<compile_context>
chip_gen: v7x
topology: tpu7x:2x2x1
jax: 0.10.0
libtpu: 0.0.40
codegen_flags: <defaults>
</compile_context>

<pallas_src>
import functools

import jax
import jax.numpy as jnp
from jax.experimental import pallas as pl
from jax.experimental.pallas import tpu as pltpu


_VMEM_LIMIT = 32 * 1024 * 1024  # actual usage ~6 MiB; safe on v5e/v6e/v7x


# ---------------------------------------------------------------------------
# Fused decoder kernel: one image per grid step.
# refs = (x, [skip, upw, P, w1s, w1u, w2, misc] * n_stages, wf, wb, out)
# ---------------------------------------------------------------------------
def _decoder_kernel(*refs, stages):
    n_stg = len(stages)
    x_ref = refs[0]
    stage_refs = [refs[1 + 7 * i: 1 + 7 * (i + 1)] for i in range(n_stg)]
    wf_ref = refs[1 + 7 * n_stg]
    wb_ref = refs[2 + 7 * n_stg]
    o_ref = refs[3 + 7 * n_stg]

    z = x_ref[0]                                   # (C0, H0*W0) bf16
    for (f, hin, win), srefs in zip(stages, stage_refs):
        (skip_ref, upw_ref, p_ref, w1s_ref, w1u_ref, w2_ref, misc_ref) = srefs
        hw_in = hin * win
        H, W = 2 * hin, 2 * win
        HW = H * W

        upb = misc_ref[:, 0:1]                     # (f,1) upconv bias
        sh1 = misc_ref[:, 1:2]                     # (f,1) folded BN shift 1
        sh2 = misc_ref[:, 2:3]                     # (f,1) folded BN shift 2

        # --- ConvTranspose2d(k=2, s=2): ONE (4F, Cin) @ (Cin, HWin) matmul.
        y4 = jnp.dot(upw_ref[...], z,
                     preferred_element_type=jnp.float32).astype(jnp.bfloat16)

        # --- 2x2 sub-pixel interleave -> (F, HW) via one-hot scatter matmuls
        # (phase p = 2*dy + dx; bias added once since scatter columns are a
        #  disjoint partition).
        acc = jnp.dot(y4[0:f], p_ref[0], preferred_element_type=jnp.float32)
        for p in range(1, 4):
            acc = acc + jnp.dot(y4[p * f:(p + 1) * f], p_ref[p],
                                preferred_element_type=jnp.float32)
        u = (acc + upb).astype(jnp.bfloat16)       # (f, HW) upsampled map

        # Horizontal boundary masks (x coordinate only; vertical boundaries
        # are handled exactly by the zero halo built inside im2col).
        xc = jax.lax.broadcasted_iota(jnp.int32, (1, HW), 1) % W
        mask_l = xc >= 1            # valid source exists for dx = -1
        mask_r = xc <= (W - 2)      # valid source exists for dx = +1

        def im2col(a, HW=HW, W=W, mask_l=mask_l, mask_r=mask_r):
            """(C, HW) -> (9C, HW) tap-major stacked operand (zero padded)."""
            cdim = a.shape[0]
            pad = jnp.zeros((cdim, W + 1), a.dtype)
            ap = jnp.concatenate([pad, a, pad], axis=1)
            taps = []
            for dy in (-1, 0, 1):
                for dx in (-1, 0, 1):
                    s = dy * W + dx
                    t = ap[:, (W + 1) + s:(W + 1) + s + HW]
                    if dx == -1:
                        t = jnp.where(mask_l, t, jnp.zeros_like(t))
                    elif dx == 1:
                        t = jnp.where(mask_r, t, jnp.zeros_like(t))
                    taps.append(t)
            return jnp.concatenate(taps, axis=0)

        skip = skip_ref[0]                          # (f, HW) bf16
        # conv1 (BN scale folded into weights): two deep-K matmuls, one per
        # channel group of torch.cat((skip, x), dim=1) -> no channel concat.
        a1 = (jnp.dot(w1s_ref[...], im2col(skip),
                      preferred_element_type=jnp.float32)
              + jnp.dot(w1u_ref[...], im2col(u),
                        preferred_element_type=jnp.float32))
        h1 = jnp.maximum(a1 + sh1, 0.0).astype(jnp.bfloat16)
        # conv2: one deep-K matmul.
        a2 = jnp.dot(w2_ref[...], im2col(h1),
                     preferred_element_type=jnp.float32)
        z = jnp.maximum(a2 + sh2, 0.0).astype(jnp.bfloat16)

    # Final 1x1 conv: (Cout, F) @ (F, HW) + b, lane-dense f32 store.
    y = jnp.dot(wf_ref[...], z, preferred_element_type=jnp.float32) + wb_ref[...]
    o_ref[0] = y.astype(o_ref.dtype)


# ---------------------------------------------------------------------------
# Host-side weight preparation helpers
# ---------------------------------------------------------------------------
def _stack3x3(w):
    """(F, C, 3, 3) -> (F, 9C), tap-major (k = 3*(dy+1) + (dx+1)), C minor."""
    f, c = w.shape[0], w.shape[1]
    return jnp.transpose(w, (0, 2, 3, 1)).reshape(f, 9 * c)


def _scatter_mats(hin, win):
    """One-hot matrices P[p] (HWin, 4*HWin): sub-pixel phase p=2*dy+dx."""
    wout = 2 * win
    hw_in, hw_out = hin * win, 4 * hin * win
    m = jnp.arange(hw_in)
    yy, xx = m // win, m % win
    mats = []
    for dy in (0, 1):
        for dx in (0, 1):
            j = (2 * yy + dy) * wout + (2 * xx + dx)
            mats.append(jax.nn.one_hot(j, hw_out, dtype=jnp.bfloat16))
    return jnp.stack(mats, axis=0)                  # (4, HWin, 4*HWin)


def _wspec(a):
    nd = a.ndim
    return pl.BlockSpec(a.shape, lambda b, _nd=nd: (0,) * _nd)


# ---------------------------------------------------------------------------
# Forward pass: single fused pallas_call over the whole decoder
# ---------------------------------------------------------------------------
def unet_decoder_forward(params, x_nchw, skip_connections_nchw, features,
                         eps=1e-5):
    n, c0, h, w = x_nchw.shape
    skips = list(skip_connections_nchw[::-1])
    cout = params["final"]["w"].shape[0]

    ops = [x_nchw.reshape(n, c0, h * w).astype(jnp.bfloat16)]
    specs = [pl.BlockSpec((1, c0, h * w), lambda b: (b, 0, 0))]

    stages = []
    hh, ww = h, w
    for i, f in enumerate(features):
        stages.append((f, hh, ww))                  # (F, Hin, Win)
        hh, ww = 2 * hh, 2 * ww
        hw = hh * ww
        # TODO(synk): bilinear resize fallback not implemented (see header).
        assert skips[i].shape == (n, f, hh, ww), (
            "skip / upsample shape mismatch is not supported by the fused "
            "kernel", skips[i].shape, (n, f, hh, ww))

        up = params["upconvs"][i]
        db = params["dec_blocks"][i]
        cin_up = up["w"].shape[0]
        # ConvTranspose2d weight (Cin, F, 2, 2) -> (4F, Cin), phase-major rows
        upw = jnp.transpose(up["w"], (2, 3, 1, 0)).reshape(4 * f, cin_up)
        pmat = _scatter_mats(stages[i][1], stages[i][2])

        # Fold BatchNorm (eval) scale into conv weights; keep only shifts.
        g1, be1, mu1, v1 = db["bn1"]
        g2, be2, mu2, v2 = db["bn2"]
        s1 = g1 / jnp.sqrt(v1 + eps)
        s2 = g2 / jnp.sqrt(v2 + eps)
        sh1 = be1 + (db["b1"] - mu1) * s1
        sh2 = be2 + (db["b2"] - mu2) * s2
        w1 = db["w1"] * s1[:, None, None, None]     # (F, 2F, 3, 3)
        w2 = db["w2"] * s2[:, None, None, None]     # (F, F, 3, 3)
        w1s = _stack3x3(w1[:, :f])                  # skip channels first
        w1u = _stack3x3(w1[:, f:])                  # then upsampled channels
        w2s = _stack3x3(w2)
        misc = jnp.stack([up["b"], sh1, sh2], axis=1).astype(jnp.float32)

        ops += [
            skips[i].reshape(n, f, hw).astype(jnp.bfloat16),
            upw.astype(jnp.bfloat16),
            pmat,
            w1s.astype(jnp.bfloat16),
            w1u.astype(jnp.bfloat16),
            w2s.astype(jnp.bfloat16),
            misc,
        ]
        specs += [
            pl.BlockSpec((1, f, hw), lambda b: (b, 0, 0)),
            _wspec(upw), _wspec(pmat), _wspec(w1s), _wspec(w1u),
            _wspec(w2s), _wspec(misc),
        ]

    wf = params["final"]["w"].reshape(cout, features[-1]).astype(jnp.bfloat16)
    wb = params["final"]["b"].reshape(cout, 1).astype(jnp.float32)
    ops += [wf, wb]
    specs += [_wspec(wf), _wspec(wb)]

    hw_out = hh * ww
    out = pl.pallas_call(
        functools.partial(_decoder_kernel, stages=tuple(stages)),
        out_shape=jax.ShapeDtypeStruct((n, cout, hw_out), jnp.float32),
        grid_spec=pltpu.PrefetchScalarGridSpec(
            num_scalar_prefetch=0,
            grid=(n,),
            in_specs=specs,
            out_specs=pl.BlockSpec((1, cout, hw_out), lambda b: (b, 0, 0)),
        ),
        compiler_params=pltpu.CompilerParams(
            dimension_semantics=("parallel",),      # batch -> megacore / 2 TCs
            vmem_limit_bytes=_VMEM_LIMIT,
        ),
    )(*ops)
    return out.reshape(n, cout, hh, ww)


# ---------------------------------------------------------------------------
# Pure-JAX float32 reference (for correctness check) and deterministic init
# ---------------------------------------------------------------------------
def reference_forward(params, x, skip_connections, features, eps=1e-5):
    skips = list(skip_connections[::-1])

    def conv_bn_relu(xx, wconv, bconv, bn):
        g, be, mu, v = bn
        y = jax.lax.conv_general_dilated(
            xx, wconv, (1, 1), ((1, 1), (1, 1)),
            dimension_numbers=("NCHW", "OIHW", "NCHW"))
        y = y + bconv[None, :, None, None]
        y = ((y - mu[None, :, None, None])
             / jnp.sqrt(v[None, :, None, None] + eps)
             * g[None, :, None, None] + be[None, :, None, None])
        return jnp.maximum(y, 0.0)

    for i, f in enumerate(features):
        up = params["upconvs"][i]
        n, _, hh, ww = x.shape
        t = jnp.einsum("ncyx,cfab->nfyaxb", x, up["w"])
        x = t.reshape(n, f, 2 * hh, 2 * ww) + up["b"][None, :, None, None]
        x = jnp.concatenate([skips[i], x], axis=1)
        db = params["dec_blocks"][i]
        x = conv_bn_relu(x, db["w1"], db["b1"], db["bn1"])
        x = conv_bn_relu(x, db["w2"], db["b2"], db["bn2"])
    fin = params["final"]
    y = jax.lax.conv_general_dilated(
        x, fin["w"], (1, 1), ((0, 0), (0, 0)),
        dimension_numbers=("NCHW", "OIHW", "NCHW"))
    return y + fin["b"][None, :, None, None]


def init_params(key, out_channels, features):
    keys = iter(jax.random.split(key, 8 * len(features) + 4))

    def rnd(shape, fan_in):
        return (jax.random.normal(next(keys), shape, jnp.float32)
                / jnp.sqrt(float(fan_in)))

    params = {"upconvs": [], "dec_blocks": []}
    for i, f in enumerate(features):
        up_cin = f if i == 0 else f * 2
        params["upconvs"].append({
            "w": rnd((up_cin, f, 2, 2), up_cin * 4),   # (Cin, Cout, 2, 2)
            "b": rnd((f,), up_cin * 4),
        })
        c_in = 2 * f
        params["dec_blocks"].append({
            "w1": rnd((f, c_in, 3, 3), c_in * 9), "b1": rnd((f,), c_in * 9),
            "bn1": (jnp.ones((f,)), jnp.zeros((f,)),
                    jnp.zeros((f,)), jnp.ones((f,))),
            "w2": rnd((f, f, 3, 3), f * 9), "b2": rnd((f,), f * 9),
            "bn2": (jnp.ones((f,)), jnp.zeros((f,)),
                    jnp.zeros((f,)), jnp.ones((f,))),
        })
    params["final"] = {
        "w": rnd((out_channels, features[-1], 1, 1), features[-1]),
        "b": rnd((out_channels,), features[-1]),
    }
    return params


# ---------------------------------------------------------------------------
if __name__ == "__main__":
    features = [32, 16, 8, 4]     # halving chain implied by the module
    out_channels = 3
    batch = 2

    key = jax.random.PRNGKey(0)
    k_x, k_skip, k_par = jax.random.split(key, 3)

    # Decoder input: (batch, features[0], 2, 2)
    x = jax.random.normal(k_x, (batch, features[0], 2, 2), jnp.float32)

    # Encoder skips (shallow -> deep); the decoder reverses them.
    rev_specs = [(features[i], 2 * (2 ** (i + 1))) for i in range(len(features))]
    skip_specs = rev_specs[::-1]
    skip_keys = jax.random.split(k_skip, len(skip_specs))
    skip_connections = [
        jax.random.normal(kk, (batch, cch, s, s), jnp.float32)
        for kk, (cch, s) in zip(skip_keys, skip_specs)
    ]

    params = init_params(k_par, out_channels, features)

    fwd = jax.jit(lambda p, xx, ss: unet_decoder_forward(p, xx, ss, features))
    out = jax.block_until_ready(fwd(params, x, skip_connections))

    expected_spatial = rev_specs[-1][1]  # 32
    assert out.shape == (batch, out_channels, expected_spatial,
                         expected_spatial), out.shape
    assert bool(jnp.all(jnp.isfinite(out)))

    # Correctness vs. float32 reference (kernel runs bf16 on the MXU with
    # f32 accumulation -> loose tolerance).
    ref = reference_forward(params, x, skip_connections, features)
    err = float(jnp.max(jnp.abs(out - ref)))
    scale = float(jnp.max(jnp.abs(ref)))
    assert err <= 0.1 * scale + 0.05, ("mismatch vs reference", err, scale)

    print("KERNEL_OK")
</pallas_src>

<mosaic_0001>
module attributes {stable_mosaic.version = 11 : i64} {
  func.func @_decoder_kernel(%arg0: i32, %arg1: memref<1x32x4xbf16, #tpu.memory_space<vmem>>, %arg2: memref<1x32x16xbf16, #tpu.memory_space<vmem>>, %arg3: memref<128x32xbf16, #tpu.memory_space<vmem>>, %arg4: memref<4x4x16xbf16, #tpu.memory_space<vmem>>, %arg5: memref<32x288xbf16, #tpu.memory_space<vmem>>, %arg6: memref<32x288xbf16, #tpu.memory_space<vmem>>, %arg7: memref<32x288xbf16, #tpu.memory_space<vmem>>, %arg8: memref<32x3xf32, #tpu.memory_space<vmem>>, %arg9: memref<1x16x64xbf16, #tpu.memory_space<vmem>>, %arg10: memref<64x32xbf16, #tpu.memory_space<vmem>>, %arg11: memref<4x16x64xbf16, #tpu.memory_space<vmem>>, %arg12: memref<16x144xbf16, #tpu.memory_space<vmem>>, %arg13: memref<16x144xbf16, #tpu.memory_space<vmem>>, %arg14: memref<16x144xbf16, #tpu.memory_space<vmem>>, %arg15: memref<16x3xf32, #tpu.memory_space<vmem>>, %arg16: memref<1x8x256xbf16, #tpu.memory_space<vmem>>, %arg17: memref<32x16xbf16, #tpu.memory_space<vmem>>, %arg18: memref<4x64x256xbf16, #tpu.memory_space<vmem>>, %arg19: memref<8x72xbf16, #tpu.memory_space<vmem>>, %arg20: memref<8x72xbf16, #tpu.memory_space<vmem>>, %arg21: memref<8x72xbf16, #tpu.memory_space<vmem>>, %arg22: memref<8x3xf32, #tpu.memory_space<vmem>>, %arg23: memref<1x4x1024xbf16, #tpu.memory_space<vmem>>, %arg24: memref<16x8xbf16, #tpu.memory_space<vmem>>, %arg25: memref<4x256x1024xbf16, #tpu.memory_space<vmem>>, %arg26: memref<4x36xbf16, #tpu.memory_space<vmem>>, %arg27: memref<4x36xbf16, #tpu.memory_space<vmem>>, %arg28: memref<4x36xbf16, #tpu.memory_space<vmem>>, %arg29: memref<4x3xf32, #tpu.memory_space<vmem>>, %arg30: memref<3x4xbf16, #tpu.memory_space<vmem>>, %arg31: memref<3x1xf32, #tpu.memory_space<vmem>>, %arg32: memref<1x3x1024xf32, #tpu.memory_space<vmem>>) attributes {dimension_semantics = [#tpu.dimension_semantics<parallel>], iteration_bounds = array<i64: 2>, scalar_prefetch = 0 : i64, scratch_operands = 0 : i64, tpu.core_type = #tpu.core_type<tc>, window_params = [{transform_indices = @transform_0, window_bounds = array<i64: 1, 32, 4>}, {transform_indices = @transform_1, window_bounds = array<i64: 1, 32, 16>}, {pipeline_mode = #tpu.pipeline_mode<synchronous>, transform_indices = @transform_2, window_bounds = array<i64: 128, 32>}, {pipeline_mode = #tpu.pipeline_mode<synchronous>, transform_indices = @transform_3, window_bounds = array<i64: 4, 4, 16>}, {pipeline_mode = #tpu.pipeline_mode<synchronous>, transform_indices = @transform_4, window_bounds = array<i64: 32, 288>}, {pipeline_mode = #tpu.pipeline_mode<synchronous>, transform_indices = @transform_5, window_bounds = array<i64: 32, 288>}, {pipeline_mode = #tpu.pipeline_mode<synchronous>, transform_indices = @transform_6, window_bounds = array<i64: 32, 288>}, {pipeline_mode = #tpu.pipeline_mode<synchronous>, transform_indices = @transform_7, window_bounds = array<i64: 32, 3>}, {transform_indices = @transform_8, window_bounds = array<i64: 1, 16, 64>}, {pipeline_mode = #tpu.pipeline_mode<synchronous>, transform_indices = @transform_9, window_bounds = array<i64: 64, 32>}, {pipeline_mode = #tpu.pipeline_mode<synchronous>, transform_indices = @transform_10, window_bounds = array<i64: 4, 16, 64>}, {pipeline_mode = #tpu.pipeline_mode<synchronous>, transform_indices = @transform_11, window_bounds = array<i64: 16, 144>}, {pipeline_mode = #tpu.pipeline_mode<synchronous>, transform_indices = @transform_12, window_bounds = array<i64: 16, 144>}, {pipeline_mode = #tpu.pipeline_mode<synchronous>, transform_indices = @transform_13, window_bounds = array<i64: 16, 144>}, {pipeline_mode = #tpu.pipeline_mode<synchronous>, transform_indices = @transform_14, window_bounds = array<i64: 16, 3>}, {transform_indices = @transform_15, window_bounds = array<i64: 1, 8, 256>}, {pipeline_mode = #tpu.pipeline_mode<synchronous>, transform_indices = @transform_16, window_bounds = array<i64: 32, 16>}, {pipeline_mode = #tpu.pipeline_mode<synchronous>, transform_indices = @transform_17, window_bounds = array<i64: 4, 64, 256>}, {pipeline_mode = #tpu.pipeline_mode<synchronous>, transform_indices = @transform_18, window_bounds = array<i64: 8, 72>}, {pipeline_mode = #tpu.pipeline_mode<synchronous>, transform_indices = @transform_19, window_bounds = array<i64: 8, 72>}, {pipeline_mode = #tpu.pipeline_mode<synchronous>, transform_indices = @transform_20, window_bounds = array<i64: 8, 72>}, {pipeline_mode = #tpu.pipeline_mode<synchronous>, transform_indices = @transform_21, window_bounds = array<i64: 8, 3>}, {transform_indices = @transform_22, window_bounds = array<i64: 1, 4, 1024>}, {pipeline_mode = #tpu.pipeline_mode<synchronous>, transform_indices = @transform_23, window_bounds = array<i64: 16, 8>}, {pipeline_mode = #tpu.pipeline_mode<synchronous>, transform_indices = @transform_24, window_bounds = array<i64: 4, 256, 1024>}, {pipeline_mode = #tpu.pipeline_mode<synchronous>, transform_indices = @transform_25, window_bounds = array<i64: 4, 36>}, {pipeline_mode = #tpu.pipeline_mode<synchronous>, transform_indices = @transform_26, window_bounds = array<i64: 4, 36>}, {pipeline_mode = #tpu.pipeline_mode<synchronous>, transform_indices = @transform_27, window_bounds = array<i64: 4, 36>}, {pipeline_mode = #tpu.pipeline_mode<synchronous>, transform_indices = @transform_28, window_bounds = array<i64: 4, 3>}, {pipeline_mode = #tpu.pipeline_mode<synchronous>, transform_indices = @transform_29, window_bounds = array<i64: 3, 4>}, {pipeline_mode = #tpu.pipeline_mode<synchronous>, transform_indices = @transform_30, window_bounds = array<i64: 3, 1>}, {transform_indices = @transform_31, window_bounds = array<i64: 1, 3, 1024>}]} {
    %c0 = arith.constant 0 : index
    %c0_0 = arith.constant 0 : index
    %c0_1 = arith.constant 0 : index
    %0 = vector.load %arg1[%c0, %c0_0, %c0_1] : memref<1x32x4xbf16, #tpu.memory_space<vmem>>, vector<1x32x4xbf16>
    %1 = vector.shape_cast %0 : vector<1x32x4xbf16> to vector<32x4xbf16>
    %c0_2 = arith.constant 0 : index
    %c0_3 = arith.constant 0 : index
    %2 = vector.load %arg8[%c0_2, %c0_3] : memref<32x3xf32, #tpu.memory_space<vmem>>, vector<32x1xf32>
    %c0_4 = arith.constant 0 : index
    %c1 = arith.constant 1 : index
    %3 = vector.load %arg8[%c0_4, %c1] : memref<32x3xf32, #tpu.memory_space<vmem>>, vector<32x1xf32>
    %c0_5 = arith.constant 0 : index
    %c2 = arith.constant 2 : index
    %4 = vector.load %arg8[%c0_5, %c2] : memref<32x3xf32, #tpu.memory_space<vmem>>, vector<32x1xf32>
    %c0_6 = arith.constant 0 : index
    %c0_7 = arith.constant 0 : index
    %5 = vector.load %arg3[%c0_6, %c0_7] : memref<128x32xbf16, #tpu.memory_space<vmem>>, vector<128x32xbf16>
    %cst = arith.constant dense<0.000000e+00> : vector<128x4xf32>
    %6 = tpu.matmul %5, %1, %cst {dimension_numbers = #tpu.dot_dimension_numbers<[1], [0], [0], [1], [0, 0, 1, 1], [], []>} : vector<128x32xbf16>, vector<32x4xbf16>, vector<128x4xf32> -> vector<128x4xf32>
    %7 = arith.truncf %6 : vector<128x4xf32> to vector<128x4xbf16>
    %8 = vector.extract_strided_slice %7 {offsets = [0, 0], sizes = [32, 4], strides = [1, 1]} : vector<128x4xbf16> to vector<32x4xbf16>
    %c0_8 = arith.constant 0 : index
    %c0_9 = arith.constant 0 : index
    %c0_10 = arith.constant 0 : index
    %9 = vector.load %arg4[%c0_8, %c0_9, %c0_10] : memref<4x4x16xbf16, #tpu.memory_space<vmem>>, vector<1x4x16xbf16>
    %10 = vector.shape_cast %9 : vector<1x4x16xbf16> to vector<4x16xbf16>
    %cst_11 = arith.constant dense<0.000000e+00> : vector<32x16xf32>
    %11 = tpu.matmul %8, %10, %cst_11 {dimension_numbers = #tpu.dot_dimension_numbers<[1], [0], [0], [1], [0, 0, 1, 1], [], []>} : vector<32x4xbf16>, vector<4x16xbf16>, vector<32x16xf32> -> vector<32x16xf32>
    %12 = vector.extract_strided_slice %7 {offsets = [32, 0], sizes = [32, 4], strides = [1, 1]} : vector<128x4xbf16> to vector<32x4xbf16>
    %c1_12 = arith.constant 1 : index
    %c0_13 = arith.constant 0 : index
    %c0_14 = arith.constant 0 : index
    %13 = vector.load %arg4[%c1_12, %c0_13, %c0_14] : memref<4x4x16xbf16, #tpu.memory_space<vmem>>, vector<1x4x16xbf16>
    %14 = vector.shape_cast %13 : vector<1x4x16xbf16> to vector<4x16xbf16>
    %cst_15 = arith.constant dense<0.000000e+00> : vector<32x16xf32>
    %15 = tpu.matmul %12, %14, %cst_15 {dimension_numbers = #tpu.dot_dimension_numbers<[1], [0], [0], [1], [0, 0, 1, 1], [], []>} : vector<32x4xbf16>, vector<4x16xbf16>, vector<32x16xf32> -> vector<32x16xf32>
    %16 = arith.addf %11, %15 : vector<32x16xf32>
    %17 = vector.extract_strided_slice %7 {offsets = [64, 0], sizes = [32, 4], strides = [1, 1]} : vector<128x4xbf16> to vector<32x4xbf16>
    %c2_16 = arith.constant 2 : index
    %c0_17 = arith.constant 0 : index
    %c0_18 = arith.constant 0 : index
    %18 = vector.load %arg4[%c2_16, %c0_17, %c0_18] : memref<4x4x16xbf16, #tpu.memory_space<vmem>>, vector<1x4x16xbf16>
    %19 = vector.shape_cast %18 : vector<1x4x16xbf16> to vector<4x16xbf16>
    %cst_19 = arith.constant dense<0.000000e+00> : vector<32x16xf32>
    %20 = tpu.matmul %17, %19, %cst_19 {dimension_numbers = #tpu.dot_dimension_numbers<[1], [0], [0], [1], [0, 0, 1, 1], [], []>} : vector<32x4xbf16>, vector<4x16xbf16>, vector<32x16xf32> -> vector<32x16xf32>
    %21 = arith.addf %16, %20 : vector<32x16xf32>
    %22 = vector.extract_strided_slice %7 {offsets = [96, 0], sizes = [32, 4], strides = [1, 1]} : vector<128x4xbf16> to vector<32x4xbf16>
    %c3 = arith.constant 3 : index
    %c0_20 = arith.constant 0 : index
    %c0_21 = arith.constant 0 : index
    %23 = vector.load %arg4[%c3, %c0_20, %c0_21] : memref<4x4x16xbf16, #tpu.memory_space<vmem>>, vector<1x4x16xbf16>
    %24 = vector.shape_cast %23 : vector<1x4x16xbf16> to vector<4x16xbf16>
    %cst_22 = arith.constant dense<0.000000e+00> : vector<32x16xf32>
    %25 = tpu.matmul %22, %24, %cst_22 {dimension_numbers = #tpu.dot_dimension_numbers<[1], [0], [0], [1], [0, 0, 1, 1], [], []>} : vector<32x4xbf16>, vector<4x16xbf16>, vector<32x16xf32> -> vector<32x16xf32>
    %26 = arith.addf %21, %25 : vector<32x16xf32>
    %27 = vector.broadcast %2 : vector<32x1xf32> to vector<32x16xf32>
    %28 = arith.addf %26, %27 : vector<32x16xf32>
    %29 = arith.truncf %28 : vector<32x16xf32> to vector<32x16xbf16>
    %30 = tpu.iota {dimensions = array<i32: 1>} : vector<1x16xi32>
    %c4_i32 = arith.constant 4 : i32
    %c0_i32 = arith.constant 0 : i32
    %31 = arith.cmpi eq, %c4_i32, %c0_i32 : i32
    %c1_i32 = arith.constant 1 : i32
    %32 = arith.select %31, %c1_i32, %c4_i32 : i32
    %33 = vector.broadcast %32 : i32 to vector<1x16xi32>
    %34 = arith.remsi %30, %33 : vector<1x16xi32>
    %c0_i32_23 = arith.constant 0 : i32
    %35 = vector.broadcast %c0_i32_23 : i32 to vector<1x16xi32>
    %36 = arith.cmpi ne, %34, %35 : vector<1x16xi32>
    %c0_i32_24 = arith.constant 0 : i32
    %37 = vector.broadcast %c0_i32_24 : i32 to vector<1x16xi32>
    %38 = arith.cmpi slt, %34, %37 : vector<1x16xi32>
    %c0_i32_25 = arith.constant 0 : i32
    %39 = arith.cmpi slt, %32, %c0_i32_25 : i32
    %40 = vector.broadcast %39 : i1 to vector<1x16xi1>
    %41 = vector.broadcast %40 : vector<1x16xi1> to vector<1x16xi1>
    %42 = arith.xori %38, %41 : vector<1x16xi1>
    %43 = arith.andi %42, %36 : vector<1x16xi1>
    %44 = vector.broadcast %32 : i32 to vector<1x16xi32>
    %45 = arith.addi %34, %44 : vector<1x16xi32>
    %46 = arith.select %43, %45, %34 : vector<1x16xi1>, vector<1x16xi32>
    %c1_i32_26 = arith.constant 1 : i32
    %47 = vector.broadcast %c1_i32_26 : i32 to vector<1x16xi32>
    %48 = arith.cmpi sge, %46, %47 : vector<1x16xi32>
    %c2_i32 = arith.constant 2 : i32
    %49 = vector.broadcast %c2_i32 : i32 to vector<1x16xi32>
    %50 = arith.cmpi sle, %46, %49 : vector<1x16xi32>
    %c0_27 = arith.constant 0 : index
    %c0_28 = arith.constant 0 : index
    %c0_29 = arith.constant 0 : index
    %51 = vector.load %arg2[%c0_27, %c0_28, %c0_29] : memref<1x32x16xbf16, #tpu.memory_space<vmem>>, vector<1x32x16xbf16>
    %52 = vector.shape_cast %51 : vector<1x32x16xbf16> to vector<32x16xbf16>
    %c0_30 = arith.constant 0 : index
    %c0_31 = arith.constant 0 : index
    %53 = vector.load %arg5[%c0_30, %c0_31] : memref<32x288xbf16, #tpu.memory_space<vmem>>, vector<32x288xbf16>
    %cst_32 = arith.constant 0.000000e+00 : bf16
    %54 = vector.broadcast %cst_32 : bf16 to vector<32x5xbf16>
    %55 = tpu.concatenate %54, %52, %54 in 1 : vector<32x5xbf16>, vector<32x16xbf16>, vector<32x5xbf16> -> vector<32x26xbf16>
    %56 = vector.extract_strided_slice %55 {offsets = [0, 0], sizes = [32, 16], strides = [1, 1]} : vector<32x26xbf16> to vector<32x16xbf16>
    %cst_33 = arith.constant 0.000000e+00 : bf16
    %57 = vector.broadcast %cst_33 : bf16 to vector<32x16xbf16>
    %58 = vector.shape_cast %48 : vector<1x16xi1> to vector<1x16xi1>
    %59 = vector.broadcast %58 : vector<1x16xi1> to vector<32x16xi1>
    %60 = arith.select %59, %56, %57 : vector<32x16xi1>, vector<32x16xbf16>
    %61 = vector.extract_strided_slice %55 {offsets = [0, 1], sizes = [32, 16], strides = [1, 1]} : vector<32x26xbf16> to vector<32x16xbf16>
    %62 = vector.extract_strided_slice %55 {offsets = [0, 2], sizes = [32, 16], strides = [1, 1]} : vector<32x26xbf16> to vector<32x16xbf16>
    %cst_34 = arith.constant 0.000000e+00 : bf16
    %63 = vector.broadcast %cst_34 : bf16 to vector<32x16xbf16>
    %64 = vector.shape_cast %50 : vector<1x16xi1> to vector<1x16xi1>
    %65 = vector.broadcast %64 : vector<1x16xi1> to vector<32x16xi1>
    %66 = arith.select %65, %62, %63 : vector<32x16xi1>, vector<32x16xbf16>
    %67 = vector.extract_strided_slice %55 {offsets = [0, 4], sizes = [32, 16], strides = [1, 1]} : vector<32x26xbf16> to vector<32x16xbf16>
    %cst_35 = arith.constant 0.000000e+00 : bf16
    %68 = vector.broadcast %cst_35 : bf16 to vector<32x16xbf16>
    %69 = vector.shape_cast %48 : vector<1x16xi1> to vector<1x16xi1>
    %70 = vector.broadcast %69 : vector<1x16xi1> to vector<32x16xi1>
    %71 = arith.select %70, %67, %68 : vector<32x16xi1>, vector<32x16xbf16>
    %72 = vector.extract_strided_slice %55 {offsets = [0, 5], sizes = [32, 16], strides = [1, 1]} : vector<32x26xbf16> to vector<32x16xbf16>
    %73 = vector.extract_strided_slice %55 {offsets = [0, 6], sizes = [32, 16], strides = [1, 1]} : vector<32x26xbf16> to vector<32x16xbf16>
    %cst_36 = arith.constant 0.000000e+00 : bf16
    %74 = vector.broadcast %cst_36 : bf16 to vector<32x16xbf16>
    %75 = vector.shape_cast %50 : vector<1x16xi1> to vector<1x16xi1>
    %76 = vector.broadcast %75 : vector<1x16xi1> to vector<32x16xi1>
    %77 = arith.select %76, %73, %74 : vector<32x16xi1>, vector<32x16xbf16>
    %78 = vector.extract_strided_slice %55 {offsets = [0, 8], sizes = [32, 16], strides = [1, 1]} : vector<32x26xbf16> to vector<32x16xbf16>
    %cst_37 = arith.constant 0.000000e+00 : bf16
    %79 = vector.broadcast %cst_37 : bf16 to vector<32x16xbf16>
    %80 = vector.shape_cast %48 : vector<1x16xi1> to vector<1x16xi1>
    %81 = vector.broadcast %80 : vector<1x16xi1> to vector<32x16xi1>
    %82 = arith.select %81, %78, %79 : vector<32x16xi1>, vector<32x16xbf16>
    %83 = vector.extract_strided_slice %55 {offsets = [0, 9], sizes = [32, 16], strides = [1, 1]} : vector<32x26xbf16> to vector<32x16xbf16>
    %84 = vector.extract_strided_slice %55 {offsets = [0, 10], sizes = [32, 16], strides = [1, 1]} : vector<32x26xbf16> to vector<32x16xbf16>
    %cst_38 = arith.constant 0.000000e+00 : bf16
    %85 = vector.broadcast %cst_38 : bf16 to vector<32x16xbf16>
    %86 = vector.shape_cast %50 : vector<1x16xi1> to vector<1x16xi1>
    %87 = vector.broadcast %86 : vector<1x16xi1> to vector<32x16xi1>
    %88 = arith.select %87, %84, %85 : vector<32x16xi1>, vector<32x16xbf16>
    %89 = tpu.concatenate %60, %61, %66, %71, %72, %77, %82, %83, %88 in 0 : vector<32x16xbf16>, vector<32x16xbf16>, vector<32x16xbf16>, vector<32x16xbf16>, vector<32x16xbf16>, vector<32x16xbf16>, vector<32x16xbf16>, vector<32x16xbf16>, vector<32x16xbf16> -> vector<288x16xbf16>
    %cst_39 = arith.constant dense<0.000000e+00> : vector<32x16xf32>
    %90 = tpu.matmul %53, %89, %cst_39 {dimension_numbers = #tpu.dot_dimension_numbers<[1], [0], [0], [1], [0, 0, 1, 1], [], []>} : vector<32x288xbf16>, vector<288x16xbf16>, vector<32x16xf32> -> vector<32x16xf32>
    %c0_40 = arith.constant 0 : index
    %c0_41 = arith.constant 0 : index
    %91 = vector.load %arg6[%c0_40, %c0_41] : memref<32x288xbf16, #tpu.memory_space<vmem>>, vector<32x288xbf16>
    %cst_42 = arith.constant 0.000000e+00 : bf16
    %92 = vector.broadcast %cst_42 : bf16 to vector<32x5xbf16>
    %93 = tpu.concatenate %92, %29, %92 in 1 : vector<32x5xbf16>, vector<32x16xbf16>, vector<32x5xbf16> -> vector<32x26xbf16>
    %94 = vector.extract_strided_slice %93 {offsets = [0, 0], sizes = [32, 16], strides = [1, 1]} : vector<32x26xbf16> to vector<32x16xbf16>
    %cst_43 = arith.constant 0.000000e+00 : bf16
    %95 = vector.broadcast %cst_43 : bf16 to vector<32x16xbf16>
    %96 = vector.shape_cast %48 : vector<1x16xi1> to vector<1x16xi1>
    %97 = vector.broadcast %96 : vector<1x16xi1> to vector<32x16xi1>
    %98 = arith.select %97, %94, %95 : vector<32x16xi1>, vector<32x16xbf16>
    %99 = vector.extract_strided_slice %93 {offsets = [0, 1], sizes = [32, 16], strides = [1, 1]} : vector<32x26xbf16> to vector<32x16xbf16>
    %100 = vector.extract_strided_slice %93 {offsets = [0, 2], sizes = [32, 16], strides = [1, 1]} : vector<32x26xbf16> to vector<32x16xbf16>
    %cst_44 = arith.constant 0.000000e+00 : bf16
    %101 = vector.broadcast %cst_44 : bf16 to vector<32x16xbf16>
    %102 = vector.shape_cast %50 : vector<1x16xi1> to vector<1x16xi1>
    %103 = vector.broadcast %102 : vector<1x16xi1> to vector<32x16xi1>
    %104 = arith.select %103, %100, %101 : vector<32x16xi1>, vector<32x16xbf16>
    %105 = vector.extract_strided_slice %93 {offsets = [0, 4], sizes = [32, 16], strides = [1, 1]} : vector<32x26xbf16> to vector<32x16xbf16>
    %cst_45 = arith.constant 0.000000e+00 : bf16
    %106 = vector.broadcast %cst_45 : bf16 to vector<32x16xbf16>
    %107 = vector.shape_cast %48 : vector<1x16xi1> to vector<1x16xi1>
    %108 = vector.broadcast %107 : vector<1x16xi1> to vector<32x16xi1>
    %109 = arith.select %108, %105, %106 : vector<32x16xi1>, vector<32x16xbf16>
    %110 = vector.extract_strided_slice %93 {offsets = [0, 5], sizes = [32, 16], strides = [1, 1]} : vector<32x26xbf16> to vector<32x16xbf16>
    %111 = vector.extract_strided_slice %93 {offsets = [0, 6], sizes = [32, 16], strides = [1, 1]} : vector<32x26xbf16> to vector<32x16xbf16>
    %cst_46 = arith.constant 0.000000e+00 : bf16
    %112 = vector.broadcast %cst_46 : bf16 to vector<32x16xbf16>
    %113 = vector.shape_cast %50 : vector<1x16xi1> to vector<1x16xi1>
    %114 = vector.broadcast %113 : vector<1x16xi1> to vector<32x16xi1>
    %115 = arith.select %114, %111, %112 : vector<32x16xi1>, vector<32x16xbf16>
    %116 = vector.extract_strided_slice %93 {offsets = [0, 8], sizes = [32, 16], strides = [1, 1]} : vector<32x26xbf16> to vector<32x16xbf16>
    %cst_47 = arith.constant 0.000000e+00 : bf16
    %117 = vector.broadcast %cst_47 : bf16 to vector<32x16xbf16>
    %118 = vector.shape_cast %48 : vector<1x16xi1> to vector<1x16xi1>
    %119 = vector.broadcast %118 : vector<1x16xi1> to vector<32x16xi1>
    %120 = arith.select %119, %116, %117 : vector<32x16xi1>, vector<32x16xbf16>
    %121 = vector.extract_strided_slice %93 {offsets = [0, 9], sizes = [32, 16], strides = [1, 1]} : vector<32x26xbf16> to vector<32x16xbf16>
    %122 = vector.extract_strided_slice %93 {offsets = [0, 10], sizes = [32, 16], strides = [1, 1]} : vector<32x26xbf16> to vector<32x16xbf16>
    %cst_48 = arith.constant 0.000000e+00 : bf16
    %123 = vector.broadcast %cst_48 : bf16 to vector<32x16xbf16>
    %124 = vector.shape_cast %50 : vector<1x16xi1> to vector<1x16xi1>
    %125 = vector.broadcast %124 : vector<1x16xi1> to vector<32x16xi1>
    %126 = arith.select %125, %122, %123 : vector<32x16xi1>, vector<32x16xbf16>
    %127 = tpu.concatenate %98, %99, %104, %109, %110, %115, %120, %121, %126 in 0 : vector<32x16xbf16>, vector<32x16xbf16>, vector<32x16xbf16>, vector<32x16xbf16>, vector<32x16xbf16>, vector<32x16xbf16>, vector<32x16xbf16>, vector<32x16xbf16>, vector<32x16xbf16> -> vector<288x16xbf16>
    %cst_49 = arith.constant dense<0.000000e+00> : vector<32x16xf32>
    %128 = tpu.matmul %91, %127, %cst_49 {dimension_numbers = #tpu.dot_dimension_numbers<[1], [0], [0], [1], [0, 0, 1, 1], [], []>} : vector<32x288xbf16>, vector<288x16xbf16>, vector<32x16xf32> -> vector<32x16xf32>
    %129 = arith.addf %90, %128 : vector<32x16xf32>
    %130 = vector.broadcast %3 : vector<32x1xf32> to vector<32x16xf32>
    %131 = arith.addf %129, %130 : vector<32x16xf32>
    %cst_50 = arith.constant 0.000000e+00 : f32
    %132 = vector.broadcast %cst_50 : f32 to vector<32x16xf32>
    %133 = arith.maximumf %131, %132 : vector<32x16xf32>
    %134 = arith.truncf %133 : vector<32x16xf32> to vector<32x16xbf16>
    %c0_51 = arith.constant 0 : index
    %c0_52 = arith.constant 0 : index
    %135 = vector.load %arg7[%c0_51, %c0_52] : memref<32x288xbf16, #tpu.memory_space<vmem>>, vector<32x288xbf16>
    %cst_53 = arith.constant 0.000000e+00 : bf16
    %136 = vector.broadcast %cst_53 : bf16 to vector<32x5xbf16>
    %137 = tpu.concatenate %136, %134, %136 in 1 : vector<32x5xbf16>, vector<32x16xbf16>, vector<32x5xbf16> -> vector<32x26xbf16>
    %138 = vector.extract_strided_slice %137 {offsets = [0, 0], sizes = [32, 16], strides = [1, 1]} : vector<32x26xbf16> to vector<32x16xbf16>
    %cst_54 = arith.constant 0.000000e+00 : bf16
    %139 = vector.broadcast %cst_54 : bf16 to vector<32x16xbf16>
    %140 = vector.shape_cast %48 : vector<1x16xi1> to vector<1x16xi1>
    %141 = vector.broadcast %140 : vector<1x16xi1> to vector<32x16xi1>
    %142 = arith.select %141, %138, %139 : vector<32x16xi1>, vector<32x16xbf16>
    %143 = vector.extract_strided_slice %137 {offsets = [0, 1], sizes = [32, 16], strides = [1, 1]} : vector<32x26xbf16> to vector<32x16xbf16>
    %144 = vector.extract_strided_slice %137 {offsets = [0, 2], sizes = [32, 16], strides = [1, 1]} : vector<32x26xbf16> to vector<32x16xbf16>
    %cst_55 = arith.constant 0.000000e+00 : bf16
    %145 = vector.broadcast %cst_55 : bf16 to vector<32x16xbf16>
    %146 = vector.shape_cast %50 : vector<1x16xi1> to vector<1x16xi1>
    %147 = vector.broadcast %146 : vector<1x16xi1> to vector<32x16xi1>
    %148 = arith.select %147, %144, %145 : vector<32x16xi1>, vector<32x16xbf16>
    %149 = vector.extract_strided_slice %137 {offsets = [0, 4], sizes = [32, 16], strides = [1, 1]} : vector<32x26xbf16> to vector<32x16xbf16>
    %cst_56 = arith.constant 0.000000e+00 : bf16
    %150 = vector.broadcast %cst_56 : bf16 to vector<32x16xbf16>
    %151 = vector.shape_cast %48 : vector<1x16xi1> to vector<1x16xi1>
    %152 = vector.broadcast %151 : vector<1x16xi1> to vector<32x16xi1>
    %153 = arith.select %152, %149, %150 : vector<32x16xi1>, vector<32x16xbf16>
    %154 = vector.extract_strided_slice %137 {offsets = [0, 5], sizes = [32, 16], strides = [1, 1]} : vector<32x26xbf16> to vector<32x16xbf16>
    %155 = vector.extract_strided_slice %137 {offsets = [0, 6], sizes = [32, 16], strides = [1, 1]} : vector<32x26xbf16> to vector<32x16xbf16>
    %cst_57 = arith.constant 0.000000e+00 : bf16
    %156 = vector.broadcast %cst_57 : bf16 to vector<32x16xbf16>
    %157 = vector.shape_cast %50 : vector<1x16xi1> to vector<1x16xi1>
    %158 = vector.broadcast %157 : vector<1x16xi1> to vector<32x16xi1>
    %159 = arith.select %158, %155, %156 : vector<32x16xi1>, vector<32x16xbf16>
    %160 = vector.extract_strided_slice %137 {offsets = [0, 8], sizes = [32, 16], strides = [1, 1]} : vector<32x26xbf16> to vector<32x16xbf16>
    %cst_58 = arith.constant 0.000000e+00 : bf16
    %161 = vector.broadcast %cst_58 : bf16 to vector<32x16xbf16>
    %162 = vector.shape_cast %48 : vector<1x16xi1> to vector<1x16xi1>
    %163 = vector.broadcast %162 : vector<1x16xi1> to vector<32x16xi1>
    %164 = arith.select %163, %160, %161 : vector<32x16xi1>, vector<32x16xbf16>
    %165 = vector.extract_strided_slice %137 {offsets = [0, 9], sizes = [32, 16], strides = [1, 1]} : vector<32x26xbf16> to vector<32x16xbf16>
    %166 = vector.extract_strided_slice %137 {offsets = [0, 10], sizes = [32, 16], strides = [1, 1]} : vector<32x26xbf16> to vector<32x16xbf16>
    %cst_59 = arith.constant 0.000000e+00 : bf16
    %167 = vector.broadcast %cst_59 : bf16 to vector<32x16xbf16>
    %168 = vector.shape_cast %50 : vector<1x16xi1> to vector<1x16xi1>
    %169 = vector.broadcast %168 : vector<1x16xi1> to vector<32x16xi1>
    %170 = arith.select %169, %166, %167 : vector<32x16xi1>, vector<32x16xbf16>
    %171 = tpu.concatenate %142, %143, %148, %153, %154, %159, %164, %165, %170 in 0 : vector<32x16xbf16>, vector<32x16xbf16>, vector<32x16xbf16>, vector<32x16xbf16>, vector<32x16xbf16>, vector<32x16xbf16>, vector<32x16xbf16>, vector<32x16xbf16>, vector<32x16xbf16> -> vector<288x16xbf16>
    %cst_60 = arith.constant dense<0.000000e+00> : vector<32x16xf32>
    %172 = tpu.matmul %135, %171, %cst_60 {dimension_numbers = #tpu.dot_dimension_numbers<[1], [0], [0], [1], [0, 0, 1, 1], [], []>} : vector<32x288xbf16>, vector<288x16xbf16>, vector<32x16xf32> -> vector<32x16xf32>
    %173 = vector.broadcast %4 : vector<32x1xf32> to vector<32x16xf32>
    %174 = arith.addf %172, %173 : vector<32x16xf32>
    %cst_61 = arith.constant 0.000000e+00 : f32
    %175 = vector.broadcast %cst_61 : f32 to vector<32x16xf32>
    %176 = arith.maximumf %174, %175 : vector<32x16xf32>
    %177 = arith.truncf %176 : vector<32x16xf32> to vector<32x16xbf16>
    %c0_62 = arith.constant 0 : index
    %c0_63 = arith.constant 0 : index
    %178 = vector.load %arg15[%c0_62, %c0_63] : memref<16x3xf32, #tpu.memory_space<vmem>>, vector<16x1xf32>
    %c0_64 = arith.constant 0 : index
    %c1_65 = arith.constant 1 : index
    %179 = vector.load %arg15[%c0_64, %c1_65] : memref<16x3xf32, #tpu.memory_space<vmem>>, vector<16x1xf32>
    %c0_66 = arith.constant 0 : index
    %c2_67 = arith.constant 2 : index
    %180 = vector.load %arg15[%c0_66, %c2_67] : memref<16x3xf32, #tpu.memory_space<vmem>>, vector<16x1xf32>
    %c0_68 = arith.constant 0 : index
    %c0_69 = arith.constant 0 : index
    %181 = vector.load %arg10[%c0_68, %c0_69] : memref<64x32xbf16, #tpu.memory_space<vmem>>, vector<64x32xbf16>
    %cst_70 = arith.constant dense<0.000000e+00> : vector<64x16xf32>
    %182 = tpu.matmul %181, %177, %cst_70 {dimension_numbers = #tpu.dot_dimension_numbers<[1], [0], [0], [1], [0, 0, 1, 1], [], []>} : vector<64x32xbf16>, vector<32x16xbf16>, vector<64x16xf32> -> vector<64x16xf32>
    %183 = arith.truncf %182 : vector<64x16xf32> to vector<64x16xbf16>
    %184 = vector.extract_strided_slice %183 {offsets = [0, 0], sizes = [16, 16], strides = [1, 1]} : vector<64x16xbf16> to vector<16x16xbf16>
    %c0_71 = arith.constant 0 : index
    %c0_72 = arith.constant 0 : index
    %c0_73 = arith.constant 0 : index
    %185 = vector.load %arg11[%c0_71, %c0_72, %c0_73] : memref<4x16x64xbf16, #tpu.memory_space<vmem>>, vector<1x16x64xbf16>
    %186 = vector.shape_cast %185 : vector<1x16x64xbf16> to vector<16x64xbf16>
    %cst_74 = arith.constant dense<0.000000e+00> : vector<16x64xf32>
    %187 = tpu.matmul %184, %186, %cst_74 {dimension_numbers = #tpu.dot_dimension_numbers<[1], [0], [0], [1], [0, 0, 1, 1], [], []>} : vector<16x16xbf16>, vector<16x64xbf16>, vector<16x64xf32> -> vector<16x64xf32>
    %188 = vector.extract_strided_slice %183 {offsets = [16, 0], sizes = [16, 16], strides = [1, 1]} : vector<64x16xbf16> to vector<16x16xbf16>
    %c1_75 = arith.constant 1 : index
    %c0_76 = arith.constant 0 : index
    %c0_77 = arith.constant 0 : index
    %189 = vector.load %arg11[%c1_75, %c0_76, %c0_77] : memref<4x16x64xbf16, #tpu.memory_space<vmem>>, vector<1x16x64xbf16>
    %190 = vector.shape_cast %189 : vector<1x16x64xbf16> to vector<16x64xbf16>
    %cst_78 = arith.constant dense<0.000000e+00> : vector<16x64xf32>
    %191 = tpu.matmul %188, %190, %cst_78 {dimension_numbers = #tpu.dot_dimension_numbers<[1], [0], [0], [1], [0, 0, 1, 1], [], []>} : vector<16x16xbf16>, vector<16x64xbf16>, vector<16x64xf32> -> vector<16x64xf32>
    %192 = arith.addf %187, %191 : vector<16x64xf32>
    %193 = vector.extract_strided_slice %183 {offsets = [32, 0], sizes = [16, 16], strides = [1, 1]} : vector<64x16xbf16> to vector<16x16xbf16>
    %c2_79 = arith.constant 2 : index
    %c0_80 = arith.constant 0 : index
    %c0_81 = arith.constant 0 : index
    %194 = vector.load %arg11[%c2_79, %c0_80, %c0_81] : memref<4x16x64xbf16, #tpu.memory_space<vmem>>, vector<1x16x64xbf16>
    %195 = vector.shape_cast %194 : vector<1x16x64xbf16> to vector<16x64xbf16>
    %cst_82 = arith.constant dense<0.000000e+00> : vector<16x64xf32>
    %196 = tpu.matmul %193, %195, %cst_82 {dimension_numbers = #tpu.dot_dimension_numbers<[1], [0], [0], [1], [0, 0, 1, 1], [], []>} : vector<16x16xbf16>, vector<16x64xbf16>, vector<16x64xf32> -> vector<16x64xf32>
    %197 = arith.addf %192, %196 : vector<16x64xf32>
    %198 = vector.extract_strided_slice %183 {offsets = [48, 0], sizes = [16, 16], strides = [1, 1]} : vector<64x16xbf16> to vector<16x16xbf16>
    %c3_83 = arith.constant 3 : index
    %c0_84 = arith.constant 0 : index
    %c0_85 = arith.constant 0 : index
    %199 = vector.load %arg11[%c3_83, %c0_84, %c0_85] : memref<4x16x64xbf16, #tpu.memory_space<vmem>>, vector<1x16x64xbf16>
    %200 = vector.shape_cast %199 : vector<1x16x64xbf16> to vector<16x64xbf16>
    %cst_86 = arith.constant dense<0.000000e+00> : vector<16x64xf32>
    %201 = tpu.matmul %198, %200, %cst_86 {dimension_numbers = #tpu.dot_dimension_numbers<[1], [0], [0], [1], [0, 0, 1, 1], [], []>} : vector<16x16xbf16>, vector<16x64xbf16>, vector<16x64xf32> -> vector<16x64xf32>
    %202 = arith.addf %197, %201 : vector<16x64xf32>
    %203 = vector.broadcast %178 : vector<16x1xf32> to vector<16x64xf32>
    %204 = arith.addf %202, %203 : vector<16x64xf32>
    %205 = arith.truncf %204 : vector<16x64xf32> to vector<16x64xbf16>
    %206 = tpu.iota {dimensions = array<i32: 1>} : vector<1x64xi32>
    %c8_i32 = arith.constant 8 : i32
    %c0_i32_87 = arith.constant 0 : i32
    %207 = arith.cmpi eq, %c8_i32, %c0_i32_87 : i32
    %c1_i32_88 = arith.constant 1 : i32
    %208 = arith.select %207, %c1_i32_88, %c8_i32 : i32
    %209 = vector.broadcast %208 : i32 to vector<1x64xi32>
    %210 = arith.remsi %206, %209 : vector<1x64xi32>
    %c0_i32_89 = arith.constant 0 : i32
    %211 = vector.broadcast %c0_i32_89 : i32 to vector<1x64xi32>
    %212 = arith.cmpi ne, %210, %211 : vector<1x64xi32>
    %c0_i32_90 = arith.constant 0 : i32
    %213 = vector.broadcast %c0_i32_90 : i32 to vector<1x64xi32>
    %214 = arith.cmpi slt, %210, %213 : vector<1x64xi32>
    %c0_i32_91 = arith.constant 0 : i32
    %215 = arith.cmpi slt, %208, %c0_i32_91 : i32
    %216 = vector.broadcast %215 : i1 to vector<1x64xi1>
    %217 = vector.broadcast %216 : vector<1x64xi1> to vector<1x64xi1>
    %218 = arith.xori %214, %217 : vector<1x64xi1>
    %219 = arith.andi %218, %212 : vector<1x64xi1>
    %220 = vector.broadcast %208 : i32 to vector<1x64xi32>
    %221 = arith.addi %210, %220 : vector<1x64xi32>
    %222 = arith.select %219, %221, %210 : vector<1x64xi1>, vector<1x64xi32>
    %c1_i32_92 = arith.constant 1 : i32
    %223 = vector.broadcast %c1_i32_92 : i32 to vector<1x64xi32>
    %224 = arith.cmpi sge, %222, %223 : vector<1x64xi32>
    %c6_i32 = arith.constant 6 : i32
    %225 = vector.broadcast %c6_i32 : i32 to vector<1x64xi32>
    %226 = arith.cmpi sle, %222, %225 : vector<1x64xi32>
    %c0_93 = arith.constant 0 : index
    %c0_94 = arith.constant 0 : index
    %c0_95 = arith.constant 0 : index
    %227 = vector.load %arg9[%c0_93, %c0_94, %c0_95] : memref<1x16x64xbf16, #tpu.memory_space<vmem>>, vector<1x16x64xbf16>
    %228 = vector.shape_cast %227 : vector<1x16x64xbf16> to vector<16x64xbf16>
    %c0_96 = arith.constant 0 : index
    %c0_97 = arith.constant 0 : index
    %229 = vector.load %arg12[%c0_96, %c0_97] : memref<16x144xbf16, #tpu.memory_space<vmem>>, vector<16x144xbf16>
    %cst_98 = arith.constant 0.000000e+00 : bf16
    %230 = vector.broadcast %cst_98 : bf16 to vector<16x9xbf16>
    %231 = tpu.concatenate %230, %228, %230 in 1 : vector<16x9xbf16>, vector<16x64xbf16>, vector<16x9xbf16> -> vector<16x82xbf16>
    %232 = vector.extract_strided_slice %231 {offsets = [0, 0], sizes = [16, 64], strides = [1, 1]} : vector<16x82xbf16> to vector<16x64xbf16>
    %cst_99 = arith.constant 0.000000e+00 : bf16
    %233 = vector.broadcast %cst_99 : bf16 to vector<16x64xbf16>
    %234 = vector.shape_cast %224 : vector<1x64xi1> to vector<1x64xi1>
    %235 = vector.broadcast %234 : vector<1x64xi1> to vector<16x64xi1>
    %236 = arith.select %235, %232, %233 : vector<16x64xi1>, vector<16x64xbf16>
    %237 = vector.extract_strided_slice %231 {offsets = [0, 1], sizes = [16, 64], strides = [1, 1]} : vector<16x82xbf16> to vector<16x64xbf16>
    %238 = vector.extract_strided_slice %231 {offsets = [0, 2], sizes = [16, 64], strides = [1, 1]} : vector<16x82xbf16> to vector<16x64xbf16>
    %cst_100 = arith.constant 0.000000e+00 : bf16
    %239 = vector.broadcast %cst_100 : bf16 to vector<16x64xbf16>
    %240 = vector.shape_cast %226 : vector<1x64xi1> to vector<1x64xi1>
    %241 = vector.broadcast %240 : vector<1x64xi1> to vector<16x64xi1>
    %242 = arith.select %241, %238, %239 : vector<16x64xi1>, vector<16x64xbf16>
    %243 = vector.extract_strided_slice %231 {offsets = [0, 8], sizes = [16, 64], strides = [1, 1]} : vector<16x82xbf16> to vector<16x64xbf16>
    %cst_101 = arith.constant 0.000000e+00 : bf16
    %244 = vector.broadcast %cst_101 : bf16 to vector<16x64xbf16>
    %245 = vector.shape_cast %224 : vector<1x64xi1> to vector<1x64xi1>
    %246 = vector.broadcast %245 : vector<1x64xi1> to vector<16x64xi1>
    %247 = arith.select %246, %243, %244 : vector<16x64xi1>, vector<16x64xbf16>
    %248 = vector.extract_strided_slice %231 {offsets = [0, 9], sizes = [16, 64], strides = [1, 1]} : vector<16x82xbf16> to vector<16x64xbf16>
    %249 = vector.extract_strided_slice %231 {offsets = [0, 10], sizes = [16, 64], strides = [1, 1]} : vector<16x82xbf16> to vector<16x64xbf16>
    %cst_102 = arith.constant 0.000000e+00 : bf16
    %250 = vector.broadcast %cst_102 : bf16 to vector<16x64xbf16>
    %251 = vector.shape_cast %226 : vector<1x64xi1> to vector<1x64xi1>
    %252 = vector.broadcast %251 : vector<1x64xi1> to vector<16x64xi1>
    %253 = arith.select %252, %249, %250 : vector<16x64xi1>, vector<16x64xbf16>
    %254 = vector.extract_strided_slice %231 {offsets = [0, 16], sizes = [16, 64], strides = [1, 1]} : vector<16x82xbf16> to vector<16x64xbf16>
    %cst_103 = arith.constant 0.000000e+00 : bf16
    %255 = vector.broadcast %cst_103 : bf16 to vector<16x64xbf16>
    %256 = vector.shape_cast %224 : vector<1x64xi1> to vector<1x64xi1>
    %257 = vector.broadcast %256 : vector<1x64xi1> to vector<16x64xi1>
    %258 = arith.select %257, %254, %255 : vector<16x64xi1>, vector<16x64xbf16>
    %259 = vector.extract_strided_slice %231 {offsets = [0, 17], sizes = [16, 64], strides = [1, 1]} : vector<16x82xbf16> to vector<16x64xbf16>
    %260 = vector.extract_strided_slice %231 {offsets = [0, 18], sizes = [16, 64], strides = [1, 1]} : vector<16x82xbf16> to vector<16x64xbf16>
    %cst_104 = arith.constant 0.000000e+00 : bf16
    %261 = vector.broadcast %cst_104 : bf16 to vector<16x64xbf16>
    %262 = vector.shape_cast %226 : vector<1x64xi1> to vector<1x64xi1>
    %263 = vector.broadcast %262 : vector<1x64xi1> to vector<16x64xi1>
    %264 = arith.select %263, %260, %261 : vector<16x64xi1>, vector<16x64xbf16>
    %265 = tpu.concatenate %236, %237, %242, %247, %248, %253, %258, %259, %264 in 0 : vector<16x64xbf16>, vector<16x64xbf16>, vector<16x64xbf16>, vector<16x64xbf16>, vector<16x64xbf16>, vector<16x64xbf16>, vector<16x64xbf16>, vector<16x64xbf16>, vector<16x64xbf16> -> vector<144x64xbf16>
    %cst_105 = arith.constant dense<0.000000e+00> : vector<16x64xf32>
    %266 = tpu.matmul %229, %265, %cst_105 {dimension_numbers = #tpu.dot_dimension_numbers<[1], [0], [0], [1], [0, 0, 1, 1], [], []>} : vector<16x144xbf16>, vector<144x64xbf16>, vector<16x64xf32> -> vector<16x64xf32>
    %c0_106 = arith.constant 0 : index
    %c0_107 = arith.constant 0 : index
    %267 = vector.load %arg13[%c0_106, %c0_107] : memref<16x144xbf16, #tpu.memory_space<vmem>>, vector<16x144xbf16>
    %cst_108 = arith.constant 0.000000e+00 : bf16
    %268 = vector.broadcast %cst_108 : bf16 to vector<16x9xbf16>
    %269 = tpu.concatenate %268, %205, %268 in 1 : vector<16x9xbf16>, vector<16x64xbf16>, vector<16x9xbf16> -> vector<16x82xbf16>
    %270 = vector.extract_strided_slice %269 {offsets = [0, 0], sizes = [16, 64], strides = [1, 1]} : vector<16x82xbf16> to vector<16x64xbf16>
    %cst_109 = arith.constant 0.000000e+00 : bf16
    %271 = vector.broadcast %cst_109 : bf16 to vector<16x64xbf16>
    %272 = vector.shape_cast %224 : vector<1x64xi1> to vector<1x64xi1>
    %273 = vector.broadcast %272 : vector<1x64xi1> to vector<16x64xi1>
    %274 = arith.select %273, %270, %271 : vector<16x64xi1>, vector<16x64xbf16>
    %275 = vector.extract_strided_slice %269 {offsets = [0, 1], sizes = [16, 64], strides = [1, 1]} : vector<16x82xbf16> to vector<16x64xbf16>
    %276 = vector.extract_strided_slice %269 {offsets = [0, 2], sizes = [16, 64], strides = [1, 1]} : vector<16x82xbf16> to vector<16x64xbf16>
    %cst_110 = arith.constant 0.000000e+00 : bf16
    %277 = vector.broadcast %cst_110 : bf16 to vector<16x64xbf16>
    %278 = vector.shape_cast %226 : vector<1x64xi1> to vector<1x64xi1>
    %279 = vector.broadcast %278 : vector<1x64xi1> to vector<16x64xi1>
    %280 = arith.select %279, %276, %277 : vector<16x64xi1>, vector<16x64xbf16>
    %281 = vector.extract_strided_slice %269 {offsets = [0, 8], sizes = [16, 64], strides = [1, 1]} : vector<16x82xbf16> to vector<16x64xbf16>
    %cst_111 = arith.constant 0.000000e+00 : bf16
    %282 = vector.broadcast %cst_111 : bf16 to vector<16x64xbf16>
    %283 = vector.shape_cast %224 : vector<1x64xi1> to vector<1x64xi1>
    %284 = vector.broadcast %283 : vector<1x64xi1> to vector<16x64xi1>
    %285 = arith.select %284, %281, %282 : vector<16x64xi1>, vector<16x64xbf16>
    %286 = vector.extract_strided_slice %269 {offsets = [0, 9], sizes = [16, 64], strides = [1, 1]} : vector<16x82xbf16> to vector<16x64xbf16>
    %287 = vector.extract_strided_slice %269 {offsets = [0, 10], sizes = [16, 64], strides = [1, 1]} : vector<16x82xbf16> to vector<16x64xbf16>
    %cst_112 = arith.constant 0.000000e+00 : bf16
    %288 = vector.broadcast %cst_112 : bf16 to vector<16x64xbf16>
    %289 = vector.shape_cast %226 : vector<1x64xi1> to vector<1x64xi1>
    %290 = vector.broadcast %289 : vector<1x64xi1> to vector<16x64xi1>
    %291 = arith.select %290, %287, %288 : vector<16x64xi1>, vector<16x64xbf16>
    %292 = vector.extract_strided_slice %269 {offsets = [0, 16], sizes = [16, 64], strides = [1, 1]} : vector<16x82xbf16> to vector<16x64xbf16>
    %cst_113 = arith.constant 0.000000e+00 : bf16
    %293 = vector.broadcast %cst_113 : bf16 to vector<16x64xbf16>
    %294 = vector.shape_cast %224 : vector<1x64xi1> to vector<1x64xi1>
    %295 = vector.broadcast %294 : vector<1x64xi1> to vector<16x64xi1>
    %296 = arith.select %295, %292, %293 : vector<16x64xi1>, vector<16x64xbf16>
    %297 = vector.extract_strided_slice %269 {offsets = [0, 17], sizes = [16, 64], strides = [1, 1]} : vector<16x82xbf16> to vector<16x64xbf16>
    %298 = vector.extract_strided_slice %269 {offsets = [0, 18], sizes = [16, 64], strides = [1, 1]} : vector<16x82xbf16> to vector<16x64xbf16>
    %cst_114 = arith.constant 0.000000e+00 : bf16
    %299 = vector.broadcast %cst_114 : bf16 to vector<16x64xbf16>
    %300 = vector.shape_cast %226 : vector<1x64xi1> to vector<1x64xi1>
    %301 = vector.broadcast %300 : vector<1x64xi1> to vector<16x64xi1>
    %302 = arith.select %301, %298, %299 : vector<16x64xi1>, vector<16x64xbf16>
    %303 = tpu.concatenate %274, %275, %280, %285, %286, %291, %296, %297, %302 in 0 : vector<16x64xbf16>, vector<16x64xbf16>, vector<16x64xbf16>, vector<16x64xbf16>, vector<16x64xbf16>, vector<16x64xbf16>, vector<16x64xbf16>, vector<16x64xbf16>, vector<16x64xbf16> -> vector<144x64xbf16>
    %cst_115 = arith.constant dense<0.000000e+00> : vector<16x64xf32>
    %304 = tpu.matmul %267, %303, %cst_115 {dimension_numbers = #tpu.dot_dimension_numbers<[1], [0], [0], [1], [0, 0, 1, 1], [], []>} : vector<16x144xbf16>, vector<144x64xbf16>, vector<16x64xf32> -> vector<16x64xf32>
    %305 = arith.addf %266, %304 : vector<16x64xf32>
    %306 = vector.broadcast %179 : vector<16x1xf32> to vector<16x64xf32>
    %307 = arith.addf %305, %306 : vector<16x64xf32>
    %cst_116 = arith.constant 0.000000e+00 : f32
    %308 = vector.broadcast %cst_116 : f32 to vector<16x64xf32>
    %309 = arith.maximumf %307, %308 : vector<16x64xf32>
    %310 = arith.truncf %309 : vector<16x64xf32> to vector<16x64xbf16>
    %c0_117 = arith.constant 0 : index
    %c0_118 = arith.constant 0 : index
    %311 = vector.load %arg14[%c0_117, %c0_118] : memref<16x144xbf16, #tpu.memory_space<vmem>>, vector<16x144xbf16>
    %cst_119 = arith.constant 0.000000e+00 : bf16
    %312 = vector.broadcast %cst_119 : bf16 to vector<16x9xbf16>
    %313 = tpu.concatenate %312, %310, %312 in 1 : vector<16x9xbf16>, vector<16x64xbf16>, vector<16x9xbf16> -> vector<16x82xbf16>
    %314 = vector.extract_strided_slice %313 {offsets = [0, 0], sizes = [16, 64], strides = [1, 1]} : vector<16x82xbf16> to vector<16x64xbf16>
    %cst_120 = arith.constant 0.000000e+00 : bf16
    %315 = vector.broadcast %cst_120 : bf16 to vector<16x64xbf16>
    %316 = vector.shape_cast %224 : vector<1x64xi1> to vector<1x64xi1>
    %317 = vector.broadcast %316 : vector<1x64xi1> to vector<16x64xi1>
    %318 = arith.select %317, %314, %315 : vector<16x64xi1>, vector<16x64xbf16>
    %319 = vector.extract_strided_slice %313 {offsets = [0, 1], sizes = [16, 64], strides = [1, 1]} : vector<16x82xbf16> to vector<16x64xbf16>
    %320 = vector.extract_strided_slice %313 {offsets = [0, 2], sizes = [16, 64], strides = [1, 1]} : vector<16x82xbf16> to vector<16x64xbf16>
    %cst_121 = arith.constant 0.000000e+00 : bf16
    %321 = vector.broadcast %cst_121 : bf16 to vector<16x64xbf16>
    %322 = vector.shape_cast %226 : vector<1x64xi1> to vector<1x64xi1>
    %323 = vector.broadcast %322 : vector<1x64xi1> to vector<16x64xi1>
    %324 = arith.select %323, %320, %321 : vector<16x64xi1>, vector<16x64xbf16>
    %325 = vector.extract_strided_slice %313 {offsets = [0, 8], sizes = [16, 64], strides = [1, 1]} : vector<16x82xbf16> to vector<16x64xbf16>
    %cst_122 = arith.constant 0.000000e+00 : bf16
    %326 = vector.broadcast %cst_122 : bf16 to vector<16x64xbf16>
    %327 = vector.shape_cast %224 : vector<1x64xi1> to vector<1x64xi1>
    %328 = vector.broadcast %327 : vector<1x64xi1> to vector<16x64xi1>
    %329 = arith.select %328, %325, %326 : vector<16x64xi1>, vector<16x64xbf16>
    %330 = vector.extract_strided_slice %313 {offsets = [0, 9], sizes = [16, 64], strides = [1, 1]} : vector<16x82xbf16> to vector<16x64xbf16>
    %331 = vector.extract_strided_slice %313 {offsets = [0, 10], sizes = [16, 64], strides = [1, 1]} : vector<16x82xbf16> to vector<16x64xbf16>
    %cst_123 = arith.constant 0.000000e+00 : bf16
    %332 = vector.broadcast %cst_123 : bf16 to vector<16x64xbf16>
    %333 = vector.shape_cast %226 : vector<1x64xi1> to vector<1x64xi1>
    %334 = vector.broadcast %333 : vector<1x64xi1> to vector<16x64xi1>
    %335 = arith.select %334, %331, %332 : vector<16x64xi1>, vector<16x64xbf16>
    %336 = vector.extract_strided_slice %313 {offsets = [0, 16], sizes = [16, 64], strides = [1, 1]} : vector<16x82xbf16> to vector<16x64xbf16>
    %cst_124 = arith.constant 0.000000e+00 : bf16
    %337 = vector.broadcast %cst_124 : bf16 to vector<16x64xbf16>
    %338 = vector.shape_cast %224 : vector<1x64xi1> to vector<1x64xi1>
    %339 = vector.broadcast %338 : vector<1x64xi1> to vector<16x64xi1>
    %340 = arith.select %339, %336, %337 : vector<16x64xi1>, vector<16x64xbf16>
    %341 = vector.extract_strided_slice %313 {offsets = [0, 17], sizes = [16, 64], strides = [1, 1]} : vector<16x82xbf16> to vector<16x64xbf16>
    %342 = vector.extract_strided_slice %313 {offsets = [0, 18], sizes = [16, 64], strides = [1, 1]} : vector<16x82xbf16> to vector<16x64xbf16>
    %cst_125 = arith.constant 0.000000e+00 : bf16
    %343 = vector.broadcast %cst_125 : bf16 to vector<16x64xbf16>
    %344 = vector.shape_cast %226 : vector<1x64xi1> to vector<1x64xi1>
    %345 = vector.broadcast %344 : vector<1x64xi1> to vector<16x64xi1>
    %346 = arith.select %345, %342, %343 : vector<16x64xi1>, vector<16x64xbf16>
    %347 = tpu.concatenate %318, %319, %324, %329, %330, %335, %340, %341, %346 in 0 : vector<16x64xbf16>, vector<16x64xbf16>, vector<16x64xbf16>, vector<16x64xbf16>, vector<16x64xbf16>, vector<16x64xbf16>, vector<16x64xbf16>, vector<16x64xbf16>, vector<16x64xbf16> -> vector<144x64xbf16>
    %cst_126 = arith.constant dense<0.000000e+00> : vector<16x64xf32>
    %348 = tpu.matmul %311, %347, %cst_126 {dimension_numbers = #tpu.dot_dimension_numbers<[1], [0], [0], [1], [0, 0, 1, 1], [], []>} : vector<16x144xbf16>, vector<144x64xbf16>, vector<16x64xf32> -> vector<16x64xf32>
    %349 = vector.broadcast %180 : vector<16x1xf32> to vector<16x64xf32>
    %350 = arith.addf %348, %349 : vector<16x64xf32>
    %cst_127 = arith.constant 0.000000e+00 : f32
    %351 = vector.broadcast %cst_127 : f32 to vector<16x64xf32>
    %352 = arith.maximumf %350, %351 : vector<16x64xf32>
    %353 = arith.truncf %352 : vector<16x64xf32> to vector<16x64xbf16>
    %c0_128 = arith.constant 0 : index
    %c0_129 = arith.constant 0 : index
    %354 = vector.load %arg22[%c0_128, %c0_129] : memref<8x3xf32, #tpu.memory_space<vmem>>, vector<8x1xf32>
    %c0_130 = arith.constant 0 : index
    %c1_131 = arith.constant 1 : index
    %355 = vector.load %arg22[%c0_130, %c1_131] : memref<8x3xf32, #tpu.memory_space<vmem>>, vector<8x1xf32>
    %c0_132 = arith.constant 0 : index
    %c2_133 = arith.constant 2 : index
    %356 = vector.load %arg22[%c0_132, %c2_133] : memref<8x3xf32, #tpu.memory_space<vmem>>, vector<8x1xf32>
    %c0_134 = arith.constant 0 : index
    %c0_135 = arith.constant 0 : index
    %357 = vector.load %arg17[%c0_134, %c0_135] : memref<32x16xbf16, #tpu.memory_space<vmem>>, vector<32x16xbf16>
    %cst_136 = arith.constant dense<0.000000e+00> : vector<32x64xf32>
    %358 = tpu.matmul %357, %353, %cst_136 {dimension_numbers = #tpu.dot_dimension_numbers<[1], [0], [0], [1], [0, 0, 1, 1], [], []>} : vector<32x16xbf16>, vector<16x64xbf16>, vector<32x64xf32> -> vector<32x64xf32>
    %359 = arith.truncf %358 : vector<32x64xf32> to vector<32x64xbf16>
    %360 = vector.extract_strided_slice %359 {offsets = [0, 0], sizes = [8, 64], strides = [1, 1]} : vector<32x64xbf16> to vector<8x64xbf16>
    %c0_137 = arith.constant 0 : index
    %c0_138 = arith.constant 0 : index
    %c0_139 = arith.constant 0 : index
    %361 = vector.load %arg18[%c0_137, %c0_138, %c0_139] : memref<4x64x256xbf16, #tpu.memory_space<vmem>>, vector<1x64x256xbf16>
    %362 = vector.shape_cast %361 : vector<1x64x256xbf16> to vector<64x256xbf16>
    %cst_140 = arith.constant dense<0.000000e+00> : vector<8x256xf32>
    %363 = tpu.matmul %360, %362, %cst_140 {dimension_numbers = #tpu.dot_dimension_numbers<[1], [0], [0], [1], [0, 0, 1, 1], [], []>} : vector<8x64xbf16>, vector<64x256xbf16>, vector<8x256xf32> -> vector<8x256xf32>
    %364 = vector.extract_strided_slice %359 {offsets = [8, 0], sizes = [8, 64], strides = [1, 1]} : vector<32x64xbf16> to vector<8x64xbf16>
    %c1_141 = arith.constant 1 : index
    %c0_142 = arith.constant 0 : index
    %c0_143 = arith.constant 0 : index
    %365 = vector.load %arg18[%c1_141, %c0_142, %c0_143] : memref<4x64x256xbf16, #tpu.memory_space<vmem>>, vector<1x64x256xbf16>
    %366 = vector.shape_cast %365 : vector<1x64x256xbf16> to vector<64x256xbf16>
    %cst_144 = arith.constant dense<0.000000e+00> : vector<8x256xf32>
    %367 = tpu.matmul %364, %366, %cst_144 {dimension_numbers = #tpu.dot_dimension_numbers<[1], [0], [0], [1], [0, 0, 1, 1], [], []>} : vector<8x64xbf16>, vector<64x256xbf16>, vector<8x256xf32> -> vector<8x256xf32>
    %368 = arith.addf %363, %367 : vector<8x256xf32>
    %369 = vector.extract_strided_slice %359 {offsets = [16, 0], sizes = [8, 64], strides = [1, 1]} : vector<32x64xbf16> to vector<8x64xbf16>
    %c2_145 = arith.constant 2 : index
    %c0_146 = arith.constant 0 : index
    %c0_147 = arith.constant 0 : index
    %370 = vector.load %arg18[%c2_145, %c0_146, %c0_147] : memref<4x64x256xbf16, #tpu.memory_space<vmem>>, vector<1x64x256xbf16>
    %371 = vector.shape_cast %370 : vector<1x64x256xbf16> to vector<64x256xbf16>
    %cst_148 = arith.constant dense<0.000000e+00> : vector<8x256xf32>
    %372 = tpu.matmul %369, %371, %cst_148 {dimension_numbers = #tpu.dot_dimension_numbers<[1], [0], [0], [1], [0, 0, 1, 1], [], []>} : vector<8x64xbf16>, vector<64x256xbf16>, vector<8x256xf32> -> vector<8x256xf32>
    %373 = arith.addf %368, %372 : vector<8x256xf32>
    %374 = vector.extract_strided_slice %359 {offsets = [24, 0], sizes = [8, 64], strides = [1, 1]} : vector<32x64xbf16> to vector<8x64xbf16>
    %c3_149 = arith.constant 3 : index
    %c0_150 = arith.constant 0 : index
    %c0_151 = arith.constant 0 : index
    %375 = vector.load %arg18[%c3_149, %c0_150, %c0_151] : memref<4x64x256xbf16, #tpu.memory_space<vmem>>, vector<1x64x256xbf16>
    %376 = vector.shape_cast %375 : vector<1x64x256xbf16> to vector<64x256xbf16>
    %cst_152 = arith.constant dense<0.000000e+00> : vector<8x256xf32>
    %377 = tpu.matmul %374, %376, %cst_152 {dimension_numbers = #tpu.dot_dimension_numbers<[1], [0], [0], [1], [0, 0, 1, 1], [], []>} : vector<8x64xbf16>, vector<64x256xbf16>, vector<8x256xf32> -> vector<8x256xf32>
    %378 = arith.addf %373, %377 : vector<8x256xf32>
    %379 = vector.broadcast %354 : vector<8x1xf32> to vector<8x256xf32>
    %380 = arith.addf %378, %379 : vector<8x256xf32>
    %381 = arith.truncf %380 : vector<8x256xf32> to vector<8x256xbf16>
    %382 = tpu.iota {dimensions = array<i32: 1>} : vector<1x256xi32>
    %c16_i32 = arith.constant 16 : i32
    %c0_i32_153 = arith.constant 0 : i32
    %383 = arith.cmpi eq, %c16_i32, %c0_i32_153 : i32
    %c1_i32_154 = arith.constant 1 : i32
    %384 = arith.select %383, %c1_i32_154, %c16_i32 : i32
    %385 = vector.broadcast %384 : i32 to vector<1x256xi32>
    %386 = arith.remsi %382, %385 : vector<1x256xi32>
    %c0_i32_155 = arith.constant 0 : i32
    %387 = vector.broadcast %c0_i32_155 : i32 to vector<1x256xi32>
    %388 = arith.cmpi ne, %386, %387 : vector<1x256xi32>
    %c0_i32_156 = arith.constant 0 : i32
    %389 = vector.broadcast %c0_i32_156 : i32 to vector<1x256xi32>
    %390 = arith.cmpi slt, %386, %389 : vector<1x256xi32>
    %c0_i32_157 = arith.constant 0 : i32
    %391 = arith.cmpi slt, %384, %c0_i32_157 : i32
    %392 = vector.broadcast %391 : i1 to vector<1x256xi1>
    %393 = vector.broadcast %392 : vector<1x256xi1> to vector<1x256xi1>
    %394 = arith.xori %390, %393 : vector<1x256xi1>
    %395 = arith.andi %394, %388 : vector<1x256xi1>
    %396 = vector.broadcast %384 : i32 to vector<1x256xi32>
    %397 = arith.addi %386, %396 : vector<1x256xi32>
    %398 = arith.select %395, %397, %386 : vector<1x256xi1>, vector<1x256xi32>
    %c1_i32_158 = arith.constant 1 : i32
    %399 = vector.broadcast %c1_i32_158 : i32 to vector<1x256xi32>
    %400 = arith.cmpi sge, %398, %399 : vector<1x256xi32>
    %c14_i32 = arith.constant 14 : i32
    %401 = vector.broadcast %c14_i32 : i32 to vector<1x256xi32>
    %402 = arith.cmpi sle, %398, %401 : vector<1x256xi32>
    %c0_159 = arith.constant 0 : index
    %c0_160 = arith.constant 0 : index
    %c0_161 = arith.constant 0 : index
    %403 = vector.load %arg16[%c0_159, %c0_160, %c0_161] : memref<1x8x256xbf16, #tpu.memory_space<vmem>>, vector<1x8x256xbf16>
    %404 = vector.shape_cast %403 : vector<1x8x256xbf16> to vector<8x256xbf16>
    %c0_162 = arith.constant 0 : index
    %c0_163 = arith.constant 0 : index
    %405 = vector.load %arg19[%c0_162, %c0_163] : memref<8x72xbf16, #tpu.memory_space<vmem>>, vector<8x72xbf16>
    %cst_164 = arith.constant 0.000000e+00 : bf16
    %406 = vector.broadcast %cst_164 : bf16 to vector<8x17xbf16>
    %407 = tpu.concatenate %406, %404, %406 in 1 : vector<8x17xbf16>, vector<8x256xbf16>, vector<8x17xbf16> -> vector<8x290xbf16>
    %408 = vector.extract_strided_slice %407 {offsets = [0, 0], sizes = [8, 256], strides = [1, 1]} : vector<8x290xbf16> to vector<8x256xbf16>
    %cst_165 = arith.constant 0.000000e+00 : bf16
    %409 = vector.broadcast %cst_165 : bf16 to vector<8x256xbf16>
    %410 = vector.shape_cast %400 : vector<1x256xi1> to vector<1x256xi1>
    %411 = vector.broadcast %410 : vector<1x256xi1> to vector<8x256xi1>
    %412 = arith.select %411, %408, %409 : vector<8x256xi1>, vector<8x256xbf16>
    %413 = vector.extract_strided_slice %407 {offsets = [0, 1], sizes = [8, 256], strides = [1, 1]} : vector<8x290xbf16> to vector<8x256xbf16>
    %414 = vector.extract_strided_slice %407 {offsets = [0, 2], sizes = [8, 256], strides = [1, 1]} : vector<8x290xbf16> to vector<8x256xbf16>
    %cst_166 = arith.constant 0.000000e+00 : bf16
    %415 = vector.broadcast %cst_166 : bf16 to vector<8x256xbf16>
    %416 = vector.shape_cast %402 : vector<1x256xi1> to vector<1x256xi1>
    %417 = vector.broadcast %416 : vector<1x256xi1> to vector<8x256xi1>
    %418 = arith.select %417, %414, %415 : vector<8x256xi1>, vector<8x256xbf16>
    %419 = vector.extract_strided_slice %407 {offsets = [0, 16], sizes = [8, 256], strides = [1, 1]} : vector<8x290xbf16> to vector<8x256xbf16>
    %cst_167 = arith.constant 0.000000e+00 : bf16
    %420 = vector.broadcast %cst_167 : bf16 to vector<8x256xbf16>
    %421 = vector.shape_cast %400 : vector<1x256xi1> to vector<1x256xi1>
    %422 = vector.broadcast %421 : vector<1x256xi1> to vector<8x256xi1>
    %423 = arith.select %422, %419, %420 : vector<8x256xi1>, vector<8x256xbf16>
    %424 = vector.extract_strided_slice %407 {offsets = [0, 17], sizes = [8, 256], strides = [1, 1]} : vector<8x290xbf16> to vector<8x256xbf16>
    %425 = vector.extract_strided_slice %407 {offsets = [0, 18], sizes = [8, 256], strides = [1, 1]} : vector<8x290xbf16> to vector<8x256xbf16>
    %cst_168 = arith.constant 0.000000e+00 : bf16
    %426 = vector.broadcast %cst_168 : bf16 to vector<8x256xbf16>
    %427 = vector.shape_cast %402 : vector<1x256xi1> to vector<1x256xi1>
    %428 = vector.broadcast %427 : vector<1x256xi1> to vector<8x256xi1>
    %429 = arith.select %428, %425, %426 : vector<8x256xi1>, vector<8x256xbf16>
    %430 = vector.extract_strided_slice %407 {offsets = [0, 32], sizes = [8, 256], strides = [1, 1]} : vector<8x290xbf16> to vector<8x256xbf16>
    %cst_169 = arith.constant 0.000000e+00 : bf16
    %431 = vector.broadcast %cst_169 : bf16 to vector<8x256xbf16>
    %432 = vector.shape_cast %400 : vector<1x256xi1> to vector<1x256xi1>
    %433 = vector.broadcast %432 : vector<1x256xi1> to vector<8x256xi1>
    %434 = arith.select %433, %430, %431 : vector<8x256xi1>, vector<8x256xbf16>
    %435 = vector.extract_strided_slice %407 {offsets = [0, 33], sizes = [8, 256], strides = [1, 1]} : vector<8x290xbf16> to vector<8x256xbf16>
    %436 = vector.extract_strided_slice %407 {offsets = [0, 34], sizes = [8, 256], strides = [1, 1]} : vector<8x290xbf16> to vector<8x256xbf16>
    %cst_170 = arith.constant 0.000000e+00 : bf16
    %437 = vector.broadcast %cst_170 : bf16 to vector<8x256xbf16>
    %438 = vector.shape_cast %402 : vector<1x256xi1> to vector<1x256xi1>
    %439 = vector.broadcast %438 : vector<1x256xi1> to vector<8x256xi1>
    %440 = arith.select %439, %436, %437 : vector<8x256xi1>, vector<8x256xbf16>
    %441 = tpu.concatenate %412, %413, %418, %423, %424, %429, %434, %435, %440 in 0 : vector<8x256xbf16>, vector<8x256xbf16>, vector<8x256xbf16>, vector<8x256xbf16>, vector<8x256xbf16>, vector<8x256xbf16>, vector<8x256xbf16>, vector<8x256xbf16>, vector<8x256xbf16> -> vector<72x256xbf16>
    %cst_171 = arith.constant dense<0.000000e+00> : vector<8x256xf32>
    %442 = tpu.matmul %405, %441, %cst_171 {dimension_numbers = #tpu.dot_dimension_numbers<[1], [0], [0], [1], [0, 0, 1, 1], [], []>} : vector<8x72xbf16>, vector<72x256xbf16>, vector<8x256xf32> -> vector<8x256xf32>
    %c0_172 = arith.constant 0 : index
    %c0_173 = arith.constant 0 : index
    %443 = vector.load %arg20[%c0_172, %c0_173] : memref<8x72xbf16, #tpu.memory_space<vmem>>, vector<8x72xbf16>
    %cst_174 = arith.constant 0.000000e+00 : bf16
    %444 = vector.broadcast %cst_174 : bf16 to vector<8x17xbf16>
    %445 = tpu.concatenate %444, %381, %444 in 1 : vector<8x17xbf16>, vector<8x256xbf16>, vector<8x17xbf16> -> vector<8x290xbf16>
    %446 = vector.extract_strided_slice %445 {offsets = [0, 0], sizes = [8, 256], strides = [1, 1]} : vector<8x290xbf16> to vector<8x256xbf16>
    %cst_175 = arith.constant 0.000000e+00 : bf16
    %447 = vector.broadcast %cst_175 : bf16 to vector<8x256xbf16>
    %448 = vector.shape_cast %400 : vector<1x256xi1> to vector<1x256xi1>
    %449 = vector.broadcast %448 : vector<1x256xi1> to vector<8x256xi1>
    %450 = arith.select %449, %446, %447 : vector<8x256xi1>, vector<8x256xbf16>
    %451 = vector.extract_strided_slice %445 {offsets = [0, 1], sizes = [8, 256], strides = [1, 1]} : vector<8x290xbf16> to vector<8x256xbf16>
    %452 = vector.extract_strided_slice %445 {offsets = [0, 2], sizes = [8, 256], strides = [1, 1]} : vector<8x290xbf16> to vector<8x256xbf16>
    %cst_176 = arith.constant 0.000000e+00 : bf16
    %453 = vector.broadcast %cst_176 : bf16 to vector<8x256xbf16>
    %454 = vector.shape_cast %402 : vector<1x256xi1> to vector<1x256xi1>
    %455 = vector.broadcast %454 : vector<1x256xi1> to vector<8x256xi1>
    %456 = arith.select %455, %452, %453 : vector<8x256xi1>, vector<8x256xbf16>
    %457 = vector.extract_strided_slice %445 {offsets = [0, 16], sizes = [8, 256], strides = [1, 1]} : vector<8x290xbf16> to vector<8x256xbf16>
    %cst_177 = arith.constant 0.000000e+00 : bf16
    %458 = vector.broadcast %cst_177 : bf16 to vector<8x256xbf16>
    %459 = vector.shape_cast %400 : vector<1x256xi1> to vector<1x256xi1>
    %460 = vector.broadcast %459 : vector<1x256xi1> to vector<8x256xi1>
    %461 = arith.select %460, %457, %458 : vector<8x256xi1>, vector<8x256xbf16>
    %462 = vector.extract_strided_slice %445 {offsets = [0, 17], sizes = [8, 256], strides = [1, 1]} : vector<8x290xbf16> to vector<8x256xbf16>
    %463 = vector.extract_strided_slice %445 {offsets = [0, 18], sizes = [8, 256], strides = [1, 1]} : vector<8x290xbf16> to vector<8x256xbf16>
    %cst_178 = arith.constant 0.000000e+00 : bf16
    %464 = vector.broadcast %cst_178 : bf16 to vector<8x256xbf16>
    %465 = vector.shape_cast %402 : vector<1x256xi1> to vector<1x256xi1>
    %466 = vector.broadcast %465 : vector<1x256xi1> to vector<8x256xi1>
    %467 = arith.select %466, %463, %464 : vector<8x256xi1>, vector<8x256xbf16>
    %468 = vector.extract_strided_slice %445 {offsets = [0, 32], sizes = [8, 256], strides = [1, 1]} : vector<8x290xbf16> to vector<8x256xbf16>
    %cst_179 = arith.constant 0.000000e+00 : bf16
    %469 = vector.broadcast %cst_179 : bf16 to vector<8x256xbf16>
    %470 = vector.shape_cast %400 : vector<1x256xi1> to vector<1x256xi1>
    %471 = vector.broadcast %470 : vector<1x256xi1> to vector<8x256xi1>
    %472 = arith.select %471, %468, %469 : vector<8x256xi1>, vector<8x256xbf16>
    %473 = vector.extract_strided_slice %445 {offsets = [0, 33], sizes = [8, 256], strides = [1, 1]} : vector<8x290xbf16> to vector<8x256xbf16>
    %474 = vector.extract_strided_slice %445 {offsets = [0, 34], sizes = [8, 256], strides = [1, 1]} : vector<8x290xbf16> to vector<8x256xbf16>
    %cst_180 = arith.constant 0.000000e+00 : bf16
    %475 = vector.broadcast %cst_180 : bf16 to vector<8x256xbf16>
    %476 = vector.shape_cast %402 : vector<1x256xi1> to vector<1x256xi1>
    %477 = vector.broadcast %476 : vector<1x256xi1> to vector<8x256xi1>
    %478 = arith.select %477, %474, %475 : vector<8x256xi1>, vector<8x256xbf16>
    %479 = tpu.concatenate %450, %451, %456, %461, %462, %467, %472, %473, %478 in 0 : vector<8x256xbf16>, vector<8x256xbf16>, vector<8x256xbf16>, vector<8x256xbf16>, vector<8x256xbf16>, vector<8x256xbf16>, vector<8x256xbf16>, vector<8x256xbf16>, vector<8x256xbf16> -> vector<72x256xbf16>
    %cst_181 = arith.constant dense<0.000000e+00> : vector<8x256xf32>
    %480 = tpu.matmul %443, %479, %cst_181 {dimension_numbers = #tpu.dot_dimension_numbers<[1], [0], [0], [1], [0, 0, 1, 1], [], []>} : vector<8x72xbf16>, vector<72x256xbf16>, vector<8x256xf32> -> vector<8x256xf32>
    %481 = arith.addf %442, %480 : vector<8x256xf32>
    %482 = vector.broadcast %355 : vector<8x1xf32> to vector<8x256xf32>
    %483 = arith.addf %481, %482 : vector<8x256xf32>
    %cst_182 = arith.constant 0.000000e+00 : f32
    %484 = vector.broadcast %cst_182 : f32 to vector<8x256xf32>
    %485 = arith.maximumf %483, %484 : vector<8x256xf32>
    %486 = arith.truncf %485 : vector<8x256xf32> to vector<8x256xbf16>
    %c0_183 = arith.constant 0 : index
    %c0_184 = arith.constant 0 : index
    %487 = vector.load %arg21[%c0_183, %c0_184] : memref<8x72xbf16, #tpu.memory_space<vmem>>, vector<8x72xbf16>
    %cst_185 = arith.constant 0.000000e+00 : bf16
    %488 = vector.broadcast %cst_185 : bf16 to vector<8x17xbf16>
    %489 = tpu.concatenate %488, %486, %488 in 1 : vector<8x17xbf16>, vector<8x256xbf16>, vector<8x17xbf16> -> vector<8x290xbf16>
    %490 = vector.extract_strided_slice %489 {offsets = [0, 0], sizes = [8, 256], strides = [1, 1]} : vector<8x290xbf16> to vector<8x256xbf16>
    %cst_186 = arith.constant 0.000000e+00 : bf16
    %491 = vector.broadcast %cst_186 : bf16 to vector<8x256xbf16>
    %492 = vector.shape_cast %400 : vector<1x256xi1> to vector<1x256xi1>
    %493 = vector.broadcast %492 : vector<1x256xi1> to vector<8x256xi1>
    %494 = arith.select %493, %490, %491 : vector<8x256xi1>, vector<8x256xbf16>
    %495 = vector.extract_strided_slice %489 {offsets = [0, 1], sizes = [8, 256], strides = [1, 1]} : vector<8x290xbf16> to vector<8x256xbf16>
    %496 = vector.extract_strided_slice %489 {offsets = [0, 2], sizes = [8, 256], strides = [1, 1]} : vector<8x290xbf16> to vector<8x256xbf16>
    %cst_187 = arith.constant 0.000000e+00 : bf16
    %497 = vector.broadcast %cst_187 : bf16 to vector<8x256xbf16>
    %498 = vector.shape_cast %402 : vector<1x256xi1> to vector<1x256xi1>
    %499 = vector.broadcast %498 : vector<1x256xi1> to vector<8x256xi1>
    %500 = arith.select %499, %496, %497 : vector<8x256xi1>, vector<8x256xbf16>
    %501 = vector.extract_strided_slice %489 {offsets = [0, 16], sizes = [8, 256], strides = [1, 1]} : vector<8x290xbf16> to vector<8x256xbf16>
    %cst_188 = arith.constant 0.000000e+00 : bf16
    %502 = vector.broadcast %cst_188 : bf16 to vector<8x256xbf16>
    %503 = vector.shape_cast %400 : vector<1x256xi1> to vector<1x256xi1>
    %504 = vector.broadcast %503 : vector<1x256xi1> to vector<8x256xi1>
    %505 = arith.select %504, %501, %502 : vector<8x256xi1>, vector<8x256xbf16>
    %506 = vector.extract_strided_slice %489 {offsets = [0, 17], sizes = [8, 256], strides = [1, 1]} : vector<8x290xbf16> to vector<8x256xbf16>
    %507 = vector.extract_strided_slice %489 {offsets = [0, 18], sizes = [8, 256], strides = [1, 1]} : vector<8x290xbf16> to vector<8x256xbf16>
    %cst_189 = arith.constant 0.000000e+00 : bf16
    %508 = vector.broadcast %cst_189 : bf16 to vector<8x256xbf16>
    %509 = vector.shape_cast %402 : vector<1x256xi1> to vector<1x256xi1>
    %510 = vector.broadcast %509 : vector<1x256xi1> to vector<8x256xi1>
    %511 = arith.select %510, %507, %508 : vector<8x256xi1>, vector<8x256xbf16>
    %512 = vector.extract_strided_slice %489 {offsets = [0, 32], sizes = [8, 256], strides = [1, 1]} : vector<8x290xbf16> to vector<8x256xbf16>
    %cst_190 = arith.constant 0.000000e+00 : bf16
    %513 = vector.broadcast %cst_190 : bf16 to vector<8x256xbf16>
    %514 = vector.shape_cast %400 : vector<1x256xi1> to vector<1x256xi1>
    %515 = vector.broadcast %514 : vector<1x256xi1> to vector<8x256xi1>
    %516 = arith.select %515, %512, %513 : vector<8x256xi1>, vector<8x256xbf16>
    %517 = vector.extract_strided_slice %489 {offsets = [0, 33], sizes = [8, 256], strides = [1, 1]} : vector<8x290xbf16> to vector<8x256xbf16>
    %518 = vector.extract_strided_slice %489 {offsets = [0, 34], sizes = [8, 256], strides = [1, 1]} : vector<8x290xbf16> to vector<8x256xbf16>
    %cst_191 = arith.constant 0.000000e+00 : bf16
    %519 = vector.broadcast %cst_191 : bf16 to vector<8x256xbf16>
    %520 = vector.shape_cast %402 : vector<1x256xi1> to vector<1x256xi1>
    %521 = vector.broadcast %520 : vector<1x256xi1> to vector<8x256xi1>
    %522 = arith.select %521, %518, %519 : vector<8x256xi1>, vector<8x256xbf16>
    %523 = tpu.concatenate %494, %495, %500, %505, %506, %511, %516, %517, %522 in 0 : vector<8x256xbf16>, vector<8x256xbf16>, vector<8x256xbf16>, vector<8x256xbf16>, vector<8x256xbf16>, vector<8x256xbf16>, vector<8x256xbf16>, vector<8x256xbf16>, vector<8x256xbf16> -> vector<72x256xbf16>
    %cst_192 = arith.constant dense<0.000000e+00> : vector<8x256xf32>
    %524 = tpu.matmul %487, %523, %cst_192 {dimension_numbers = #tpu.dot_dimension_numbers<[1], [0], [0], [1], [0, 0, 1, 1], [], []>} : vector<8x72xbf16>, vector<72x256xbf16>, vector<8x256xf32> -> vector<8x256xf32>
    %525 = vector.broadcast %356 : vector<8x1xf32> to vector<8x256xf32>
    %526 = arith.addf %524, %525 : vector<8x256xf32>
    %cst_193 = arith.constant 0.000000e+00 : f32
    %527 = vector.broadcast %cst_193 : f32 to vector<8x256xf32>
    %528 = arith.maximumf %526, %527 : vector<8x256xf32>
    %529 = arith.truncf %528 : vector<8x256xf32> to vector<8x256xbf16>
    %c0_194 = arith.constant 0 : index
    %c0_195 = arith.constant 0 : index
    %530 = vector.load %arg29[%c0_194, %c0_195] : memref<4x3xf32, #tpu.memory_space<vmem>>, vector<4x1xf32>
    %c0_196 = arith.constant 0 : index
    %c1_197 = arith.constant 1 : index
    %531 = vector.load %arg29[%c0_196, %c1_197] : memref<4x3xf32, #tpu.memory_space<vmem>>, vector<4x1xf32>
    %c0_198 = arith.constant 0 : index
    %c2_199 = arith.constant 2 : index
    %532 = vector.load %arg29[%c0_198, %c2_199] : memref<4x3xf32, #tpu.memory_space<vmem>>, vector<4x1xf32>
    %c0_200 = arith.constant 0 : index
    %c0_201 = arith.constant 0 : index
    %533 = vector.load %arg24[%c0_200, %c0_201] : memref<16x8xbf16, #tpu.memory_space<vmem>>, vector<16x8xbf16>
    %cst_202 = arith.constant dense<0.000000e+00> : vector<16x256xf32>
    %534 = tpu.matmul %533, %529, %cst_202 {dimension_numbers = #tpu.dot_dimension_numbers<[1], [0], [0], [1], [0, 0, 1, 1], [], []>} : vector<16x8xbf16>, vector<8x256xbf16>, vector<16x256xf32> -> vector<16x256xf32>
    %535 = arith.truncf %534 : vector<16x256xf32> to vector<16x256xbf16>
    %536 = vector.extract_strided_slice %535 {offsets = [0, 0], sizes = [4, 256], strides = [1, 1]} : vector<16x256xbf16> to vector<4x256xbf16>
    %c0_203 = arith.constant 0 : index
    %c0_204 = arith.constant 0 : index
    %c0_205 = arith.constant 0 : index
    %537 = vector.load %arg25[%c0_203, %c0_204, %c0_205] : memref<4x256x1024xbf16, #tpu.memory_space<vmem>>, vector<1x256x1024xbf16>
    %538 = vector.shape_cast %537 : vector<1x256x1024xbf16> to vector<256x1024xbf16>
    %cst_206 = arith.constant dense<0.000000e+00> : vector<4x1024xf32>
    %539 = tpu.matmul %536, %538, %cst_206 {dimension_numbers = #tpu.dot_dimension_numbers<[1], [0], [0], [1], [0, 0, 1, 1], [], []>} : vector<4x256xbf16>, vector<256x1024xbf16>, vector<4x1024xf32> -> vector<4x1024xf32>
    %540 = vector.extract_strided_slice %535 {offsets = [4, 0], sizes = [4, 256], strides = [1, 1]} : vector<16x256xbf16> to vector<4x256xbf16>
    %c1_207 = arith.constant 1 : index
    %c0_208 = arith.constant 0 : index
    %c0_209 = arith.constant 0 : index
    %541 = vector.load %arg25[%c1_207, %c0_208, %c0_209] : memref<4x256x1024xbf16, #tpu.memory_space<vmem>>, vector<1x256x1024xbf16>
    %542 = vector.shape_cast %541 : vector<1x256x1024xbf16> to vector<256x1024xbf16>
    %cst_210 = arith.constant dense<0.000000e+00> : vector<4x1024xf32>
    %543 = tpu.matmul %540, %542, %cst_210 {dimension_numbers = #tpu.dot_dimension_numbers<[1], [0], [0], [1], [0, 0, 1, 1], [], []>} : vector<4x256xbf16>, vector<256x1024xbf16>, vector<4x1024xf32> -> vector<4x1024xf32>
    %544 = arith.addf %539, %543 : vector<4x1024xf32>
    %545 = vector.extract_strided_slice %535 {offsets = [8, 0], sizes = [4, 256], strides = [1, 1]} : vector<16x256xbf16> to vector<4x256xbf16>
    %c2_211 = arith.constant 2 : index
    %c0_212 = arith.constant 0 : index
    %c0_213 = arith.constant 0 : index
    %546 = vector.load %arg25[%c2_211, %c0_212, %c0_213] : memref<4x256x1024xbf16, #tpu.memory_space<vmem>>, vector<1x256x1024xbf16>
    %547 = vector.shape_cast %546 : vector<1x256x1024xbf16> to vector<256x1024xbf16>
    %cst_214 = arith.constant dense<0.000000e+00> : vector<4x1024xf32>
    %548 = tpu.matmul %545, %547, %cst_214 {dimension_numbers = #tpu.dot_dimension_numbers<[1], [0], [0], [1], [0, 0, 1, 1], [], []>} : vector<4x256xbf16>, vector<256x1024xbf16>, vector<4x1024xf32> -> vector<4x1024xf32>
    %549 = arith.addf %544, %548 : vector<4x1024xf32>
    %550 = vector.extract_strided_slice %535 {offsets = [12, 0], sizes = [4, 256], strides = [1, 1]} : vector<16x256xbf16> to vector<4x256xbf16>
    %c3_215 = arith.constant 3 : index
    %c0_216 = arith.constant 0 : index
    %c0_217 = arith.constant 0 : index
    %551 = vector.load %arg25[%c3_215, %c0_216, %c0_217] : memref<4x256x1024xbf16, #tpu.memory_space<vmem>>, vector<1x256x1024xbf16>
    %552 = vector.shape_cast %551 : vector<1x256x1024xbf16> to vector<256x1024xbf16>
    %cst_218 = arith.constant dense<0.000000e+00> : vector<4x1024xf32>
    %553 = tpu.matmul %550, %552, %cst_218 {dimension_numbers = #tpu.dot_dimension_numbers<[1], [0], [0], [1], [0, 0, 1, 1], [], []>} : vector<4x256xbf16>, vector<256x1024xbf16>, vector<4x1024xf32> -> vector<4x1024xf32>
    %554 = arith.addf %549, %553 : vector<4x1024xf32>
    %555 = vector.broadcast %530 : vector<4x1xf32> to vector<4x1024xf32>
    %556 = arith.addf %554, %555 : vector<4x1024xf32>
    %557 = arith.truncf %556 : vector<4x1024xf32> to vector<4x1024xbf16>
    %558 = tpu.iota {dimensions = array<i32: 1>} : vector<1x1024xi32>
    %c32_i32 = arith.constant 32 : i32
    %c0_i32_219 = arith.constant 0 : i32
    %559 = arith.cmpi eq, %c32_i32, %c0_i32_219 : i32
    %c1_i32_220 = arith.constant 1 : i32
    %560 = arith.select %559, %c1_i32_220, %c32_i32 : i32
    %561 = vector.broadcast %560 : i32 to vector<1x1024xi32>
    %562 = arith.remsi %558, %561 : vector<1x1024xi32>
    %c0_i32_221 = arith.constant 0 : i32
    %563 = vector.broadcast %c0_i32_221 : i32 to vector<1x1024xi32>
    %564 = arith.cmpi ne, %562, %563 : vector<1x1024xi32>
    %c0_i32_222 = arith.constant 0 : i32
    %565 = vector.broadcast %c0_i32_222 : i32 to vector<1x1024xi32>
    %566 = arith.cmpi slt, %562, %565 : vector<1x1024xi32>
    %c0_i32_223 = arith.constant 0 : i32
    %567 = arith.cmpi slt, %560, %c0_i32_223 : i32
    %568 = vector.broadcast %567 : i1 to vector<1x1024xi1>
    %569 = vector.broadcast %568 : vector<1x1024xi1> to vector<1x1024xi1>
    %570 = arith.xori %566, %569 : vector<1x1024xi1>
    %571 = arith.andi %570, %564 : vector<1x1024xi1>
    %572 = vector.broadcast %560 : i32 to vector<1x1024xi32>
    %573 = arith.addi %562, %572 : vector<1x1024xi32>
    %574 = arith.select %571, %573, %562 : vector<1x1024xi1>, vector<1x1024xi32>
    %c1_i32_224 = arith.constant 1 : i32
    %575 = vector.broadcast %c1_i32_224 : i32 to vector<1x1024xi32>
    %576 = arith.cmpi sge, %574, %575 : vector<1x1024xi32>
    %c30_i32 = arith.constant 30 : i32
    %577 = vector.broadcast %c30_i32 : i32 to vector<1x1024xi32>
    %578 = arith.cmpi sle, %574, %577 : vector<1x1024xi32>
    %c0_225 = arith.constant 0 : index
    %c0_226 = arith.constant 0 : index
    %c0_227 = arith.constant 0 : index
    %579 = vector.load %arg23[%c0_225, %c0_226, %c0_227] : memref<1x4x1024xbf16, #tpu.memory_space<vmem>>, vector<1x4x1024xbf16>
    %580 = vector.shape_cast %579 : vector<1x4x1024xbf16> to vector<4x1024xbf16>
    %c0_228 = arith.constant 0 : index
    %c0_229 = arith.constant 0 : index
    %581 = vector.load %arg26[%c0_228, %c0_229] : memref<4x36xbf16, #tpu.memory_space<vmem>>, vector<4x36xbf16>
    %cst_230 = arith.constant 0.000000e+00 : bf16
    %582 = vector.broadcast %cst_230 : bf16 to vector<4x33xbf16>
    %583 = tpu.concatenate %582, %580, %582 in 1 : vector<4x33xbf16>, vector<4x1024xbf16>, vector<4x33xbf16> -> vector<4x1090xbf16>
    %584 = vector.extract_strided_slice %583 {offsets = [0, 0], sizes = [4, 1024], strides = [1, 1]} : vector<4x1090xbf16> to vector<4x1024xbf16>
    %cst_231 = arith.constant 0.000000e+00 : bf16
    %585 = vector.broadcast %cst_231 : bf16 to vector<4x1024xbf16>
    %586 = vector.shape_cast %576 : vector<1x1024xi1> to vector<1x1024xi1>
    %587 = vector.broadcast %586 : vector<1x1024xi1> to vector<4x1024xi1>
    %588 = arith.select %587, %584, %585 : vector<4x1024xi1>, vector<4x1024xbf16>
    %589 = vector.extract_strided_slice %583 {offsets = [0, 1], sizes = [4, 1024], strides = [1, 1]} : vector<4x1090xbf16> to vector<4x1024xbf16>
    %590 = vector.extract_strided_slice %583 {offsets = [0, 2], sizes = [4, 1024], strides = [1, 1]} : vector<4x1090xbf16> to vector<4x1024xbf16>
    %cst_232 = arith.constant 0.000000e+00 : bf16
    %591 = vector.broadcast %cst_232 : bf16 to vector<4x1024xbf16>
    %592 = vector.shape_cast %578 : vector<1x1024xi1> to vector<1x1024xi1>
    %593 = vector.broadcast %592 : vector<1x1024xi1> to vector<4x1024xi1>
    %594 = arith.select %593, %590, %591 : vector<4x1024xi1>, vector<4x1024xbf16>
    %595 = vector.extract_strided_slice %583 {offsets = [0, 32], sizes = [4, 1024], strides = [1, 1]} : vector<4x1090xbf16> to vector<4x1024xbf16>
    %cst_233 = arith.constant 0.000000e+00 : bf16
    %596 = vector.broadcast %cst_233 : bf16 to vector<4x1024xbf16>
    %597 = vector.shape_cast %576 : vector<1x1024xi1> to vector<1x1024xi1>
    %598 = vector.broadcast %597 : vector<1x1024xi1> to vector<4x1024xi1>
    %599 = arith.select %598, %595, %596 : vector<4x1024xi1>, vector<4x1024xbf16>
    %600 = vector.extract_strided_slice %583 {offsets = [0, 33], sizes = [4, 1024], strides = [1, 1]} : vector<4x1090xbf16> to vector<4x1024xbf16>
    %601 = vector.extract_strided_slice %583 {offsets = [0, 34], sizes = [4, 1024], strides = [1, 1]} : vector<4x1090xbf16> to vector<4x1024xbf16>
    %cst_234 = arith.constant 0.000000e+00 : bf16
    %602 = vector.broadcast %cst_234 : bf16 to vector<4x1024xbf16>
    %603 = vector.shape_cast %578 : vector<1x1024xi1> to vector<1x1024xi1>
    %604 = vector.broadcast %603 : vector<1x1024xi1> to vector<4x1024xi1>
    %605 = arith.select %604, %601, %602 : vector<4x1024xi1>, vector<4x1024xbf16>
    %606 = vector.extract_strided_slice %583 {offsets = [0, 64], sizes = [4, 1024], strides = [1, 1]} : vector<4x1090xbf16> to vector<4x1024xbf16>
    %cst_235 = arith.constant 0.000000e+00 : bf16
    %607 = vector.broadcast %cst_235 : bf16 to vector<4x1024xbf16>
    %608 = vector.shape_cast %576 : vector<1x1024xi1> to vector<1x1024xi1>
    %609 = vector.broadcast %608 : vector<1x1024xi1> to vector<4x1024xi1>
    %610 = arith.select %609, %606, %607 : vector<4x1024xi1>, vector<4x1024xbf16>
    %611 = vector.extract_strided_slice %583 {offsets = [0, 65], sizes = [4, 1024], strides = [1, 1]} : vector<4x1090xbf16> to vector<4x1024xbf16>
    %612 = vector.extract_strided_slice %583 {offsets = [0, 66], sizes = [4, 1024], strides = [1, 1]} : vector<4x1090xbf16> to vector<4x1024xbf16>
    %cst_236 = arith.constant 0.000000e+00 : bf16
    %613 = vector.broadcast %cst_236 : bf16 to vector<4x1024xbf16>
    %614 = vector.shape_cast %578 : vector<1x1024xi1> to vector<1x1024xi1>
    %615 = vector.broadcast %614 : vector<1x1024xi1> to vector<4x1024xi1>
    %616 = arith.select %615, %612, %613 : vector<4x1024xi1>, vector<4x1024xbf16>
    %617 = tpu.concatenate %588, %589, %594, %599, %600, %605, %610, %611, %616 in 0 : vector<4x1024xbf16>, vector<4x1024xbf16>, vector<4x1024xbf16>, vector<4x1024xbf16>, vector<4x1024xbf16>, vector<4x1024xbf16>, vector<4x1024xbf16>, vector<4x1024xbf16>, vector<4x1024xbf16> -> vector<36x1024xbf16>
    %cst_237 = arith.constant dense<0.000000e+00> : vector<4x1024xf32>
    %618 = tpu.matmul %581, %617, %cst_237 {dimension_numbers = #tpu.dot_dimension_numbers<[1], [0], [0], [1], [0, 0, 1, 1], [], []>} : vector<4x36xbf16>, vector<36x1024xbf16>, vector<4x1024xf32> -> vector<4x1024xf32>
    %c0_238 = arith.constant 0 : index
    %c0_239 = arith.constant 0 : index
    %619 = vector.load %arg27[%c0_238, %c0_239] : memref<4x36xbf16, #tpu.memory_space<vmem>>, vector<4x36xbf16>
    %cst_240 = arith.constant 0.000000e+00 : bf16
    %620 = vector.broadcast %cst_240 : bf16 to vector<4x33xbf16>
    %621 = tpu.concatenate %620, %557, %620 in 1 : vector<4x33xbf16>, vector<4x1024xbf16>, vector<4x33xbf16> -> vector<4x1090xbf16>
    %622 = vector.extract_strided_slice %621 {offsets = [0, 0], sizes = [4, 1024], strides = [1, 1]} : vector<4x1090xbf16> to vector<4x1024xbf16>
    %cst_241 = arith.constant 0.000000e+00 : bf16
    %623 = vector.broadcast %cst_241 : bf16 to vector<4x1024xbf16>
    %624 = vector.shape_cast %576 : vector<1x1024xi1> to vector<1x1024xi1>
    %625 = vector.broadcast %624 : vector<1x1024xi1> to vector<4x1024xi1>
    %626 = arith.select %625, %622, %623 : vector<4x1024xi1>, vector<4x1024xbf16>
    %627 = vector.extract_strided_slice %621 {offsets = [0, 1], sizes = [4, 1024], strides = [1, 1]} : vector<4x1090xbf16> to vector<4x1024xbf16>
    %628 = vector.extract_strided_slice %621 {offsets = [0, 2], sizes = [4, 1024], strides = [1, 1]} : vector<4x1090xbf16> to vector<4x1024xbf16>
    %cst_242 = arith.constant 0.000000e+00 : bf16
    %629 = vector.broadcast %cst_242 : bf16 to vector<4x1024xbf16>
    %630 = vector.shape_cast %578 : vector<1x1024xi1> to vector<1x1024xi1>
    %631 = vector.broadcast %630 : vector<1x1024xi1> to vector<4x1024xi1>
    %632 = arith.select %631, %628, %629 : vector<4x1024xi1>, vector<4x1024xbf16>
    %633 = vector.extract_strided_slice %621 {offsets = [0, 32], sizes = [4, 1024], strides = [1, 1]} : vector<4x1090xbf16> to vector<4x1024xbf16>
    %cst_243 = arith.constant 0.000000e+00 : bf16
    %634 = vector.broadcast %cst_243 : bf16 to vector<4x1024xbf16>
    %635 = vector.shape_cast %576 : vector<1x1024xi1> to vector<1x1024xi1>
    %636 = vector.broadcast %635 : vector<1x1024xi1> to vector<4x1024xi1>
    %637 = arith.select %636, %633, %634 : vector<4x1024xi1>, vector<4x1024xbf16>
    %638 = vector.extract_strided_slice %621 {offsets = [0, 33], sizes = [4, 1024], strides = [1, 1]} : vector<4x1090xbf16> to vector<4x1024xbf16>
    %639 = vector.extract_strided_slice %621 {offsets = [0, 34], sizes = [4, 1024], strides = [1, 1]} : vector<4x1090xbf16> to vector<4x1024xbf16>
    %cst_244 = arith.constant 0.000000e+00 : bf16
    %640 = vector.broadcast %cst_244 : bf16 to vector<4x1024xbf16>
    %641 = vector.shape_cast %578 : vector<1x1024xi1> to vector<1x1024xi1>
    %642 = vector.broadcast %641 : vector<1x1024xi1> to vector<4x1024xi1>
    %643 = arith.select %642, %639, %640 : vector<4x1024xi1>, vector<4x1024xbf16>
    %644 = vector.extract_strided_slice %621 {offsets = [0, 64], sizes = [4, 1024], strides = [1, 1]} : vector<4x1090xbf16> to vector<4x1024xbf16>
    %cst_245 = arith.constant 0.000000e+00 : bf16
    %645 = vector.broadcast %cst_245 : bf16 to vector<4x1024xbf16>
    %646 = vector.shape_cast %576 : vector<1x1024xi1> to vector<1x1024xi1>
    %647 = vector.broadcast %646 : vector<1x1024xi1> to vector<4x1024xi1>
    %648 = arith.select %647, %644, %645 : vector<4x1024xi1>, vector<4x1024xbf16>
    %649 = vector.extract_strided_slice %621 {offsets = [0, 65], sizes = [4, 1024], strides = [1, 1]} : vector<4x1090xbf16> to vector<4x1024xbf16>
    %650 = vector.extract_strided_slice %621 {offsets = [0, 66], sizes = [4, 1024], strides = [1, 1]} : vector<4x1090xbf16> to vector<4x1024xbf16>
    %cst_246 = arith.constant 0.000000e+00 : bf16
    %651 = vector.broadcast %cst_246 : bf16 to vector<4x1024xbf16>
    %652 = vector.shape_cast %578 : vector<1x1024xi1> to vector<1x1024xi1>
    %653 = vector.broadcast %652 : vector<1x1024xi1> to vector<4x1024xi1>
    %654 = arith.select %653, %650, %651 : vector<4x1024xi1>, vector<4x1024xbf16>
    %655 = tpu.concatenate %626, %627, %632, %637, %638, %643, %648, %649, %654 in 0 : vector<4x1024xbf16>, vector<4x1024xbf16>, vector<4x1024xbf16>, vector<4x1024xbf16>, vector<4x1024xbf16>, vector<4x1024xbf16>, vector<4x1024xbf16>, vector<4x1024xbf16>, vector<4x1024xbf16> -> vector<36x1024xbf16>
    %cst_247 = arith.constant dense<0.000000e+00> : vector<4x1024xf32>
    %656 = tpu.matmul %619, %655, %cst_247 {dimension_numbers = #tpu.dot_dimension_numbers<[1], [0], [0], [1], [0, 0, 1, 1], [], []>} : vector<4x36xbf16>, vector<36x1024xbf16>, vector<4x1024xf32> -> vector<4x1024xf32>
    %657 = arith.addf %618, %656 : vector<4x1024xf32>
    %658 = vector.broadcast %531 : vector<4x1xf32> to vector<4x1024xf32>
    %659 = arith.addf %657, %658 : vector<4x1024xf32>
    %cst_248 = arith.constant 0.000000e+00 : f32
    %660 = vector.broadcast %cst_248 : f32 to vector<4x1024xf32>
    %661 = arith.maximumf %659, %660 : vector<4x1024xf32>
    %662 = arith.truncf %661 : vector<4x1024xf32> to vector<4x1024xbf16>
    %c0_249 = arith.constant 0 : index
    %c0_250 = arith.constant 0 : index
    %663 = vector.load %arg28[%c0_249, %c0_250] : memref<4x36xbf16, #tpu.memory_space<vmem>>, vector<4x36xbf16>
    %cst_251 = arith.constant 0.000000e+00 : bf16
    %664 = vector.broadcast %cst_251 : bf16 to vector<4x33xbf16>
    %665 = tpu.concatenate %664, %662, %664 in 1 : vector<4x33xbf16>, vector<4x1024xbf16>, vector<4x33xbf16> -> vector<4x1090xbf16>
    %666 = vector.extract_strided_slice %665 {offsets = [0, 0], sizes = [4, 1024], strides = [1, 1]} : vector<4x1090xbf16> to vector<4x1024xbf16>
    %cst_252 = arith.constant 0.000000e+00 : bf16
    %667 = vector.broadcast %cst_252 : bf16 to vector<4x1024xbf16>
    %668 = vector.shape_cast %576 : vector<1x1024xi1> to vector<1x1024xi1>
    %669 = vector.broadcast %668 : vector<1x1024xi1> to vector<4x1024xi1>
    %670 = arith.select %669, %666, %667 : vector<4x1024xi1>, vector<4x1024xbf16>
    %671 = vector.extract_strided_slice %665 {offsets = [0, 1], sizes = [4, 1024], strides = [1, 1]} : vector<4x1090xbf16> to vector<4x1024xbf16>
    %672 = vector.extract_strided_slice %665 {offsets = [0, 2], sizes = [4, 1024], strides = [1, 1]} : vector<4x1090xbf16> to vector<4x1024xbf16>
    %cst_253 = arith.constant 0.000000e+00 : bf16
    %673 = vector.broadcast %cst_253 : bf16 to vector<4x1024xbf16>
    %674 = vector.shape_cast %578 : vector<1x1024xi1> to vector<1x1024xi1>
    %675 = vector.broadcast %674 : vector<1x1024xi1> to vector<4x1024xi1>
    %676 = arith.select %675, %672, %673 : vector<4x1024xi1>, vector<4x1024xbf16>
    %677 = vector.extract_strided_slice %665 {offsets = [0, 32], sizes = [4, 1024], strides = [1, 1]} : vector<4x1090xbf16> to vector<4x1024xbf16>
    %cst_254 = arith.constant 0.000000e+00 : bf16
    %678 = vector.broadcast %cst_254 : bf16 to vector<4x1024xbf16>
    %679 = vector.shape_cast %576 : vector<1x1024xi1> to vector<1x1024xi1>
    %680 = vector.broadcast %679 : vector<1x1024xi1> to vector<4x1024xi1>
    %681 = arith.select %680, %677, %678 : vector<4x1024xi1>, vector<4x1024xbf16>
    %682 = vector.extract_strided_slice %665 {offsets = [0, 33], sizes = [4, 1024], strides = [1, 1]} : vector<4x1090xbf16> to vector<4x1024xbf16>
    %683 = vector.extract_strided_slice %665 {offsets = [0, 34], sizes = [4, 1024], strides = [1, 1]} : vector<4x1090xbf16> to vector<4x1024xbf16>
    %cst_255 = arith.constant 0.000000e+00 : bf16
    %684 = vector.broadcast %cst_255 : bf16 to vector<4x1024xbf16>
    %685 = vector.shape_cast %578 : vector<1x1024xi1> to vector<1x1024xi1>
    %686 = vector.broadcast %685 : vector<1x1024xi1> to vector<4x1024xi1>
    %687 = arith.select %686, %683, %684 : vector<4x1024xi1>, vector<4x1024xbf16>
    %688 = vector.extract_strided_slice %665 {offsets = [0, 64], sizes = [4, 1024], strides = [1, 1]} : vector<4x1090xbf16> to vector<4x1024xbf16>
    %cst_256 = arith.constant 0.000000e+00 : bf16
    %689 = vector.broadcast %cst_256 : bf16 to vector<4x1024xbf16>
    %690 = vector.shape_cast %576 : vector<1x1024xi1> to vector<1x1024xi1>
    %691 = vector.broadcast %690 : vector<1x1024xi1> to vector<4x1024xi1>
    %692 = arith.select %691, %688, %689 : vector<4x1024xi1>, vector<4x1024xbf16>
    %693 = vector.extract_strided_slice %665 {offsets = [0, 65], sizes = [4, 1024], strides = [1, 1]} : vector<4x1090xbf16> to vector<4x1024xbf16>
    %694 = vector.extract_strided_slice %665 {offsets = [0, 66], sizes = [4, 1024], strides = [1, 1]} : vector<4x1090xbf16> to vector<4x1024xbf16>
    %cst_257 = arith.constant 0.000000e+00 : bf16
    %695 = vector.broadcast %cst_257 : bf16 to vector<4x1024xbf16>
    %696 = vector.shape_cast %578 : vector<1x1024xi1> to vector<1x1024xi1>
    %697 = vector.broadcast %696 : vector<1x1024xi1> to vector<4x1024xi1>
    %698 = arith.select %697, %694, %695 : vector<4x1024xi1>, vector<4x1024xbf16>
    %699 = tpu.concatenate %670, %671, %676, %681, %682, %687, %692, %693, %698 in 0 : vector<4x1024xbf16>, vector<4x1024xbf16>, vector<4x1024xbf16>, vector<4x1024xbf16>, vector<4x1024xbf16>, vector<4x1024xbf16>, vector<4x1024xbf16>, vector<4x1024xbf16>, vector<4x1024xbf16> -> vector<36x1024xbf16>
    %cst_258 = arith.constant dense<0.000000e+00> : vector<4x1024xf32>
    %700 = tpu.matmul %663, %699, %cst_258 {dimension_numbers = #tpu.dot_dimension_numbers<[1], [0], [0], [1], [0, 0, 1, 1], [], []>} : vector<4x36xbf16>, vector<36x1024xbf16>, vector<4x1024xf32> -> vector<4x1024xf32>
    %701 = vector.broadcast %532 : vector<4x1xf32> to vector<4x1024xf32>
    %702 = arith.addf %700, %701 : vector<4x1024xf32>
    %cst_259 = arith.constant 0.000000e+00 : f32
    %703 = vector.broadcast %cst_259 : f32 to vector<4x1024xf32>
    %704 = arith.maximumf %702, %703 : vector<4x1024xf32>
    %705 = arith.truncf %704 : vector<4x1024xf32> to vector<4x1024xbf16>
    %c0_260 = arith.constant 0 : index
    %c0_261 = arith.constant 0 : index
    %706 = vector.load %arg30[%c0_260, %c0_261] : memref<3x4xbf16, #tpu.memory_space<vmem>>, vector<3x4xbf16>
    %cst_262 = arith.constant dense<0.000000e+00> : vector<3x1024xf32>
    %707 = tpu.matmul %706, %705, %cst_262 {dimension_numbers = #tpu.dot_dimension_numbers<[1], [0], [0], [1], [0, 0, 1, 1], [], []>} : vector<3x4xbf16>, vector<4x1024xbf16>, vector<3x1024xf32> -> vector<3x1024xf32>
    %c0_263 = arith.constant 0 : index
    %c0_264 = arith.constant 0 : index
    %708 = vector.load %arg31[%c0_263, %c0_264] : memref<3x1xf32, #tpu.memory_space<vmem>>, vector<3x1xf32>
    %709 = vector.broadcast %708 : vector<3x1xf32> to vector<3x1024xf32>
    %710 = arith.addf %707, %709 : vector<3x1024xf32>
    %c0_265 = arith.constant 0 : index
    %c0_266 = arith.constant 0 : index
    %c0_267 = arith.constant 0 : index
    %711 = vector.load %arg32[%c0_265, %c0_266, %c0_267] : memref<1x3x1024xf32, #tpu.memory_space<vmem>>, vector<1x3x1024xf32>
    %712 = vector.shape_cast %711 : vector<1x3x1024xf32> to vector<3x1024xf32>
    %713 = vector.shape_cast %710 : vector<3x1024xf32> to vector<1x3x1024xf32>
    tpu.vector_store %arg32[%c0_265, %c0_266, %c0_267], %713 {strides = array<i32>} : memref<1x3x1024xf32, #tpu.memory_space<vmem>>, vector<1x3x1024xf32>,
    return
  }
  func.func @transform_0(%arg0: i32) -> (i32, i32, i32) {
    %c0_i32 = arith.constant 0 : i32
    %c0_i32_0 = arith.constant 0 : i32
    %c0_i32_1 = arith.constant 0 : i32
    return %arg0, %c0_i32, %c0_i32_0 : i32, i32, i32
  }
  func.func @transform_1(%arg0: i32) -> (i32, i32, i32) {
    %c0_i32 = arith.constant 0 : i32
    %c0_i32_0 = arith.constant 0 : i32
    %c0_i32_1 = arith.constant 0 : i32
    return %arg0, %c0_i32, %c0_i32_0 : i32, i32, i32
  }
  func.func @transform_2(%arg0: i32) -> (i32, i32) {
    %c0_i32 = arith.constant 0 : i32
    %c0_i32_0 = arith.constant 0 : i32
    %c0_i32_1 = arith.constant 0 : i32
    return %c0_i32, %c0_i32_0 : i32, i32
  }
  func.func @transform_3(%arg0: i32) -> (i32, i32, i32) {
    %c0_i32 = arith.constant 0 : i32
    %c0_i32_0 = arith.constant 0 : i32
    %c0_i32_1 = arith.constant 0 : i32
    %c0_i32_2 = arith.constant 0 : i32
    return %c0_i32, %c0_i32_0, %c0_i32_1 : i32, i32, i32
  }
  func.func @transform_4(%arg0: i32) -> (i32, i32) {
    %c0_i32 = arith.constant 0 : i32
    %c0_i32_0 = arith.constant 0 : i32
    %c0_i32_1 = arith.constant 0 : i32
    return %c0_i32, %c0_i32_0 : i32, i32
  }
  func.func @transform_5(%arg0: i32) -> (i32, i32) {
    %c0_i32 = arith.constant 0 : i32
    %c0_i32_0 = arith.constant 0 : i32
    %c0_i32_1 = arith.constant 0 : i32
    return %c0_i32, %c0_i32_0 : i32, i32
  }
  func.func @transform_6(%arg0: i32) -> (i32, i32) {
    %c0_i32 = arith.constant 0 : i32
    %c0_i32_0 = arith.constant 0 : i32
    %c0_i32_1 = arith.constant 0 : i32
    return %c0_i32, %c0_i32_0 : i32, i32
  }
  func.func @transform_7(%arg0: i32) -> (i32, i32) {
    %c0_i32 = arith.constant 0 : i32
    %c0_i32_0 = arith.constant 0 : i32
    %c0_i32_1 = arith.constant 0 : i32
    return %c0_i32, %c0_i32_0 : i32, i32
  }
  func.func @transform_8(%arg0: i32) -> (i32, i32, i32) {
    %c0_i32 = arith.constant 0 : i32
    %c0_i32_0 = arith.constant 0 : i32
    %c0_i32_1 = arith.constant 0 : i32
    return %arg0, %c0_i32, %c0_i32_0 : i32, i32, i32
  }
  func.func @transform_9(%arg0: i32) -> (i32, i32) {
    %c0_i32 = arith.constant 0 : i32
    %c0_i32_0 = arith.constant 0 : i32
    %c0_i32_1 = arith.constant 0 : i32
    return %c0_i32, %c0_i32_0 : i32, i32
  }
  func.func @transform_10(%arg0: i32) -> (i32, i32, i32) {
    %c0_i32 = arith.constant 0 : i32
    %c0_i32_0 = arith.constant 0 : i32
    %c0_i32_1 = arith.constant 0 : i32
    %c0_i32_2 = arith.constant 0 : i32
    return %c0_i32, %c0_i32_0, %c0_i32_1 : i32, i32, i32
  }
  func.func @transform_11(%arg0: i32) -> (i32, i32) {
    %c0_i32 = arith.constant 0 : i32
    %c0_i32_0 = arith.constant 0 : i32
    %c0_i32_1 = arith.constant 0 : i32
    return %c0_i32, %c0_i32_0 : i32, i32
  }
  func.func @transform_12(%arg0: i32) -> (i32, i32) {
    %c0_i32 = arith.constant 0 : i32
    %c0_i32_0 = arith.constant 0 : i32
    %c0_i32_1 = arith.constant 0 : i32
    return %c0_i32, %c0_i32_0 : i32, i32
  }
  func.func @transform_13(%arg0: i32) -> (i32, i32) {
    %c0_i32 = arith.constant 0 : i32
    %c0_i32_0 = arith.constant 0 : i32
    %c0_i32_1 = arith.constant 0 : i32
    return %c0_i32, %c0_i32_0 : i32, i32
  }
  func.func @transform_14(%arg0: i32) -> (i32, i32) {
    %c0_i32 = arith.constant 0 : i32
    %c0_i32_0 = arith.constant 0 : i32
    %c0_i32_1 = arith.constant 0 : i32
    return %c0_i32, %c0_i32_0 : i32, i32
  }
  func.func @transform_15(%arg0: i32) -> (i32, i32, i32) {
    %c0_i32 = arith.constant 0 : i32
    %c0_i32_0 = arith.constant 0 : i32
    %c0_i32_1 = arith.constant 0 : i32
    return %arg0, %c0_i32, %c0_i32_0 : i32, i32, i32
  }
  func.func @transform_16(%arg0: i32) -> (i32, i32) {
    %c0_i32 = arith.constant 0 : i32
    %c0_i32_0 = arith.constant 0 : i32
    %c0_i32_1 = arith.constant 0 : i32
    return %c0_i32, %c0_i32_0 : i32, i32
  }
  func.func @transform_17(%arg0: i32) -> (i32, i32, i32) {
    %c0_i32 = arith.constant 0 : i32
    %c0_i32_0 = arith.constant 0 : i32
    %c0_i32_1 = arith.constant 0 : i32
    %c0_i32_2 = arith.constant 0 : i32
    return %c0_i32, %c0_i32_0, %c0_i32_1 : i32, i32, i32
  }
  func.func @transform_18(%arg0: i32) -> (i32, i32) {
    %c0_i32 = arith.constant 0 : i32
    %c0_i32_0 = arith.constant 0 : i32
    %c0_i32_1 = arith.constant 0 : i32
    return %c0_i32, %c0_i32_0 : i32, i32
  }
  func.func @transform_19(%arg0: i32) -> (i32, i32) {
    %c0_i32 = arith.constant 0 : i32
    %c0_i32_0 = arith.constant 0 : i32
    %c0_i32_1 = arith.constant 0 : i32
    return %c0_i32, %c0_i32_0 : i32, i32
  }
  func.func @transform_20(%arg0: i32) -> (i32, i32) {
    %c0_i32 = arith.constant 0 : i32
    %c0_i32_0 = arith.constant 0 : i32
    %c0_i32_1 = arith.constant 0 : i32
    return %c0_i32, %c0_i32_0 : i32, i32
  }
  func.func @transform_21(%arg0: i32) -> (i32, i32) {
    %c0_i32 = arith.constant 0 : i32
    %c0_i32_0 = arith.constant 0 : i32
    %c0_i32_1 = arith.constant 0 : i32
    return %c0_i32, %c0_i32_0 : i32, i32
  }
  func.func @transform_22(%arg0: i32) -> (i32, i32, i32) {
    %c0_i32 = arith.constant 0 : i32
    %c0_i32_0 = arith.constant 0 : i32
    %c0_i32_1 = arith.constant 0 : i32
    return %arg0, %c0_i32, %c0_i32_0 : i32, i32, i32
  }
  func.func @transform_23(%arg0: i32) -> (i32, i32) {
    %c0_i32 = arith.constant 0 : i32
    %c0_i32_0 = arith.constant 0 : i32
    %c0_i32_1 = arith.constant 0 : i32
    return %c0_i32, %c0_i32_0 : i32, i32
  }
  func.func @transform_24(%arg0: i32) -> (i32, i32, i32) {
    %c0_i32 = arith.constant 0 : i32
    %c0_i32_0 = arith.constant 0 : i32
    %c0_i32_1 = arith.constant 0 : i32
    %c0_i32_2 = arith.constant 0 : i32
    return %c0_i32, %c0_i32_0, %c0_i32_1 : i32, i32, i32
  }
  func.func @transform_25(%arg0: i32) -> (i32, i32) {
    %c0_i32 = arith.constant 0 : i32
    %c0_i32_0 = arith.constant 0 : i32
    %c0_i32_1 = arith.constant 0 : i32
    return %c0_i32, %c0_i32_0 : i32, i32
  }
  func.func @transform_26(%arg0: i32) -> (i32, i32) {
    %c0_i32 = arith.constant 0 : i32
    %c0_i32_0 = arith.constant 0 : i32
    %c0_i32_1 = arith.constant 0 : i32
    return %c0_i32, %c0_i32_0 : i32, i32
  }
  func.func @transform_27(%arg0: i32) -> (i32, i32) {
    %c0_i32 = arith.constant 0 : i32
    %c0_i32_0 = arith.constant 0 : i32
    %c0_i32_1 = arith.constant 0 : i32
    return %c0_i32, %c0_i32_0 : i32, i32
  }
  func.func @transform_28(%arg0: i32) -> (i32, i32) {
    %c0_i32 = arith.constant 0 : i32
    %c0_i32_0 = arith.constant 0 : i32
    %c0_i32_1 = arith.constant 0 : i32
    return %c0_i32, %c0_i32_0 : i32, i32
  }
  func.func @transform_29(%arg0: i32) -> (i32, i32) {
    %c0_i32 = arith.constant 0 : i32
    %c0_i32_0 = arith.constant 0 : i32
    %c0_i32_1 = arith.constant 0 : i32
    return %c0_i32, %c0_i32_0 : i32, i32
  }
  func.func @transform_30(%arg0: i32) -> (i32, i32) {
    %c0_i32 = arith.constant 0 : i32
    %c0_i32_0 = arith.constant 0 : i32
    %c0_i32_1 = arith.constant 0 : i32
    return %c0_i32, %c0_i32_0 : i32, i32
  }
  func.func @transform_31(%arg0: i32) -> (i32, i32, i32) {
    %c0_i32 = arith.constant 0 : i32
    %c0_i32_0 = arith.constant 0 : i32
    %c0_i32_1 = arith.constant 0 : i32
    return %arg0, %c0_i32, %c0_i32_0 : i32, i32, i32
  }
}

</mosaic_0001>

<bundles_post_ra>
// kernel: _lambda_.1
= control target key start
LH: loop header
LB: loop body
LE: loop exit
PB: predicated region body
PF: predicated region fallthrough
CT: control target
= control target key end

     0   :  { %s12702_s6 = smov 1   ;;  %s12703_s10 = smov 2   ;;  %s17016_s0 = inlined_call_operand.smem [shape: u32[32], index: -1, kind: input, shape index: {}] }
   0x1   :  { %s12778_s5 = sld [smem:[%s17016_s0]]   ;;  %s12704_s14 = smov 3  }
   0x2   :  { %s12783_s9 = sld [smem:[%s17016_s0 + %s12702_s6]]   ;;  %s12705_s18 = smov 4  }
   0x3   :  { %s12788_s13 = sld [smem:[%s17016_s0 + %s12703_s10]]   ;;  %s12706_s22 = smov 5  }
   0x4   :  { %s12793_s17 = sld [smem:[%s17016_s0 + %s12704_s14]]   ;;  %s12707_s26 = smov 6  }
   0x5   :  { %s12798_s21 = sld [smem:[%s17016_s0 + %s12705_s18]]   ;;  %s12708_s30 = smov 7  }
   0x6   :  { %s12803_s25 = sld [smem:[%s17016_s0 + %s12706_s22]]   ;;  %s12709_s4 = smov 8  }
   0x7   :  { %17271 = sst [smem:[#allocation2_spill]] %s12778_s5  ;;  %s12710_s10 = smov 9  }
   0x8   :  { %17272 = sst [smem:[#allocation3_spill]] %s12783_s9  ;;  %s12711_s15 = smov 10  }
   0x9   :  { %s12808_s29 = sld [smem:[%s17016_s0 + %s12707_s26]]   ;;  %s12712_s20 = smov 11  }
   0xa   :  { %s12813_s3 = sld [smem:[%s17016_s0 + %s12708_s30]]   ;;  %s12713_s26 = smov 12  }
   0xb   :  { %s12818_s8 = sld [smem:[%s17016_s0 + %s12709_s4]]   ;;  %s12714_s1 = smov 13  }
   0xc   :  { %s12823_s14 = sld [smem:[%s17016_s0 + %s12710_s10]]   ;;  %s12715_s7 = smov 14  }
   0xd   :  { %s12828_s19 = sld [smem:[%s17016_s0 + %s12711_s15]]   ;;  %s12716_s15 = smov 15  }
   0xe   :  { %s12833_s24 = sld [smem:[%s17016_s0 + %s12712_s20]]   ;;  %s12717_s22 = smov 16  }
   0xf   :  { %s12838_s30 = sld [smem:[%s17016_s0 + %s12713_s26]]   ;;  %s12718_s28 = smov 17  }
  0x10   :  { %17273 = sst [smem:[#allocation4_spill]] %s12813_s3 }
  0x11   :  { %17274 = sst [smem:[#allocation5_spill]] %s12818_s8 }
  0x12   :  { %s12843_s6 = sld [smem:[%s17016_s0 + %s12714_s1]]  }
  0x13   :  { %s12848_s12 = sld [smem:[%s17016_s0 + %s12715_s7]]   ;;  %s12719_s7 = smov 18  }
  0x14   :  { %s12853_s20 = sld [smem:[%s17016_s0 + %s12716_s15]]   ;;  %s12720_s15 = smov 19  }
  0x15   :  { %s12858_s27 = sld [smem:[%s17016_s0 + %s12717_s22]]   ;;  %s12721_s22 = smov 20  }
  0x16   :  { %s12863_s4 = sld [smem:[%s17016_s0 + %s12718_s28]]   ;;  %s12722_s28 = smov 21  }
  0x18   :  { %17275 = sst [smem:[#allocation6_spill]] %s12843_s6 }
  0x19   :  { %s12868_s6 = sld [smem:[%s17016_s0 + %s12719_s7]]   ;;  %s12723_s7 = smov 22  }
  0x1a   :  { %17276 = sst [smem:[#allocation7_spill]] %s12853_s20 }
  0x1b   :  { %17277 = sst [smem:[#allocation8_spill]] %s12858_s27 }
  0x1c   :  { %17278 = sst [smem:[#allocation9_spill]] %s12863_s4 }
  0x1d   :  { %s12873_s20 = sld [smem:[%s17016_s0 + %s12720_s15]]   ;;  %s12724_s15 = smov 23  }
  0x1e   :  { %s12878_s27 = sld [smem:[%s17016_s0 + %s12721_s22]]   ;;  %s12725_s22 = smov 24  }
  0x1f   :  { %17279 = sst [smem:[#allocation10_spill]] %s12868_s6 }
  0x20   :  { %s12883_s4 = sld [smem:[%s17016_s0 + %s12722_s28]]   ;;  %s12726_s28 = smov 25  }
  0x21   :  { %s12888_s6 = sld [smem:[%s17016_s0 + %s12723_s7]]   ;;  %s12727_s7 = smov 26  }
  0x23   :  { %17280 = sst [smem:[#allocation11_spill]] %s12873_s20 }
  0x24   :  { %17281 = sst [smem:[#allocation12_spill]] %s12878_s27 }
  0x25   :  { %s12893_s20 = sld [smem:[%s17016_s0 + %s12724_s15]]   ;;  %s12728_s15 = smov 27  }
  0x26   :  { %17282 = sst [smem:[#allocation13_spill]] %s12883_s4 }
  0x27   :  { %17283 = sst [smem:[#allocation14_spill]] %s12888_s6 }
  0x28   :  { %s12898_s27 = sld [smem:[%s17016_s0 + %s12725_s22]]   ;;  %s12729_s22 = smov 28  }
  0x29   :  { %s12903_s4 = sld [smem:[%s17016_s0 + %s12726_s28]]   ;;  %s12730_s28 = smov 29  }
  0x2a   :  { %s12908_s6 = sld [smem:[%s17016_s0 + %s12727_s7]]   ;;  %s12731_s7 = smov 30  }
  0x2b   :  { %17284 = sst [smem:[#allocation15_spill]] %s12893_s20 }
  0x2c   :  { %s12913_s20 = sld [smem:[%s17016_s0 + %s12728_s15]]   ;;  %s12732_s15 = smov 31  }
  0x2e   :  { %17285 = sst [smem:[#allocation16_spill]] %s12898_s27 }
  0x2f   :  { %17286 = sst [smem:[#allocation17_spill]] %s12903_s4 }
  0x30   :  { %17287 = sst [smem:[#allocation18_spill]] %s12908_s6 }
  0x31   :  { %s12918_s27 = sld [smem:[%s17016_s0 + %s12729_s22]]   ;;  %s12935_s22 = smov 0  }
  0x32   :  { %17288 = sst [smem:[#allocation19_spill]] %s12913_s20 }
  0x33   :  { %s12923_s4 = sld [smem:[%s17016_s0 + %s12730_s28]]  }
  0x34   :  { %s12928_s6 = sld [smem:[%s17016_s0 + %s12731_s7]]  }
  0x35   :  { %s12933_s20 = sld [smem:[%s17016_s0 + %s12732_s15]]  }
  0x36 LB: > { %s17289_s3 = sld [smem:[#allocation4_spill]]  ;;  %s11100_s23 = sadd.s32 4294967295, %s12700_s22   ;;  %s12700_s22 = sphi %s12935_s22, %s73_s22  }
  0x37   : > { %p11104_p0 = scmp.ge.s32.totalorder %s12700_s22, 1  ;;  %p909_p1 = scmp.lt.s32.totalorder %s12700_s22, 3 }
  0x39   : > { %p910_p2 = pnand %p11104_p0, %p909_p1 }
  0x3b   : > { %913 = sbr.rel (%p910_p2) target bundleno = 6779 (0x1a7b), region = 144 }
  0x42   : > { %p1009_p3 = scmp.lt.s32.totalorder %s11100_s23, 1  ;;  %s17290_s5 = sld [smem:[#allocation2_spill]]  ;;  %v12584_v0 = vld [vmem:[%s12788_s13] sm:$0xff]   ;;  %vm17057_vm0 = vcmask 261120   ;;  %v12585_v3 = vld [vmem:[%s12788_s13 + $0x8] sm:$0xff]   ;;  %v12586_v4 = vld [vmem:[%s12788_s13 + $0x10] sm:$0xff]   ;;  %v1523_v15 = vlaneseq }
  0x43   : > { %12354 = vmatprep.mubr.msk.bf16.mxu0 %vm17057_vm0, %v12584_v0  ;;  %v12587_v5 = vld [vmem:[%s12788_s13 + $0x18] sm:$0xff]   ;;  %v12588_v6 = vld [vmem:[%s12788_s13 + $0x20] sm:$0xff]   ;;  %v12589_v7 = vld [vmem:[%s12788_s13 + $0x28] sm:$0xff]   ;;  %s17291_s9 = sld [smem:[#allocation3_spill]]  ;;  %vm17042_vm1 = vcmask 1041408   ;;  %v17081_v16 = vmov 0  }
  0x44   : > { %s17968_s23 = smov (!%p1009_p3, %s11100_s23), 1  ;;  %v12590_v8 = vld [vmem:[%s12788_s13 + $0x30] sm:$0xff]   ;;  %v12591_v9 = vld [vmem:[%s12788_s13 + $0x38] sm:$0xff]   ;;  %v11135_v10 = vld [vmem:[%s12793_s17 + $0x2] sm:$0x3]  ;;  %12564 = vset.pattern.permute.xlu0 %v17081_v16  ;;  %12565 = vset.pattern.permute.xlu1 %v17081_v16  ;;  %v12988_v18 = vand.u32 127, %v1523_v15 }
  0x45   : > { %s12948_s0 = sshll.u32 %s17968_s23, 4  ;;  %12484 = vmatprep.subr.msk.bf16.mxu1 %vm17042_vm1, %v11135_v10  ;;  %v1260_v11 = vsel %vm17042_vm1, %v11135_v10, 0  ;;  %v1248_v12 = vld [vmem:[%s12793_s17] sm:$0x3]  ;;  %v12975_v14 = vld [vmem:[%s17289_s3 + $0x10] sm:$0xff]  ;;  %v12980_v17 = vld [vmem:[%s17289_s3 + $0x8] sm:$0xff] }
  0x46   : > { %12371 = vmatpush3.bf16.msra.mxu1 %v1260_v11  ;;  %v12972_v13 = vld [vmem:[%s17289_s3] sm:$0xff]  ;;  %1509 = vperm.xlu1 %12565, %v12975_v14   ;;  %v12990_v19 = vshrl.u32 %v1523_v15, 7  ;;  %v12993_v20 = vld [vmem:[%s17289_s3 + $0x18] sm:$0xff]  ;;  %v1529_v21 = vand.u32 3, %v12988_v18  ;;  %s17023_s1 = smov 10   ;;  %s12735_s2 = smov 5  }
  0x47   : > { %12485 = vmatprep.subr.msk.bf16.mxu1 %vm17042_vm1, %v1248_v12  ;;  %1499 = vperm.xlu0 %12564, %v12972_v13   ;;  %vm17041_vm4 = vcmask 31744   ;;  %v1318_v38 = vsel %vm17042_vm1, %v1248_v12, 0  ;;  %v11140_v39 = vld [vmem:[%s12793_s17 + $0x4] sm:$0x3]  ;;  %v11143_v50 = vld [vmem:[%s12793_s17 + $0x6] sm:$0x3] }
  0x48   : > { %s1013_s26 = scalar_lea.vmem %s17290_s5, %s12948_s0  ;;  %v12997_v22 = vsub.s32 0, %v12990_v19  ;;  %vm1538_vm2 = vcmp.le.s32.totalorder %v1529_v21, 2  ;;  %v1378_v47 = vsel %vm17042_vm1, %v11140_v39, 0  ;;  %v1442_v54 = vsel %vm17042_vm1, %v11143_v50, 0  ;;  %s12736_s7 = smov 6  }
  0x49   : > { %v12582_v1 = vld [vmem:[%s1013_s26] sm:$0xff]   ;;  %v12583_v2 = vld [vmem:[%s1013_s26 + $0x8] sm:$0xff]   ;;  %s12984_s28 = scalar_lea.vmem %s17291_s9, %s12948_s0  ;;  %vm1589_vm3 = vmpackc.low %vm1538_vm2, %vm1538_vm2  ;;  %s17028_s10 = smov 2   ;;  %vm1565_vm5 = vcmask 39936   ;;  %vm1571_vm6 = vcmask 171008   ;;  %vm1537_vm8 = vcmp.ge.s32.totalorder %v1529_v21, 1 }
  0x4a   : > { %12350 = vmatprep.subr.bf16.mxu0 %v12582_v1  ;;  %1514 = vperm.xlu1 %12565, %v12993_v20   ;;  %v1590_v23 = vsel %vm1589_vm3, 65537, %v17081_v16  ;;  %v12592_v25 = vld [vmem:[%s12984_s28] sm:$0xff]   ;;  %s12738_s11 = smov 123   ;;  %s12739_s15 = smov 122   ;;  %vm1578_vm9 = vmpackc.low %vm1537_vm8, %vm1537_vm8  ;;  %v12593_v11 = vld [vmem:[%s12984_s28 + $0x8] sm:$0xff]   ;;  %vm12751_vm15 = vmmov 0  }
  0x4b   : > { %12351 = vmatpush3.bf16.msra.mxu0 %v12582_v1  ;;  %1504 = vperm.xlu0 %12564, %v12980_v17   ;;  %v1594_v24 = vrot.slane %v1590_v23, %v12997_v22  ;;  %s17051_s16 = smov 127   ;;  %v1579_v12 = vsel %vm1578_vm9, 65537, %v17081_v16  ;;  %s17022_s18 = smov 8   ;;  %vm2440_vm2 = vcmask 130048   ;;  %vm2683_vm8 = vcmask 72704  }
  0x4c   : > { %12352 = vmatprep.subr.bf16.mxu0 %v12583_v2  ;;  %v13049_v15 = vrot.slane %v1579_v12, %v12997_v22  ;;  %s12742_s26 = smov 4   ;;  %s17024_s28 = smov 118   ;;  %vm2686_vm9 = vcmask 596992  }
  0x4d   : > { %s17292_s8 = sld [smem:[#allocation5_spill]]  ;;  %s17311_s3 = smov 96  }
  0x4e   : > { %1615 = vrot.lane.b32.xlu1 %v1594_v24, %s17023_s1  ;;  %s12747_s1 = smov 124   ;;  %vm1584_vm14 = vcmp.ne.s16.totalorder %v13049_v15, 0  ;;  %s17312_s5 = smov 95  }
  0x4f   : > { %12353 = vmatpush3.bf16.msra.mxu0 %v12583_v2  ;;  %s17320_s9 = sld [smem:[#allocation11_spill]] }
  0x52   : > { %12355 = vmatmul.mubr.msk.bf16.vlgmr.msra.gmra.mrb[0].mxu0 %vm17057_vm0, %v12585_v3  ;;  %1561 = vrot.lane.b32.xlu1 %v12592_v25, %s12735_s2 }
  0x53   : > { %12358 = vmatprep.mubr.msk.bf16.mxu0 %vm17057_vm0, %v12586_v4 }
  0x56   : > { %1605 = vrot.lane.b32.xlu1 %v1594_v24, %s12736_s7  ;;  %s12744_s7 = smov 120  }
  0x5a   : > { %12359 = vmatmul.mubr.msk.bf16.gmra.mrb[4].mxu0 %vm17057_vm0, %v12587_v5  ;;  %1595 = vrot.lane.b32.xlu1 %v1594_v24, %s17028_s10 }
  0x5b   : > { %12362 = vmatprep.mubr.msk.bf16.mxu0 %vm17057_vm0, %v12588_v6 }
  0x62   : > { %12363 = vmatmul.mubr.msk.bf16.gmra.mrb[8].mxu0 %vm17057_vm0, %v12589_v7 }
  0x63   : > { %12366 = vmatprep.mubr.msk.bf16.mxu0 %vm17057_vm0, %v12590_v8 }
  0x6a   : > { %12367 = vmatmul.mubr.msk.bf16.gmra.mrb[12].mxu0 %vm17057_vm0, %v12591_v9 }
  0xc5   : > { %v1510_v55 = vpop.permute.xlu1 %1509 }
  0xc6   : > { %v1500_v63 = vpop.permute.xlu0 %1499 }
  0xc9   : > { %v1515_v56 = vpop.permute.xlu1 %1514 }
  0xca   : > { %v1505_v3 = vpop.permute.xlu0 %1504 }
  0xcd   : > { %v13024_v57 = vpop.permute.xlu1 %1615 }
  0xce   : > { %vm1617_vm10 = vcmp.ne.s16.totalorder %v13024_v57, 0 }
  0xd1   : > { %v1562_v58 = vpop.permute.xlu1 %1561 }
  0xd2   : > { %v1568_v59 = vsel %vm1565_vm5, 0, %v1562_v58 }
  0xd3   : > { %v13028_v60 = vsel %vm1571_vm6, %v1568_v59, 0 }
  0xd4   : > { %1644 = vrot.lane.b32.xlu1 %v13028_v60, %s12738_s11 }
  0xd5   : > { %v13032_v61 = vpop.permute.xlu1 %1605 }
  0xd6   : > { %vm1607_vm7 = vcmp.ne.s16.totalorder %v13032_v61, 0 }
  0xd7   : > { %v1608_v62 = vsel %vm1607_vm7, %v13028_v60, 0 }
  0xd8   : > { %1652 = vrot.lane.b32.xlu1 %v1608_v62, %s12739_s15 }
  0xdc   : > { %1622 = vrot.lane.b32.xlu1 %v13028_v60, %s17051_s16 }
 0x125   : > { %v12356_v26 = vpop.f32.mrb[0].mxu0 }
 0x126   : > { %v1177_v27 = vpop.f32.mrb[1].mxu0 }
 0x127   : > { %v12357_v28 = vpop.f32.mrb[2].mxu0 }
 0x128   : > { %v1241_v29 = vpack.c.bf16 %v12357_v28, %v12356_v26  ;;  %v1180_v30 = vpop.f32.mrb[3].mxu0 }
 0x129   : > { %v1240_v31 = vpack.c.bf16 %v1180_v30, %v1177_v27  ;;  %v12594_v30 = vld [vmem:[%s12803_s25 + $0x8] ss:$12 sps:$4 sm:$0xff]  }
 0x12d   : > { %v12360_v32 = vpop.f32.mrb[4].mxu0 }
 0x12e   : > { %v1193_v33 = vpop.f32.mrb[5].mxu0 }
 0x12f   : > { %v12361_v34 = vpop.f32.mrb[6].mxu0 }
 0x130   : > { %v1243_v35 = vpack.c.bf16 %v12361_v34, %v12360_v32  ;;  %v1196_v36 = vpop.f32.mrb[7].mxu0  ;;  %v13080_v34 = vpop.permute.xlu1 %1595 }
 0x131   : > { %v1242_v37 = vpack.c.bf16 %v1196_v36, %v1193_v33  ;;  %vm1597_vm12 = vcmp.ne.s16.totalorder %v13080_v34, 0 }
 0x133   : > { %12372 = vmatprep.mubr.msk.bf16.mxu1 %vm17041_vm4, %v1242_v37 }
 0x134   : > { %12373 = vmatmul.mubr.msk.bf16.vlgmr.msra.gmra.mrb[0].mxu1 %vm17041_vm4, %v1243_v35 }
 0x135   : > { %12378 = vmatprep.mubr.msk.bf16.mxu1 %vm17041_vm4, %v1240_v31  ;;  %12377 = vmatpush3.bf16.msra.mxu1 %v1318_v38  ;;  %v12364_v40 = vpop.f32.mrb[8].mxu0  ;;  %v1598_v38 = vsel %vm1597_vm12, %v13028_v60, 0 }
 0x136   : > { %v1209_v41 = vpop.f32.mrb[9].mxu0  ;;  %12486 = vmatprep.subr.msk.bf16.mxu1 %vm17042_vm1, %v11140_v39 }
 0x137   : > { %v12365_v42 = vpop.f32.mrb[10].mxu0 }
 0x138   : > { %v1245_v43 = vpack.c.bf16 %v12365_v42, %v12364_v40  ;;  %v1212_v44 = vpop.f32.mrb[11].mxu0 }
 0x139   : > { %v1244_v45 = vpack.c.bf16 %v1212_v44, %v1209_v41 }
 0x13d   : > { %v12368_v46 = vpop.f32.mrb[12].mxu0 }
 0x13e   : > { %v1225_v48 = vpop.f32.mrb[13].mxu0 }
 0x13f   : > { %v12369_v49 = vpop.f32.mrb[14].mxu0 }
 0x140   : > { %12379 = vmatmul.mubr.msk.bf16.vlgmr.msra.gmra.mrb[0].mxu1 %vm17041_vm4, %v1241_v29  ;;  %v1247_v51 = vpack.c.bf16 %v12369_v49, %v12368_v46  ;;  %v1228_v52 = vpop.f32.mrb[15].mxu0  ;;  %v1618_v49 = vsel %vm1617_vm10, %v13028_v60, 0 }
 0x141   : > { %12383 = vmatpush3.bf16.msra.mxu1 %v1378_v47  ;;  %12384 = vmatprep.mubr.msk.bf16.mxu1 %vm17041_vm4, %v1244_v45  ;;  %v1246_v53 = vpack.c.bf16 %v1228_v52, %v1225_v48 }
 0x142   : > { %12487 = vmatprep.subr.msk.bf16.mxu1 %vm17042_vm1, %v11143_v50  ;;  %v12604_v50 = vld [vmem:[%s12803_s25 + $0x4] ss:$12 sps:$4 sm:$0xff]   ;;  %vm3601_vm1 = vcmask 146432  }
 0x143   : > { %1842 = vmatprep.mubr.bf16.mxu0 %v12604_v50  ;;  %v12606_v50 = vld [vmem:[%s12798_s21 + $0x20] ss:$12 sps:$4 sm:$0xff]  }
 0x14c   : > { %12385 = vmatmul.mubr.msk.bf16.vlgmr.msra.gmra.mrb[0].mxu1 %vm17041_vm4, %v1245_v43 }
 0x14d   : > { %12389 = vmatpush3.bf16.msra.mxu1 %v1442_v54  ;;  %12390 = vmatprep.mubr.msk.bf16.mxu1 %vm17041_vm4, %v1246_v53  ;;  %v12748_v54 = vmov 1  }
 0x14e   : > { %12566 = vset.pattern.permute.xlu1 %v12748_v54  ;;  %12567 = vset.pattern.permute.xlu0 %v12748_v54 }
 0x158   : > { %12391 = vmatmul.mubr.msk.bf16.vlgmr.msra.gmra.mrb[0].mxu1 %vm17041_vm4, %v1247_v51  ;;  %vm3671_vm4 = vcmask 916480  }
 0x159   : > { %12398 = vmatprep.mubr.msk.bf16.mxu1 %vm17057_vm0, %v12594_v30 }
 0x22b   : > { %v12392_v0 = vpop.f32.mrb[0].mxu1 }
 0x22c   : > { %v1478_v1 = vpop.f32.mrb[1].mxu1  ;;  %v1519_v4 = vadd.f32 %v12392_v0, %v1510_v55 }
 0x22d   : > { %v12393_v2 = vpop.f32.mrb[2].mxu1  ;;  %v1517_v7 = vadd.f32 %v1500_v63, %v1478_v1 }
 0x22e   : > { %v1520_v5 = vadd.f32 %v12393_v2, %v1515_v56  ;;  %v1481_v6 = vpop.f32.mrb[3].mxu1  ;;  %v1645_v56 = vpop.permute.xlu1 %1644 }
 0x22f   : > { %v1518_v8 = vadd.f32 %v1505_v3, %v1481_v6 }
 0x230   : > { %v1522_v9 = vpack.c.bf16 %v1520_v5, %v1519_v4  ;;  %v12595_v5 = vld [vmem:[%s12803_s25 + $0x20] ss:$12 sps:$4 sm:$0xff]  }
 0x231   : > { %v1521_v10 = vpack.c.bf16 %v1518_v8, %v1517_v7  ;;  %v12598_v8 = vld [vmem:[%s12798_s21 + $0x4] ss:$12 sps:$4 sm:$0xff]  }
 0x232   : > { %v1653_v58 = vpop.permute.xlu1 %1652 }
 0x233   : > { %1690 = vrot.lane.b32.xlu0 %v1521_v10, %s12735_s2  ;;  %v1585_v10 = vsel %vm1584_vm14, %v13028_v60, 0 }
 0x236   : > { %v1623_v59 = vpop.permute.xlu1 %1622 }
 0x237   : > { %1692 = vrot.lane.b32.xlu0 %v1522_v9, %s12735_s2 }
 0x23b   : > { %1563 = vrot.lane.b32.xlu0 %v12593_v11, %s12735_s2 }
 0x23f   : > { %1610 = vrot.lane.b32.xlu0 %v13049_v15, %s17022_s18  ;;  %s12746_s18 = smov 119  }
 0x243   : > { %1600 = vrot.lane.b32.xlu0 %v13049_v15, %s12742_s26  ;;  %s17054_s26 = smov 126  }
 0x2a5   : > { %v1691_v21 = vpop.permute.xlu0 %1690 }
 0x2a6   : > { %v1695_v23 = vsel %vm1565_vm5, 0, %v1691_v21 }
 0x2a7   : > { %v13057_v24 = vsel %vm1571_vm6, %v1695_v23, 0 }
 0x2a8   : > { %v1712_v25 = vsel %vm1617_vm10, %v13057_v24, 0  ;;  %v1708_v44 = vsel %vm1607_vm7, %v13057_v24, 0  ;;  %v1704_v48 = vsel %vm1597_vm12, %v13057_v24, 0  ;;  %v1702_v9 = vsel %vm1584_vm14, %v13057_v24, 0 }
 0x2a9   : > { %1768 = vrot.lane.b32.xlu1 %v1712_v25, %s17024_s28  ;;  %v1693_v26 = vpop.permute.xlu0 %1692 }
 0x2aa   : > { %v1697_v27 = vsel %vm1565_vm5, 0, %v1693_v26 }
 0x2ab   : > { %v13065_v28 = vsel %vm1571_vm6, %v1697_v27, 0 }
 0x2ac   : > { %v1713_v37 = vsel %vm1617_vm10, %v13065_v28, 0  ;;  %v1709_v42 = vsel %vm1607_vm7, %v13065_v28, 0  ;;  %v1705_v51 = vsel %vm1597_vm12, %v13065_v28, 0  ;;  %v1703_v21 = vsel %vm1584_vm14, %v13065_v28, 0 }
 0x2ad   : > { %1740 = vrot.lane.b32.xlu1 %v13065_v28, %s12738_s11  ;;  %v1564_v29 = vpop.permute.xlu0 %1563 }
 0x2ae   : > { %v1570_v31 = vsel %vm1565_vm5, 0, %v1564_v29 }
 0x2af   : > { %v13072_v32 = vsel %vm1571_vm6, %v1570_v31, 0 }
 0x2b0   : > { %1646 = vrot.lane.b32.xlu0 %v13072_v32, %s12738_s11  ;;  %v1609_v35 = vsel %vm1607_vm7, %v13072_v32, 0  ;;  %v1599_v40 = vsel %vm1597_vm12, %v13072_v32, 0  ;;  %v1619_v55 = vsel %vm1617_vm10, %v13072_v32, 0  ;;  %v1586_v23 = vsel %vm1584_vm14, %v13072_v32, 0 }
 0x2b1   : > { %v13077_v33 = vpop.permute.xlu0 %1610 }
 0x2b2   : > { %vm1612_vm11 = vcmp.ne.s16.totalorder %v13077_v33, 0 }
 0x2b3   : > { %v1613_v36 = vsel %vm1612_vm11, %v13028_v60, 0  ;;  %v1614_v39 = vsel %vm1612_vm11, %v13072_v32, 0  ;;  %v1711_v46 = vsel %vm1612_vm11, %v13065_v28, 0  ;;  %v1710_v47 = vsel %vm1612_vm11, %v13057_v24, 0 }
 0x2b4   : > { %1654 = vrot.lane.b32.xlu0 %v1609_v35, %s12739_s15  ;;  %1660 = vrot.lane.b32.xlu1 %v1613_v36, %s12744_s7 }
 0x2b5   : > { %v13111_v41 = vpop.permute.xlu0 %1600 }
 0x2b6   : > { %vm1602_vm13 = vcmp.ne.s16.totalorder %v13111_v41, 0 }
 0x2b7   : > { %v1603_v43 = vsel %vm1602_vm13, %v13028_v60, 0  ;;  %v1604_v45 = vsel %vm1602_vm13, %v13072_v32, 0  ;;  %v1706_v52 = vsel %vm1602_vm13, %v13057_v24, 0  ;;  %v1707_v53 = vsel %vm1602_vm13, %v13065_v28, 0 }
 0x2b8   : > { %1770 = vrot.lane.b32.xlu0 %v1713_v37, %s17024_s28  ;;  %1630 = vrot.lane.b32.xlu1 %v1598_v38, %s17054_s26  ;;  %v12596_v37 = vld [vmem:[%s12798_s21] ss:$12 sps:$4 sm:$0xff]   ;;  %v12599_v38 = vld [vmem:[%s12798_s21 + $0x1c] ss:$12 sps:$4 sm:$0xff]  }
 0x2bc   : > { %1738 = vrot.lane.b32.xlu0 %v13057_v24, %s12738_s11  ;;  %1662 = vrot.lane.b32.xlu1 %v1614_v39, %s12744_s7 }
 0x2c0   : > { %1624 = vrot.lane.b32.xlu0 %v13072_v32, %s17051_s16  ;;  %1632 = vrot.lane.b32.xlu1 %v1599_v40, %s17054_s26 }
 0x2c4   : > { %1716 = vrot.lane.b32.xlu0 %v13057_v24, %s17051_s16  ;;  %1666 = vrot.lane.b32.xlu1 %v13028_v60, %s12746_s18 }
 0x2c8   : > { %1748 = vrot.lane.b32.xlu0 %v1709_v42, %s12739_s15  ;;  %1638 = vrot.lane.b32.xlu1 %v1603_v43, %s12747_s1  ;;  %v12601_v43 = vld [vmem:[%s12798_s21 + $0x18] ss:$12 sps:$4 sm:$0xff]  }
 0x2cc   : > { %1718 = vrot.lane.b32.xlu0 %v13065_v28, %s17051_s16  ;;  %1668 = vrot.lane.b32.xlu1 %v13072_v32, %s12746_s18 }
 0x2d0   : > { %1746 = vrot.lane.b32.xlu0 %v1708_v44, %s12739_s15  ;;  %1640 = vrot.lane.b32.xlu1 %v1604_v45, %s12747_s1  ;;  %v12605_v44 = vld [vmem:[%s12798_s21 + $0x8] ss:$12 sps:$4 sm:$0xff]  }
 0x2d4   : > { %1756 = vrot.lane.b32.xlu0 %v1711_v46, %s12744_s7  ;;  %1760 = vrot.lane.b32.xlu1 %v13057_v24, %s12746_s18 }
 0x2d8   : > { %1754 = vrot.lane.b32.xlu0 %v1710_v47, %s12744_s7  ;;  %1762 = vrot.lane.b32.xlu1 %v13065_v28, %s12746_s18  ;;  %v12602_v47 = vld [vmem:[%s12803_s25] ss:$12 sps:$4 sm:$0xff]  }
 0x2dc   : > { %1724 = vrot.lane.b32.xlu0 %v1704_v48, %s17054_s26  ;;  %1674 = vrot.lane.b32.xlu1 %v1618_v49, %s17024_s28  ;;  %v12607_v48 = vld [vmem:[%s12803_s25 + $0x1c] ss:$12 sps:$4 sm:$0xff]  }
 0x2e0   : > { %1726 = vrot.lane.b32.xlu0 %v1705_v51, %s17054_s26  ;;  %2043 = vperm.xlu1 %12566, %v12972_v13   ;;  %v12609_v51 = vld [vmem:[%s12803_s25 + $0x18] ss:$12 sps:$4 sm:$0xff]  }
 0x2e4   : > { %1732 = vrot.lane.b32.xlu0 %v1706_v52, %s12747_s1  ;;  %2051 = vperm.xlu1 %12566, %v12975_v14  }
 0x2e8   : > { %1734 = vrot.lane.b32.xlu0 %v1707_v53, %s12747_s1  ;;  %2055 = vperm.xlu1 %12566, %v12993_v20  }
 0x2ec   : > { %1676 = vrot.lane.b32.xlu0 %v1619_v55, %s17024_s28 }
 0x2f0   : > { %2047 = vperm.xlu0 %12567, %v12980_v17  }
 0x31b   : > { %v1769_v62 = vpop.permute.xlu1 %1768 }
 0x31c   : > { %12394 = vmatprep.subr.bf16.mxu1 %v1769_v62 }
 0x31d   : > { %12395 = vmatpush3.bf16.msra.mxu1 %v1769_v62 }
 0x31f   : > { %v1741_v63 = vpop.permute.xlu1 %1740 }
 0x322   : > { %v1647_v0 = vpop.permute.xlu0 %1646 }
 0x326   : > { %v1661_v1 = vpop.permute.xlu1 %1660  ;;  %v1655_v2 = vpop.permute.xlu0 %1654 }
 0x32a   : > { %v1631_v3 = vpop.permute.xlu1 %1630  ;;  %v1771_v4 = vpop.permute.xlu0 %1770 }
 0x32b   : > { %12396 = vmatprep.subr.bf16.mxu1 %v1771_v4 }
 0x32c   : > { %12397 = vmatpush3.bf16.msra.mxu1 %v1771_v4 }
 0x32d   : > { %12269 = vmatprep.subr.bf16.mxu1 %v1645_v56 }
 0x32e   : > { %v1663_v6 = vpop.permute.xlu1 %1662  ;;  %v1739_v7 = vpop.permute.xlu0 %1738 }
 0x32f   : > { %12237 = vmatprep.subr.bf16.mxu0 %v1739_v7  ;;  %12399 = vmatmul.mubr.msk.bf16.vlgmr.msra.gmra.mrb[4].mxu1 %vm17057_vm0, %v12595_v5 }
 0x330   : > { %12238 = vmatpush3.bf16.msra.mxu0 %v1702_v9  ;;  %12270 = vmatpush3.bf16.msra.mxu1 %v1585_v10 }
 0x331   : > { %12239 = vmatprep.subr.bf16.mxu0 %v1741_v63  ;;  %12271 = vmatprep.subr.bf16.mxu1 %v1647_v0 }
 0x332   : > { %v1633_v11 = vpop.permute.xlu1 %1632  ;;  %v1625_v12 = vpop.permute.xlu0 %1624  ;;  %1976 = vmatprep.mubr.bf16.mxu1 %v12598_v8 }
 0x334   : > { %12240 = vmatpush3.bf16.msra.mxu0 %v1703_v21  ;;  %12272 = vmatpush3.bf16.msra.mxu1 %v1586_v23 }
 0x335   : > { %12273 = vmatprep.subr.bf16.mxu1 %v1653_v58 }
 0x336   : > { %v1667_v24 = vpop.permute.xlu1 %1666  ;;  %v1717_v60 = vpop.permute.xlu0 %1716 }
 0x338   : > { %12274 = vmatpush3.bf16.msra.mxu1 %v1623_v59 }
 0x339   : > { %12275 = vmatprep.subr.bf16.mxu1 %v1655_v2 }
 0x33a   : > { %v1639_v25 = vpop.permute.xlu1 %1638  ;;  %v1749_v26 = vpop.permute.xlu0 %1748 }
 0x33c   : > { %12276 = vmatpush3.bf16.msra.mxu1 %v1625_v12 }
 0x33d   : > { %12277 = vmatprep.subr.bf16.mxu1 %v1661_v1 }
 0x33e   : > { %v1669_v27 = vpop.permute.xlu1 %1668  ;;  %v1719_v29 = vpop.permute.xlu0 %1718 }
 0x340   : > { %12278 = vmatpush3.bf16.msra.mxu1 %v1631_v3 }
 0x341   : > { %12279 = vmatprep.subr.bf16.mxu1 %v1663_v6 }
 0x342   : > { %v1641_v28 = vpop.permute.xlu1 %1640  ;;  %v1747_v30 = vpop.permute.xlu0 %1746 }
 0x343   : > { %12241 = vmatprep.subr.bf16.mxu0 %v1747_v30 }
 0x344   : > { %12242 = vmatpush3.bf16.msra.mxu0 %v1717_v60  ;;  %12280 = vmatpush3.bf16.msra.mxu1 %v1633_v11 }
 0x345   : > { %12243 = vmatprep.subr.bf16.mxu0 %v1749_v26  ;;  %12281 = vmatprep.subr.bf16.mxu1 %v1667_v24 }
 0x346   : > { %v1761_v31 = vpop.permute.xlu1 %1760  ;;  %v1757_v32 = vpop.permute.xlu0 %1756 }
 0x348   : > { %12244 = vmatpush3.bf16.msra.mxu0 %v1719_v29  ;;  %12282 = vmatpush3.bf16.msra.mxu1 %v1639_v25 }
 0x349   : > { %12283 = vmatprep.subr.bf16.mxu1 %v1669_v27 }
 0x34a   : > { %v1763_v35 = vpop.permute.xlu1 %1762  ;;  %v1755_v36 = vpop.permute.xlu0 %1754 }
 0x34b   : > { %12245 = vmatprep.subr.bf16.mxu0 %v1755_v36 }
 0x34c   : > { %12284 = vmatpush3.bf16.msra.mxu1 %v1641_v28 }
 0x34e   : > { %v1675_v39 = vpop.permute.xlu1 %1674  ;;  %v1725_v40 = vpop.permute.xlu0 %1724 }
 0x34f   : > { %12246 = vmatpush3.bf16.msra.mxu0 %v1725_v40  ;;  %12402 = vmatprep.subr.bf16.mxu1 %v1675_v39 }
 0x350   : > { %12247 = vmatprep.subr.bf16.mxu0 %v1757_v32  ;;  %1977 = vmatmul.mubr.bf16.vlgmr.msra.gmra.mrb[8].mxu1 %v12596_v37 }
 0x351   : > { %12403 = vmatpush3.bf16.msra.mxu1 %v1675_v39  ;;  %1984 = vmatprep.mubr.bf16.mxu1 %v12599_v38 }
 0x352   : > { %v1727_v42 = vpop.permute.xlu0 %1726 }
 0x353   : > { %12248 = vmatpush3.bf16.msra.mxu0 %v1727_v42 }
 0x354   : > { %12249 = vmatprep.subr.bf16.mxu0 %v1761_v31 }
 0x356   : > { %v1733_v45 = vpop.permute.xlu0 %1732 }
 0x357   : > { %12250 = vmatpush3.bf16.msra.mxu0 %v1733_v45 }
 0x358   : > { %12251 = vmatprep.subr.bf16.mxu0 %v1763_v35  ;;  %1985 = vmatmul.mubr.bf16.gmra.mrb[12].mxu1 %v12601_v43 }
 0x359   : > { %12406 = vmatprep.mubr.msk.bf16.mxu1 %vm17057_vm0, %v12605_v44 }
 0x35a   : > { %v1735_v46 = vpop.permute.xlu0 %1734 }
 0x35b   : > { %12252 = vmatpush3.bf16.msra.mxu0 %v1735_v46 }
 0x35e   : > { %1843 = vmatmul.mubr.bf16.vlgmr.msra.gmra.mrb[16].mxu0 %v12602_v47  ;;  %v1677_v49 = vpop.permute.xlu0 %1676 }
 0x35f   : > { %12404 = vmatprep.subr.bf16.mxu1 %v1677_v49  ;;  %1850 = vmatprep.mubr.bf16.mxu0 %v12607_v48  ;;  %v2044_v11 = vpop.permute.xlu1 %2043 }
 0x360   : > { %12405 = vmatpush3.bf16.msra.mxu1 %v1677_v49 }
 0x363   : > { %12407 = vmatmul.mubr.msk.bf16.vlgmr.msra.gmra.mrb[4].mxu1 %vm17057_vm0, %v12606_v50  ;;  %v2052_v35 = vpop.permute.xlu1 %2051 }
 0x366   : > { %1851 = vmatmul.mubr.bf16.gmra.mrb[20].mxu0 %v12609_v51 }
 0x367   : > { %v2056_v48 = vpop.permute.xlu1 %2055 }
 0x36f   : > { %v2048_v25 = vpop.permute.xlu0 %2047 }
 0x423   : > { %v12285_v52 = vpop.f32.mrb[8].mxu1 }
 0x424   : > { %v12286_v53 = vpop.f32.mrb[9].mxu1 }
 0x425   : > { %v12287_v55 = vadd.f32 %v12286_v53, %v12285_v52  ;;  %v12288_v56 = vpop.f32.mrb[10].mxu1 }
 0x426   : > { %v12289_v58 = vpop.f32.mrb[11].mxu1 }
 0x427   : > { %v12290_v59 = vadd.f32 %v12289_v58, %v12288_v56 }
 0x42b   : > { %v12291_v62 = vpop.f32.mrb[12].mxu1 }
 0x42c   : > { %v12292_v63 = vpop.f32.mrb[13].mxu1 }
 0x42d   : > { %v12293_v0 = vadd.f32 %v12292_v63, %v12291_v62  ;;  %v12294_v1 = vpop.f32.mrb[14].mxu1 }
 0x42e   : > { %v12295_v2 = vpop.f32.mrb[15].mxu1 }
 0x42f   : > { %v12296_v3 = vadd.f32 %v12295_v2, %v12294_v1 }
 0x431   : > { %v12253_v4 = vpop.f32.mrb[16].mxu0 }
 0x432   : > { %v12254_v5 = vpop.f32.mrb[17].mxu0 }
 0x433   : > { %v12255_v6 = vadd.f32 %v12254_v5, %v12253_v4  ;;  %v12256_v7 = vpop.f32.mrb[18].mxu0 }
 0x434   : > { %v12257_v8 = vpop.f32.mrb[19].mxu0 }
 0x435   : > { %v12258_v9 = vadd.f32 %v12257_v8, %v12256_v7  ;;  %v12462_v10 = vadd.f32 %v12287_v55, %v12255_v6  ;;  %v17080_v7 = vmov 2  }
 0x436   : > { %v12408_v12 = vpop.f32.mrb[4].mxu1  ;;  %12568 = vset.pattern.permute.xlu0 %v17080_v7  ;;  %12569 = vset.pattern.permute.xlu1 %v17080_v7 }
 0x437   : > { %v2027_v21 = vpop.f32.mrb[5].mxu1  ;;  %v12466_v23 = vadd.f32 %v12290_v59, %v12258_v9 }
 0x438   : > { %v12463_v24 = vadd.f32 %v12462_v10, %v2027_v21  ;;  %v12409_v60 = vpop.f32.mrb[6].mxu1 }
 0x439   : > { %v12259_v26 = vpop.f32.mrb[20].mxu0  ;;  %v2030_v27 = vpop.f32.mrb[7].mxu1 }
 0x43a   : > { %v2058_v29 = vadd.f32 %v12463_v24, %v2044_v11  ;;  %v12467_v28 = vadd.f32 %v12466_v23, %v2030_v27  ;;  %v12260_v30 = vpop.f32.mrb[21].mxu0  ;;  %v12613_v27 = vld [vmem:[%s12808_s29 + $0x1c] ss:$12 sps:$4 sm:$0xff]  }
 0x43b   : > { %v12261_v31 = vadd.f32 %v12260_v30, %v12259_v26  ;;  %v12262_v32 = vpop.f32.mrb[22].mxu0  ;;  %v12616_v30 = vld [vmem:[%s12808_s29 + $0x8] ss:$12 sps:$4 sm:$0xff]  }
 0x43c   : > { %v2059_v36 = vadd.f32 %v12467_v28, %v2048_v25  ;;  %v12263_v37 = vpop.f32.mrb[23].mxu0  ;;  %v2062_v40 = vmax.f32 %v2058_v29, 0.0  ;;  %v12610_v25 = vld [vmem:[%s12808_s29] ss:$12 sps:$4 sm:$0xff]   ;;  %v12615_v28 = vld [vmem:[%s12808_s29 + $0x18] ss:$12 sps:$4 sm:$0xff]  }
 0x43d   : > { %v12460_v38 = vadd.f32 %v12293_v0, %v12261_v31  ;;  %v12264_v39 = vadd.f32 %v12263_v37, %v12262_v32  ;;  %v12617_v31 = vld [vmem:[%s12808_s29 + $0x20] ss:$12 sps:$4 sm:$0xff]  }
 0x43e   : > { %v2063_v42 = vmax.f32 %v2059_v36, 0.0  ;;  %v12618_v32 = vld [vmem:[%s12823_s14] sm:$0xff]  }
 0x43f   : > { %v12461_v43 = vadd.f32 %v12460_v38, %v12408_v12  ;;  %v12464_v44 = vadd.f32 %v12296_v3, %v12264_v39  ;;  %v12612_v3 = vld [vmem:[%s12808_s29 + $0x4] ss:$12 sps:$4 sm:$0xff]   ;;  %12422 = vmatprep.mubr.msk.bf16.mxu1 %vm17057_vm0, %v12618_v32 }
 0x440   : > { %v2066_v45 = vpack.c.bf16 %v2063_v42, %v2062_v40  ;;  %2246 = vmatprep.mubr.bf16.mxu0 %v12612_v3 }
 0x441   : > { %v12465_v46 = vadd.f32 %v12464_v44, %v12409_v60  ;;  %v2060_v47 = vadd.f32 %v12461_v43, %v2052_v35 }
 0x442   : > { %2078 = vrot.lane.b32.xlu0 %v2066_v45, %s12735_s2 }
 0x443   : > { %v2061_v49 = vadd.f32 %v12465_v46, %v2056_v48  ;;  %v2064_v50 = vmax.f32 %v2060_v47, 0.0 }
 0x445   : > { %v2065_v51 = vmax.f32 %v2061_v49, 0.0 }
 0x447   : > { %v2067_v52 = vpack.c.bf16 %v2065_v51, %v2064_v50 }
 0x449   : > { %2080 = vrot.lane.b32.xlu1 %v2067_v52, %s12735_s2 }
 0x4b4   : > { %v2079_v53 = vpop.permute.xlu0 %2078 }
 0x4b5   : > { %v2083_v55 = vsel %vm1565_vm5, 0, %v2079_v53 }
 0x4b6   : > { %v2086_v56 = vsel %vm1571_vm6, %v2083_v55, 0 }
 0x4b7   : > { %2126 = vrot.lane.b32.xlu0 %v2086_v56, %s12738_s11  ;;  %v2096_v58 = vsel %vm1607_vm7, %v2086_v56, 0  ;;  %v2098_v1 = vsel %vm1612_vm11, %v2086_v56, 0  ;;  %v2092_v61 = vsel %vm1597_vm12, %v2086_v56, 0  ;;  %v2094_v33 = vsel %vm1602_vm13, %v2086_v56, 0 }
 0x4b8   : > { %v2100_v5 = vsel %vm1617_vm10, %v2086_v56, 0  ;;  %v2090_v41 = vsel %vm1584_vm14, %v2086_v56, 0 }
 0x4bb   : > { %v2081_v59 = vpop.permute.xlu1 %2080  ;;  %2134 = vrot.lane.b32.xlu0 %v2096_v58, %s12739_s15 }
 0x4bc   : > { %v2085_v62 = vsel %vm1565_vm5, 0, %v2081_v59 }
 0x4bd   : > { %v2088_v63 = vsel %vm1571_vm6, %v2085_v62, 0 }
 0x4be   : > { %2128 = vrot.lane.b32.xlu1 %v2088_v63, %s12738_s11  ;;  %v2097_v0 = vsel %vm1607_vm7, %v2088_v63, 0  ;;  %v2099_v2 = vsel %vm1612_vm11, %v2088_v63, 0  ;;  %v2093_v4 = vsel %vm1597_vm12, %v2088_v63, 0  ;;  %v2095_v6 = vsel %vm1602_vm13, %v2088_v63, 0  ;;  %s17293_s11 = smov 10  }
 0x4bf   : > { %2136 = vrot.lane.b32.xlu0 %v2097_v0, %s12739_s15  ;;  %v2101_v34 = vsel %vm1617_vm10, %v2088_v63, 0  ;;  %s12752_s15 = smov 9  }
 0x4c2   : > { %2104 = vrot.lane.b32.xlu1 %v2086_v56, %s17051_s16 }
 0x4c3   : > { %2142 = vrot.lane.b32.xlu0 %v2098_v1, %s12744_s7 }
 0x4c6   : > { %2106 = vrot.lane.b32.xlu1 %v2088_v63, %s17051_s16 }
 0x4c7   : > { %2144 = vrot.lane.b32.xlu0 %v2099_v2, %s12744_s7 }
 0x4ca   : > { %2112 = vrot.lane.b32.xlu1 %v2092_v61, %s17054_s26 }
 0x4cb   : > { %2148 = vrot.lane.b32.xlu0 %v2086_v56, %s12746_s18 }
 0x4ce   : > { %2114 = vrot.lane.b32.xlu1 %v2093_v4, %s17054_s26 }
 0x4cf   : > { %2150 = vrot.lane.b32.xlu0 %v2088_v63, %s12746_s18 }
 0x4d2   : > { %2120 = vrot.lane.b32.xlu1 %v2094_v33, %s12747_s1 }
 0x4d3   : > { %2156 = vrot.lane.b32.xlu0 %v2100_v5, %s17024_s28 }
 0x4d6   : > { %2122 = vrot.lane.b32.xlu1 %v2095_v6, %s12747_s1  ;;  %s17032_s1 = sshll.u32 %s17968_s23, 3 }
 0x4d7   : > { %2163 = vperm.xlu0 %12568, %v12972_v13   ;;  %v2091_v13 = vsel %vm1584_vm14, %v2088_v63, 0  ;;  %s1023_s2 = scalar_lea.vmem %s17292_s8, %s17032_s1  ;;  %s17296_s1 = sld [smem:[#allocation6_spill]] }
 0x4d8   : > { %s17075_s8 = smov 94  }
 0x4da   : > { %2158 = vrot.lane.b32.xlu1 %v2101_v34, %s17024_s28  ;;  %s17026_s28 = smov 18  }
 0x4db   : > { %2175 = vperm.xlu0 %12568, %v12993_v20  }
 0x4de   : > { %2167 = vperm.xlu1 %12569, %v12980_v17  }
 0x4df   : > { %12571 = vset.pattern.permute.xlu0 %v17081_v16 }
 0x4e2   : > { %2171 = vperm.xlu1 %12569, %v12975_v14  }
 0x4e6   : > { %12570 = vset.pattern.permute.xlu1 %v17081_v16 }
 0x529   : > { %v2127_v57 = vpop.permute.xlu0 %2126 }
 0x52a   : > { %12301 = vmatprep.subr.bf16.mxu0 %v2127_v57  ;;  %v12619_v57 = vld [vmem:[%s12823_s14 + $0x8] sm:$0xff]  }
 0x52b   : > { %12302 = vmatpush3.bf16.msra.mxu0 %v2090_v41  ;;  %v12620_v41 = vld [vmem:[%s12823_s14 + $0x10] sm:$0xff]  }
 0x52d   : > { %v2135_v8 = vpop.permute.xlu0 %2134 }
 0x530   : > { %v2129_v9 = vpop.permute.xlu1 %2128 }
 0x531   : > { %v2137_v10 = vpop.permute.xlu0 %2136  ;;  %12303 = vmatprep.subr.bf16.mxu0 %v2129_v9  ;;  %v12622_v9 = vld [vmem:[%s12828_s19 + $0x8] sm:$0xff]  }
 0x532   : > { %12304 = vmatpush3.bf16.msra.mxu0 %v2091_v13  ;;  %v12623_v13 = vld [vmem:[%s12828_s19 + $0x10] sm:$0xff]  }
 0x533   : > { %12305 = vmatprep.subr.bf16.mxu0 %v2135_v8  ;;  %v12621_v8 = vld [vmem:[%s12823_s14 + $0x18] sm:$0xff]  }
 0x534   : > { %v2105_v14 = vpop.permute.xlu1 %2104 }
 0x535   : > { %v2143_v17 = vpop.permute.xlu0 %2142 }
 0x536   : > { %12306 = vmatpush3.bf16.msra.mxu0 %v2105_v14  ;;  %v13283_v14 = vld [vmem:[%s12848_s12] sm:$0xff] }
 0x537   : > { %12307 = vmatprep.subr.bf16.mxu0 %v2137_v10  ;;  %v12750_v10 = vmov 0.0   ;;  %2647 = vperm.xlu1 %12570, %v13283_v14  }
 0x538   : > { %v2107_v20 = vpop.permute.xlu1 %2106 }
 0x539   : > { %v2145_v11 = vpop.permute.xlu0 %2144 }
 0x53a   : > { %12308 = vmatpush3.bf16.msra.mxu0 %v2107_v20 }
 0x53b   : > { %12309 = vmatprep.subr.bf16.mxu0 %v2143_v17  ;;  %v13286_v17 = vld [vmem:[%s12848_s12 + $0x8] sm:$0xff]  ;;  %12572 = vset.pattern.permute.xlu1 %v12748_v54 }
 0x53c   : > { %v2113_v12 = vpop.permute.xlu1 %2112  ;;  %2652 = vperm.xlu0 %12571, %v13286_v17  }
 0x53d   : > { %v2149_v21 = vpop.permute.xlu0 %2148 }
 0x53e   : > { %12310 = vmatpush3.bf16.msra.mxu0 %v2113_v12 }
 0x53f   : > { %12311 = vmatprep.subr.bf16.mxu0 %v2145_v11 }
 0x540   : > { %v2115_v23 = vpop.permute.xlu1 %2114  ;;  %12573 = vset.pattern.permute.xlu0 %v12748_v54 }
 0x541   : > { %v2151_v15 = vpop.permute.xlu0 %2150 }
 0x542   : > { %12312 = vmatpush3.bf16.msra.mxu0 %v2115_v23 }
 0x543   : > { %12313 = vmatprep.subr.bf16.mxu0 %v2149_v21  ;;  %v12624_v21 = vld [vmem:[%s12828_s19] sm:$0xff]  }
 0x544   : > { %v2121_v24 = vpop.permute.xlu1 %2120 }
 0x545   : > { %v2157_v26 = vpop.permute.xlu0 %2156 }
 0x546   : > { %12314 = vmatpush3.bf16.msra.mxu0 %v2121_v24 }
 0x547   : > { %12315 = vmatprep.subr.bf16.mxu0 %v2151_v15 }
 0x548   : > { %v2123_v60 = vpop.permute.xlu1 %2122 }
 0x54a   : > { %12316 = vmatpush3.bf16.msra.mxu0 %v2123_v60 }
 0x54b   : > { %12410 = vmatprep.subr.bf16.mxu0 %v2157_v26 }
 0x54c   : > { %v2159_v29 = vpop.permute.xlu1 %2158 }
 0x54d   : > { %2247 = vmatmul.mubr.bf16.vlgmr.msra.gmra.mrb[24].mxu0 %v12610_v25 }
 0x54e   : > { %12411 = vmatpush3.bf16.msra.mxu0 %v2157_v26  ;;  %2254 = vmatprep.mubr.bf16.mxu0 %v12613_v27  ;;  %v12625_v27 = vld [vmem:[%s12828_s19 + $0x18] sm:$0xff]  }
 0x54f   : > { %12412 = vmatprep.subr.bf16.mxu0 %v2159_v29 }
 0x552   : > { %12413 = vmatpush3.bf16.msra.mxu0 %v2159_v29 }
 0x553   : > { %12430 = vmatprep.subr.bf16.mxu0 %v12750_v10 }
 0x555   : > { %2255 = vmatmul.mubr.bf16.gmra.mrb[28].mxu0 %v12615_v28 }
 0x556   : > { %12414 = vmatprep.mubr.msk.bf16.mxu0 %vm17057_vm0, %v12616_v30  ;;  %v2164_v45 = vpop.permute.xlu0 %2163 }
 0x55a   : > { %v2176_v51 = vpop.permute.xlu0 %2175 }
 0x55d   : > { %12415 = vmatmul.mubr.msk.bf16.vlgmr.msra.gmra.mrb[32].mxu0 %vm17057_vm0, %v12617_v31  ;;  %v2168_v42 = vpop.permute.xlu1 %2167  ;;  %v2662_v31 = vand.u32 7, %v12988_v18 }
 0x55e   : > { %12431 = vmatpush3.bf16.msra.mxu0 %v12622_v9  ;;  %12432 = vmatprep.mubr.msk.bf16.mxu0 %vm12751_vm15, %v12750_v10 }
 0x55f   : > { %12436 = vmatprep.subr.bf16.mxu0 %v12750_v10  ;;  %vm2671_vm3 = vcmp.le.s32.totalorder %v2662_v31, 6  ;;  %vm2670_vm6 = vcmp.ge.s32.totalorder %v2662_v31, 1 }
 0x560   : > { %vm2701_vm5 = vmpackc.low %vm2671_vm3, %vm2671_vm3 }
 0x561   : > { %v2172_v49 = vpop.permute.xlu1 %2171  ;;  %v2702_v32 = vsel %vm2701_vm5, 65537, %v17081_v16  ;;  %vm2691_vm7 = vmpackc.low %vm2670_vm6, %vm2670_vm6 }
 0x620   : > { %v12317_v35 = vpop.f32.mrb[24].mxu0 }
 0x621   : > { %v12318_v36 = vpop.f32.mrb[25].mxu0 }
 0x622   : > { %v12319_v37 = vadd.f32 %v12318_v36, %v12317_v35  ;;  %v12320_v38 = vpop.f32.mrb[26].mxu0  ;;  %v2706_v35 = vrot.slane %v2702_v32, %v12997_v22  ;;  %v12626_v36 = vld [vmem:[%s1023_s2] sm:$0xff]   ;;  %s17294_s2 = smov 8  }
 0x623   : > { %v12321_v39 = vpop.f32.mrb[27].mxu0  ;;  %2681 = vrot.lane.b32.xlu1 %v12626_v36, %s12752_s15 }
 0x624   : > { %v12322_v40 = vadd.f32 %v12321_v39, %v12320_v38  ;;  %v2249_v53 = vadd.f32 %v12319_v37, %v2164_v45  ;;  %2707 = vrot.lane.b32.xlu0 %v2706_v35, %s17028_s10  ;;  %v2692_v38 = vsel %vm2691_vm7, 65537, %v17081_v16  ;;  %s17035_s10 = smov 111  }
 0x626   : > { %v2252_v62 = vadd.f32 %v12322_v40, %v2168_v42  ;;  %v2648_v40 = vpop.permute.xlu1 %2647 }
 0x628   : > { %v12323_v43 = vpop.f32.mrb[28].mxu0  ;;  %2715 = vrot.lane.b32.xlu0 %v2706_v35, %s17293_s11  ;;  %s17030_s11 = smov 16  }
 0x629   : > { %v12324_v44 = vpop.f32.mrb[29].mxu0 }
 0x62a   : > { %v12325_v46 = vadd.f32 %v12324_v44, %v12323_v43  ;;  %v12326_v47 = vpop.f32.mrb[30].mxu0  ;;  %v13314_v44 = vrot.slane %v2692_v38, %v12997_v22 }
 0x62b   : > { %v12327_v48 = vpop.f32.mrb[31].mxu0 }
 0x62c   : > { %v12328_v50 = vadd.f32 %v12327_v48, %v12326_v47  ;;  %v2257_v52 = vadd.f32 %v12325_v46, %v2172_v49  ;;  %2723 = vrot.lane.b32.xlu0 %v2706_v35, %s17026_s28  ;;  %vm2697_vm10 = vcmp.ne.s16.totalorder %v13314_v44, 0  ;;  %s17037_s28 = smov 112  }
 0x62e   : > { %v2260_v56 = vadd.f32 %v12328_v50, %v2176_v51 }
 0x630   : > { %v12416_v55 = vpop.f32.mrb[32].mxu0 }
 0x631   : > { %v2306_v58 = vadd.f32 %v12416_v55, %v2257_v52  ;;  %v2297_v59 = vpop.f32.mrb[33].mxu0 }
 0x632   : > { %v2298_v63 = vadd.f32 %v2297_v59, %v2249_v53  ;;  %v12417_v0 = vpop.f32.mrb[34].mxu0 }
 0x633   : > { %v2309_v1 = vadd.f32 %v12417_v0, %v2260_v56  ;;  %v2300_v2 = vpop.f32.mrb[35].mxu0  ;;  %v2314_v3 = vmax.f32 %v2306_v58, 0.0 }
 0x634   : > { %v2301_v61 = vadd.f32 %v2300_v2, %v2252_v62  ;;  %v2312_v33 = vmax.f32 %v2298_v63, 0.0 }
 0x635   : > { %v2315_v4 = vmax.f32 %v2309_v1, 0.0 }
 0x636   : > { %v2313_v5 = vmax.f32 %v2301_v61, 0.0 }
 0x637   : > { %v2317_v6 = vpack.c.bf16 %v2315_v4, %v2314_v3  ;;  %v2653_v4 = vpop.permute.xlu0 %2652 }
 0x638   : > { %v2316_v34 = vpack.c.bf16 %v2313_v5, %v2312_v33 }
 0x63a   : > { %12418 = vmatprep.subr.bf16.mxu1 %v2316_v34 }
 0x63b   : > { %12419 = vmatpush3.bf16.msra.mxu1 %v2316_v34 }
 0x63c   : > { %12420 = vmatprep.subr.bf16.mxu1 %v2317_v6 }
 0x63f   : > { %12421 = vmatpush3.bf16.msra.mxu1 %v2317_v6 }
 0x640   : > { %12442 = vmatprep.subr.bf16.mxu1 %v12750_v10 }
 0x642   : > { %12423 = vmatmul.mubr.msk.bf16.vlgmr.msra.gmra.mrb[16].mxu1 %vm17057_vm0, %v12619_v57 }
 0x643   : > { %12426 = vmatprep.mubr.msk.bf16.mxu1 %vm17057_vm0, %v12620_v41  ;;  %12443 = vmatpush3.bf16.msra.mxu1 %v12623_v13 }
 0x644   : > { %2814 = vmatprep.subr.bf16.mxu1 %v17081_v16 }
 0x64a   : > { %12427 = vmatmul.mubr.msk.bf16.gmra.mrb[20].mxu1 %vm17057_vm0, %v12621_v8 }
 0x64b   : > { %12444 = vmatprep.mubr.msk.bf16.mxu1 %vm12751_vm15, %v12750_v10 }
 0x695   : > { %v2682_v45 = vpop.permute.xlu1 %2681 }
 0x696   : > { %v2685_v46 = vsel %vm2683_vm8, 0, %v2682_v45  ;;  %v13330_v41 = vpop.permute.xlu0 %2707 }
 0x697   : > { %v13319_v47 = vsel %vm2686_vm9, %v2685_v46, 0  ;;  %vm2709_vm11 = vcmp.ne.s16.totalorder %v13330_v41, 0 }
 0x698   : > { %v2698_v49 = vsel %vm2697_vm10, %v13319_v47, 0  ;;  %v2710_v8 = vsel %vm2709_vm11, %v13319_v47, 0 }
 0x715   : > { %v12424_v20 = vpop.f32.mrb[16].mxu1 }
 0x716   : > { %v2394_v11 = vpop.f32.mrb[17].mxu1 }
 0x717   : > { %v12425_v12 = vpop.f32.mrb[18].mxu1 }
 0x718   : > { %v2426_v23 = vpack.c.bf16 %v12425_v12, %v12424_v20  ;;  %v2397_v15 = vpop.f32.mrb[19].mxu1 }
 0x719   : > { %v2425_v24 = vpack.c.bf16 %v2397_v15, %v2394_v11  ;;  %v13357_v15 = vpop.permute.xlu0 %2715 }
 0x71a   : > { %12433 = vmatmul.mubr.msk.bf16.vlgmr.msra.gmra.mrb[36].mxu0 %vm2440_vm2, %v2426_v23  ;;  %vm2717_vm13 = vcmp.ne.s16.totalorder %v13357_v15, 0 }
 0x71b   : > { %12437 = vmatpush3.bf16.msra.mxu0 %v12624_v21  ;;  %12438 = vmatprep.mubr.msk.bf16.mxu0 %vm12751_vm15, %v12750_v10 }
 0x71c   : > { %12448 = vmatprep.subr.bf16.mxu0 %v12750_v10 }
 0x71d   : > { %v12428_v60 = vpop.f32.mrb[20].mxu1  ;;  %v13383_v31 = vpop.permute.xlu0 %2723 }
 0x71e   : > { %v2410_v25 = vpop.f32.mrb[21].mxu1 }
 0x71f   : > { %v12429_v26 = vpop.f32.mrb[22].mxu1 }
 0x720   : > { %v2428_v29 = vpack.c.bf16 %v12429_v26, %v12428_v60  ;;  %v2413_v28 = vpop.f32.mrb[23].mxu1  ;;  %v12627_v26 = vld [vmem:[%s12833_s24 + $0x4] ss:$8 sps:$4 sm:$0xff]  }
 0x721   : > { %v2427_v30 = vpack.c.bf16 %v2413_v28, %v2410_v25  ;;  %v2718_v25 = vsel %vm2717_vm13, %v13319_v47, 0 }
 0x722   : > { %12439 = vmatmul.mubr.msk.bf16.vlgmr.msra.gmra.mrb[40].mxu0 %vm2440_vm2, %v2425_v24 }
 0x723   : > { %12445 = vmatmul.mubr.msk.bf16.vlgmr.msra.gmra.mrb[24].mxu1 %vm2440_vm2, %v2427_v30  ;;  %12449 = vmatpush3.bf16.msra.mxu0 %v12625_v27  ;;  %v12630_v30 = vld [vmem:[%s12838_s30 + $0x4] ss:$8 sps:$4 sm:$0xff]  }
 0x724   : > { %12450 = vmatprep.mubr.msk.bf16.mxu0 %vm12751_vm15, %v12750_v10  ;;  %2867 = vmatprep.subr.bf16.mxu0 %v17081_v16  ;;  %vm2725_vm15 = vcmp.ne.s16.totalorder %v13383_v31, 0 }
 0x725   : > { %11197 = vmatprep.mubr.msk.bf16.mxu1 %vm2440_vm2, %v12630_v30  ;;  %v2726_v35 = vsel %vm2725_vm15, %v13319_v47, 0 }
 0x72a   : > { %12451 = vmatmul.mubr.msk.bf16.vlgmr.msra.gmra.mrb[44].mxu0 %vm2440_vm2, %v2428_v29 }
 0x72b   : > { %2868 = vmatpush1.bf16.msra.mxu0 %v2698_v49  ;;  %11200 = vmatprep.mubr.msk.bf16.mxu0 %vm2440_vm2, %v12627_v26 }
 0x72c   : > { %2869 = vmatprep.subr.bf16.mxu0 %v17081_v16 }
 0x7ed   : > { %v2478_v37 = vpop.f32.mrb[36].mxu0 }
 0x7ee   : > { %v12434_v39 = vpop.f32.mrb[37].mxu0 }
 0x7ef   : > { %v2481_v42 = vpop.f32.mrb[38].mxu0 }
 0x7f0   : > { %v12435_v43 = vpop.f32.mrb[39].mxu0 }
 0x7f5   : > { %v2528_v48 = vpop.f32.mrb[40].mxu0 }
 0x7f6   : > { %v2529_v50 = vadd.f32 %v2528_v48, %v2478_v37  ;;  %v12440_v51 = vpop.f32.mrb[41].mxu0  ;;  %v2581_v52 = vpop.f32.mrb[24].mxu1 }
 0x7f7   : > { %v2531_v53 = vpop.f32.mrb[42].mxu0  ;;  %v12446_v55 = vpop.f32.mrb[25].mxu1 }
 0x7f8   : > { %v2588_v56 = vadd.f32 %v2581_v52, %v2529_v50  ;;  %v2532_v58 = vadd.f32 %v2531_v53, %v2481_v42  ;;  %v12441_v59 = vpop.f32.mrb[43].mxu0  ;;  %v2584_v62 = vpop.f32.mrb[26].mxu1  ;;  %v12629_v52 = vld [vmem:[%s12833_s24] ss:$8 sps:$4 sm:$0xff]  }
 0x7f9   : > { %v12447_v63 = vpop.f32.mrb[27].mxu1  ;;  %v12632_v55 = vld [vmem:[%s12838_s30] ss:$8 sps:$4 sm:$0xff]  }
 0x7fa   : > { %v2589_v0 = vadd.f32 %v2584_v62, %v2532_v58 }
 0x7fd   : > { %v2636_v1 = vpop.f32.mrb[44].mxu0 }
 0x7fe   : > { %v2643_v2 = vadd.f32 %v2636_v1, %v2588_v56  ;;  %v12452_v61 = vpop.f32.mrb[45].mxu0 }
 0x7ff   : > { %v2639_v3 = vpop.f32.mrb[46].mxu0 }
 0x800   : > { %v2644_v33 = vadd.f32 %v2639_v3, %v2589_v0  ;;  %v12453_v5 = vpop.f32.mrb[47].mxu0  ;;  %v2655_v6 = vadd.f32 %v2648_v40, %v2643_v2 }
 0x802   : > { %v2656_v34 = vadd.f32 %v2653_v4, %v2644_v33 }
 0x804   : > { %v2657_v57 = vpack.c.bf16 %v2656_v34, %v2655_v6 }
 0x806   : > { %2760 = vrot.lane.b32.xlu1 %v2657_v57, %s12752_s15 }
 0x80a   : > { %2711 = vrot.lane.b32.xlu1 %v13314_v44, %s17294_s2  ;;  %s17295_s2 = smov 118  }
 0x80e   : > { %2719 = vrot.lane.b32.xlu1 %v13314_v44, %s17030_s11  ;;  %s17033_s11 = smov 110  }
 0x812   : > { %2728 = vrot.lane.b32.xlu1 %v13319_v47, %s17051_s16 }
 0x816   : > { %2732 = vrot.lane.b32.xlu1 %v2710_v8, %s17054_s26 }
 0x878   : > { %v2761_v9 = vpop.permute.xlu1 %2760 }
 0x879   : > { %v2763_v10 = vsel %vm2683_vm8, 0, %v2761_v9 }
 0x87a   : > { %v2764_v13 = vsel %vm2686_vm9, %v2763_v10, 0 }
 0x87b   : > { %2773 = vrot.lane.b32.xlu0 %v2764_v13, %s17051_s16  ;;  %v2766_v20 = vsel %vm2697_vm10, %v2764_v13, 0  ;;  %v2767_v12 = vsel %vm2709_vm11, %v2764_v13, 0  ;;  %v2769_v29 = vsel %vm2717_vm13, %v2764_v13, 0  ;;  %v2771_v36 = vsel %vm2725_vm15, %v2764_v13, 0 }
 0x87c   : > { %2815 = vmatpush1.bf16.msra.mxu1 %v2766_v20  ;;  %v13344_v11 = vpop.permute.xlu1 %2711 }
 0x87d   : > { %vm2713_vm12 = vcmp.ne.s16.totalorder %v13344_v11, 0  ;;  %2816 = vmatprep.subr.bf16.mxu1 %v17081_v16 }
 0x87e   : > { %v2714_v21 = vsel %vm2713_vm12, %v13319_v47, 0  ;;  %v2768_v24 = vsel %vm2713_vm12, %v2764_v13, 0 }
 0x87f   : > { %2777 = vrot.lane.b32.xlu0 %v2767_v12, %s17054_s26  ;;  %2736 = vrot.lane.b32.xlu1 %v2714_v21, %s12744_s7 }
 0x880   : > { %v13355_v23 = vpop.permute.xlu1 %2719 }
 0x881   : > { %vm2721_vm14 = vcmp.ne.s16.totalorder %v13355_v23, 0 }
 0x882   : > { %v2722_v28 = vsel %vm2721_vm14, %v13319_v47, 0  ;;  %v2770_v32 = vsel %vm2721_vm14, %v2764_v13, 0 }
 0x883   : > { %2781 = vrot.lane.b32.xlu0 %v2768_v24, %s12744_s7  ;;  %2739 = vrot.lane.b32.xlu1 %v13319_v47, %s12746_s18  ;;  %v12633_v24 = vld [vmem:[%s17296_s1 + $0x4] ss:$8 sps:$4 sm:$0xff]  }
 0x884   : > { %v2729_v60 = vpop.permute.xlu1 %2728 }
 0x885   : > { %2870 = vmatpush1.bf16.msra.mxu0 %v2729_v60 }
 0x886   : > { %2871 = vmatprep.subr.bf16.mxu0 %v17081_v16 }
 0x887   : > { %2784 = vrot.lane.b32.xlu0 %v2764_v13, %s12746_s18  ;;  %2743 = vrot.lane.b32.xlu1 %v2718_v25, %s17295_s2 }
 0x888   : > { %v2733_v27 = vpop.permute.xlu1 %2732 }
 0x889   : > { %2872 = vmatpush1.bf16.msra.mxu0 %v2733_v27 }
 0x88a   : > { %2873 = vmatprep.subr.bf16.mxu0 %v17081_v16 }
 0x88b   : > { %2788 = vrot.lane.b32.xlu0 %v2769_v29, %s17295_s2  ;;  %2747 = vrot.lane.b32.xlu1 %v2722_v28, %s17037_s28  ;;  %v12635_v29 = vld [vmem:[%s17296_s1] ss:$8 sps:$4 sm:$0xff]   ;;  %s17058_s1 = smov 95  }
 0x88f   : > { %2792 = vrot.lane.b32.xlu0 %v2770_v32, %s17037_s28  ;;  %2750 = vrot.lane.b32.xlu1 %v13319_v47, %s17035_s10 }
 0x893   : > { %2795 = vrot.lane.b32.xlu0 %v2764_v13, %s17035_s10  ;;  %2754 = vrot.lane.b32.xlu1 %v2726_v35, %s17033_s11 }
 0x897   : > { %2799 = vrot.lane.b32.xlu0 %v2771_v36, %s17033_s11  ;;  %2909 = vperm.xlu1 %12572, %v13283_v14  }
 0x89b   : > { %2913 = vperm.xlu0 %12573, %v13286_v17   ;;  %12574 = vset.pattern.permute.xlu1 %v17080_v7 }
 0x89f   : > { %12575 = vset.pattern.permute.xlu0 %v17080_v7 }
 0x8ed   : > { %v2774_v37 = vpop.permute.xlu0 %2773 }
 0x8ee   : > { %2817 = vmatpush1.bf16.msra.mxu1 %v2774_v37 }
 0x8ef   : > { %2818 = vmatprep.subr.bf16.mxu1 %v17081_v16 }
 0x8f1   : > { %v2778_v38 = vpop.permute.xlu0 %2777  ;;  %v2737_v39 = vpop.permute.xlu1 %2736 }
 0x8f2   : > { %2819 = vmatpush1.bf16.msra.mxu1 %v2778_v38  ;;  %2874 = vmatpush1.bf16.msra.mxu0 %v2737_v39 }
 0x8f3   : > { %2820 = vmatprep.subr.bf16.mxu1 %v17081_v16  ;;  %2875 = vmatprep.subr.bf16.mxu0 %v17081_v16 }
 0x8f5   : > { %v2782_v40 = vpop.permute.xlu0 %2781  ;;  %v2740_v42 = vpop.permute.xlu1 %2739 }
 0x8f6   : > { %2821 = vmatpush1.bf16.msra.mxu1 %v2782_v40  ;;  %2876 = vmatpush1.bf16.msra.mxu0 %v2740_v42 }
 0x8f7   : > { %2822 = vmatprep.subr.bf16.mxu1 %v17081_v16  ;;  %2877 = vmatprep.subr.bf16.mxu0 %v17081_v16 }
 0x8f9   : > { %v2785_v43 = vpop.permute.xlu0 %2784  ;;  %v2744_v45 = vpop.permute.xlu1 %2743 }
 0x8fa   : > { %2823 = vmatpush1.bf16.msra.mxu1 %v2785_v43  ;;  %2878 = vmatpush1.bf16.msra.mxu0 %v2744_v45 }
 0x8fb   : > { %2824 = vmatprep.subr.bf16.mxu1 %v17081_v16  ;;  %2879 = vmatprep.subr.bf16.mxu0 %v17081_v16 }
 0x8fd   : > { %v2789_v46 = vpop.permute.xlu0 %2788  ;;  %v2748_v47 = vpop.permute.xlu1 %2747 }
 0x8fe   : > { %2825 = vmatpush1.bf16.msra.mxu1 %v2789_v46  ;;  %2880 = vmatpush1.bf16.msra.mxu0 %v2748_v47 }
 0x8ff   : > { %2826 = vmatprep.subr.bf16.mxu1 %v17081_v16  ;;  %2881 = vmatprep.subr.bf16.mxu0 %v17081_v16 }
 0x901   : > { %v2793_v48 = vpop.permute.xlu0 %2792  ;;  %v2751_v49 = vpop.permute.xlu1 %2750 }
 0x902   : > { %2827 = vmatpush1.bf16.msra.mxu1 %v2793_v48  ;;  %2882 = vmatpush1.bf16.msra.mxu0 %v2751_v49 }
 0x903   : > { %2828 = vmatprep.subr.bf16.mxu1 %v17081_v16  ;;  %2883 = vmatprep.subr.bf16.mxu0 %v17081_v16 }
 0x905   : > { %v2796_v50 = vpop.permute.xlu0 %2795  ;;  %v2755_v51 = vpop.permute.xlu1 %2754 }
 0x906   : > { %2829 = vmatpush1.bf16.msra.mxu1 %v2796_v50  ;;  %2884 = vmatpush1.bf16.msra.mxu0 %v2755_v51 }
 0x907   : > { %2830 = vmatprep.subr.bf16.mxu1 %v17081_v16 }
 0x909   : > { %v2800_v53 = vpop.permute.xlu0 %2799  ;;  %2900 = vmatmul.mubr.bf16.vlgmr.msra.gmra.mrb[48].mxu0 %v12629_v52 }
 0x90a   : > { %2831 = vmatpush1.bf16.msra.mxu1 %v2800_v53 }
 0x90b   : > { %2986 = vmatprep.subr.bf16.mxu1 %v17081_v16 }
 0x90d   : > { %2847 = vmatmul.mubr.bf16.vlgmr.msra.gmra.mrb[28].mxu1 %v12632_v55 }
 0x90e   : > { %11203 = vmatprep.mubr.msk.bf16.mxu1 %vm2440_vm2, %v12633_v24 }
 0x916   : > { %v2910_v0 = vpop.permute.xlu1 %2909 }
 0x91a   : > { %v2914_v3 = vpop.permute.xlu0 %2913 }
 0x9dc   : > { %v2901_v56 = vpop.f32.mrb[48].mxu0 }
 0x9dd   : > { %v2903_v58 = vpop.f32.mrb[49].mxu0 }
 0x9de   : > { %v2904_v59 = vpop.f32.mrb[50].mxu0 }
 0x9df   : > { %v2906_v62 = vpop.f32.mrb[51].mxu0 }
 0x9e0   : > { %v2848_v63 = vpop.f32.mrb[28].mxu1 }
 0x9e1   : > { %v2902_v1 = vadd.f32 %v2901_v56, %v2848_v63  ;;  %v2850_v2 = vpop.f32.mrb[29].mxu1 }
 0x9e2   : > { %v2851_v61 = vpop.f32.mrb[30].mxu1 }
 0x9e3   : > { %v2916_v4 = vadd.f32 %v2910_v0, %v2902_v1  ;;  %v2905_v33 = vadd.f32 %v2904_v59, %v2851_v61  ;;  %v2853_v5 = vpop.f32.mrb[31].mxu1 }
 0x9e4   : > { %v13490_v5 = vadd.s32 128, %v12988_v18 }
 0x9e5   : > { %v2917_v6 = vadd.f32 %v2914_v3, %v2905_v33  ;;  %v2918_v34 = vmax.f32 %v2916_v4, 0.0 }
 0x9e7   : > { %v2919_v57 = vmax.f32 %v2917_v6, 0.0  ;;  %v3496_v6 = vand.u32 15, %v12988_v18 }
 0x9e9   : > { %v2920_v8 = vpack.c.bf16 %v2919_v57, %v2918_v34  ;;  %v3503_v34 = vand.u32 15, %v13490_v5  ;;  %vm3516_vm3 = vcmp.ge.s32.totalorder %v3496_v6, 1  ;;  %v13495_v57 = vsub.s32 4, %v12990_v19 }
 0x9ea   : > { %vm3518_vm5 = vcmp.le.s32.totalorder %v3496_v6, 14 }
 0x9eb   : > { %2924 = vrot.lane.b32.xlu1 %v2920_v8, %s12752_s15  ;;  %s17299_s15 = sld [smem:[#allocation9_spill]]  ;;  %vm3517_vm6 = vcmp.ge.s32.totalorder %v3503_v34, 1  ;;  %vm3519_vm7 = vcmp.le.s32.totalorder %v3503_v34, 14 }
 0x9f1   : > { %v12638_v31 = vld [vmem:[%s17299_s15 + $0x80] ss:$8 sps:$4 sm:$0xff]   ;;  %v12640_v32 = vld [vmem:[%s17299_s15 + $0x84] ss:$8 sps:$4 sm:$0xff]   ;;  %v12646_v35 = vld [vmem:[%s17299_s15 + $0x94] ss:$8 sps:$4 sm:$0xff]  }
 0x9f2   : > { %v12644_v36 = vld [vmem:[%s17299_s15 + $0x90] ss:$8 sps:$4 sm:$0xff]   ;;  %v12652_v37 = vld [vmem:[%s17299_s15 + $0xa4] ss:$8 sps:$4 sm:$0xff]   ;;  %v12650_v38 = vld [vmem:[%s17299_s15 + $0xa0] ss:$8 sps:$4 sm:$0xff]  }
 0x9f3   : > { %v12643_v52 = vld [vmem:[%s17299_s15 + $0x44] ss:$8 sps:$4 sm:$0xff]   ;;  %v12641_v55 = vld [vmem:[%s17299_s15 + $0x40] ss:$8 sps:$4 sm:$0xff]   ;;  %v12649_v56 = vld [vmem:[%s17299_s15 + $0x54] ss:$8 sps:$4 sm:$0xff]  }
 0x9f4   : > { %v12647_v58 = vld [vmem:[%s17299_s15 + $0x50] ss:$8 sps:$4 sm:$0xff]   ;;  %v12655_v59 = vld [vmem:[%s17299_s15 + $0x64] ss:$8 sps:$4 sm:$0xff]   ;;  %v12653_v62 = vld [vmem:[%s17299_s15 + $0x60] ss:$8 sps:$4 sm:$0xff]  }
 0x9f5   : > { %v12658_v0 = vld [vmem:[%s17299_s15 + $0xb4] ss:$8 sps:$4 sm:$0xff]   ;;  %v12656_v1 = vld [vmem:[%s17299_s15 + $0xb0] ss:$8 sps:$4 sm:$0xff]   ;;  %v12666_v33 = vld [vmem:[%s17299_s15 + $0x4] ss:$8 sps:$4 sm:$0xff]  }
 0x9f6   : > { %v12661_v2 = vld [vmem:[%s17299_s15 + $0x74] ss:$8 sps:$4 sm:$0xff]   ;;  %v12659_v61 = vld [vmem:[%s17299_s15 + $0x70] ss:$8 sps:$4 sm:$0xff]  }
 0xa5d   : > { %v2925_v9 = vpop.permute.xlu1 %2924 }
 0xa5e   : > { %v2927_v10 = vsel %vm2683_vm8, 0, %v2925_v9  ;;  %vm3545_vm8 = vmpackc.low %vm3517_vm6, %vm3516_vm3 }
 0xa5f   : > { %v2928_v13 = vsel %vm2686_vm9, %v2927_v10, 0  ;;  %v3546_v8 = vsel %vm3545_vm8, 65537, %v17081_v16  ;;  %vm3563_vm9 = vmpackc.low %vm3519_vm7, %vm3518_vm5  ;;  %vm17053_vm5 = vcmask 1039360   ;;  %vm17125_vm7 = vcmask 1043456  }
 0xa60   : > { %2937 = vrot.lane.b32.xlu1 %v2928_v13, %s17051_s16  ;;  %v2931_v20 = vsel %vm2709_vm11, %v2928_v13, 0  ;;  %v2930_v12 = vsel %vm2697_vm10, %v2928_v13, 0  ;;  %v2932_v21 = vsel %vm2713_vm12, %v2928_v13, 0  ;;  %v2933_v41 = vsel %vm2717_vm13, %v2928_v13, 0 }
 0xa61   : > { %2941 = vrot.lane.b32.xlu0 %v2931_v20, %s17054_s26  ;;  %2987 = vmatpush1.bf16.msra.mxu1 %v2930_v12  ;;  %v2934_v44 = vsel %vm2721_vm14, %v2928_v13, 0  ;;  %v2935_v11 = vsel %vm2725_vm15, %v2928_v13, 0  ;;  %v13499_v9 = vrot.slane %v3546_v8, %v12997_v22  ;;  %v13502_v10 = vrot.slane %v3546_v8, %v13495_v57 }
 0xa62   : > { %2988 = vmatprep.subr.bf16.mxu1 %v17081_v16  ;;  %vm3531_vm10 = vcmask 138240   ;;  %vm17043_vm11 = vcmask 523264   ;;  %vm17046_vm14 = vcmask 15360  }
 0xa63   : > { %vm17048_vm6 = vcmp.ne.s16.totalorder %v13502_v10, 0  ;;  %vm17047_vm8 = vcmp.ne.s16.totalorder %v13499_v9, 0 }
 0xa64   : > { %2945 = vrot.lane.b32.xlu1 %v2932_v21, %s12744_s7  ;;  %s17298_s7 = sld [smem:[#allocation13_spill]] }
 0xa65   : > { %2948 = vrot.lane.b32.xlu0 %v2928_v13, %s12746_s18  ;;  %s17297_s18 = sld [smem:[#allocation8_spill]] }
 0xa68   : > { %2952 = vrot.lane.b32.xlu1 %v2933_v41, %s17295_s2  ;;  %s17300_s2 = sld [smem:[#allocation7_spill]] }
 0xa69   : > { %2956 = vrot.lane.b32.xlu0 %v2934_v44, %s17037_s28  ;;  %s17039_s28 = smov 17  }
 0xa6a   : > { %v13460_v30 = vld [vmem:[%s17298_s7] sm:$0xff] }
 0xa6b   : > { %v12636_v28 = vld [vmem:[%s17297_s18] sm:$0xff]   ;;  %v12637_v53 = vld [vmem:[%s17297_s18 + $0x8] sm:$0xff]  }
 0xa6c   : > { %2959 = vrot.lane.b32.xlu1 %v2928_v13, %s17035_s10  ;;  %12456 = vmatprep.mubr.msk.bf16.mxu0 %vm2440_vm2, %v12636_v28  ;;  %v3564_v13 = vsel %vm3563_vm9, 65537, %v17081_v16  ;;  %vm17062_vm9 = vcmask 1031168  }
 0xa6d   : > { %2963 = vrot.lane.b32.xlu0 %v2935_v11, %s17033_s11  ;;  %s17301_s11 = sshll.u32 %s17968_s23, 3  ;;  %v3568_v20 = vrot.slane %v3564_v13, %v12997_v22  ;;  %v3572_v12 = vrot.slane %v3564_v13, %v13495_v57 }
 0xa6e   : > { %s1028_s10 = scalar_lea.vmem %s17300_s2, %s17301_s11  ;;  %s17303_s11 = smov 2  }
 0xa6f   : > { %v3520_v63 = vld [vmem:[%s1028_s10] sm:$0xff]  ;;  %s17302_s10 = smov 16   ;;  %s17304_s2 = smov 18  }
 0xa70   : > { %2967 = vperm.xlu1 %12574, %v13283_v14   ;;  %v11268_v3 = vcombine.low %v3520_v63, %v3520_v63  ;;  %v11269_v4 = vcombine.high %v3520_v63, %v3520_v63 }
 0xa71   : > { %2971 = vperm.xlu0 %12575, %v13286_v17  }
 0xa74   : > { %12576 = vset.pattern.permute.xlu1 %v17081_v16 }
 0xa75   : > { %3484 = vperm.xlu1 %12576, %v13460_v30   ;;  %3529 = vrot.lane.b32.xlu0 %v11269_v4, %s17039_s28 }
 0xa79   : > { %12577 = vset.pattern.permute.xlu1 %v12748_v54  ;;  %3587 = vrot.lane.b32.xlu0 %v13502_v10, %s17302_s10 }
 0xa7a   : > { %3527 = vrot.lane.b32.xlu1 %v11268_v3, %s17039_s28  ;;  %s17049_s28 = smov 32  }
 0xa7d   : > { %3575 = vrot.lane.b32.xlu0 %v3572_v12, %s17303_s11 }
 0xa7e   : > { %3585 = vrot.lane.b32.xlu1 %v13499_v9, %s17302_s10  ;;  %s17044_s10 = smov 34  }
 0xa81   : > { %3599 = vrot.lane.b32.xlu0 %v3572_v12, %s17304_s2 }
 0xa82   : > { %3573 = vrot.lane.b32.xlu1 %v3568_v20, %s17303_s11 }
 0xa85   : > { %3611 = vrot.lane.b32.xlu0 %v13502_v10, %s17049_s28 }
 0xa86   : > { %3597 = vrot.lane.b32.xlu1 %v3568_v20, %s17304_s2  ;;  %s17305_s2 = smov 112  }
 0xa89   : > { %3623 = vrot.lane.b32.xlu0 %v3572_v12, %s17044_s10 }
 0xa8a   : > { %3609 = vrot.lane.b32.xlu1 %v13499_v9, %s17049_s28  ;;  %s17307_s28 = smov 111  }
 0xa8e   : > { %3621 = vrot.lane.b32.xlu1 %v3568_v20, %s17044_s10  ;;  %s17306_s10 = smov 17  }
 0xad2   : > { %v2938_v23 = vpop.permute.xlu1 %2937 }
 0xad3   : > { %2989 = vmatpush1.bf16.msra.mxu1 %v2938_v23  ;;  %v2942_v15 = vpop.permute.xlu0 %2941 }
 0xad4   : > { %2990 = vmatprep.subr.bf16.mxu1 %v17081_v16 }
 0xad6   : > { %v2946_v60 = vpop.permute.xlu1 %2945 }
 0xad7   : > { %2991 = vmatpush1.bf16.msra.mxu1 %v2942_v15  ;;  %v2949_v14 = vpop.permute.xlu0 %2948 }
 0xad8   : > { %2992 = vmatprep.subr.bf16.mxu1 %v17081_v16 }
 0xada   : > { %v2953_v17 = vpop.permute.xlu1 %2952 }
 0xadb   : > { %2993 = vmatpush1.bf16.msra.mxu1 %v2946_v60  ;;  %v2957_v25 = vpop.permute.xlu0 %2956 }
 0xadc   : > { %2994 = vmatprep.subr.bf16.mxu1 %v17081_v16 }
 0xade   : > { %v2960_v26 = vpop.permute.xlu1 %2959 }
 0xadf   : > { %2995 = vmatpush1.bf16.msra.mxu1 %v2949_v14  ;;  %v2964_v27 = vpop.permute.xlu0 %2963 }
 0xae0   : > { %2996 = vmatprep.subr.bf16.mxu1 %v17081_v16 }
 0xae3   : > { %2997 = vmatpush1.bf16.msra.mxu1 %v2953_v17 }
 0xae4   : > { %2998 = vmatprep.subr.bf16.mxu1 %v17081_v16 }
 0xae7   : > { %2999 = vmatpush1.bf16.msra.mxu1 %v2957_v25 }
 0xae8   : > { %3000 = vmatprep.subr.bf16.mxu1 %v17081_v16 }
 0xaeb   : > { %3001 = vmatpush1.bf16.msra.mxu1 %v2960_v26 }
 0xaec   : > { %3002 = vmatprep.subr.bf16.mxu1 %v17081_v16 }
 0xaef   : > { %3003 = vmatpush1.bf16.msra.mxu1 %v2964_v27  ;;  %v2968_v39 = vpop.permute.xlu1 %2967 }
 0xaf0   : > { %3342 = vmatprep.subr.bf16.mxu1 %v12640_v32  ;;  %v2972_v42 = vpop.permute.xlu0 %2971 }
 0xaf2   : > { %3019 = vmatmul.mubr.bf16.vlgmr.msra.gmra.mrb[32].mxu1 %v12635_v29 }
 0xaf3   : > { %3374 = vmatprep.mubr.bf16.mxu1 %v17081_v16  ;;  %3343 = vmatpush1.bf16.msra.mxu1 %v12638_v31  ;;  %v12664_v31 = vld [vmem:[%s17299_s15] ss:$8 sps:$4 sm:$0xff]  }
 0xaf4   : > { %3344 = vmatprep.subr.bf16.mxu1 %v12646_v35  ;;  %v13521_v21 = vpop.permute.xlu1 %3484  ;;  %v3530_v44 = vpop.permute.xlu0 %3529  ;;  %v12669_v35 = vld [vmem:[%s17299_s15 + $0x14] ss:$8 sps:$4 sm:$0xff]  }
 0xaf5   : > { %v13530_v23 = vsel %vm3531_vm10, %v3530_v44, 0 }
 0xaf6   : > { %v3637_v15 = vrot.slane %v13530_v23, 4 }
 0xaf7   : > { %3345 = vmatpush1.bf16.msra.mxu1 %v12644_v36  ;;  %v12667_v36 = vld [vmem:[%s17299_s15 + $0x10] ss:$8 sps:$4 sm:$0xff]  }
 0xaf8   : > { %3346 = vmatprep.subr.bf16.mxu1 %v12652_v37  ;;  %v3528_v41 = vpop.permute.xlu1 %3527  ;;  %3642 = vrot.lane.b32.xlu0 %v3637_v15, %s17051_s16  ;;  %v12672_v37 = vld [vmem:[%s17299_s15 + $0x24] ss:$8 sps:$4 sm:$0xff]  }
 0xaf9   : > { %v13524_v11 = vsel %vm3531_vm10, 0, %v3528_v41  ;;  %v13527_v24 = vsel %vm3531_vm10, %v3528_v41, %v3530_v44 }
 0xafa   : > { %v3636_v60 = vrot.slane %v13527_v24, 4  ;;  %v3635_v14 = vrot.slane %v13524_v11, 4 }
 0xafb   : > { %3347 = vmatpush1.bf16.msra.mxu1 %v12650_v38  ;;  %v12670_v38 = vld [vmem:[%s17299_s15 + $0x20] ss:$8 sps:$4 sm:$0xff]  }
 0xafc   : > { %3348 = vmatprep.subr.bf16.mxu1 %v12658_v0  ;;  %3640 = vrot.lane.b32.xlu1 %v3636_v60, %s17051_s16 }
 0xaff   : > { %3349 = vmatpush1.bf16.msra.mxu1 %v12656_v1 }
 0xb00   : > { %3638 = vrot.lane.b32.xlu1 %v3635_v14, %s17051_s16  ;;  %s17308_s16 = smov 110  }
 0xbc5   : > { %v3020_v40 = vpop.f32.mrb[32].mxu1 }
 0xbc6   : > { %v3021_v43 = vadd.f32 %v3020_v40, %v2968_v39  ;;  %v3022_v45 = vpop.f32.mrb[33].mxu1  ;;  %v12675_v39 = vld [vmem:[%s17299_s15 + $0x34] ss:$8 sps:$4 sm:$0xff]   ;;  %v12673_v40 = vld [vmem:[%s17299_s15 + $0x30] ss:$8 sps:$4 sm:$0xff]  }
 0xbc7   : > { %v3023_v46 = vpop.f32.mrb[34].mxu1  ;;  %v12681_v45 = vld [vmem:[%s17299_s15 + $0xd4] ss:$8 sps:$4 sm:$0xff]  }
 0xbc8   : > { %v3024_v47 = vadd.f32 %v3023_v46, %v2972_v42  ;;  %v3025_v48 = vpop.f32.mrb[35].mxu1  ;;  %v3027_v49 = vmax.f32 %v3021_v43, 0.0  ;;  %v12678_v42 = vld [vmem:[%s17299_s15 + $0xc4] ss:$8 sps:$4 sm:$0xff]   ;;  %v12676_v43 = vld [vmem:[%s17299_s15 + $0xc0] ss:$8 sps:$4 sm:$0xff]  }
 0xbc9   : > { %v12679_v46 = vld [vmem:[%s17299_s15 + $0xd0] ss:$8 sps:$4 sm:$0xff]   ;;  %v12682_v48 = vld [vmem:[%s17299_s15 + $0xe0] ss:$8 sps:$4 sm:$0xff]  }
 0xbca   : > { %v3028_v50 = vmax.f32 %v3024_v47, 0.0  ;;  %v12684_v47 = vld [vmem:[%s17299_s15 + $0xe4] ss:$8 sps:$4 sm:$0xff]  }
 0xbcc   : > { %v3029_v51 = vpack.c.bf16 %v3028_v50, %v3027_v49  ;;  %v12687_v49 = vld [vmem:[%s17299_s15 + $0xf4] ss:$8 sps:$4 sm:$0xff]   ;;  %v12685_v50 = vld [vmem:[%s17299_s15 + $0xf0] ss:$8 sps:$4 sm:$0xff]  }
 0xbce   : > { %12454 = vmatprep.subr.bf16.mxu0 %v3029_v51 }
 0xbcf   : > { %12455 = vmatpush3.bf16.msra.mxu0 %v3029_v51 }
 0xbd0   : > { %3165 = vmatprep.subr.bf16.mxu0 %v12643_v52  ;;  %v13567_v52 = vpop.permute.xlu1 %3585 }
 0xbd1   : > { %vm3591_vm15 = vcmp.ne.s16.totalorder %v13567_v52, 0 }
 0xbd2   : > { %12457 = vmatmul.mubr.msk.bf16.vlgmr.msra.gmra.mrb[52].mxu0 %vm2440_vm2, %v12637_v53  ;;  %v13569_v53 = vpop.permute.xlu0 %3587 }
 0xbd3   : > { %3166 = vmatpush1.bf16.msra.mxu0 %v12641_v55  ;;  %3197 = vmatprep.mubr.bf16.mxu0 %v17081_v16  ;;  %v13574_v55 = vsel %vm2440_vm2, %v13567_v52, %v13569_v53  ;;  %vm17070_vm13 = vcmp.ne.s16.totalorder %v13569_v53, 0 }
 0xbd4   : > { %3167 = vmatprep.subr.bf16.mxu0 %v12649_v56  ;;  %vm17067_vm12 = vcmp.ne.s16.totalorder %v13574_v55, 0  ;;  %v13578_v56 = vpop.permute.xlu1 %3573 }
 0xbd7   : > { %3168 = vmatpush1.bf16.msra.mxu0 %v12647_v58  ;;  %v13580_v58 = vpop.permute.xlu0 %3575 }
 0xbd8   : > { %3169 = vmatprep.subr.bf16.mxu0 %v12655_v59  ;;  %v3595_v59 = vsel %vm17067_vm12, %v13527_v24, 0  ;;  %v13591_v63 = vsel %vm17046_vm14, %v13578_v56, %v13580_v58  ;;  %vm3581_vm2 = vcmp.ne.s16.totalorder %v13580_v58, 0  ;;  %v13602_v3 = vpop.permute.xlu1 %3597 }
 0xbd9   : > { %vm3580_vm3 = vcmp.ne.s16.totalorder %v13591_v63, 0  ;;  %v3584_v0 = vsel %vm3581_vm2, %v13530_v23, 0 }
 0xbda   : > { %v3583_v1 = vsel %vm3580_vm3, %v13527_v24, 0  ;;  %3654 = vrot.lane.b32.xlu0 %v3584_v0, %s17054_s26 }
 0xbdb   : > { %3170 = vmatpush1.bf16.msra.mxu0 %v12653_v62  ;;  %v3596_v62 = vsel %vm17070_vm13, %v13530_v23, 0  ;;  %v13604_v4 = vpop.permute.xlu0 %3599  ;;  %3652 = vrot.lane.b32.xlu1 %v3583_v1, %s17054_s26 }
 0xbdc   : > { %3171 = vmatprep.subr.bf16.mxu0 %v12661_v2  ;;  %v3663_v2 = vrot.slane %v3595_v59, 4  ;;  %v13611_v34 = vpop.permute.xlu1 %3609  ;;  %vm3605_vm14 = vcmp.ne.s16.totalorder %v13604_v4, 0 }
 0xbdf   : > { %3172 = vmatpush1.bf16.msra.mxu0 %v12659_v61  ;;  %v3664_v61 = vrot.slane %v3596_v62, 4  ;;  %v13613_v8 = vpop.permute.xlu0 %3611  ;;  %3667 = vrot.lane.b32.xlu1 %v3663_v2, %s17305_s2 }
 0xbe0   : > { %3249 = vmatprep.subr.bf16.mxu0 %v12666_v33  ;;  %v3594_v33 = vsel %vm3591_vm15, %v13524_v11, 0  ;;  %v13617_v13 = vpop.permute.xlu1 %3621 }
 0xbe1   : > { %v3662_v6 = vrot.slane %v3594_v33, 4  ;;  %3669 = vrot.lane.b32.xlu0 %v3664_v61, %s17305_s2 }
 0xbe3   : > { %v13619_v20 = vpop.permute.xlu0 %3623 }
 0xbe4   : > { %v3641_v12 = vpop.permute.xlu1 %3640 }
 0xbe5   : > { %3665 = vrot.lane.b32.xlu0 %v3662_v6, %s17305_s2 }
 0xbe7   : > { %v3643_v41 = vpop.permute.xlu0 %3642 }
 0xbe8   : > { %v3646_v44 = vsel %vm17053_vm5, %v3641_v12, %v3643_v41 }
 0xca5   : > { %v12458_v17 = vpop.f32.mrb[52].mxu0 }
 0xca6   : > { %v3085_v25 = vpop.f32.mrb[53].mxu0 }
 0xca7   : > { %v12459_v26 = vpop.f32.mrb[54].mxu0 }
 0xca8   : > { %v3101_v27 = vpack.c.bf16 %v12459_v26, %v12458_v17  ;;  %v3088_v29 = vpop.f32.mrb[55].mxu0  ;;  %v3558_v17 = vsel %vm17048_vm6, %v13527_v24, 0  ;;  %v3557_v26 = vsel %vm17047_vm8, %v13524_v11, 0  ;;  %vm17068_vm6 = vcmp.ne.s16.totalorder %v13602_v3, 0 }
 0xca9   : > { %v3100_v28 = vpack.c.bf16 %v3088_v29, %v3085_v25  ;;  %v3738_v25 = vsel %vm17125_vm7, %v3558_v17, %v3646_v44 }
 0xcaa   : > { %11250 = vmatmul.mubr.msk.bf16.vlgmr.msra.gmra.mrb[36].mxu1 %vm17043_vm11, %v3101_v27  ;;  %v3395_v51 = vrot.slane %v3101_v27, 4  ;;  %v3639_v27 = vpop.permute.xlu1 %3638 }
 0xcab   : > { %v3120_v32 = vrot.slane %v3100_v28, 4  ;;  %3960 = vmatprep.mubr.bf16.mxu1 %v17081_v16  ;;  %v3645_v29 = vsel %vm17053_vm5, %v3639_v27, %v3641_v12 }
 0xcad   : > { %11224 = vmatmul.mubr.msk.bf16.vlgmr.msra.gmra.mrb[56].mxu0 %vm17043_vm11, %v3120_v32 }
 0xcae   : > { %3250 = vmatpush1.bf16.msra.mxu0 %v12664_v31  ;;  %3281 = vmatprep.mubr.bf16.mxu0 %v17081_v16  ;;  %v3655_v31 = vpop.permute.xlu0 %3654  ;;  %v13634_v32 = vpop.permute.xlu1 %3652 }
 0xcaf   : > { %3251 = vmatprep.subr.bf16.mxu0 %v12669_v35  ;;  %v3658_v35 = vsel %vm17062_vm9, %v13634_v32, %v3655_v31 }
 0xcb2   : > { %3252 = vmatpush1.bf16.msra.mxu0 %v12667_v36  ;;  %v3670_v36 = vpop.permute.xlu0 %3669 }
 0xcb3   : > { %3253 = vmatprep.subr.bf16.mxu0 %v12672_v37  ;;  %v13638_v37 = vpop.permute.xlu1 %3667 }
 0xcb6   : > { %3254 = vmatpush1.bf16.msra.mxu0 %v12670_v38  ;;  %v3673_v38 = vsel %vm3671_vm4, %v13638_v37, %v3670_v36 }
 0xcb7   : > { %3255 = vmatprep.subr.bf16.mxu0 %v12675_v39  ;;  %v3746_v39 = vsel %vm17125_vm7, %v3658_v35, %v3673_v38  ;;  %v3606_v38 = vsel %vm17068_vm6, %v13524_v11, 0 }
 0xcba   : > { %3256 = vmatpush1.bf16.msra.mxu0 %v12673_v40 }
 0xcbb   : > { %3439 = vmatprep.subr.bf16.mxu0 %v12678_v42 }
 0xcbd   : > { %11233 = vmatmul.mubr.msk.bf16.vlgmr.msra.gmra.mrb[60].mxu0 %vm17043_vm11, %v3100_v28  ;;  %v3734_v28 = vsel %vm17125_vm7, %v3557_v26, %v3645_v29 }
 0xcbe   : > { %3440 = vmatpush1.bf16.msra.mxu0 %v12676_v43  ;;  %3471 = vmatprep.mubr.bf16.mxu0 %v17081_v16 }
 0xcbf   : > { %3441 = vmatprep.subr.bf16.mxu0 %v12681_v45 }
 0xcc2   : > { %3442 = vmatpush1.bf16.msra.mxu0 %v12679_v46 }
 0xcc3   : > { %3443 = vmatprep.subr.bf16.mxu0 %v12684_v47 }
 0xcc6   : > { %3444 = vmatpush1.bf16.msra.mxu0 %v12682_v48 }
 0xcc7   : > { %3445 = vmatprep.subr.bf16.mxu0 %v12687_v49 }
 0xcca   : > { %3446 = vmatpush1.bf16.msra.mxu0 %v12685_v50 }
 0xccb   : > { %3978 = vmatprep.subr.bf16.mxu0 %v3738_v25 }
 0xccd   : > { %11267 = vmatmul.mubr.msk.bf16.vlgmr.msra.gmra.mrb[64].mxu0 %vm17043_vm11, %v3395_v51  ;;  %vm17063_vm11 = vcmp.ne.s16.totalorder %v13578_v56, 0 }
 0xcce   : > { %4010 = vmatprep.mubr.bf16.mxu0 %v17081_v16  ;;  %3979 = vmatpush1.bf16.msra.mxu0 %v3734_v28  ;;  %v13649_v28 = vsel %vm3601_vm1, %v13602_v3, %v13604_v4  ;;  %v3582_v31 = vsel %vm17063_vm11, %v13524_v11, 0  ;;  %vm17066_vm1 = vcmp.ne.s16.totalorder %v13613_v8, 0 }
 0xccf   : > { %3980 = vmatprep.subr.bf16.mxu0 %v3746_v39  ;;  %vm17069_vm8 = vcmp.ne.s16.totalorder %v13649_v28, 0 }
 0xcd0   : > { %v3607_v35 = vsel %vm17069_vm8, %v13527_v24, 0 }
 0xcd1   : > { %v3687_v39 = vrot.slane %v3607_v35, 4 }
 0xd7d   : > { %v3376_v40 = vpop.f32.mrb[36].mxu1 }
 0xd7e   : > { %v3378_v42 = vpop.f32.mrb[37].mxu1 }
 0xd7f   : > { %v3380_v43 = vpop.f32.mrb[38].mxu1 }
 0xd80   : > { %v3199_v45 = vpop.f32.mrb[56].mxu0  ;;  %v3381_v46 = vpop.f32.mrb[39].mxu1  ;;  %v3620_v43 = vsel %vm17066_vm1, %v13530_v23, 0 }
 0xd81   : > { %v3201_v47 = vpop.f32.mrb[57].mxu0 }
 0xd82   : > { %v3203_v48 = vpop.f32.mrb[58].mxu0 }
 0xd83   : > { %v3204_v49 = vpop.f32.mrb[59].mxu0 }
 0xd90   : > { %v3283_v50 = vpop.f32.mrb[60].mxu0 }
 0xd91   : > { %v3284_v51 = vadd.f32 %v3283_v50, %v3199_v45  ;;  %v3285_v59 = vpop.f32.mrb[61].mxu0 }
 0xd92   : > { %v3286_v62 = vadd.f32 %v3285_v59, %v3201_v47  ;;  %v3287_v0 = vpop.f32.mrb[62].mxu0  ;;  %v3666_v47 = vpop.permute.xlu0 %3665 }
 0xd93   : > { %v3288_v1 = vpop.f32.mrb[63].mxu0  ;;  %v3383_v2 = vadd.f32 %v3376_v40, %v3284_v51  ;;  %v3686_v40 = vrot.slane %v3606_v38, 4 }
 0xd94   : > { %v3384_v61 = vadd.f32 %v3378_v42, %v3286_v62  ;;  %v13677_v42 = vsel %vm17057_vm0, %v13611_v34, %v13613_v8  ;;  %vm17065_vm0 = vcmp.ne.s16.totalorder %v13611_v34, 0 }
 0xd95   : > { %vm3616_vm5 = vcmp.ne.s16.totalorder %v13677_v42, 0  ;;  %v3618_v46 = vsel %vm17065_vm0, %v13524_v11, 0 }
 0xd96   : > { %v3619_v45 = vsel %vm3616_vm5, %v13527_v24, 0 }
 0xda0   : > { %v3473_v33 = vpop.f32.mrb[64].mxu0 }
 0xda1   : > { %v3480_v6 = vadd.f32 %v3473_v33, %v3383_v2  ;;  %v3475_v12 = vpop.f32.mrb[65].mxu0 }
 0xda2   : > { %v3481_v41 = vadd.f32 %v3475_v12, %v3384_v61  ;;  %v3477_v44 = vpop.f32.mrb[66].mxu0 }
 0xda3   : > { %v3487_v17 = vadd.f32 %v13521_v21, %v3480_v6  ;;  %v3478_v25 = vpop.f32.mrb[67].mxu0 }
 0xda4   : > { %v3488_v26 = vadd.f32 %v13521_v21, %v3481_v41  ;;  %v3608_v21 = vsel %vm3605_vm14, %v13530_v23, 0 }
 0xda5   : > { %v3489_v27 = vpack.c.bf16 %v3487_v17, %v3487_v17  ;;  %v3688_v36 = vrot.slane %v3608_v21, 4 }
 0xda6   : > { %v3490_v29 = vpack.c.bf16 %v3488_v26, %v3488_v26 }
 0xda7   : > { %3767 = vrot.lane.b32.xlu1 %v3489_v27, %s17306_s10 }
 0xda8   : > { %3769 = vrot.lane.b32.xlu0 %v3490_v29, %s17306_s10 }
 0xdab   : > { %3650 = vrot.lane.b32.xlu1 %v3582_v31, %s17054_s26  ;;  %s17060_s26 = smov 96  }
 0xdac   : > { %3678 = vrot.lane.b32.xlu0 %v13530_v23, %s17307_s28 }
 0xdaf   : > { %3676 = vrot.lane.b32.xlu1 %v13527_v24, %s17307_s28 }
 0xdb0   : > { %3693 = vrot.lane.b32.xlu0 %v3688_v36, %s17308_s16 }
 0xdb3   : > { %3691 = vrot.lane.b32.xlu1 %v3687_v39, %s17308_s16 }
 0xdb4   : > { %3689 = vrot.lane.b32.xlu0 %v3686_v40, %s17308_s16 }
 0xdb7   : > { %3674 = vrot.lane.b32.xlu1 %v13524_v11, %s17307_s28 }
 0xdb8   : > { %3705 = vrot.lane.b32.xlu0 %v3620_v43, %s17060_s26 }
 0xdbb   : > { %3703 = vrot.lane.b32.xlu1 %v3619_v45, %s17060_s26 }
 0xdbc   : > { %3714 = vrot.lane.b32.xlu0 %v3637_v15, %s17058_s1 }
 0xdbf   : > { %3712 = vrot.lane.b32.xlu1 %v3636_v60, %s17058_s1 }
 0xdc0   : > { %3710 = vrot.lane.b32.xlu0 %v3635_v14, %s17058_s1  ;;  %v3672_v14 = vsel %vm3671_vm4, %v3666_v47, %v13638_v37  ;;  %s17309_s1 = smov 126  }
 0xdc3   : > { %3701 = vrot.lane.b32.xlu1 %v3618_v46, %s17060_s26  ;;  %s17310_s26 = smov 127  }
 0xe19   : > { %v3768_v48 = vpop.permute.xlu1 %3767 }
 0xe1a   : > { %v13707_v15 = vsel %vm3531_vm10, 0, %v3768_v48  ;;  %v3770_v49 = vpop.permute.xlu0 %3769 }
 0xe1b   : > { %v13710_v50 = vsel %vm3531_vm10, %v3770_v49, 0  ;;  %3834 = vrot.lane.b32.xlu1 %v13707_v15, %s17307_s28  ;;  %v3781_v62 = vsel %vm17063_vm11, %v13707_v15, 0  ;;  %v3798_v0 = vrot.slane %v13707_v15, 4  ;;  %v13728_v37 = vsel %vm3531_vm10, %v3768_v48, %v3770_v49 }
 0xe1c   : > { %3838 = vrot.lane.b32.xlu0 %v13710_v50, %s17307_s28  ;;  %vm3695_vm11 = vcmask 900096   ;;  %v3790_v44 = vsel %vm17065_vm0, %v13707_v15, 0  ;;  %v3792_v17 = vsel %vm17066_vm1, %v13710_v50, 0  ;;  %v3782_v21 = vsel %vm3580_vm3, %v13728_v37, 0 }
 0xe1d   : > { %v3651_v60 = vpop.permute.xlu1 %3650  ;;  %v3791_v39 = vsel %vm3616_vm5, %v13728_v37, 0  ;;  %v3800_v40 = vrot.slane %v13710_v50, 4  ;;  %vm17126_vm0 = vcmask 785408   ;;  %vm17114_vm1 = vcmask 777216  }
 0xe1e   : > { %v3657_v51 = vsel %vm17062_vm9, %v3651_v60, %v13634_v32  ;;  %v3679_v59 = vpop.permute.xlu0 %3678  ;;  %vm3680_vm9 = vcmask 908288   ;;  %v3783_v32 = vsel %vm3581_vm2, %v13710_v50, 0  ;;  %v3784_v43 = vsel %vm3591_vm15, %v13707_v15, 0 }
 0xe1f   : > { %3812 = vrot.lane.b32.xlu1 %v3781_v62, %s17309_s1  ;;  %v3742_v1 = vsel %vm17125_vm7, %v3657_v51, %v3672_v14  ;;  %v3799_v46 = vrot.slane %v13728_v37, 4  ;;  %v3823_v49 = vrot.slane %v3784_v43, 4  ;;  %v3787_v51 = vsel %vm17068_vm6, %v13707_v15, 0 }
 0xe20   : > { %3801 = vrot.lane.b32.xlu0 %v3798_v0, %s17310_s26  ;;  %3981 = vmatpush1.bf16.msra.mxu0 %v3742_v1  ;;  %v3845_v1 = vrot.slane %v3787_v51, 4  ;;  %vm17074_vm6 = vcmp.ne.s16.totalorder %v13617_v13, 0 }
 0xe21   : > { %v3677_v2 = vpop.permute.xlu1 %3676 }
 0xe22   : > { %v3694_v61 = vpop.permute.xlu0 %3693  ;;  %v3682_v6 = vsel %vm3680_vm9, %v3677_v2, %v3679_v59 }
 0xe23   : > { %3836 = vrot.lane.b32.xlu1 %v13728_v37, %s17307_s28 }
 0xe24   : > { %3816 = vrot.lane.b32.xlu0 %v3783_v32, %s17309_s1 }
 0xe25   : > { %v3692_v33 = vpop.permute.xlu1 %3691 }
 0xe26   : > { %v3697_v12 = vsel %vm3695_vm11, %v3692_v33, %v3694_v61  ;;  %v3690_v41 = vpop.permute.xlu0 %3689 }
 0xe27   : > { %3859 = vrot.lane.b32.xlu1 %v3790_v44, %s17311_s3  ;;  %v3754_v25 = vsel %vm17125_vm7, %v3682_v6, %v3697_v12  ;;  %v3696_v27 = vsel %vm3695_vm11, %v3690_v41, %v3692_v33  ;;  %v3788_v33 = vsel %vm17069_vm8, %v13728_v37, 0  ;;  %v3786_v6 = vsel %vm17070_vm13, %v13710_v50, 0 }
 0xe28   : > { %3863 = vrot.lane.b32.xlu0 %v3792_v17, %s17311_s3  ;;  %3982 = vmatprep.subr.bf16.mxu0 %v3754_v25  ;;  %v3846_v12 = vrot.slane %v3788_v33, 4  ;;  %v3825_v41 = vrot.slane %v3786_v6, 4  ;;  %v3789_v44 = vsel %vm3605_vm14, %v13710_v50, 0  ;;  %v3630_v25 = vsel %vm17074_vm6, %v13524_v11, 0 }
 0xe29   : > { %v3675_v26 = vpop.permute.xlu1 %3674  ;;  %vm17073_vm8 = vcmp.ne.s16.totalorder %v13619_v20, 0 }
 0xe2a   : > { %v3681_v29 = vsel %vm3680_vm9, %v3675_v26, %v3677_v2  ;;  %v3706_v31 = vpop.permute.xlu0 %3705  ;;  %v3785_v2 = vsel %vm17067_vm12, %v13728_v37, 0  ;;  %vm17071_vm12 = vcmask 277504   ;;  %v3847_v26 = vrot.slane %v3789_v44, 4 }
 0xe2b   : > { %3814 = vrot.lane.b32.xlu1 %v3782_v21, %s17309_s1  ;;  %v3750_v35 = vsel %vm17125_vm7, %v3681_v29, %v3696_v27  ;;  %v3824_v32 = vrot.slane %v3785_v2, 4  ;;  %v13798_v17 = vsel %vm17071_vm12, %v13617_v13, %v13619_v20  ;;  %v3632_v27 = vsel %vm17073_vm8, %v13530_v23, 0 }
 0xe2c   : > { %3867 = vrot.lane.b32.xlu0 %v3798_v0, %s17312_s5  ;;  %3983 = vmatpush1.bf16.msra.mxu0 %v3750_v35  ;;  %vm17072_vm13 = vcmp.ne.s16.totalorder %v13798_v17, 0  ;;  %v3795_v23 = vsel %vm17073_vm8, %v13710_v50, 0  ;;  %vm17313_vm12 = vcmask 1039360   ;;  %vm17315_vm8 = vcmp.ne.s16.totalorder %v13502_v10, 0 }
 0xe2d   : > { %v3704_v36 = vpop.permute.xlu1 %3703  ;;  %v3631_v11 = vsel %vm17072_vm13, %v13527_v24, 0  ;;  %v3794_v29 = vsel %vm17072_vm13, %v13728_v37, 0  ;;  %vm17314_vm13 = vmmov %vm17313_vm12 }
 0xe2e   : > { %v3715_v38 = vpop.permute.xlu0 %3714  ;;  %v3709_v47 = vsel %vm17126_vm0, %v3704_v36, %v3706_v31  ;;  %v3793_v31 = vsel %vm17074_vm6, %v13707_v15, 0  ;;  %vm17316_vm6 = vcmp.ne.s16.totalorder %v13499_v9, 0 }
 0xe2f   : > { %3861 = vrot.lane.b32.xlu1 %v3791_v39, %s17311_s3  ;;  %v3779_v51 = vsel %vm17316_vm6, %v13707_v15, 0  ;;  %vm17124_vm6 = vcmask 769024  }
 0xe30   : > { %3805 = vrot.lane.b32.xlu0 %v3800_v40, %s17310_s26 }
 0xe31   : > { %v3713_v45 = vpop.permute.xlu1 %3712 }
 0xe32   : > { %v3718_v48 = vsel %vm17114_vm1, %v3713_v45, %v3715_v38  ;;  %v3711_v60 = vpop.permute.xlu0 %3710 }
 0xe33   : > { %3803 = vrot.lane.b32.xlu1 %v3799_v46, %s17310_s26  ;;  %v3762_v14 = vsel %vm17125_vm7, %v3709_v47, %v3718_v48  ;;  %v3717_v62 = vsel %vm17114_vm1, %v3711_v60, %v3713_v45 }
 0xe34   : > { %3826 = vrot.lane.b32.xlu0 %v3823_v49, %s17305_s2  ;;  %3984 = vmatprep.subr.bf16.mxu0 %v3762_v14  ;;  %v3780_v14 = vsel %vm17315_vm8, %v13728_v37, 0  ;;  %vm3918_vm8 = vcmask 588800  }
 0xe35   : > { %v3702_v59 = vpop.permute.xlu1 %3701 }
 0xe36   : > { %v3708_v0 = vsel %vm17126_vm0, %v3702_v59, %v3704_v36 }
 0xe37   : > { %3869 = vrot.lane.b32.xlu1 %v3799_v46, %s17312_s5  ;;  %v3758_v61 = vsel %vm17125_vm7, %v3708_v0, %v3717_v62 }
 0xe38   : > { %3848 = vrot.lane.b32.xlu0 %v3845_v1, %s17308_s16  ;;  %3985 = vmatpush1.bf16.msra.mxu0 %v3758_v61 }
 0xe3b   : > { %3828 = vrot.lane.b32.xlu1 %v3824_v32, %s17305_s2 }
 0xe3c   : > { %3871 = vrot.lane.b32.xlu0 %v3800_v40, %s17312_s5 }
 0xe3f   : > { %3850 = vrot.lane.b32.xlu1 %v3846_v12, %s17308_s16 }
 0xe40   : > { %3830 = vrot.lane.b32.xlu0 %v3825_v41, %s17305_s2 }
 0xe43   : > { %3722 = vrot.lane.b32.xlu1 %v3630_v25, %s17075_s8 }
 0xe44   : > { %3852 = vrot.lane.b32.xlu0 %v3847_v26, %s17308_s16 }
 0xe47   : > { %3726 = vrot.lane.b32.xlu1 %v3632_v27, %s17075_s8 }
 0xe48   : > { %3724 = vrot.lane.b32.xlu0 %v3631_v11, %s17075_s8 }
 0xe4b   : > { %3880 = vrot.lane.b32.xlu1 %v3794_v29, %s17075_s8 }
 0xe4c   : > { %3878 = vrot.lane.b32.xlu0 %v3793_v31, %s17075_s8 }
 0xe4f   : > { %4020 = vperm.xlu1 %12577, %v13460_v30  }
 0xe50   : > { %3882 = vrot.lane.b32.xlu0 %v3795_v23, %s17075_s8  ;;  %s17319_s8 = sld [smem:[#allocation10_spill]] }
 0xe53   : > { %12578 = vset.pattern.permute.xlu1 %v17081_v16 }
 0xe8d   : > { %v3835_v24 = vpop.permute.xlu1 %3834 }
 0xe8e   : > { %v3839_v21 = vpop.permute.xlu0 %3838 }
 0xe91   : > { %v3813_v35 = vpop.permute.xlu1 %3812 }
 0xe92   : > { %v3802_v36 = vpop.permute.xlu0 %3801 }
 0xe95   : > { %v3837_v38 = vpop.permute.xlu1 %3836 }
 0xe96   : > { %v3817_v39 = vpop.permute.xlu0 %3816  ;;  %v3841_v11 = vsel %vm3680_vm9, %v3837_v38, %v3839_v21  ;;  %v3840_v23 = vsel %vm3680_vm9, %v3835_v24, %v3837_v38 }
 0xe99   : > { %v3860_v40 = vpop.permute.xlu1 %3859 }
 0xe9a   : > { %v3864_v43 = vpop.permute.xlu0 %3863 }
 0xe9d   : > { %v3815_v45 = vpop.permute.xlu1 %3814 }
 0xe9e   : > { %v3868_v46 = vpop.permute.xlu0 %3867 }
 0xea1   : > { %v3862_v47 = vpop.permute.xlu1 %3861 }
 0xea2   : > { %v3806_v48 = vpop.permute.xlu0 %3805  ;;  %v3865_v38 = vsel %vm17126_vm0, %v3860_v40, %v3862_v47 }
 0xea5   : > { %v3804_v49 = vpop.permute.xlu1 %3803 }
 0xea6   : > { %v3807_v50 = vsel %vm17313_vm12, %v3802_v36, %v3804_v49  ;;  %v3808_v30 = vsel %vm17314_vm13, %v3804_v49, %v3806_v48  ;;  %v3827_v60 = vpop.permute.xlu0 %3826  ;;  %vm17317_vm12 = vcmask 1031168   ;;  %v3866_v36 = vsel %vm17126_vm0, %v3862_v47, %v3864_v43 }
 0xea7   : > { %v3892_v59 = vsel %vm17125_vm7, %v3780_v14, %v3808_v30  ;;  %v3888_v62 = vsel %vm17125_vm7, %v3779_v51, %v3807_v50  ;;  %v3819_v37 = vsel %vm17317_vm12, %v3815_v45, %v3817_v39  ;;  %vm17318_vm13 = vmmov %vm17317_vm12  ;;  %vm17321_vm12 = vcmp.ne.s16.totalorder %v13578_v56, 0 }
 0xea8   : > { %3928 = vmatprep.subr.bf16.mxu1 %v3892_v59  ;;  %v3818_v15 = vsel %vm17318_vm13, %v3813_v35, %v3815_v45  ;;  %vm17322_vm13 = vcmp.ne.s16.totalorder %v13613_v8, 0 }
 0xea9   : > { %3929 = vmatpush1.bf16.msra.mxu1 %v3888_v62  ;;  %v3870_v0 = vpop.permute.xlu1 %3869  ;;  %v3764_v62 = vld [vmem:[%s17320_s9] sm:$0xf]  ;;  %s17329_s9 = smov 94  }
 0xeaa   : > { %v3849_v1 = vpop.permute.xlu0 %3848  ;;  %v3873_v48 = vsel %vm17114_vm1, %v3868_v46, %v3870_v0  ;;  %v3521_v46 = vld [vmem:[%s17319_s8] sm:$0xf]  ;;  %s17338_s8 = sld [smem:[#allocation12_spill]] }
 0xeab   : > { %v3912_v30 = vsel %vm17125_vm7, %v3865_v38, %v3873_v48 }
 0xead   : > { %v3829_v2 = vpop.permute.xlu1 %3828 }
 0xeae   : > { %v3872_v61 = vpop.permute.xlu0 %3871  ;;  %v3832_v33 = vsel %vm3671_vm4, %v3827_v60, %v3829_v2 }
 0xeaf   : > { %v3896_v25 = vsel %vm17125_vm7, %v3818_v15, %v3832_v33  ;;  %v3874_v29 = vsel %vm17114_vm1, %v3870_v0, %v3872_v61 }
 0xeb0   : > { %v3916_v21 = vsel %vm17125_vm7, %v3866_v36, %v3874_v29 }
 0xeb1   : > { %v3851_v32 = vpop.permute.xlu1 %3850 }
 0xeb2   : > { %v3831_v6 = vpop.permute.xlu0 %3830  ;;  %v3854_v26 = vsel %vm3695_vm11, %v3849_v1, %v3851_v32 }
 0xeb3   : > { %v3833_v12 = vsel %vm3671_vm4, %v3829_v2, %v3831_v6  ;;  %v3904_v45 = vsel %vm17125_vm7, %v3840_v23, %v3854_v26 }
 0xeb4   : > { %v3900_v41 = vsel %vm17125_vm7, %v3819_v37, %v3833_v12 }
 0xeb5   : > { %3930 = vmatprep.subr.bf16.mxu1 %v3900_v41  ;;  %v3723_v44 = vpop.permute.xlu1 %3722 }
 0xeb6   : > { %v3853_v27 = vpop.permute.xlu0 %3852  ;;  %3931 = vmatpush1.bf16.msra.mxu1 %v3896_v25 }
 0xeb7   : > { %v3855_v31 = vsel %vm3695_vm11, %v3851_v32, %v3853_v27 }
 0xeb8   : > { %v3908_v35 = vsel %vm17125_vm7, %v3841_v11, %v3855_v31 }
 0xeb9   : > { %3932 = vmatprep.subr.bf16.mxu1 %v3908_v35  ;;  %v3727_v39 = vpop.permute.xlu1 %3726 }
 0xeba   : > { %v3725_v49 = vpop.permute.xlu0 %3724  ;;  %3933 = vmatpush1.bf16.msra.mxu1 %v3904_v45 }
 0xebb   : > { %v3729_v50 = vsel %vm17124_vm6, %v3723_v44, %v3725_v49  ;;  %3934 = vmatprep.subr.bf16.mxu1 %v3916_v21  ;;  %v3730_v24 = vsel %vm17124_vm6, %v3725_v49, %v3727_v39 }
 0xebc   : > { %11272 = vmatprep.subr.msk.bf16.mxu0 %vm17125_vm7, %v3730_v24  ;;  %v3973_v43 = vsel %vm17125_vm7, %v3729_v50, 0 }
 0xebd   : > { %3987 = vmatpush1.bf16.msra.mxu0 %v3973_v43  ;;  %v3881_v60 = vpop.permute.xlu1 %3880 }
 0xebe   : > { %v3879_v14 = vpop.permute.xlu0 %3878  ;;  %3935 = vmatpush1.bf16.msra.mxu1 %v3912_v30 }
 0xebf   : > { %v3884_v51 = vsel %vm17124_vm6, %v3879_v14, %v3881_v60 }
 0xec0   : > { %11273 = vmatmul.mubr.msk.bf16.vlgmr.msra.gmra.mrb[68].mxu0 %vm3918_vm8, %v3521_v46  ;;  %v3923_v59 = vsel %vm17125_vm7, %v3884_v51, 0  ;;  %v12691_v51 = vld [vmem:[%s17298_s7] sm:$0xff] }
 0xec1   : > { %4291 = vmatprep.mubr.bf16.mxu0 %v17081_v16 }
 0xec2   : > { %v3883_v40 = vpop.permute.xlu0 %3882 }
 0xec3   : > { %v3885_v47 = vsel %vm17124_vm6, %v3881_v60, %v3883_v40 }
 0xec4   : > { %11270 = vmatprep.subr.msk.bf16.mxu1 %vm17125_vm7, %v3885_v47 }
 0xec5   : > { %3937 = vmatpush1.bf16.msra.mxu1 %v3923_v59 }
 0xec8   : > { %11271 = vmatmul.mubr.msk.bf16.vlgmr.msra.gmra.mrb[40].mxu1 %vm3918_vm8, %v3764_v62 }
 0xec9   : > { %4228 = vmatprep.mubr.bf16.mxu1 %v17081_v16 }
 0xece   : > { %v4021_v33 = vpop.permute.xlu1 %4020 }
 0xf93   : > { %v4012_v0 = vpop.f32.mrb[68].mxu0 }
 0xf94   : > { %v4014_v1 = vpop.f32.mrb[69].mxu0 }
 0xf95   : > { %v4016_v2 = vpop.f32.mrb[70].mxu0 }
 0xf96   : > { %v4017_v61 = vpop.f32.mrb[71].mxu0 }
 0xf9b   : > { %v3962_v32 = vpop.f32.mrb[40].mxu1 }
 0xf9c   : > { %v4013_v6 = vadd.f32 %v4012_v0, %v3962_v32  ;;  %v3964_v37 = vpop.f32.mrb[41].mxu1 }
 0xf9d   : > { %v4015_v12 = vadd.f32 %v4014_v1, %v3964_v37  ;;  %v3966_v15 = vpop.f32.mrb[42].mxu1 }
 0xf9e   : > { %v4023_v41 = vadd.f32 %v4021_v33, %v4013_v6  ;;  %v3967_v44 = vpop.f32.mrb[43].mxu1 }
 0xf9f   : > { %v4024_v25 = vadd.f32 %v4021_v33, %v4015_v12 }
 0xfa0   : > { %v4025_v26 = vmax.f32 %v4023_v41, 0.0 }
 0xfa1   : > { %v4026_v27 = vmax.f32 %v4024_v25, 0.0 }
 0xfa2   : > { %v4027_v11 = vpack.c.bf16 %v4025_v26, %v4025_v26 }
 0xfa3   : > { %v4028_v29 = vpack.c.bf16 %v4026_v27, %v4026_v27 }
 0xfa4   : > { %4032 = vrot.lane.b32.xlu0 %v4027_v11, %s17306_s10 }
 0xfa5   : > { %4034 = vrot.lane.b32.xlu1 %v4028_v29, %s17306_s10  ;;  %s17350_s10 = smov 32  }
0x1016   : > { %v4033_v31 = vpop.permute.xlu0 %4032 }
0x1017   : > { %v13874_v23 = vsel %vm3531_vm10, 0, %v4033_v31  ;;  %v4035_v35 = vpop.permute.xlu1 %4034 }
0x1018   : > { %v4042_v36 = vsel %vm3531_vm10, %v4035_v35, 0  ;;  %4099 = vrot.lane.b32.xlu1 %v13874_v23, %s17307_s28  ;;  %v4046_v39 = vsel %vm17321_vm12, %v13874_v23, 0  ;;  %v4063_v45 = vrot.slane %v13874_v23, 4  ;;  %v4036_v48 = vsel %vm3531_vm10, %v4033_v31, %v4035_v35 }
0x1019   : > { %4103 = vrot.lane.b32.xlu0 %v4042_v36, %s17307_s28  ;;  %v4048_v49 = vsel %vm3581_vm2, %v4042_v36, 0  ;;  %v4047_v21 = vsel %vm3580_vm3, %v4036_v48, 0  ;;  %v4057_v56 = vsel %vm17322_vm13, %v4042_v36, 0  ;;  %v4056_v50 = vsel %vm3616_vm5, %v4036_v48, 0 }
0x101a   : > { %v4064_v24 = vrot.slane %v4036_v48, 4  ;;  %v4049_v58 = vsel %vm3591_vm15, %v13874_v23, 0  ;;  %v4065_v63 = vrot.slane %v4042_v36, 4  ;;  %vm17323_vm10 = vcmp.ne.s16.totalorder %v13602_v3, 0 }
0x101b   : > { %v4088_v38 = vrot.slane %v4049_v58, 4  ;;  %v4052_v8 = vsel %vm17323_vm10, %v13874_v23, 0  ;;  %vm17324_vm2 = vcmp.ne.s16.totalorder %v13574_v55, 0  ;;  %vm17325_vm15 = vcmp.ne.s16.totalorder %v13569_v53, 0 }
0x101c   : > { %4077 = vrot.lane.b32.xlu1 %v4046_v39, %s17309_s1  ;;  %v4110_v42 = vrot.slane %v4052_v8, 4  ;;  %v4050_v43 = vsel %vm17324_vm2, %v4036_v48, 0  ;;  %v4051_v52 = vsel %vm17325_vm15, %v4042_v36, 0  ;;  %vm17326_vm3 = vcmp.ne.s16.totalorder %v13649_v28, 0 }
0x101d   : > { %4066 = vrot.lane.b32.xlu0 %v4063_v45, %s17310_s26  ;;  %v4089_v30 = vrot.slane %v4050_v43, 4  ;;  %v4090_v46 = vrot.slane %v4051_v52, 4  ;;  %v4053_v60 = vsel %vm17326_vm3, %v4036_v48, 0  ;;  %v4054_v3 = vsel %vm3605_vm14, %v4042_v36, 0 }
0x101e   : > { %v4111_v55 = vrot.slane %v4053_v60, 4  ;;  %v4112_v14 = vrot.slane %v4054_v3, 4  ;;  %vm17327_vm5 = vcmp.ne.s16.totalorder %v13611_v34, 0  ;;  %vm17328_vm14 = vcmp.ne.s16.totalorder %v13617_v13, 0 }
0x101f   : > { %v4055_v53 = vsel %vm17327_vm5, %v13874_v23, 0  ;;  %v4058_v4 = vsel %vm17328_vm14, %v13874_v23, 0  ;;  %vm17330_vm12 = vcmp.ne.s16.totalorder %v13619_v20, 0  ;;  %vm17331_vm13 = vcmp.ne.s16.totalorder %v13798_v17, 0 }
0x1020   : > { %4101 = vrot.lane.b32.xlu1 %v4036_v48, %s17307_s28  ;;  %v4060_v28 = vsel %vm17330_vm12, %v4042_v36, 0  ;;  %v4059_v34 = vsel %vm17331_vm13, %v4036_v48, 0  ;;  %vm17332_vm10 = vcmask 1039360   ;;  %vm17334_vm15 = vcmp.ne.s16.totalorder %v13502_v10, 0  ;;  %s17340_s28 = sld [smem:[#allocation15_spill]] }
0x1021   : > { %4081 = vrot.lane.b32.xlu0 %v4048_v49, %s17309_s1  ;;  %vm17333_vm2 = vmmov %vm17332_vm10  ;;  %v4045_v37 = vsel %vm17334_vm15, %v4036_v48, 0  ;;  %vm17335_vm3 = vcmp.ne.s16.totalorder %v13499_v9, 0  ;;  %vm17336_vm5 = vcmask 1031168  }
0x1022   : > { %v4044_v12 = vsel %vm17335_vm3, %v13874_v23, 0  ;;  %vm17337_vm14 = vmmov %vm17336_vm5 }
0x1024   : > { %4079 = vrot.lane.b32.xlu1 %v4047_v21, %s17309_s1 }
0x1025   : > { %4128 = vrot.lane.b32.xlu0 %v4057_v56, %s17311_s3 }
0x1028   : > { %4126 = vrot.lane.b32.xlu1 %v4056_v50, %s17311_s3 }
0x1029   : > { %4068 = vrot.lane.b32.xlu0 %v4064_v24, %s17310_s26 }
0x102c   : > { %4070 = vrot.lane.b32.xlu1 %v4065_v63, %s17310_s26 }
0x102d   : > { %4091 = vrot.lane.b32.xlu0 %v4088_v38, %s17305_s2 }
0x1030   : > { %4134 = vrot.lane.b32.xlu1 %v4064_v24, %s17312_s5 }
0x1031   : > { %4113 = vrot.lane.b32.xlu0 %v4110_v42, %s17308_s16 }
0x1034   : > { %4093 = vrot.lane.b32.xlu1 %v4089_v30, %s17305_s2 }
0x1035   : > { %4095 = vrot.lane.b32.xlu0 %v4090_v46, %s17305_s2  ;;  %s17353_s2 = smov 34  }
0x1038   : > { %4115 = vrot.lane.b32.xlu1 %v4111_v55, %s17308_s16 }
0x1039   : > { %4117 = vrot.lane.b32.xlu0 %v4112_v14, %s17308_s16  ;;  %s17339_s16 = sld [smem:[#allocation16_spill]]  ;;  %v4029_v14 = vld [vmem:[%s17338_s8] sm:$0xf]  ;;  %s12764_s8 = smov 64  }
0x103c   : > { %4124 = vrot.lane.b32.xlu1 %v4055_v53, %s17311_s3 }
0x103d   : > { %4136 = vrot.lane.b32.xlu0 %v4065_v63, %s17312_s5 }
0x103f   : > { %v11280_v53 = vld [vmem:[%s17339_s16 + $0x408] sm:$0xff] }
0x1040   : > { %4143 = vrot.lane.b32.xlu1 %v4058_v4, %s17329_s9  ;;  %v11284_v4 = vld [vmem:[%s17339_s16 + $0x428] sm:$0xff] }
0x1041   : > { %4132 = vrot.lane.b32.xlu0 %v4063_v45, %s17312_s5  ;;  %v11668_v7 = vld [vmem:[%s17339_s16 + $0x828] sm:$0xff] }
0x1044   : > { %4147 = vrot.lane.b32.xlu1 %v4060_v28, %s17329_s9  ;;  %v11409_v28 = vcombine.low %v11280_v53, %v11284_v4 }
0x1045   : > { %4145 = vrot.lane.b32.xlu0 %v4059_v34, %s17329_s9  ;;  %v11410_v34 = vcombine.high %v11280_v53, %v11284_v4 }
0x1049   : > { %4184 = vperm.xlu0 %12575, %v12691_v51   ;;  %v11288_v51 = vld [vmem:[%s17339_s16 + $0x448] sm:$0xff] }
0x104d   : > { %12579 = vset.pattern.permute.xlu0 %v12748_v54 }
0x108a   : > { %v4100_v13 = vpop.permute.xlu1 %4099 }
0x108b   : > { %v4104_v40 = vpop.permute.xlu0 %4103 }
0x108e   : > { %v4078_v47 = vpop.permute.xlu1 %4077 }
0x108f   : > { %v4067_v59 = vpop.permute.xlu0 %4066 }
0x1092   : > { %v4102_v62 = vpop.permute.xlu1 %4101 }
0x1093   : > { %v4082_v0 = vpop.permute.xlu0 %4081  ;;  %v4106_v39 = vsel %vm3680_vm9, %v4102_v62, %v4104_v40  ;;  %v4105_v48 = vsel %vm3680_vm9, %v4100_v13, %v4102_v62  ;;  %v11292_v13 = vld [vmem:[%s17339_s16 + $0x468] sm:$0xff] }
0x1094   : > { %v11418_v40 = vcombine.high %v11288_v51, %v11292_v13  ;;  %v11300_v62 = vld [vmem:[%s17339_s16 + $0x4a8] sm:$0xff] }
0x1096   : > { %v4080_v1 = vpop.permute.xlu1 %4079 }
0x1097   : > { %v4129_v20 = vpop.permute.xlu0 %4128  ;;  %v4084_v11 = vsel %vm17336_vm5, %v4080_v1, %v4082_v0  ;;  %v4083_v29 = vsel %vm17337_vm14, %v4078_v47, %v4080_v1  ;;  %v11417_v47 = vcombine.low %v11288_v51, %v11292_v13 }
0x109a   : > { %v4127_v2 = vpop.permute.xlu1 %4126 }
0x109b   : > { %v4069_v61 = vpop.permute.xlu0 %4068  ;;  %v4131_v24 = vsel %vm17126_vm0, %v4127_v2, %v4129_v20  ;;  %v11304_v20 = vld [vmem:[%s17339_s16 + $0x4c8] sm:$0xff] }
0x109c   : > { %v4072_v32 = vsel %vm17332_vm10, %v4067_v59, %v4069_v61  ;;  %v11296_v59 = vld [vmem:[%s17339_s16 + $0x488] sm:$0xff] }
0x109d   : > { %v4153_v15 = vsel %vm17125_vm7, %v4044_v12, %v4072_v32  ;;  %v11426_v0 = vcombine.high %v11296_v59, %v11300_v62  ;;  %v11425_v1 = vcombine.low %v11296_v59, %v11300_v62  ;;  %v11324_v12 = vld [vmem:[%s17339_s16 + $0x568] sm:$0xff]  ;;  %v11283_v59 = vld [vmem:[%s17339_s16 + $0x420] sm:$0xff] }
0x109e   : > { %v4071_v17 = vpop.permute.xlu1 %4070 }
0x109f   : > { %v4073_v33 = vsel %vm17333_vm2, %v4069_v61, %v4071_v17  ;;  %v4092_v6 = vpop.permute.xlu0 %4091  ;;  %v11312_v17 = vld [vmem:[%s17339_s16 + $0x508] sm:$0xff] }
0x10a0   : > { %v4157_v54 = vsel %vm17125_vm7, %v4045_v37, %v4073_v33  ;;  %v11316_v33 = vld [vmem:[%s17339_s16 + $0x528] sm:$0xff] }
0x10a1   : > { %4196 = vmatprep.subr.bf16.mxu1 %v4157_v54  ;;  %v11441_v37 = vcombine.low %v11312_v17, %v11316_v33  ;;  %v11320_v54 = vld [vmem:[%s17339_s16 + $0x548] sm:$0xff] }
0x10a2   : > { %v4135_v41 = vpop.permute.xlu1 %4134  ;;  %4197 = vmatpush1.bf16.msra.mxu1 %v4153_v15  ;;  %v11450_v15 = vcombine.high %v11320_v54, %v11324_v12 }
0x10a3   : > { %v4114_v44 = vpop.permute.xlu0 %4113 }
0x10a6   : > { %v4094_v25 = vpop.permute.xlu1 %4093 }
0x10a7   : > { %v4097_v26 = vsel %vm3671_vm4, %v4092_v6, %v4094_v25  ;;  %v4096_v27 = vpop.permute.xlu0 %4095  ;;  %v11442_v6 = vcombine.high %v11312_v17, %v11316_v33  ;;  %v12688_v17 = vld [vmem:[%s17340_s28] sm:$0xff]   ;;  %s17077_s28 = smov 66  }
0x10a8   : > { %v4098_v10 = vsel %vm3671_vm4, %v4094_v25, %v4096_v27  ;;  %v4161_v23 = vsel %vm17125_vm7, %v4083_v29, %v4097_v26  ;;  %v11332_v25 = vld [vmem:[%s17339_s16 + $0x5a8] sm:$0xff]  ;;  %vm4249_vm4 = vcmask 64512  }
0x10a9   : > { %v4165_v31 = vsel %vm17125_vm7, %v4084_v11, %v4098_v10  ;;  %v11336_v11 = vld [vmem:[%s17339_s16 + $0x5c8] sm:$0xff] }
0x10aa   : > { %v4116_v9 = vpop.permute.xlu1 %4115  ;;  %4198 = vmatprep.subr.bf16.mxu1 %v4165_v31  ;;  %v11340_v10 = vld [vmem:[%s17339_s16 + $0x5e8] sm:$0xff] }
0x10ab   : > { %v4119_v35 = vsel %vm3695_vm11, %v4114_v44, %v4116_v9  ;;  %4199 = vmatpush1.bf16.msra.mxu1 %v4161_v23  ;;  %v4118_v36 = vpop.permute.xlu0 %4117  ;;  %v11328_v44 = vld [vmem:[%s17339_s16 + $0x588] sm:$0xff]  ;;  %v11466_v29 = vcombine.high %v11336_v11, %v11340_v10  ;;  %v11465_v31 = vcombine.low %v11336_v11, %v11340_v10  ;;  %v11315_v11 = vld [vmem:[%s17339_s16 + $0x520] sm:$0xff] }
0x10ac   : > { %v4120_v45 = vsel %vm3695_vm11, %v4116_v9, %v4118_v36  ;;  %v4169_v56 = vsel %vm17125_vm7, %v4105_v48, %v4119_v35  ;;  %v11458_v26 = vcombine.high %v11328_v44, %v11332_v25  ;;  %v11457_v27 = vcombine.low %v11328_v44, %v11332_v25  ;;  %v11344_v9 = vld [vmem:[%s17339_s16 + $0x608] sm:$0xff]  ;;  %v11307_v44 = vld [vmem:[%s17339_s16 + $0x4e0] sm:$0xff] }
0x10ad   : > { %v4173_v49 = vsel %vm17125_vm7, %v4106_v39, %v4120_v45  ;;  %v11348_v23 = vld [vmem:[%s17339_s16 + $0x628] sm:$0xff] }
0x10ae   : > { %v4125_v21 = vpop.permute.xlu1 %4124  ;;  %4200 = vmatprep.subr.bf16.mxu1 %v4173_v49  ;;  %v11474_v35 = vcombine.high %v11344_v9, %v11348_v23  ;;  %v11473_v36 = vcombine.low %v11344_v9, %v11348_v23  ;;  %v11352_v39 = vld [vmem:[%s17339_s16 + $0x648] sm:$0xff]  ;;  %v11323_v9 = vld [vmem:[%s17339_s16 + $0x560] sm:$0xff] }
0x10af   : > { %4201 = vmatpush1.bf16.msra.mxu1 %v4169_v56  ;;  %v4137_v50 = vpop.permute.xlu0 %4136  ;;  %v4130_v42 = vsel %vm17126_vm0, %v4125_v21, %v4127_v2  ;;  %v11308_v2 = vld [vmem:[%s17339_s16 + $0x4e8] sm:$0xff] }
0x10b0   : > { %v4139_v58 = vsel %vm17114_vm1, %v4135_v41, %v4137_v50  ;;  %v11434_v61 = vcombine.high %v11304_v20, %v11308_v2  ;;  %v11433_v32 = vcombine.low %v11304_v20, %v11308_v2  ;;  %v11356_v45 = vld [vmem:[%s17339_s16 + $0x668] sm:$0xff] }
0x10b1   : > { %v4181_v63 = vsel %vm17125_vm7, %v4131_v24, %v4139_v58  ;;  %v11482_v48 = vcombine.high %v11352_v39, %v11356_v45  ;;  %v11481_v49 = vcombine.low %v11352_v39, %v11356_v45  ;;  %v11360_v21 = vld [vmem:[%s17339_s16 + $0x688] sm:$0xff]  ;;  %v11331_v39 = vld [vmem:[%s17339_s16 + $0x5a0] sm:$0xff] }
0x10b2   : > { %v4144_v38 = vpop.permute.xlu1 %4143  ;;  %4202 = vmatprep.subr.bf16.mxu1 %v4181_v63  ;;  %v11364_v56 = vld [vmem:[%s17339_s16 + $0x6a8] sm:$0xff] }
0x10b3   : > { %v4133_v8 = vpop.permute.xlu0 %4132  ;;  %v11490_v50 = vcombine.high %v11360_v21, %v11364_v56  ;;  %v11489_v24 = vcombine.low %v11360_v21, %v11364_v56  ;;  %v11368_v58 = vld [vmem:[%s17339_s16 + $0x6c8] sm:$0xff]  ;;  %v11339_v21 = vld [vmem:[%s17339_s16 + $0x5e0] sm:$0xff] }
0x10b4   : > { %v4138_v43 = vsel %vm17114_vm1, %v4133_v8, %v4135_v41  ;;  %v11449_v41 = vcombine.low %v11320_v54, %v11324_v12  ;;  %v11372_v63 = vld [vmem:[%s17339_s16 + $0x6e8] sm:$0xff]  ;;  %v11299_v54 = vld [vmem:[%s17339_s16 + $0x4a0] sm:$0xff] }
0x10b5   : > { %v4177_v52 = vsel %vm17125_vm7, %v4130_v42, %v4138_v43  ;;  %v11497_v8 = vcombine.low %v11368_v58, %v11372_v63  ;;  %v11376_v42 = vld [vmem:[%s17339_s16 + $0x708] sm:$0xff] }
0x10b6   : > { %v4148_v30 = vpop.permute.xlu1 %4147  ;;  %4203 = vmatpush1.bf16.msra.mxu1 %v4177_v52  ;;  %v11380_v43 = vld [vmem:[%s17339_s16 + $0x728] sm:$0xff] }
0x10b7   : > { %v4146_v46 = vpop.permute.xlu0 %4145  ;;  %v11506_v52 = vcombine.high %v11376_v42, %v11380_v43 }
0x10b8   : > { %v4149_v60 = vsel %vm17124_vm6, %v4144_v38, %v4146_v46  ;;  %v4150_v3 = vsel %vm17124_vm6, %v4146_v46, %v4148_v30  ;;  %v11498_v38 = vcombine.high %v11368_v58, %v11372_v63  ;;  %v11505_v30 = vcombine.low %v11376_v42, %v11380_v43  ;;  %v11384_v46 = vld [vmem:[%s17339_s16 + $0x748] sm:$0xff]  ;;  %v11347_v58 = vld [vmem:[%s17339_s16 + $0x620] sm:$0xff] }
0x10b9   : > { %11274 = vmatprep.subr.msk.bf16.mxu1 %vm17125_vm7, %v4150_v3  ;;  %v4191_v55 = vsel %vm17125_vm7, %v4149_v60, 0  ;;  %v11388_v60 = vld [vmem:[%s17339_s16 + $0x768] sm:$0xff]  ;;  %v11355_v42 = vld [vmem:[%s17339_s16 + $0x660] sm:$0xff]  ;;  %vm8590_vm6 = vcmask 539648  }
0x10ba   : > { %4205 = vmatpush1.bf16.msra.mxu1 %v4191_v55  ;;  %v11514_v3 = vcombine.high %v11384_v46, %v11388_v60  ;;  %v11513_v55 = vcombine.low %v11384_v46, %v11388_v60  ;;  %v11363_v46 = vld [vmem:[%s17339_s16 + $0x6a0] sm:$0xff] }
0x10bb   : > { %5248 = vmatprep.subr.bf16.mxu1 %v11410_v34 }
0x10bd   : > { %11275 = vmatmul.mubr.msk.bf16.vlgmr.msra.gmra.mrb[44].mxu1 %vm3918_vm8, %v4029_v14 }
0x10be   : > { %5249 = vmatpush1.bf16.msra.mxu1 %v11409_v28 }
0x10bf   : > { %5250 = vmatprep.subr.bf16.mxu1 %v11418_v40 }
0x10c2   : > { %5251 = vmatpush1.bf16.msra.mxu1 %v11417_v47  ;;  %v11279_v47 = vld [vmem:[%s17339_s16 + $0x400] sm:$0xff] }
0x10c3   : > { %5252 = vmatprep.subr.bf16.mxu1 %v11426_v0  ;;  %v11408_v20 = vcombine.high %v11279_v47, %v11283_v59  ;;  %v11407_v33 = vcombine.low %v11279_v47, %v11283_v59  ;;  %v11387_v47 = vld [vmem:[%s17339_s16 + $0x760] sm:$0xff] }
0x10c6   : > { %5253 = vmatpush1.bf16.msra.mxu1 %v11425_v1 }
0x10c7   : > { %5254 = vmatprep.subr.bf16.mxu1 %v11434_v61  ;;  %v11287_v61 = vld [vmem:[%s17339_s16 + $0x440] sm:$0xff] }
0x10c8   : > { %v4185_v14 = vpop.permute.xlu0 %4184 }
0x10ca   : > { %5255 = vmatpush1.bf16.msra.mxu1 %v11433_v32  ;;  %v11291_v32 = vld [vmem:[%s17339_s16 + $0x460] sm:$0xff] }
0x10cb   : > { %5256 = vmatprep.subr.bf16.mxu1 %v11442_v6  ;;  %v11416_v6 = vcombine.high %v11287_v61, %v11291_v32  ;;  %v11415_v12 = vcombine.low %v11287_v61, %v11291_v32 }
0x10ce   : > { %5257 = vmatpush1.bf16.msra.mxu1 %v11441_v37  ;;  %v11295_v37 = vld [vmem:[%s17339_s16 + $0x480] sm:$0xff] }
0x10cf   : > { %5258 = vmatprep.subr.bf16.mxu1 %v11450_v15  ;;  %v11424_v15 = vcombine.high %v11295_v37, %v11299_v54  ;;  %v11423_v25 = vcombine.low %v11295_v37, %v11299_v54  ;;  %v11399_v37 = vld [vmem:[%s17339_s16 + $0x7c0] sm:$0xff] }
0x10d0   : > { %v11403_v54 = vld [vmem:[%s17339_s16 + $0x7e0] sm:$0xff] }
0x10d2   : > { %5259 = vmatpush1.bf16.msra.mxu1 %v11449_v41  ;;  %v11303_v41 = vld [vmem:[%s17339_s16 + $0x4c0] sm:$0xff] }
0x10d3   : > { %5260 = vmatprep.subr.bf16.mxu1 %v11458_v26  ;;  %v11432_v26 = vcombine.high %v11303_v41, %v11307_v44  ;;  %v11431_v10 = vcombine.low %v11303_v41, %v11307_v44  ;;  %v11528_v41 = vcombine.high %v11399_v37, %v11403_v54  ;;  %v11404_v44 = vld [vmem:[%s17339_s16 + $0x7e8] sm:$0xff] }
0x10d6   : > { %5261 = vmatpush1.bf16.msra.mxu1 %v11457_v27  ;;  %v11311_v27 = vld [vmem:[%s17339_s16 + $0x500] sm:$0xff] }
0x10d7   : > { %5262 = vmatprep.subr.bf16.mxu1 %v11466_v29  ;;  %v11440_v29 = vcombine.high %v11311_v27, %v11315_v11  ;;  %v11439_v23 = vcombine.low %v11311_v27, %v11315_v11  ;;  %v11281_v27 = vld [vmem:[%s17339_s16 + $0x410] sm:$0xff] }
0x10d8   : > { %v11285_v11 = vld [vmem:[%s17339_s16 + $0x430] sm:$0xff] }
0x10da   : > { %5263 = vmatpush1.bf16.msra.mxu1 %v11465_v31  ;;  %v11319_v31 = vld [vmem:[%s17339_s16 + $0x540] sm:$0xff] }
0x10db   : > { %5264 = vmatprep.subr.bf16.mxu1 %v11474_v35  ;;  %v11448_v35 = vcombine.high %v11319_v31, %v11323_v9  ;;  %v11447_v45 = vcombine.low %v11319_v31, %v11323_v9  ;;  %v11412_v31 = vcombine.high %v11281_v27, %v11285_v11  ;;  %v11286_v9 = vld [vmem:[%s17339_s16 + $0x438] sm:$0xff] }
0x10de   : > { %5265 = vmatpush1.bf16.msra.mxu1 %v11473_v36  ;;  %v11327_v36 = vld [vmem:[%s17339_s16 + $0x580] sm:$0xff] }
0x10df   : > { %5266 = vmatprep.subr.bf16.mxu1 %v11482_v48  ;;  %v11456_v48 = vcombine.high %v11327_v36, %v11331_v39  ;;  %v11455_v56 = vcombine.low %v11327_v36, %v11331_v39  ;;  %v4241_v36 = vld [vmem:[%s12918_s27] sm:$0xf] }
0x10e0   : > { %8067 = vperm.xlu1 %12578, %v4241_v36   ;;  %v11325_v36 = vld [vmem:[%s17339_s16 + $0x570] sm:$0xff] }
0x10e2   : > { %5267 = vmatpush1.bf16.msra.mxu1 %v11481_v49  ;;  %v11335_v49 = vld [vmem:[%s17339_s16 + $0x5c0] sm:$0xff] }
0x10e3   : > { %5268 = vmatprep.subr.bf16.mxu1 %v11490_v50  ;;  %v11464_v50 = vcombine.high %v11335_v49, %v11339_v21  ;;  %v11463_v63 = vcombine.low %v11335_v49, %v11339_v21 }
0x10e6   : > { %5269 = vmatpush1.bf16.msra.mxu1 %v11489_v24  ;;  %v11343_v24 = vld [vmem:[%s17339_s16 + $0x600] sm:$0xff] }
0x10e7   : > { %5270 = vmatprep.subr.bf16.mxu1 %v11498_v38  ;;  %v11472_v38 = vcombine.high %v11343_v24, %v11347_v58  ;;  %v11471_v43 = vcombine.low %v11343_v24, %v11347_v58  ;;  %v8096_v24 = vand.u32 31, %v12988_v18  ;;  %v11293_v58 = vld [vmem:[%s17339_s16 + $0x470] sm:$0xff] }
0x10e9   : > { %vm14057_vm11 = vcmp.le.s32.totalorder %v8096_v24, 30  ;;  %vm14079_vm12 = vcmp.ge.s32.totalorder %v8096_v24, 1 }
0x10ea   : > { %5271 = vmatpush1.bf16.msra.mxu1 %v11497_v8  ;;  %v11351_v8 = vld [vmem:[%s17339_s16 + $0x640] sm:$0xff] }
0x10eb   : > { %5272 = vmatprep.subr.bf16.mxu1 %v11506_v52  ;;  %v11480_v52 = vcombine.high %v11351_v8, %v11355_v42  ;;  %v11479_v60 = vcombine.low %v11351_v8, %v11355_v42  ;;  %v8103_v8 = vand.u32 31, %v13490_v5 }
0x10ed   : > { %vm8197_vm9 = vcmp.le.s32.totalorder %v8103_v8, 30  ;;  %vm8189_vm13 = vcmp.ge.s32.totalorder %v8103_v8, 1  ;;  %v11333_v8 = vld [vmem:[%s17339_s16 + $0x5b0] sm:$0xff] }
0x10ee   : > { %5273 = vmatpush1.bf16.msra.mxu1 %v11505_v30  ;;  %v11359_v30 = vld [vmem:[%s17339_s16 + $0x680] sm:$0xff]  ;;  %vm8369_vm8 = vmpackc.low %vm8197_vm9, %vm14057_vm11 }
0x10ef   : > { %5274 = vmatprep.subr.bf16.mxu1 %v11514_v3  ;;  %v11488_v3 = vcombine.high %v11359_v30, %v11363_v46  ;;  %vm8297_vm10 = vmpackc.low %vm8189_vm13, %vm14079_vm12 }
0x10f2   : > { %5275 = vmatpush1.bf16.msra.mxu1 %v11513_v55  ;;  %v11367_v55 = vld [vmem:[%s17339_s16 + $0x6c0] sm:$0xff] }
0x1190   : > { %v4230_v53 = vpop.f32.mrb[44].mxu1 }
0x1191   : > { %v4231_v4 = vadd.f32 %v4230_v53, %v4185_v14  ;;  %v4232_v28 = vpop.f32.mrb[45].mxu1  ;;  %v11487_v53 = vcombine.low %v11359_v30, %v11363_v46  ;;  %v11297_v30 = vld [vmem:[%s17339_s16 + $0x490] sm:$0xff] }
0x1192   : > { %v4233_v34 = vadd.f32 %v4232_v28, %v4185_v14  ;;  %v4234_v51 = vpop.f32.mrb[46].mxu1  ;;  %v11371_v14 = vld [vmem:[%s17339_s16 + $0x6e0] sm:$0xff]  ;;  %v11301_v46 = vld [vmem:[%s17339_s16 + $0x4b0] sm:$0xff] }
0x1193   : > { %v4237_v13 = vmax.f32 %v4231_v4, 0.0  ;;  %v4235_v40 = vpop.f32.mrb[47].mxu1  ;;  %v11496_v4 = vcombine.high %v11367_v55, %v11371_v14  ;;  %v11375_v28 = vld [vmem:[%s17339_s16 + $0x700] sm:$0xff]  ;;  %v11495_v51 = vcombine.low %v11367_v55, %v11371_v14  ;;  %v11298_v55 = vld [vmem:[%s17339_s16 + $0x498] sm:$0xff] }
0x1194   : > { %v4238_v62 = vmax.f32 %v4233_v34, 0.0  ;;  %v11379_v34 = vld [vmem:[%s17339_s16 + $0x720] sm:$0xff]  ;;  %v11302_v14 = vld [vmem:[%s17339_s16 + $0x4b8] sm:$0xff] }
0x1195   : > { %v4239_v0 = vpack.c.bf16 %v4237_v13, %v4237_v13  ;;  %v11504_v13 = vcombine.high %v11375_v28, %v11379_v34  ;;  %v11383_v40 = vld [vmem:[%s17339_s16 + $0x740] sm:$0xff]  ;;  %v11503_v59 = vcombine.low %v11375_v28, %v11379_v34 }
0x1196   : > { %v4240_v1 = vpack.c.bf16 %v4238_v62, %v4238_v62  ;;  %v11512_v62 = vcombine.high %v11383_v40, %v11387_v47 }
0x1197   : > { %v4254_v2 = vsel %vm17125_vm7, %v4239_v0, 0  ;;  %v11511_v0 = vcombine.low %v11383_v40, %v11387_v47  ;;  %v11430_v40 = vcombine.high %v11298_v55, %v11302_v14  ;;  %v11305_v47 = vld [vmem:[%s17339_s16 + $0x4d0] sm:$0xff] }
0x1198   : > { %11277 = vmatprep.subr.msk.bf16.mxu0 %vm17125_vm7, %v4240_v1  ;;  %v11391_v1 = vld [vmem:[%s17339_s16 + $0x780] sm:$0xff] }
0x1199   : > { %4260 = vmatpush1.bf16.msra.mxu0 %v4254_v2  ;;  %v11392_v2 = vld [vmem:[%s17339_s16 + $0x788] sm:$0xff] }
0x119a   : > { %5207 = vmatprep.subr.bf16.mxu0 %v11408_v20  ;;  %v11395_v20 = vld [vmem:[%s17339_s16 + $0x7a0] sm:$0xff] }
0x119b   : > { %v11519_v61 = vcombine.low %v11391_v1, %v11395_v20  ;;  %v11520_v32 = vcombine.high %v11391_v1, %v11395_v20  ;;  %v11306_v1 = vld [vmem:[%s17339_s16 + $0x4d8] sm:$0xff] }
0x119c   : > { %11278 = vmatmul.mubr.msk.bf16.vlgmr.msra.gmra.mrb[72].mxu0 %vm4249_vm4, %v12688_v17  ;;  %v11396_v17 = vld [vmem:[%s17339_s16 + $0x7a8] sm:$0xff]  ;;  %v11310_v20 = vld [vmem:[%s17339_s16 + $0x4f8] sm:$0xff] }
0x119d   : > { %5208 = vmatpush1.bf16.msra.mxu0 %v11407_v33  ;;  %v11521_v33 = vcombine.low %v11392_v2, %v11396_v17 }
0x119e   : > { %5209 = vmatprep.subr.bf16.mxu0 %v11416_v6  ;;  %v11522_v6 = vcombine.high %v11392_v2, %v11396_v17  ;;  %v8301_v2 = vsel %vm8297_vm10, 65537, %v17081_v16  ;;  %v11427_v17 = vcombine.low %v11297_v30, %v11301_v46 }
0x11a0   : > { %5276 = vmatprep.subr.bf16.mxu1 %v11522_v6 }
0x11a1   : > { %5210 = vmatpush1.bf16.msra.mxu0 %v11415_v12  ;;  %v11400_v12 = vld [vmem:[%s17339_s16 + $0x7c8] sm:$0xff]  ;;  %5277 = vmatpush1.bf16.msra.mxu1 %v11521_v33  ;;  %v11429_v33 = vcombine.low %v11298_v55, %v11302_v14  ;;  %v11337_v55 = vld [vmem:[%s17339_s16 + $0x5d0] sm:$0xff] }
0x11a2   : > { %5211 = vmatprep.subr.bf16.mxu0 %v11424_v15  ;;  %v11527_v15 = vcombine.low %v11399_v37, %v11403_v54  ;;  %v11438_v54 = vcombine.high %v11306_v1, %v11310_v20  ;;  %v11341_v14 = vld [vmem:[%s17339_s16 + $0x5f0] sm:$0xff] }
0x11a5   : > { %5212 = vmatpush1.bf16.msra.mxu0 %v11423_v25  ;;  %v11529_v25 = vcombine.low %v11400_v12, %v11404_v44 }
0x11a6   : > { %5213 = vmatprep.subr.bf16.mxu0 %v11432_v26  ;;  %v11530_v26 = vcombine.high %v11400_v12, %v11404_v44  ;;  %v11313_v12 = vld [vmem:[%s17339_s16 + $0x510] sm:$0xff]  ;;  %v11314_v44 = vld [vmem:[%s17339_s16 + $0x518] sm:$0xff] }
0x11a8   : > { %5278 = vmatprep.subr.bf16.mxu1 %v11530_v26  ;;  %v8091_v26 = vadd.s32 896, %v12988_v18 }
0x11a9   : > { %5214 = vmatpush1.bf16.msra.mxu0 %v11431_v10  ;;  %v11282_v10 = vld [vmem:[%s17339_s16 + $0x418] sm:$0xff]  ;;  %5279 = vmatpush1.bf16.msra.mxu1 %v11529_v25 }
0x11aa   : > { %5215 = vmatprep.subr.bf16.mxu0 %v11440_v29  ;;  %v11411_v29 = vcombine.low %v11281_v27, %v11285_v11  ;;  %v11318_v25 = vld [vmem:[%s17339_s16 + $0x538] sm:$0xff]  ;;  %v11437_v11 = vcombine.low %v11306_v1, %v11310_v20 }
0x11ab   : > { %v11445_v24 = vcombine.low %v11314_v44, %v11318_v25  ;;  %v11346_v1 = vld [vmem:[%s17339_s16 + $0x618] sm:$0xff] }
0x11ac   : > { %v11350_v20 = vld [vmem:[%s17339_s16 + $0x638] sm:$0xff] }
0x11ad   : > { %5216 = vmatpush1.bf16.msra.mxu0 %v11439_v23  ;;  %v11413_v23 = vcombine.low %v11282_v10, %v11286_v9 }
0x11ae   : > { %5217 = vmatprep.subr.bf16.mxu0 %v11448_v35  ;;  %v11414_v35 = vcombine.high %v11282_v10, %v11286_v9  ;;  %v11321_v9 = vld [vmem:[%s17339_s16 + $0x550] sm:$0xff] }
0x11b0   : > { %5330 = vmatprep.subr.bf16.mxu1 %v11414_v35 }
0x11b1   : > { %5218 = vmatpush1.bf16.msra.mxu0 %v11447_v45 }
0x11b2   : > { %5219 = vmatprep.subr.bf16.mxu0 %v11456_v48 }
0x11b5   : > { %5220 = vmatpush1.bf16.msra.mxu0 %v11455_v56 }
0x11b6   : > { %5221 = vmatprep.subr.bf16.mxu0 %v11464_v50  ;;  %v11289_v50 = vld [vmem:[%s17339_s16 + $0x450] sm:$0xff] }
0x11b7   : > { %v11419_v5 = vcombine.low %v11289_v50, %v11293_v58 }
0x11b9   : > { %5222 = vmatpush1.bf16.msra.mxu0 %v11463_v63  ;;  %v11290_v63 = vld [vmem:[%s17339_s16 + $0x458] sm:$0xff] }
0x11ba   : > { %5223 = vmatprep.subr.bf16.mxu0 %v11472_v38  ;;  %v11294_v38 = vld [vmem:[%s17339_s16 + $0x478] sm:$0xff] }
0x11bd   : > { %5224 = vmatpush1.bf16.msra.mxu0 %v11471_v43  ;;  %v11334_v43 = vld [vmem:[%s17339_s16 + $0x5b8] sm:$0xff] }
0x11be   : > { %5225 = vmatprep.subr.bf16.mxu0 %v11480_v52 }
0x11c1   : > { %5226 = vmatpush1.bf16.msra.mxu0 %v11479_v60  ;;  %v11420_v60 = vcombine.high %v11289_v50, %v11293_v58  ;;  %v11452_v58 = vcombine.high %v11321_v9, %v11325_v36 }
0x11c2   : > { %5227 = vmatprep.subr.bf16.mxu0 %v11488_v3  ;;  %v11422_v3 = vcombine.high %v11290_v63, %v11294_v38 }
0x11c5   : > { %5228 = vmatpush1.bf16.msra.mxu0 %v11487_v53  ;;  %v11421_v53 = vcombine.low %v11290_v63, %v11294_v38  ;;  %v11329_v38 = vld [vmem:[%s17339_s16 + $0x590] sm:$0xff] }
0x11c6   : > { %5229 = vmatprep.subr.bf16.mxu0 %v11496_v4  ;;  %v8373_v4 = vsel %vm8369_vm8, 65537, %v17081_v16 }
0x11c7   : > { %v14074_v28 = vrot.slane %v8373_v4, %v13495_v57  ;;  %v14077_v34 = vrot.slane %v8373_v4, %v12997_v22  ;;  %v11459_v4 = vcombine.low %v11329_v38, %v11333_v8 }
0x11c9   : > { %5230 = vmatpush1.bf16.msra.mxu0 %v11495_v51  ;;  %8411 = vrot.lane.b32.xlu1 %v14074_v28, %s17303_s11 }
0x11ca   : > { %5231 = vmatprep.subr.bf16.mxu0 %v11504_v13  ;;  %v11428_v13 = vcombine.high %v11297_v30, %v11301_v46  ;;  %8409 = vrot.lane.b32.xlu0 %v14077_v34, %s17303_s11  ;;  %v11451_v30 = vcombine.low %v11321_v9, %v11325_v36  ;;  %v8145_v9 = vand.u32 31, %v8091_v26 }
0x11cc   : > { %vm8203_vm13 = vcmp.le.s32.totalorder %v8145_v9, 30 }
0x11cd   : > { %5232 = vmatpush1.bf16.msra.mxu0 %v11503_v59  ;;  %v8086_v59 = vadd.s32 256, %v12988_v18 }
0x11ce   : > { %5233 = vmatprep.subr.bf16.mxu0 %v11512_v62  ;;  %v8087_v62 = vadd.s32 384, %v12988_v18 }
0x11d0   : > { %v8117_v6 = vand.u32 31, %v8087_v62  ;;  %v8088_v62 = vadd.s32 512, %v12988_v18 }
0x11d1   : > { %5234 = vmatpush1.bf16.msra.mxu0 %v11511_v0  ;;  %v11309_v0 = vld [vmem:[%s17339_s16 + $0x4f0] sm:$0xff] }
0x11d2   : > { %5235 = vmatprep.subr.bf16.mxu0 %v11520_v32  ;;  %v8110_v32 = vand.u32 31, %v8086_v59  ;;  %v11436_v37 = vcombine.high %v11305_v47, %v11309_v0  ;;  %vm8199_vm3 = vcmp.le.s32.totalorder %v8117_v6, 30  ;;  %vm14107_vm5 = vcmp.ge.s32.totalorder %v8117_v6, 1  ;;  %v11349_v59 = vld [vmem:[%s17339_s16 + $0x630] sm:$0xff] }
0x11d3   : > { %v11435_v27 = vcombine.low %v11305_v47, %v11309_v0  ;;  %v11345_v47 = vld [vmem:[%s17339_s16 + $0x610] sm:$0xff]  ;;  %v8089_v0 = vadd.s32 640, %v12988_v18 }
0x11d4   : > { %vm8198_vm2 = vcmp.le.s32.totalorder %v8110_v32, 30  ;;  %vm14100_vm15 = vcmp.ge.s32.totalorder %v8110_v32, 1  ;;  %v11476_v6 = vcombine.high %v11345_v47, %v11349_v59 }
0x11d5   : > { %5236 = vmatpush1.bf16.msra.mxu0 %v11519_v61  ;;  %v14097_v61 = vrot.slane %v8301_v2, %v12997_v22  ;;  %vm8370_vm14 = vmpackc.low %vm8199_vm3, %vm8198_vm2  ;;  %v8131_v32 = vand.u32 31, %v8089_v0  ;;  %v11381_v0 = vld [vmem:[%s17339_s16 + $0x730] sm:$0xff] }
0x11d6   : > { %5237 = vmatprep.subr.bf16.mxu0 %v11528_v41  ;;  %v11317_v41 = vld [vmem:[%s17339_s16 + $0x530] sm:$0xff]  ;;  %v14114_v10 = vsel %vm8370_vm14, 65537, %v17081_v16  ;;  %vm8298_vm4 = vmpackc.low %vm14107_vm5, %vm14100_vm15  ;;  %vm14245_vm14 = vcmp.ge.s32.totalorder %v8145_v9, 1  ;;  %v11398_v9 = vld [vmem:[%s17339_s16 + $0x7b8] sm:$0xff] }
0x11d7   : > { %17345 = vst [vmem:[#allocation20_spill] sm:$0xff] %v14097_v61  ;;  %8450 = vrot.lane.b32.xlu1 %v14097_v61, %s17350_s10  ;;  %v14126_v35 = vsel %vm8298_vm4, 65537, %v17081_v16  ;;  %v11443_v50 = vcombine.low %v11313_v12, %v11317_v41  ;;  %vm8201_vm9 = vcmp.le.s32.totalorder %v8131_v32, 30  ;;  %vm8193_vm15 = vcmp.ge.s32.totalorder %v8131_v32, 1 }
0x11d9   : > { %5238 = vmatpush1.bf16.msra.mxu0 %v11527_v15  ;;  %v14169_v15 = vadd.s32 768, %v12988_v18 }
0x11da   : > { %5289 = vmatprep.subr.bf16.mxu0 %v11412_v31  ;;  %v11446_v31 = vcombine.high %v11314_v44, %v11318_v25  ;;  %v11358_v44 = vld [vmem:[%s17339_s16 + $0x678] sm:$0xff]  ;;  %v14177_v25 = vrot.slane %v14114_v10, %v13495_v57 }
0x126f   : > { %v4293_v39 = vpop.f32.mrb[72].mxu0 }
0x1270   : > { %v4295_v45 = vpop.f32.mrb[73].mxu0 }
0x1271   : > { %v4297_v48 = vpop.f32.mrb[74].mxu0 }
0x1272   : > { %v14046_v49 = vpack.c.bf16 %v4297_v48, %v4293_v39  ;;  %v4299_v21 = vpop.f32.mrb[75].mxu0  ;;  %v11322_v39 = vld [vmem:[%s17339_s16 + $0x558] sm:$0xff]  ;;  %v14133_v48 = vrot.slane %v14126_v35, %v12997_v22 }
0x1273   : > { %v14048_v56 = vpack.c.bf16 %v4299_v21, %v4295_v45  ;;  %v11326_v45 = vld [vmem:[%s17339_s16 + $0x578] sm:$0xff]  ;;  %v14138_v21 = vrot.slane %v8301_v2, %v13495_v57  ;;  %v8124_v2 = vand.u32 31, %v8088_v62  ;;  %v11377_v62 = vld [vmem:[%s17339_s16 + $0x710] sm:$0xff] }
0x1274   : > { %v14062_v52 = vrot.slane %v14046_v49, 2  ;;  %17351 = vst [vmem:[#allocation21_spill] sm:$0xff] %v14133_v48  ;;  %v11454_v63 = vcombine.high %v11322_v39, %v11326_v45  ;;  %8454 = vrot.lane.b32.xlu1 %v14133_v48, %s17350_s10  ;;  %v11453_v46 = vcombine.low %v11322_v39, %v11326_v45  ;;  %v11361_v39 = vld [vmem:[%s17339_s16 + $0x690] sm:$0xff]  ;;  %v11507_v26 = vcombine.low %v11377_v62, %v11381_v0 }
0x1275   : > { %v4564_v42 = vrot.slane %v14048_v56, 2  ;;  %17352 = vst [vmem:[#allocation22_spill] sm:$0xff] %v14138_v21  ;;  %vm8200_vm11 = vcmp.le.s32.totalorder %v8124_v2, 30  ;;  %vm14200_vm10 = vcmp.ge.s32.totalorder %v8124_v2, 1 }
0x1276   : > { %vm8371_vm8 = vmpackc.low %vm8201_vm9, %vm8200_vm11  ;;  %vm8259_vm11 = vcmask 269312   ;;  %vm17383_vm9 = vcmask 15360  }
0x1277   : > { %5239 = vmatprep.mubr.bf16.mxu0 %v4564_v42  ;;  %5280 = vmatprep.mubr.bf16.mxu1 %v4564_v42  ;;  %vm8299_vm3 = vmpackc.low %vm8193_vm15, %vm14200_vm10  ;;  %vm17389_vm10 = vcmask 261120  }
0x1278   : > { %5240 = vmatmul.mubr.bf16.vlgmr.msra.gmra.mrb[76].mxu0 %v14062_v52  ;;  %5281 = vmatmul.mubr.bf16.vlgmr.msra.gmra.mrb[48].mxu1 %v14062_v52  ;;  %vm17392_vm15 = vmmov %vm17389_vm10 }
0x1279   : > { %5290 = vmatpush1.bf16.msra.mxu0 %v11411_v29  ;;  %5331 = vmatpush1.bf16.msra.mxu1 %v11413_v23  ;;  %v11444_v29 = vcombine.high %v11313_v12, %v11317_v41  ;;  %v14123_v23 = vrot.slane %v14114_v10, %v12997_v22  ;;  %v11357_v12 = vld [vmem:[%s17339_s16 + $0x670] sm:$0xff]  ;;  %v11354_v41 = vld [vmem:[%s17339_s16 + $0x658] sm:$0xff] }
0x127a   : > { %5321 = vmatprep.mubr.bf16.mxu0 %v4564_v42  ;;  %5362 = vmatprep.mubr.bf16.mxu1 %v4564_v42  ;;  %v11330_v42 = vld [vmem:[%s17339_s16 + $0x598] sm:$0xff]  ;;  %v11486_v36 = vcombine.high %v11354_v41, %v11358_v44 }
0x127b   : > { %5291 = vmatprep.subr.bf16.mxu0 %v11420_v60  ;;  %5332 = vmatprep.subr.bf16.mxu1 %v11422_v3  ;;  %v11460_v60 = vcombine.high %v11329_v38, %v11333_v8  ;;  %v11462_v3 = vcombine.high %v11330_v42, %v11334_v43  ;;  %v11461_v51 = vcombine.low %v11330_v42, %v11334_v43 }
0x127c   : > { %8413 = vrot.lane.b32.xlu0 %v14123_v23, %s17303_s11  ;;  %8491 = vrot.lane.b32.xlu1 %v14077_v34, %s17353_s2  ;;  %v11485_v42 = vcombine.low %v11354_v41, %v11358_v44 }
0x127d   : > { %5292 = vmatpush1.bf16.msra.mxu0 %v11419_v5  ;;  %5333 = vmatpush1.bf16.msra.mxu1 %v11421_v53  ;;  %v11338_v5 = vld [vmem:[%s17339_s16 + $0x5d8] sm:$0xff] }
0x127e   : > { %5293 = vmatprep.subr.bf16.mxu0 %v11428_v13  ;;  %5334 = vmatprep.subr.bf16.mxu1 %v11430_v40  ;;  %v11342_v53 = vld [vmem:[%s17339_s16 + $0x5f8] sm:$0xff]  ;;  %v11468_v13 = vcombine.high %v11337_v55, %v11341_v14 }
0x127f   : > { %v11470_v40 = vcombine.high %v11338_v5, %v11342_v53 }
0x1280   : > { %8452 = vrot.lane.b32.xlu0 %v14138_v21, %s17350_s10  ;;  %8495 = vrot.lane.b32.xlu1 %v14123_v23, %s17353_s2 }
0x1281   : > { %5294 = vmatpush1.bf16.msra.mxu0 %v11427_v17  ;;  %5335 = vmatpush1.bf16.msra.mxu1 %v11429_v33  ;;  %v11467_v17 = vcombine.low %v11337_v55, %v11341_v14  ;;  %v11469_v33 = vcombine.low %v11338_v5, %v11342_v53  ;;  %v8303_v55 = vsel %vm8299_vm3, 65537, %v17081_v16  ;;  %v11373_v14 = vld [vmem:[%s17339_s16 + $0x6f0] sm:$0xff]  ;;  %v11370_v5 = vld [vmem:[%s17339_s16 + $0x6d8] sm:$0xff] }
0x1282   : > { %5295 = vmatprep.subr.bf16.mxu0 %v11436_v37  ;;  %5336 = vmatprep.subr.bf16.mxu1 %v11438_v54  ;;  %v11478_v37 = vcombine.high %v11346_v1, %v11350_v20  ;;  %v11353_v54 = vld [vmem:[%s17339_s16 + $0x650] sm:$0xff]  ;;  %v11374_v53 = vld [vmem:[%s17339_s16 + $0x6f8] sm:$0xff]  ;;  %v14262_v41 = vrot.slane %v8303_v55, %v13495_v57 }
0x1283   : > { %v11484_v18 = vcombine.high %v11353_v54, %v11357_v12  ;;  %v11483_v8 = vcombine.low %v11353_v54, %v11357_v12  ;;  %v11389_v54 = vld [vmem:[%s17339_s16 + $0x770] sm:$0xff]  ;;  %v11386_v12 = vld [vmem:[%s17339_s16 + $0x758] sm:$0xff] }
0x1284   : > { %8493 = vrot.lane.b32.xlu0 %v14074_v28, %s17353_s2  ;;  %8534 = vrot.lane.b32.xlu1 %v14138_v21, %s12764_s8  ;;  %17364 = vst [vmem:[#allocation25_spill] sm:$0xff] %v14262_v41 }
0x1285   : > { %5296 = vmatpush1.bf16.msra.mxu0 %v11435_v27  ;;  %5337 = vmatpush1.bf16.msra.mxu1 %v11437_v11  ;;  %v8375_v27 = vsel %vm8371_vm8, 65537, %v17081_v16  ;;  %v8138_v11 = vand.u32 31, %v14169_v15  ;;  %v11390_v15 = vld [vmem:[%s17339_s16 + $0x778] sm:$0xff]  ;;  %vm17385_vm8 = vmmov %vm17383_vm9 }
0x1286   : > { %5297 = vmatprep.subr.bf16.mxu0 %v11444_v29  ;;  %5338 = vmatprep.subr.bf16.mxu1 %v11446_v31  ;;  %v11475_v29 = vcombine.low %v11345_v47, %v11349_v59  ;;  %v11477_v31 = vcombine.low %v11346_v1, %v11350_v20  ;;  %v14185_v10 = vrot.slane %v8375_v27, %v12997_v22  ;;  %v11378_v1 = vld [vmem:[%s17339_s16 + $0x718] sm:$0xff] }
0x1287   : > { %vm14188_vm12 = vcmp.le.s32.totalorder %v8138_v11, 30  ;;  %v11502_v59 = vcombine.high %v11370_v5, %v11374_v53  ;;  %vm14239_vm5 = vcmp.ge.s32.totalorder %v8138_v11, 1 }
0x1288   : > { %8532 = vrot.lane.b32.xlu0 %v14097_v61, %s12764_s8  ;;  %8415 = vrot.lane.b32.xlu1 %v14177_v25, %s17303_s11  ;;  %vm8372_vm2 = vmpackc.low %vm8203_vm13, %vm14188_vm12 }
0x1289   : > { %5298 = vmatpush1.bf16.msra.mxu0 %v11443_v50  ;;  %5339 = vmatpush1.bf16.msra.mxu1 %v11445_v24  ;;  %v11365_v50 = vld [vmem:[%s17339_s16 + $0x6b0] sm:$0xff]  ;;  %v11362_v24 = vld [vmem:[%s17339_s16 + $0x698] sm:$0xff]  ;;  %v14209_v43 = vsel %vm8372_vm2, 65537, %v17081_v16  ;;  %vm8300_vm4 = vmpackc.low %vm14245_vm14, %vm14239_vm5 }
0x128a   : > { %5299 = vmatprep.subr.bf16.mxu0 %v11452_v58  ;;  %5340 = vmatprep.subr.bf16.mxu1 %v11454_v63  ;;  %v11366_v58 = vld [vmem:[%s17339_s16 + $0x6b8] sm:$0xff]  ;;  %v14198_v63 = vrot.slane %v8375_v27, %v13495_v57  ;;  %v14265_v44 = vsel %vm8300_vm4, 65537, %v17081_v16  ;;  %v11683_v16 = vld [vmem:[%s17339_s16 + $0x8a0] sm:$0xff]  ;;  %vm17395_vm4 = vcmask 277504  }
0x128c   : > { %8536 = vrot.lane.b32.xlu0 %v14133_v48, %s12764_s8  ;;  %8419 = vrot.lane.b32.xlu1 %v14198_v63, %s17303_s11  ;;  %v11695_v48 = vld [vmem:[%s17339_s16 + $0x900] sm:$0xff] }
0x128d   : > { %5300 = vmatpush1.bf16.msra.mxu0 %v11451_v30  ;;  %5341 = vmatpush1.bf16.msra.mxu1 %v11453_v46  ;;  %v11492_v30 = vcombine.high %v11361_v39, %v11365_v50  ;;  %v11494_v46 = vcombine.high %v11362_v24, %v11366_v58 }
0x128e   : > { %5301 = vmatprep.subr.bf16.mxu0 %v11460_v60  ;;  %5342 = vmatprep.subr.bf16.mxu1 %v11462_v3  ;;  %v11369_v60 = vld [vmem:[%s17339_s16 + $0x6d0] sm:$0xff]  ;;  %v14216_v3 = vrot.slane %v14209_v43, %v12997_v22 }
0x128f   : > { %v11500_v47 = vcombine.high %v11369_v60, %v11373_v14  ;;  %v11499_v32 = vcombine.low %v11369_v60, %v11373_v14  ;;  %v4308_v60 = vld [vmem:[%s17339_s16 + $0x20] sm:$0xff]  ;;  %v4309_v14 = vld [vmem:[%s17339_s16 + $0x28] sm:$0xff] }
0x1290   : > { %8417 = vrot.lane.b32.xlu0 %v14185_v10, %s17303_s11 }
0x1291   : > { %5302 = vmatpush1.bf16.msra.mxu0 %v11459_v4  ;;  %5343 = vmatpush1.bf16.msra.mxu1 %v11461_v51  ;;  %v14226_v4 = vrot.slane %v14126_v35, %v13495_v57  ;;  %v14231_v51 = vrot.slane %v8303_v55, %v12997_v22  ;;  %v11382_v35 = vld [vmem:[%s17339_s16 + $0x738] sm:$0xff]  ;;  %v4305_v55 = vld [vmem:[%s17339_s16 + $0x8] sm:$0xff] }
0x1292   : > { %5303 = vmatprep.subr.bf16.mxu0 %v11468_v13  ;;  %5344 = vmatprep.subr.bf16.mxu1 %v11470_v40  ;;  %v11491_v13 = vcombine.low %v11361_v39, %v11365_v50  ;;  %v11493_v40 = vcombine.low %v11362_v24, %v11366_v58  ;;  %v11509_v27 = vcombine.low %v11378_v1, %v11382_v35  ;;  %v11401_v24 = vld [vmem:[%s17339_s16 + $0x7d0] sm:$0xff]  ;;  %v11402_v58 = vld [vmem:[%s17339_s16 + $0x7d8] sm:$0xff] }
0x1293   : > { %17358 = vst [vmem:[#allocation23_spill] sm:$0xff] %v14226_v4  ;;  %17359 = vst [vmem:[#allocation24_spill] sm:$0xff] %v14231_v51  ;;  %8456 = vrot.lane.b32.xlu1 %v14226_v4, %s17350_s10  ;;  %v11517_v39 = vcombine.low %v11386_v12, %v11390_v15 }
0x1294   : > { %8421 = vrot.lane.b32.xlu0 %v14216_v3, %s17303_s11 }
0x1295   : > { %5304 = vmatpush1.bf16.msra.mxu0 %v11467_v17  ;;  %5345 = vmatpush1.bf16.msra.mxu1 %v11469_v33  ;;  %v11501_v17 = vcombine.low %v11370_v5, %v11374_v53  ;;  %v11508_v33 = vcombine.high %v11377_v62, %v11381_v0  ;;  %v4313_v62 = vld [vmem:[%s17339_s16 + $0x48] sm:$0xff] }
0x1296   : > { %5305 = vmatprep.subr.bf16.mxu0 %v11476_v6  ;;  %5346 = vmatprep.subr.bf16.mxu1 %v11478_v37  ;;  %v11510_v6 = vcombine.high %v11378_v1, %v11382_v35  ;;  %v11385_v37 = vld [vmem:[%s17339_s16 + $0x750] sm:$0xff]  ;;  %v4317_v0 = vld [vmem:[%s17339_s16 + $0x68] sm:$0xff]  ;;  %v11537_v35 = vcombine.low %v4305_v55, %v4309_v14 }
0x1297   : > { %8574 = vrot.lane.b32.xlu1 %v14077_v34, %s17077_s28  ;;  %v11516_v11 = vcombine.high %v11385_v37, %v11389_v54  ;;  %v11397_v34 = vld [vmem:[%s17339_s16 + $0x7b0] sm:$0xff]  ;;  %v11546_v2 = vcombine.high %v4313_v62, %v4317_v0 }
0x1298   : > { %8458 = vrot.lane.b32.xlu0 %v14231_v51, %s17350_s10 }
0x1299   : > { %5306 = vmatpush1.bf16.msra.mxu0 %v11475_v29  ;;  %5347 = vmatpush1.bf16.msra.mxu1 %v11477_v31  ;;  %v11518_v29 = vcombine.high %v11386_v12, %v11390_v15  ;;  %v11393_v31 = vld [vmem:[%s17339_s16 + $0x790] sm:$0xff] }
0x129a   : > { %5307 = vmatprep.subr.bf16.mxu0 %v11484_v18  ;;  %5348 = vmatprep.subr.bf16.mxu1 %v11486_v36  ;;  %v14275_v18 = vrot.slane %v14265_v44, %v12997_v22  ;;  %v11515_v36 = vcombine.low %v11385_v37, %v11389_v54  ;;  %v11524_v45 = vcombine.high %v11393_v31, %v11397_v34  ;;  %v11406_v22 = vld [vmem:[%s17339_s16 + $0x7f8] sm:$0xff] }
0x129b   : > { %8578 = vrot.lane.b32.xlu1 %v14123_v23, %s17077_s28  ;;  %v11405_v23 = vld [vmem:[%s17339_s16 + $0x7f0] sm:$0xff]  ;;  %v11523_v38 = vcombine.low %v11393_v31, %v11397_v34  ;;  %v11533_v53 = vcombine.low %v11402_v58, %v11406_v22  ;;  %v11545_v54 = vcombine.low %v4313_v62, %v4317_v0  ;;  %v12766_v34 = vmov 1983009808  }
0x129c   : > { %8576 = vrot.lane.b32.xlu0 %v14074_v28, %s17077_s28  ;;  %v11394_v28 = vld [vmem:[%s17339_s16 + $0x798] sm:$0xff]  ;;  %17365 = vst [vmem:[#allocation26_spill] sm:$0xff] %v14275_v18  ;;  %v11531_v5 = vcombine.low %v11401_v24, %v11405_v23  ;;  %s17366_s28 = sld [smem:[#allocation14_spill]] }
0x129d   : > { %5308 = vmatpush1.bf16.msra.mxu0 %v11483_v8  ;;  %5349 = vmatpush1.bf16.msra.mxu1 %v11485_v42  ;;  %v11526_v50 = vcombine.high %v11394_v28, %v11398_v9  ;;  %v11525_v8 = vcombine.low %v11394_v28, %v11398_v9  ;;  %v11532_v42 = vcombine.high %v11401_v24, %v11405_v23  ;;  %v8211_v28 = vunpack.c.l.s4 %v12766_v34  ;;  %v4341_v23 = vld [vmem:[%s17339_s16 + $0x128] sm:$0xff] }
0x129e   : > { %5309 = vmatprep.subr.bf16.mxu0 %v11492_v30  ;;  %5350 = vmatprep.subr.bf16.mxu1 %v11494_v46  ;;  %v11534_v30 = vcombine.high %v11402_v58, %v11406_v22  ;;  %v4304_v46 = vld [vmem:[%s17339_s16] sm:$0xff]  ;;  %v14339_v58 = vrot.slane %v14265_v44, %v13495_v57 }
0x129f   : > { %8462 = vrot.lane.b32.xlu1 %v14275_v18, %s17350_s10  ;;  %v11535_v1 = vcombine.low %v4304_v46, %v4308_v60  ;;  %v8212_v24 = vunpack.c.0.s8 %v8211_v28  ;;  %v4376_v28 = vld [vmem:[%s17339_s16 + $0x240] sm:$0xff] }
0x12a0   : > { %8460 = vrot.lane.b32.xlu0 %v14262_v41, %s17350_s10  ;;  %17368 = vst [vmem:[#allocation27_spill] sm:$0xff] %v14339_v58 }
0x12a1   : > { %5310 = vmatpush1.bf16.msra.mxu0 %v11491_v13  ;;  %5351 = vmatpush1.bf16.msra.mxu1 %v11493_v40  ;;  %v11536_v13 = vcombine.high %v4304_v46, %v4308_v60  ;;  %v11538_v40 = vcombine.high %v4305_v55, %v4309_v14  ;;  %v4344_v60 = vld [vmem:[%s17339_s16 + $0x140] sm:$0xff]  ;;  %v4345_v55 = vld [vmem:[%s17339_s16 + $0x148] sm:$0xff] }
0x12a2   : > { %5311 = vmatprep.subr.bf16.mxu0 %v11500_v47  ;;  %5352 = vmatprep.subr.bf16.mxu1 %v11502_v59  ;;  %v4312_v47 = vld [vmem:[%s17339_s16 + $0x40] sm:$0xff]  ;;  %s14327_s7 = scalar_lea.vmem %s17366_s28, %s12948_s0  ;;  %s17367_s0 = smov 66  }
0x12a3   : > { %8499 = vrot.lane.b32.xlu1 %v14185_v10, %s17353_s2  ;;  %v4316_v59 = vld [vmem:[%s17339_s16 + $0x60] sm:$0xff]  ;;  %s17722_s28 = sld [smem:[#allocation17_spill]] }
0x12a4   : > { %8497 = vrot.lane.b32.xlu0 %v14177_v25, %s17353_s2  ;;  %v11544_v20 = vcombine.high %v4312_v47, %v4316_v59  ;;  %v11543_v37 = vcombine.low %v4312_v47, %v4316_v59  ;;  %v4353_v47 = vld [vmem:[%s17339_s16 + $0x188] sm:$0xff] }
0x12a5   : > { %5312 = vmatpush1.bf16.msra.mxu0 %v11499_v32  ;;  %5353 = vmatpush1.bf16.msra.mxu1 %v11501_v17  ;;  %v4320_v32 = vld [vmem:[%s17339_s16 + $0x80] sm:$0xff] }
0x12a6   : > { %5313 = vmatprep.subr.bf16.mxu0 %v11508_v33  ;;  %5354 = vmatprep.subr.bf16.mxu1 %v11510_v6  ;;  %v4324_v17 = vld [vmem:[%s17339_s16 + $0xa0] sm:$0xff]  ;;  %v4321_v33 = vld [vmem:[%s17339_s16 + $0x88] sm:$0xff] }
0x12a7   : > { %8503 = vrot.lane.b32.xlu1 %v14216_v3, %s17353_s2  ;;  %v4325_v6 = vld [vmem:[%s17339_s16 + $0xa8] sm:$0xff]  ;;  %v11552_v12 = vcombine.high %v4320_v32, %v4324_v17  ;;  %v11551_v31 = vcombine.low %v4320_v32, %v4324_v17  ;;  %v4364_v32 = vld [vmem:[%s17339_s16 + $0x1e0] sm:$0xff] }
0x12a8   : > { %8501 = vrot.lane.b32.xlu0 %v14198_v63, %s17353_s2  ;;  %v11554_v15 = vcombine.high %v4321_v33, %v4325_v6  ;;  %v11553_v9 = vcombine.low %v4321_v33, %v4325_v6  ;;  %v4361_v17 = vld [vmem:[%s17339_s16 + $0x1c8] sm:$0xff] }
0x12a9   : > { %5314 = vmatpush1.bf16.msra.mxu0 %v11507_v26  ;;  %5355 = vmatpush1.bf16.msra.mxu1 %v11509_v27  ;;  %v4328_v26 = vld [vmem:[%s17339_s16 + $0xc0] sm:$0xff] }
0x12aa   : > { %5315 = vmatprep.subr.bf16.mxu0 %v11516_v11  ;;  %5356 = vmatprep.subr.bf16.mxu1 %v11518_v29  ;;  %v4332_v27 = vld [vmem:[%s17339_s16 + $0xe0] sm:$0xff]  ;;  %v4333_v11 = vld [vmem:[%s17339_s16 + $0xe8] sm:$0xff]  ;;  %v14323_v29 = vrot.slane %v14209_v43, %v13495_v57 }
0x12ab   : > { %8540 = vrot.lane.b32.xlu1 %v14231_v51, %s12764_s8  ;;  %v4337_v43 = vld [vmem:[%s17339_s16 + $0x108] sm:$0xff]  ;;  %v11559_v22 = vcombine.low %v4328_v26, %v4332_v27  ;;  %v11691_v51 = vld [vmem:[%s17339_s16 + $0x8e0] sm:$0xff] }
0x12ac   : > { %8538 = vrot.lane.b32.xlu0 %v14226_v4, %s12764_s8  ;;  %v11570_v46 = vcombine.high %v4337_v43, %v4341_v23  ;;  %v4349_v57 = vld [vmem:[%s17339_s16 + $0x168] sm:$0xff]  ;;  %v11569_v14 = vcombine.low %v4337_v43, %v4341_v23  ;;  %v4384_v23 = vld [vmem:[%s17339_s16 + $0x280] sm:$0xff] }
0x12ad   : > { %5316 = vmatpush1.bf16.msra.mxu0 %v11515_v36  ;;  %5357 = vmatpush1.bf16.msra.mxu1 %v11517_v39  ;;  %v11560_v36 = vcombine.high %v4328_v26, %v4332_v27  ;;  %v4369_v26 = vld [vmem:[%s17339_s16 + $0x208] sm:$0xff]  ;;  %v11699_v4 = vld [vmem:[%s17339_s16 + $0x920] sm:$0xff] }
0x12ae   : > { %5317 = vmatprep.subr.bf16.mxu0 %v11524_v45  ;;  %5358 = vmatprep.subr.bf16.mxu1 %v11526_v50  ;;  %v4336_v45 = vld [vmem:[%s17339_s16 + $0x100] sm:$0xff]  ;;  %v4373_v27 = vld [vmem:[%s17339_s16 + $0x228] sm:$0xff] }
0x12af   : > { %8544 = vrot.lane.b32.xlu1 %v14275_v18, %s12764_s8  ;;  %v4340_v50 = vld [vmem:[%s17339_s16 + $0x120] sm:$0xff]  ;;  %v11602_v34 = vcombine.high %v4369_v26, %v4373_v27 }
0x12b0   : > { %8542 = vrot.lane.b32.xlu0 %v14262_v41, %s12764_s8  ;;  %v11567_v44 = vcombine.low %v4336_v45, %v4340_v50  ;;  %v11687_v18 = vld [vmem:[%s17339_s16 + $0x8c0] sm:$0xff] }
0x12b1   : > { %5318 = vmatpush1.bf16.msra.mxu0 %v11523_v38  ;;  %5359 = vmatpush1.bf16.msra.mxu1 %v11525_v8  ;;  %v8204_v38 = vld [vmem:[%s14327_s7] sm:$0xff]  ;;  %v14343_v8 = vsub.s32 %v8212_v24, %v12990_v19 }
0x12b2   : > { %5319 = vmatprep.subr.bf16.mxu0 %v11532_v42  ;;  %5360 = vmatprep.subr.bf16.mxu1 %v11534_v30  ;;  %v11568_v30 = vcombine.high %v4336_v45, %v4340_v50  ;;  %v8209_v62 = vcombine.high %v8204_v38, %v8204_v38  ;;  %v11601_v50 = vcombine.low %v4369_v26, %v4373_v27  ;;  %v14407_v26 = vpop.permute.xlu1 %8067 }
0x12b3   : > { %8580 = vrot.lane.b32.xlu1 %v14177_v25, %s17367_s0  ;;  %v4348_v25 = vld [vmem:[%s17339_s16 + $0x160] sm:$0xff]  ;;  %v8216_v19 = vrot.slane %v8204_v38, %v14343_v8  ;;  %v4385_v38 = vld [vmem:[%s17339_s16 + $0x288] sm:$0xff]  ;;  %17369 = vst [vmem:[#allocation28_spill] sm:$0xff] %v14407_v26 }
0x12b4   : > { %8423 = vrot.lane.b32.xlu0 %v14323_v29, %s17303_s11  ;;  %v11575_v0 = vcombine.low %v4344_v60, %v4348_v25  ;;  %s12767_s11 = smov 33  }
0x12b5   : > { %5320 = vmatpush1.bf16.msra.mxu0 %v11531_v5  ;;  %5361 = vmatpush1.bf16.msra.mxu1 %v11533_v53  ;;  %v11576_v5 = vcombine.high %v4344_v60, %v4348_v25  ;;  %v11578_v53 = vcombine.high %v4345_v55, %v4349_v57  ;;  %v8224_v59 = vcombine.high %v8216_v19, %v8216_v19  ;;  %v4392_v25 = vld [vmem:[%s17339_s16 + $0x2c0] sm:$0xff] }
0x12b6   : > { %6011 = vmatprep.subr.bf16.mxu0 %v11536_v13  ;;  %6052 = vmatprep.subr.bf16.mxu1 %v11538_v40  ;;  %v4352_v13 = vld [vmem:[%s17339_s16 + $0x180] sm:$0xff] }
0x12b7   : > { %8464 = vrot.lane.b32.xlu1 %v14339_v58, %s17350_s10  ;;  %v4356_v40 = vld [vmem:[%s17339_s16 + $0x1a0] sm:$0xff]  ;;  %s12769_s10 = smov 62  }
0x12b8   : > { %5322 = vmatmul.mubr.bf16.vlgmr.msra.gmra.mrb[80].mxu0 %v14062_v52  ;;  %5363 = vmatmul.mubr.bf16.vlgmr.msra.gmra.mrb[52].mxu1 %v14062_v52  ;;  %v4329_v52 = vld [vmem:[%s17339_s16 + $0xc8] sm:$0xff]  ;;  %v11583_v33 = vcombine.low %v4352_v13, %v4356_v40 }
0x12b9   : > { %6012 = vmatpush1.bf16.msra.mxu0 %v11535_v1  ;;  %6043 = vmatprep.mubr.bf16.mxu0 %v14048_v56  ;;  %v11562_v39 = vcombine.high %v4329_v52, %v4333_v11  ;;  %v11561_v42 = vcombine.low %v4329_v52, %v4333_v11  ;;  %v11577_v1 = vcombine.low %v4345_v55, %v4349_v57  ;;  %v4396_v55 = vld [vmem:[%s17339_s16 + $0x2e0] sm:$0xff]  ;;  %v4393_v57 = vld [vmem:[%s17339_s16 + $0x2c8] sm:$0xff] }
0x12ba   : > { %6053 = vmatpush1.bf16.msra.mxu1 %v11537_v35  ;;  %6084 = vmatprep.mubr.bf16.mxu1 %v14048_v56  ;;  %v11584_v35 = vcombine.high %v4352_v13, %v4356_v40  ;;  %v4400_v13 = vld [vmem:[%s17339_s16 + $0x300] sm:$0xff] }
0x12bb   : > { %6013 = vmatprep.subr.bf16.mxu0 %v11544_v20  ;;  %6054 = vmatprep.subr.bf16.mxu1 %v11546_v2  ;;  %v4360_v2 = vld [vmem:[%s17339_s16 + $0x1c0] sm:$0xff] }
0x12bc   : > { %8582 = vrot.lane.b32.xlu0 %v14185_v10, %s17367_s0  ;;  %v4357_v10 = vld [vmem:[%s17339_s16 + $0x1a8] sm:$0xff]  ;;  %8586 = vrot.lane.b32.xlu1 %v14216_v3, %s17367_s0  ;;  %v14369_v3 = vrot.slane %v8209_v62, %v14343_v8  ;;  %v11591_v52 = vcombine.low %v4360_v2, %v4364_v32  ;;  %v4404_v40 = vld [vmem:[%s17339_s16 + $0x320] sm:$0xff] }
0x12bd   : > { %6014 = vmatpush1.bf16.msra.mxu0 %v11543_v37  ;;  %v11586_v20 = vcombine.high %v4353_v47, %v4357_v10  ;;  %v11585_v6 = vcombine.low %v4353_v47, %v4357_v10  ;;  %v11592_v37 = vcombine.high %v4360_v2, %v4364_v32  ;;  %v4401_v47 = vld [vmem:[%s17339_s16 + $0x308] sm:$0xff] }
0x12be   : > { %6055 = vmatpush1.bf16.msra.mxu1 %v11545_v54  ;;  %6015 = vmatprep.subr.bf16.mxu0 %v11552_v12  ;;  %v4368_v12 = vld [vmem:[%s17339_s16 + $0x200] sm:$0xff]  ;;  %v4405_v10 = vld [vmem:[%s17339_s16 + $0x328] sm:$0xff] }
0x12bf   : > { %6056 = vmatprep.subr.bf16.mxu1 %v11554_v15  ;;  %v4372_v15 = vld [vmem:[%s17339_s16 + $0x220] sm:$0xff]  ;;  %v4409_v2 = vld [vmem:[%s17339_s16 + $0x348] sm:$0xff] }
0x12c0   : > { %8584 = vrot.lane.b32.xlu0 %v14198_v63, %s17367_s0  ;;  %v4365_v63 = vld [vmem:[%s17339_s16 + $0x1e8] sm:$0xff]  ;;  %8243 = vrot.lane.b32.xlu1 %v8216_v19, %s12767_s11  ;;  %v11599_v45 = vcombine.low %v4368_v12, %v4372_v15 }
0x12c1   : > { %6016 = vmatpush1.bf16.msra.mxu0 %v11551_v31  ;;  %v11594_v54 = vcombine.high %v4361_v17, %v4365_v63  ;;  %v11593_v11 = vcombine.low %v4361_v17, %v4365_v63  ;;  %v11600_v31 = vcombine.high %v4368_v12, %v4372_v15  ;;  %v4397_v19 = vld [vmem:[%s17339_s16 + $0x2e8] sm:$0xff]  ;;  %v11631_v17 = vcombine.low %v4400_v13, %v4404_v40 }
0x12c2   : > { %6057 = vmatpush1.bf16.msra.mxu1 %v11553_v9  ;;  %6017 = vmatprep.subr.bf16.mxu0 %v11560_v36  ;;  %v4380_v9 = vld [vmem:[%s17339_s16 + $0x260] sm:$0xff]  ;;  %v4377_v36 = vld [vmem:[%s17339_s16 + $0x248] sm:$0xff]  ;;  %v11625_v62 = vcombine.low %v4393_v57, %v4397_v19  ;;  %v11633_v63 = vcombine.low %v4401_v47, %v4405_v10 }
0x12c3   : > { %6058 = vmatprep.subr.bf16.mxu1 %v11562_v39  ;;  %v4381_v39 = vld [vmem:[%s17339_s16 + $0x268] sm:$0xff]  ;;  %v11608_v24 = vcombine.high %v4376_v28, %v4380_v9 }
0x12c4   : > { %8245 = vrot.lane.b32.xlu0 %v8224_v59, %s12767_s11  ;;  %8247 = vrot.lane.b32.xlu1 %v14369_v3, %s12767_s11  ;;  %v11610_v43 = vcombine.high %v4377_v36, %v4381_v39  ;;  %v11623_v59 = vcombine.low %v4392_v25, %v4396_v55  ;;  %v4413_v32 = vld [vmem:[%s17339_s16 + $0x368] sm:$0xff] }
0x12c5   : > { %6018 = vmatpush1.bf16.msra.mxu0 %v11559_v22  ;;  %v4388_v22 = vld [vmem:[%s17339_s16 + $0x2a0] sm:$0xff]  ;;  %v4417_v12 = vld [vmem:[%s17339_s16 + $0x388] sm:$0xff] }
0x12c6   : > { %6059 = vmatpush1.bf16.msra.mxu1 %v11561_v42  ;;  %6019 = vmatprep.subr.bf16.mxu0 %v11568_v30  ;;  %v4389_v42 = vld [vmem:[%s17339_s16 + $0x2a8] sm:$0xff]  ;;  %v11609_v30 = vcombine.low %v4377_v36, %v4381_v39  ;;  %v8225_v36 = vcombine.high %v14369_v3, %v14369_v3  ;;  %v4306_v3 = vld [vmem:[%s17339_s16 + $0x10] sm:$0xff] }
0x12c7   : > { %6060 = vmatprep.subr.bf16.mxu1 %v11570_v46  ;;  %v11616_v46 = vcombine.high %v4384_v23, %v4388_v22  ;;  %v11618_v60 = vcombine.high %v4385_v38, %v4389_v42  ;;  %v4421_v15 = vld [vmem:[%s17339_s16 + $0x3a8] sm:$0xff] }
0x12c8   : > { %8505 = vrot.lane.b32.xlu0 %v14323_v29, %s17353_s2  ;;  %8546 = vrot.lane.b32.xlu1 %v14339_v58, %s12764_s8  ;;  %v4425_v39 = vld [vmem:[%s17339_s16 + $0x3c8] sm:$0xff]  ;;  %s17566_s2 = sld [smem:[#allocation18_spill]] }
0x12c9   : > { %6020 = vmatpush1.bf16.msra.mxu0 %v11567_v44  ;;  %v11615_v44 = vcombine.low %v4384_v23, %v4388_v22  ;;  %v14421_v22 = vpop.permute.xlu1 %8411 }
0x12ca   : > { %6061 = vmatpush1.bf16.msra.mxu1 %v11569_v14  ;;  %6021 = vmatprep.subr.bf16.mxu0 %v11576_v5  ;;  %v11617_v14 = vcombine.low %v4385_v38, %v4389_v42  ;;  %v11624_v5 = vcombine.high %v4392_v25, %v4396_v55  ;;  %v4310_v42 = vld [vmem:[%s17339_s16 + $0x30] sm:$0xff] }
0x12cb   : > { %6062 = vmatprep.subr.bf16.mxu1 %v11578_v53  ;;  %v11626_v53 = vcombine.high %v4393_v57, %v4397_v19  ;;  %v11540_v55 = vcombine.high %v4306_v3, %v4310_v42 }
0x12cc   : > { %8588 = vrot.lane.b32.xlu0 %v14323_v29, %s17367_s0  ;;  %v11607_v29 = vcombine.low %v4376_v28, %v4380_v9  ;;  %v4428_v28 = vld [vmem:[%s17339_s16 + $0x3e0] sm:$0xff]  ;;  %v14412_v9 = vld [vmem:[%s14327_s7 + $0x8] sm:$0xff]  ;;  %8249 = vrot.lane.b32.xlu1 %v8225_v36, %s12767_s11  ;;  %s12768_s7 = smov 63  }
0x12cd   : > { %6022 = vmatpush1.bf16.msra.mxu0 %v11575_v0  ;;  %v11632_v0 = vcombine.high %v4400_v13, %v4404_v40  ;;  %v14430_v19 = vpop.permute.xlu1 %8450  ;;  %v4315_v13 = vld [vmem:[%s17339_s16 + $0x58] sm:$0xff] }
0x12ce   : > { %6063 = vmatpush1.bf16.msra.mxu1 %v11577_v1  ;;  %6023 = vmatprep.subr.bf16.mxu0 %v11584_v35  ;;  %v11634_v1 = vcombine.high %v4401_v47, %v4405_v10  ;;  %v4408_v35 = vld [vmem:[%s17339_s16 + $0x340] sm:$0xff]  ;;  %17371 = vst [vmem:[#allocation30_spill] sm:$0xff] %v14430_v19  ;;  %v4319_v40 = vld [vmem:[%s17339_s16 + $0x78] sm:$0xff]  ;;  %vm17220_vm14 = vcmp.ne.s16.totalorder %v14430_v19, 0 }
0x12cf   : > { %6064 = vmatprep.subr.bf16.mxu1 %v11586_v20  ;;  %v4412_v20 = vld [vmem:[%s17339_s16 + $0x360] sm:$0xff] }
0x12d0   : > { %v11639_v27 = vcombine.low %v4408_v35, %v4412_v20 }
0x12d1   : > { %6024 = vmatpush1.bf16.msra.mxu0 %v11583_v33  ;;  %v11640_v33 = vcombine.high %v4408_v35, %v4412_v20  ;;  %v4323_v35 = vld [vmem:[%s17339_s16 + $0x98] sm:$0xff] }
0x12d2   : > { %6065 = vmatpush1.bf16.msra.mxu1 %v11585_v6  ;;  %6025 = vmatprep.subr.bf16.mxu0 %v11592_v37  ;;  %v11642_v6 = vcombine.high %v4409_v2, %v4413_v32  ;;  %v4416_v37 = vld [vmem:[%s17339_s16 + $0x380] sm:$0xff]  ;;  %v4327_v20 = vld [vmem:[%s17339_s16 + $0xb8] sm:$0xff] }
0x12d3   : > { %6066 = vmatprep.subr.bf16.mxu1 %v11594_v54  ;;  %v4420_v54 = vld [vmem:[%s17339_s16 + $0x3a0] sm:$0xff] }
0x12d5   : > { %6026 = vmatpush1.bf16.msra.mxu0 %v11591_v52  ;;  %v11641_v52 = vcombine.low %v4409_v2, %v4413_v32 }
0x12d6   : > { %6067 = vmatpush1.bf16.msra.mxu1 %v11593_v11  ;;  %6027 = vmatprep.subr.bf16.mxu0 %v11600_v31  ;;  %v11648_v11 = vcombine.high %v4416_v37, %v4420_v54  ;;  %v11650_v31 = vcombine.high %v4417_v12, %v4421_v15 }
0x12d7   : > { %6068 = vmatprep.subr.bf16.mxu1 %v11602_v34  ;;  %v4424_v34 = vld [vmem:[%s17339_s16 + $0x3c0] sm:$0xff] }
0x12d8   : > { %v11656_v23 = vcombine.high %v4424_v34, %v4428_v28 }
0x12d9   : > { %6028 = vmatpush1.bf16.msra.mxu0 %v11599_v45  ;;  %v4429_v45 = vld [vmem:[%s17339_s16 + $0x3e8] sm:$0xff] }
0x12da   : > { %6069 = vmatpush1.bf16.msra.mxu1 %v11601_v50  ;;  %6029 = vmatprep.subr.bf16.mxu0 %v11608_v24  ;;  %v8233_v50 = vrot.slane %v14412_v9, %v14343_v8  ;;  %v11647_v24 = vcombine.low %v4416_v37, %v4420_v54  ;;  %v11658_v38 = vcombine.high %v4425_v39, %v4429_v45  ;;  %v4330_v54 = vld [vmem:[%s17339_s16 + $0xd0] sm:$0xff] }
0x12db   : > { %6070 = vmatprep.subr.bf16.mxu1 %v11610_v43  ;;  %v11649_v43 = vcombine.low %v4417_v12, %v4421_v15  ;;  %v11657_v25 = vcombine.low %v4425_v39, %v4429_v45  ;;  %v11558_v37 = vcombine.high %v4323_v35, %v4327_v20  ;;  %v4334_v12 = vld [vmem:[%s17339_s16 + $0xf0] sm:$0xff]  ;;  %v4331_v15 = vld [vmem:[%s17339_s16 + $0xd8] sm:$0xff] }
0x12dc   : > { %8251 = vrot.lane.b32.xlu0 %v8233_v50, %s12767_s11  ;;  %v4338_v39 = vld [vmem:[%s17339_s16 + $0x110] sm:$0xff] }
0x12dd   : > { %6030 = vmatpush1.bf16.msra.mxu0 %v11607_v29  ;;  %v4307_v29 = vld [vmem:[%s17339_s16 + $0x18] sm:$0xff]  ;;  %v4342_v45 = vld [vmem:[%s17339_s16 + $0x130] sm:$0xff] }
0x12de   : > { %6071 = vmatpush1.bf16.msra.mxu1 %v11609_v30  ;;  %6031 = vmatprep.subr.bf16.mxu0 %v11616_v46  ;;  %v4311_v30 = vld [vmem:[%s17339_s16 + $0x38] sm:$0xff]  ;;  %v14428_v46 = vpop.permute.xlu0 %8409 }
0x12df   : > { %6072 = vmatprep.subr.bf16.mxu1 %v11618_v60  ;;  %17370 = vst [vmem:[#allocation29_spill] sm:$0xff] %v14428_v46  ;;  %v11655_v60 = vcombine.low %v4424_v34, %v4428_v28  ;;  %v11542_v57 = vcombine.high %v4307_v29, %v4311_v30  ;;  %v11541_v47 = vcombine.low %v4307_v29, %v4311_v30  ;;  %v4346_v29 = vld [vmem:[%s17339_s16 + $0x150] sm:$0xff]  ;;  %vm17260_vm2 = vcmp.ne.s16.totalorder %v14428_v46, 0 }
0x12e0   : > { %v11557_v34 = vcombine.low %v4323_v35, %v4327_v20  ;;  %v11564_v28 = vcombine.high %v4330_v54, %v4334_v12  ;;  %v4350_v30 = vld [vmem:[%s17339_s16 + $0x170] sm:$0xff] }
0x12e1   : > { %6032 = vmatpush1.bf16.msra.mxu0 %v11615_v44  ;;  %v8241_v44 = vcombine.high %v8233_v50, %v8233_v50  ;;  %v4343_v50 = vld [vmem:[%s17339_s16 + $0x138] sm:$0xff] }
0x12e2   : > { %6073 = vmatpush1.bf16.msra.mxu1 %v11617_v14  ;;  %6033 = vmatprep.subr.bf16.mxu0 %v11624_v5  ;;  %v4314_v14 = vld [vmem:[%s17339_s16 + $0x50] sm:$0xff] }
0x12e3   : > { %6074 = vmatprep.subr.bf16.mxu1 %v11626_v53  ;;  %v4318_v5 = vld [vmem:[%s17339_s16 + $0x70] sm:$0xff]  ;;  %v11539_v53 = vcombine.low %v4306_v3, %v4310_v42  ;;  %8253 = vrot.lane.b32.xlu1 %v8241_v44, %s12767_s11 }
0x12e4   : > { %v11547_v2 = vcombine.low %v4314_v14, %v4318_v5 }
0x12e5   : > { %6034 = vmatpush1.bf16.msra.mxu0 %v11623_v59  ;;  %v11548_v59 = vcombine.high %v4314_v14, %v4318_v5  ;;  %v11580_v14 = vcombine.high %v4346_v29, %v4350_v30 }
0x12e6   : > { %6075 = vmatpush1.bf16.msra.mxu1 %v11625_v62  ;;  %6035 = vmatprep.subr.bf16.mxu0 %v11632_v0  ;;  %v4322_v62 = vld [vmem:[%s17339_s16 + $0x90] sm:$0xff]  ;;  %v14445_v32 = vpop.permute.xlu1 %8454 }
0x12e7   : > { %6076 = vmatprep.subr.bf16.mxu1 %v11634_v1  ;;  %v4326_v0 = vld [vmem:[%s17339_s16 + $0xb0] sm:$0xff]  ;;  %v11550_v1 = vcombine.high %v4315_v13, %v4319_v40 }
0x12e9   : > { %6036 = vmatpush1.bf16.msra.mxu0 %v11631_v17  ;;  %v8226_v17 = vcombine.high %v14412_v9, %v14412_v9 }
0x12ea   : > { %6077 = vmatpush1.bf16.msra.mxu1 %v11633_v63  ;;  %6037 = vmatprep.subr.bf16.mxu0 %v11640_v33  ;;  %v11549_v63 = vcombine.low %v4315_v13, %v4319_v40  ;;  %v11556_v33 = vcombine.high %v4322_v62, %v4326_v0  ;;  %v4354_v13 = vld [vmem:[%s17339_s16 + $0x190] sm:$0xff] }
0x12eb   : > { %6078 = vmatprep.subr.bf16.mxu1 %v11642_v6  ;;  %v4358_v40 = vld [vmem:[%s17339_s16 + $0x1b0] sm:$0xff] }
0x12ec   : > { %v11588_v35 = vcombine.high %v4354_v13, %v4358_v40 }
0x12ed   : > { %6038 = vmatpush1.bf16.msra.mxu0 %v11639_v27  ;;  %v4335_v27 = vld [vmem:[%s17339_s16 + $0xf8] sm:$0xff] }
0x12ee   : > { %6079 = vmatpush1.bf16.msra.mxu1 %v11641_v52  ;;  %6039 = vmatprep.subr.bf16.mxu0 %v11648_v11  ;;  %v14437_v10 = vpop.permute.xlu0 %8413  ;;  %v14458_v52 = vrot.slane %v8226_v17, %v14343_v8  ;;  %v11555_v11 = vcombine.low %v4322_v62, %v4326_v0  ;;  %v11566_v36 = vcombine.high %v4331_v15, %v4335_v27  ;;  %v4339_v8 = vld [vmem:[%s17339_s16 + $0x118] sm:$0xff]  ;;  %v4362_v17 = vld [vmem:[%s17339_s16 + $0x1d0] sm:$0xff] }
0x12ef   : > { %6080 = vmatprep.subr.bf16.mxu1 %v11650_v31  ;;  %v14460_v31 = vpop.permute.xlu1 %8491  ;;  %v11574_v42 = vcombine.high %v4339_v8, %v4343_v50  ;;  %v11573_v44 = vcombine.low %v4339_v8, %v4343_v50  ;;  %v11579_v62 = vcombine.low %v4346_v29, %v4350_v30  ;;  %v4378_v29 = vld [vmem:[%s17339_s16 + $0x250] sm:$0xff] }
0x12f0   : > { %17372 = vst [vmem:[#allocation31_spill] sm:$0xff] %v14460_v31  ;;  %8255 = vrot.lane.b32.xlu0 %v14458_v52, %s12767_s11  ;;  %v4382_v30 = vld [vmem:[%s17339_s16 + $0x270] sm:$0xff] }
0x12f1   : > { %6040 = vmatpush1.bf16.msra.mxu0 %v11647_v24  ;;  %v11563_v24 = vcombine.low %v4330_v54, %v4334_v12  ;;  %v11587_v54 = vcombine.low %v4354_v13, %v4358_v40 }
0x12f2   : > { %6081 = vmatpush1.bf16.msra.mxu1 %v11649_v43  ;;  %6041 = vmatprep.subr.bf16.mxu0 %v11656_v23  ;;  %v14450_v6 = vpop.permute.xlu0 %8452  ;;  %v11565_v23 = vcombine.low %v4331_v15, %v4335_v27 }
0x12f3   : > { %6082 = vmatprep.subr.bf16.mxu1 %v11658_v38  ;;  %v14470_v43 = vpop.permute.xlu1 %8495  ;;  %v11572_v38 = vcombine.high %v4338_v39, %v4342_v45 }
0x12f5   : > { %6042 = vmatpush1.bf16.msra.mxu0 %v11655_v60  ;;  %v4347_v60 = vld [vmem:[%s17339_s16 + $0x158] sm:$0xff] }
0x12f6   : > { %6083 = vmatpush1.bf16.msra.mxu1 %v11657_v25  ;;  %6093 = vmatprep.subr.bf16.mxu0 %v11540_v55  ;;  %v14462_v9 = vpop.permute.xlu0 %8493  ;;  %v4351_v25 = vld [vmem:[%s17339_s16 + $0x178] sm:$0xff]  ;;  %v11571_v55 = vcombine.low %v4338_v39, %v4342_v45 }
0x12f7   : > { %6134 = vmatprep.subr.bf16.mxu1 %v11542_v57  ;;  %v14478_v57 = vpop.permute.xlu1 %8534  ;;  %v4371_v39 = vld [vmem:[%s17339_s16 + $0x218] sm:$0xff] }
0x12f8   : > { %6044 = vmatmul.mubr.bf16.vlgmr.msra.gmra.mrb[84].mxu0 %v14046_v49  ;;  %v4375_v45 = vld [vmem:[%s17339_s16 + $0x238] sm:$0xff] }
0x12f9   : > { %6085 = vmatmul.mubr.bf16.vlgmr.msra.gmra.mrb[56].mxu1 %v14046_v49  ;;  %6094 = vmatpush1.bf16.msra.mxu0 %v11539_v53  ;;  %v11582_v53 = vcombine.high %v4347_v60, %v4351_v25 }
0x12fa   : > { %6125 = vmatprep.mubr.bf16.mxu0 %v14048_v56  ;;  %6135 = vmatpush1.bf16.msra.mxu1 %v11541_v47  ;;  %v14472_v3 = vpop.permute.xlu0 %8532  ;;  %v4355_v47 = vld [vmem:[%s17339_s16 + $0x198] sm:$0xff] }
0x12fb   : > { %6166 = vmatprep.mubr.bf16.mxu1 %v14048_v56  ;;  %6095 = vmatprep.subr.bf16.mxu0 %v11548_v59  ;;  %17373 = vst [vmem:[#allocation32_spill] sm:$0xff] %v14472_v3  ;;  %v4359_v59 = vld [vmem:[%s17339_s16 + $0x1b8] sm:$0xff]  ;;  %v14486_v0 = vpop.permute.xlu1 %8415  ;;  %vm17225_vm1 = vcmp.ne.s16.totalorder %v14472_v3, 0 }
0x12fc   : > { %6136 = vmatprep.subr.bf16.mxu1 %v11550_v1  ;;  %v11581_v1 = vcombine.low %v4347_v60, %v4351_v25  ;;  %v11589_v15 = vcombine.low %v4355_v47, %v4359_v59  ;;  %v4379_v60 = vld [vmem:[%s17339_s16 + $0x258] sm:$0xff] }
0x12fd   : > { %6096 = vmatpush1.bf16.msra.mxu0 %v11547_v2  ;;  %v11590_v2 = vcombine.high %v4355_v47, %v4359_v59  ;;  %v4383_v25 = vld [vmem:[%s17339_s16 + $0x278] sm:$0xff]  ;;  %v4386_v47 = vld [vmem:[%s17339_s16 + $0x290] sm:$0xff] }
0x12fe   : > { %6137 = vmatpush1.bf16.msra.mxu1 %v11549_v63  ;;  %6097 = vmatprep.subr.bf16.mxu0 %v11556_v33  ;;  %v14480_v5 = vpop.permute.xlu0 %8536  ;;  %v4366_v63 = vld [vmem:[%s17339_s16 + $0x1f0] sm:$0xff]  ;;  %v4363_v33 = vld [vmem:[%s17339_s16 + $0x1d8] sm:$0xff]  ;;  %v11614_v40 = vcombine.high %v4379_v60, %v4383_v25 }
0x12ff   : > { %6138 = vmatprep.subr.bf16.mxu1 %v11558_v37  ;;  %v4367_v37 = vld [vmem:[%s17339_s16 + $0x1f8] sm:$0xff]  ;;  %v14494_v12 = vpop.permute.xlu1 %8419  ;;  %v11596_v27 = vcombine.high %v4362_v17, %v4366_v63  ;;  %v11595_v8 = vcombine.low %v4362_v17, %v4366_v63  ;;  %v4390_v59 = vld [vmem:[%s17339_s16 + $0x2b0] sm:$0xff]  ;;  %v11613_v17 = vcombine.low %v4379_v60, %v4383_v25 }
0x1300   : > { %v11620_v63 = vcombine.high %v4386_v47, %v4390_v59 }
0x1301   : > { %6098 = vmatpush1.bf16.msra.mxu0 %v11555_v11 }
0x1302   : > { %6139 = vmatpush1.bf16.msra.mxu1 %v11557_v34  ;;  %6099 = vmatprep.subr.bf16.mxu0 %v11564_v28  ;;  %v14488_v20 = vpop.permute.xlu0 %8417  ;;  %v11598_v34 = vcombine.high %v4363_v33, %v4367_v37  ;;  %v4370_v28 = vld [vmem:[%s17339_s16 + $0x210] sm:$0xff] }
0x1303   : > { %6140 = vmatprep.subr.bf16.mxu1 %v11566_v36  ;;  %v4374_v36 = vld [vmem:[%s17339_s16 + $0x230] sm:$0xff] }
0x1305   : > { %6100 = vmatpush1.bf16.msra.mxu0 %v11563_v24  ;;  %v14502_v50 = vpop.permute.xlu1 %8456  ;;  %v11597_v24 = vcombine.low %v4363_v33, %v4367_v37 }
0x1306   : > { %6141 = vmatpush1.bf16.msra.mxu1 %v11565_v23  ;;  %6101 = vmatprep.subr.bf16.mxu0 %v11572_v38  ;;  %v14496_v11 = vpop.permute.xlu0 %8421  ;;  %v11604_v23 = vcombine.high %v4370_v28, %v4374_v36 }
0x1307   : > { %6142 = vmatprep.subr.bf16.mxu1 %v11574_v42  ;;  %17374 = vst [vmem:[#allocation33_spill] sm:$0xff] %v14496_v11  ;;  %v11606_v42 = vcombine.high %v4371_v39, %v4375_v45 }
0x1309   : > { %6102 = vmatpush1.bf16.msra.mxu0 %v11571_v55  ;;  %v11603_v55 = vcombine.low %v4370_v28, %v4374_v36  ;;  %v11619_v28 = vcombine.low %v4386_v47, %v4390_v59  ;;  %v4410_v47 = vld [vmem:[%s17339_s16 + $0x350] sm:$0xff] }
0x130a   : > { %6143 = vmatpush1.bf16.msra.mxu1 %v11573_v44  ;;  %6103 = vmatprep.subr.bf16.mxu0 %v11580_v14  ;;  %v14504_v38 = vpop.permute.xlu0 %8458  ;;  %v14510_v44 = vpop.permute.xlu1 %8574  ;;  %v11605_v14 = vcombine.low %v4371_v39, %v4375_v45  ;;  %v4414_v59 = vld [vmem:[%s17339_s16 + $0x370] sm:$0xff] }
0x130b   : > { %6144 = vmatprep.subr.bf16.mxu1 %v11582_v53  ;;  %17375 = vst [vmem:[#allocation34_spill] sm:$0xff] %v14510_v44  ;;  %v11612_v53 = vcombine.high %v4378_v29, %v4382_v30  ;;  %vm17263_vm7 = vcmp.ne.s16.totalorder %v14510_v44, 0 }
0x130d   : > { %6104 = vmatpush1.bf16.msra.mxu0 %v11579_v62  ;;  %v4387_v62 = vld [vmem:[%s17339_s16 + $0x298] sm:$0xff] }
0x130e   : > { %6145 = vmatpush1.bf16.msra.mxu1 %v11581_v1  ;;  %6105 = vmatprep.subr.bf16.mxu0 %v11588_v35  ;;  %v14512_v13 = vpop.permute.xlu0 %8576  ;;  %v4391_v1 = vld [vmem:[%s17339_s16 + $0x2b8] sm:$0xff]  ;;  %v11611_v35 = vcombine.low %v4378_v29, %v4382_v30 }
0x130f   : > { %6146 = vmatprep.subr.bf16.mxu1 %v11590_v2  ;;  %v14518_v2 = vpop.permute.xlu1 %8578  ;;  %v11622_v37 = vcombine.high %v4387_v62, %v4391_v1  ;;  %v11621_v39 = vcombine.low %v4387_v62, %v4391_v1  ;;  %v4403_v29 = vld [vmem:[%s17339_s16 + $0x318] sm:$0xff] }
0x1310   : > { %v4407_v30 = vld [vmem:[%s17339_s16 + $0x338] sm:$0xff] }
0x1311   : > { %6106 = vmatpush1.bf16.msra.mxu0 %v11587_v54  ;;  %v4394_v54 = vld [vmem:[%s17339_s16 + $0x2d0] sm:$0xff]  ;;  %v4411_v62 = vld [vmem:[%s17339_s16 + $0x358] sm:$0xff] }
0x1312   : > { %6147 = vmatpush1.bf16.msra.mxu1 %v11589_v15  ;;  %6107 = vmatprep.subr.bf16.mxu0 %v11596_v27  ;;  %v14520_v33 = vpop.permute.xlu0 %8460  ;;  %v4398_v15 = vld [vmem:[%s17339_s16 + $0x2f0] sm:$0xff]  ;;  %v4395_v27 = vld [vmem:[%s17339_s16 + $0x2d8] sm:$0xff] }
0x1313   : > { %6148 = vmatprep.subr.bf16.mxu1 %v11598_v34  ;;  %v4399_v34 = vld [vmem:[%s17339_s16 + $0x2f8] sm:$0xff]  ;;  %v14526_v36 = vpop.permute.xlu1 %8462  ;;  %v11628_v45 = vcombine.high %v4394_v54, %v4398_v15  ;;  %v11627_v60 = vcombine.low %v4394_v54, %v4398_v15  ;;  %v4418_v15 = vld [vmem:[%s17339_s16 + $0x390] sm:$0xff] }
0x1314   : > { %17376 = vst [vmem:[#allocation35_spill] sm:$0xff] %v14526_v36  ;;  %v4415_v1 = vld [vmem:[%s17339_s16 + $0x378] sm:$0xff] }
0x1315   : > { %6108 = vmatpush1.bf16.msra.mxu0 %v11595_v8  ;;  %v11646_v54 = vcombine.high %v4411_v62, %v4415_v1 }
0x1316   : > { %6149 = vmatpush1.bf16.msra.mxu1 %v11597_v24  ;;  %6109 = vmatprep.subr.bf16.mxu0 %v11604_v23  ;;  %v14528_v8 = vpop.permute.xlu0 %8497  ;;  %v11630_v24 = vcombine.high %v4395_v27, %v4399_v34  ;;  %v4402_v23 = vld [vmem:[%s17339_s16 + $0x310] sm:$0xff] }
0x1317   : > { %6150 = vmatprep.subr.bf16.mxu1 %v11606_v42  ;;  %v4406_v42 = vld [vmem:[%s17339_s16 + $0x330] sm:$0xff]  ;;  %v14534_v25 = vpop.permute.xlu1 %8499 }
0x1319   : > { %6110 = vmatpush1.bf16.msra.mxu0 %v11603_v55  ;;  %v11629_v55 = vcombine.low %v4395_v27, %v4399_v34  ;;  %v4422_v27 = vld [vmem:[%s17339_s16 + $0x3b0] sm:$0xff]  ;;  %v4419_v34 = vld [vmem:[%s17339_s16 + $0x398] sm:$0xff] }
0x131a   : > { %6151 = vmatpush1.bf16.msra.mxu1 %v11605_v14  ;;  %6111 = vmatprep.subr.bf16.mxu0 %v11612_v53  ;;  %v11636_v14 = vcombine.high %v4402_v23, %v4406_v42  ;;  %v14536_v53 = vpop.permute.xlu0 %8501 }
0x131b   : > { %6152 = vmatprep.subr.bf16.mxu1 %v11614_v40  ;;  %v11638_v40 = vcombine.high %v4403_v29, %v4407_v30 }
0x131d   : > { %6112 = vmatpush1.bf16.msra.mxu0 %v11611_v35  ;;  %v11635_v35 = vcombine.low %v4402_v23, %v4406_v42  ;;  %v11645_v23 = vcombine.low %v4411_v62, %v4415_v1  ;;  %v11652_v42 = vcombine.high %v4418_v15, %v4422_v27 }
0x131e   : > { %6153 = vmatpush1.bf16.msra.mxu1 %v11613_v17  ;;  %6113 = vmatprep.subr.bf16.mxu0 %v11620_v63  ;;  %v14542_v17 = vpop.permute.xlu1 %8503  ;;  %v11637_v63 = vcombine.low %v4403_v29, %v4407_v30  ;;  %v4426_v30 = vld [vmem:[%s17339_s16 + $0x3d0] sm:$0xff] }
0x131f   : > { %6154 = vmatprep.subr.bf16.mxu1 %v11622_v37  ;;  %17377 = vst [vmem:[#allocation36_spill] sm:$0xff] %v14542_v17  ;;  %v11644_v37 = vcombine.high %v4410_v47, %v4414_v59 }
0x1321   : > { %6114 = vmatpush1.bf16.msra.mxu0 %v11619_v28  ;;  %v4423_v28 = vld [vmem:[%s17339_s16 + $0x3b8] sm:$0xff] }
0x1322   : > { %6155 = vmatpush1.bf16.msra.mxu1 %v11621_v39  ;;  %6115 = vmatprep.subr.bf16.mxu0 %v11628_v45  ;;  %v14548_v39 = vpop.permute.xlu0 %8538  ;;  %v11643_v45 = vcombine.low %v4410_v47, %v4414_v59  ;;  %v11654_v29 = vcombine.high %v4419_v34, %v4423_v28  ;;  %v11653_v47 = vcombine.low %v4419_v34, %v4423_v28 }
0x1323   : > { %6156 = vmatprep.subr.bf16.mxu1 %v11630_v24  ;;  %v14550_v24 = vpop.permute.xlu1 %8540 }
0x1325   : > { %6116 = vmatpush1.bf16.msra.mxu0 %v11627_v60  ;;  %v4430_v60 = vld [vmem:[%s17339_s16 + $0x3f0] sm:$0xff] }
0x1326   : > { %6157 = vmatpush1.bf16.msra.mxu1 %v11629_v55  ;;  %6117 = vmatprep.subr.bf16.mxu0 %v11636_v14  ;;  %v4427_v55 = vld [vmem:[%s17339_s16 + $0x3d8] sm:$0xff]  ;;  %v11660_v59 = vcombine.high %v4426_v30, %v4430_v60  ;;  %v14558_v62 = vpop.permute.xlu0 %8542 }
0x1327   : > { %6158 = vmatprep.subr.bf16.mxu1 %v11638_v40  ;;  %v4431_v14 = vld [vmem:[%s17339_s16 + $0x3f8] sm:$0xff]  ;;  %v11651_v40 = vcombine.low %v4418_v15, %v4422_v27 }
0x1328   : > { %v11662_v1 = vcombine.high %v4427_v55, %v4431_v14  ;;  %v11661_v15 = vcombine.low %v4427_v55, %v4431_v14  ;;  %v11676_v55 = vld [vmem:[%s17339_s16 + $0x868] sm:$0xff] }
0x1329   : > { %6118 = vmatpush1.bf16.msra.mxu0 %v11635_v35  ;;  %v14556_v35 = vpop.permute.xlu1 %8544 }
0x132a   : > { %6159 = vmatpush1.bf16.msra.mxu1 %v11637_v63  ;;  %6119 = vmatprep.subr.bf16.mxu0 %v11644_v37  ;;  %17378 = vst [vmem:[#allocation37_spill] sm:$0xff] %v14556_v35  ;;  %v11663_v63 = vld [vmem:[%s17339_s16 + $0x800] sm:$0xff]  ;;  %v14566_v28 = vpop.permute.xlu0 %8423 }
0x132b   : > { %6160 = vmatprep.subr.bf16.mxu1 %v11646_v54  ;;  %v11667_v37 = vld [vmem:[%s17339_s16 + $0x820] sm:$0xff]  ;;  %v11664_v54 = vld [vmem:[%s17339_s16 + $0x808] sm:$0xff]  ;;  %17379 = vst [vmem:[#allocation38_spill] sm:$0xff] %v14566_v28 }
0x132c   : > { %v11792_v27 = vcombine.high %v11663_v63, %v11667_v37  ;;  %v11793_v14 = vcombine.low %v11664_v54, %v11668_v7 }
0x132d   : > { %6120 = vmatpush1.bf16.msra.mxu0 %v11643_v45  ;;  %v11659_v45 = vcombine.low %v4426_v30, %v4430_v60  ;;  %v14564_v34 = vpop.permute.xlu1 %8580  ;;  %v11791_v30 = vcombine.low %v11663_v63, %v11667_v37  ;;  %v11672_v60 = vld [vmem:[%s17339_s16 + $0x848] sm:$0xff] }
0x132e   : > { %6161 = vmatpush1.bf16.msra.mxu1 %v11645_v23  ;;  %6121 = vmatprep.subr.bf16.mxu0 %v11652_v42  ;;  %v8242_v23 = vcombine.high %v14458_v52, %v14458_v52  ;;  %v11794_v42 = vcombine.high %v11664_v54, %v11668_v7  ;;  %v14577_v52 = vpop.permute.xlu0 %8582  ;;  %v11802_v63 = vcombine.high %v11672_v60, %v11676_v55  ;;  %v11680_v37 = vld [vmem:[%s17339_s16 + $0x888] sm:$0xff] }
0x132f   : > { %6162 = vmatprep.subr.bf16.mxu1 %v11654_v29  ;;  %v11671_v29 = vld [vmem:[%s17339_s16 + $0x840] sm:$0xff]  ;;  %v11801_v54 = vcombine.low %v11672_v60, %v11676_v55  ;;  %v11816_v55 = vcombine.high %v11687_v18, %v11691_v51 }
0x1330   : > { %8257 = vrot.lane.b32.xlu1 %v8242_v23, %s12767_s11 }
0x1331   : > { %6122 = vmatpush1.bf16.msra.mxu0 %v11651_v40  ;;  %v11675_v40 = vld [vmem:[%s17339_s16 + $0x860] sm:$0xff] }
0x1332   : > { %6163 = vmatpush1.bf16.msra.mxu1 %v11653_v47  ;;  %6123 = vmatprep.subr.bf16.mxu0 %v11660_v59  ;;  %v14575_v47 = vpop.permute.xlu1 %8464  ;;  %v11800_v59 = vcombine.high %v11671_v29, %v11675_v40  ;;  %v11799_v7 = vcombine.low %v11671_v29, %v11675_v40  ;;  %v11692_v29 = vld [vmem:[%s17339_s16 + $0x8e8] sm:$0xff] }
0x1333   : > { %6164 = vmatprep.subr.bf16.mxu1 %v11662_v1  ;;  %17380 = vst [vmem:[#allocation39_spill] sm:$0xff] %v14575_v47  ;;  %v11679_v1 = vld [vmem:[%s17339_s16 + $0x880] sm:$0xff] }
0x1334   : > { %v11807_v40 = vcombine.low %v11679_v1, %v11683_v16  ;;  %v11703_v47 = vld [vmem:[%s17339_s16 + $0x940] sm:$0xff] }
0x1335   : > { %6124 = vmatpush1.bf16.msra.mxu0 %v11659_v45  ;;  %v14583_v45 = vrot.slane %v14048_v56, 4 }
0x1336   : > { %6165 = vmatpush1.bf16.msra.mxu1 %v11661_v15  ;;  %6948 = vmatprep.subr.bf16.mxu0 %v11792_v27  ;;  %v11684_v15 = vld [vmem:[%s17339_s16 + $0x8a8] sm:$0xff]  ;;  %v11808_v27 = vcombine.high %v11679_v1, %v11683_v16  ;;  %v14589_v23 = vpop.permute.xlu1 %8586 }
0x1337   : > { %6989 = vmatprep.subr.bf16.mxu1 %v11794_v42  ;;  %17381 = vst [vmem:[#allocation40_spill] sm:$0xff] %v14589_v23  ;;  %v14591_v42 = vpop.permute.xlu0 %8584  ;;  %v11810_v58 = vcombine.high %v11680_v37, %v11684_v15  ;;  %v11809_v60 = vcombine.low %v11680_v37, %v11684_v15  ;;  %v11696_v1 = vld [vmem:[%s17339_s16 + $0x908] sm:$0xff] }
0x1338   : > { %6126 = vmatmul.mubr.bf16.vlgmr.msra.gmra.mrb[88].mxu0 %v14046_v49  ;;  %17382 = vst [vmem:[#allocation41_spill] sm:$0xff] %v14591_v42  ;;  %v11700_v37 = vld [vmem:[%s17339_s16 + $0x928] sm:$0xff]  ;;  %v14649_v42 = vsel %vm17392_vm15, %v14450_v6, %v14445_v32  ;;  %vm17216_vm15 = vcmp.ne.s16.totalorder %v14460_v31, 0 }
0x1339   : > { %6167 = vmatmul.mubr.bf16.vlgmr.msra.gmra.mrb[60].mxu1 %v14046_v49  ;;  %6949 = vmatpush1.bf16.msra.mxu0 %v11791_v30  ;;  %v11688_v30 = vld [vmem:[%s17339_s16 + $0x8c8] sm:$0xff]  ;;  %v11826_v21 = vcombine.high %v11696_v1, %v11700_v37  ;;  %17393 = vst [vmem:[#allocation48_spill] sm:$0xff] %v14649_v42  ;;  %vm17194_vm5 = vcmp.ne.s16.totalorder %v14649_v42, 0  ;;  %v14689_v42 = vsel %vm17395_vm4, %v14460_v31, %v14462_v9 }
0x133a   : > { %6980 = vmatprep.mubr.bf16.mxu0 %v14583_v45  ;;  %6990 = vmatpush1.bf16.msra.mxu1 %v11793_v14  ;;  %v14601_v14 = vsel %vm17383_vm9, %v14428_v46, %v14421_v22  ;;  %17396 = vst [vmem:[#allocation50_spill] sm:$0xff] %v14689_v42  ;;  %vm17397_vm9 = vmmov %vm17395_vm4  ;;  %vm17399_vm4 = vcmask 523264  }
0x133b   : > { %7021 = vmatprep.mubr.bf16.mxu1 %v14583_v45  ;;  %6950 = vmatprep.subr.bf16.mxu0 %v11800_v59  ;;  %17384 = vst [vmem:[#allocation42_spill] sm:$0xff] %v14601_v14  ;;  %v8244_v59 = vpop.permute.xlu1 %8243  ;;  %v8246_v41 = vpop.permute.xlu0 %8245  ;;  %vm17219_vm12 = vcmp.ne.s16.totalorder %v14601_v14, 0  ;;  %v11716_v14 = vld [vmem:[%s17339_s16 + $0x9a8] sm:$0xff] }
0x133c   : > { %6991 = vmatprep.subr.bf16.mxu1 %v11802_v63  ;;  %v11818_v63 = vcombine.high %v11688_v30, %v11692_v29  ;;  %v14611_v16 = vsel %vm8259_vm11, %v8244_v59, %v8246_v41 }
0x133d   : > { %6951 = vmatpush1.bf16.msra.mxu0 %v11799_v7  ;;  %v14608_v7 = vsel %vm17385_vm8, %v14421_v22, %v14437_v10  ;;  %17387 = vst [vmem:[#allocation44_spill] sm:$0xff] %v14611_v16  ;;  %v8619_v15 = vrot.slane %v14611_v16, 6  ;;  %v11817_v22 = vcombine.low %v11688_v30, %v11692_v29  ;;  %v11704_v30 = vld [vmem:[%s17339_s16 + $0x948] sm:$0xff]  ;;  %vm17136_vm8 = vcmp.ne.s16.totalorder %v14689_v42, 0 }
0x133e   : > { %6992 = vmatpush1.bf16.msra.mxu1 %v11801_v54  ;;  %6952 = vmatprep.subr.bf16.mxu0 %v11808_v27  ;;  %17386 = vst [vmem:[#allocation43_spill] sm:$0xff] %v14608_v7  ;;  %v11815_v54 = vcombine.low %v11687_v18, %v11691_v51  ;;  %v11824_v27 = vcombine.high %v11695_v48, %v11699_v4  ;;  %vm17130_vm13 = vcmp.ne.s16.totalorder %v14608_v7, 0  ;;  %v11708_v29 = vld [vmem:[%s17339_s16 + $0x968] sm:$0xff] }
0x133f   : > { %6993 = vmatprep.subr.bf16.mxu1 %v11810_v58  ;;  %v14618_v58 = vsel %vm8259_vm11, 0, %v8244_v59  ;;  %v14621_v61 = vpop.permute.xlu1 %8247  ;;  %v14628_v51 = vsel %vm17389_vm10, %v14430_v19, %v14450_v6  ;;  %8629 = vrot.lane.b32.xlu0 %v8619_v15, %s17310_s26  ;;  %v8442_v59 = vsel %vm17219_vm12, %v14611_v16, 0  ;;  %v11825_v15 = vcombine.low %v11696_v1, %v11700_v37  ;;  %v11712_v7 = vld [vmem:[%s17339_s16 + $0x988] sm:$0xff] }
0x1340   : > { %17388 = vst [vmem:[#allocation45_spill] sm:$0xff] %v14618_v58  ;;  %17390 = vst [vmem:[#allocation46_spill] sm:$0xff] %v14628_v51  ;;  %v14632_v18 = vsel %vm8259_vm11, %v8246_v41, %v14621_v61  ;;  %vm17129_vm3 = vcmp.ne.s16.totalorder %v14628_v51, 0  ;;  %v8663_v23 = vrot.slane %v8442_v59, 4  ;;  %v8441_v6 = vsel %vm17260_vm2, %v14618_v58, 0  ;;  %v11723_v59 = vld [vmem:[%s17339_s16 + $0x9e0] sm:$0xff] }
0x1341   : > { %6953 = vmatpush1.bf16.msra.mxu0 %v11807_v40  ;;  %v11707_v40 = vld [vmem:[%s17339_s16 + $0x960] sm:$0xff]  ;;  %17391 = vst [vmem:[#allocation47_spill] sm:$0xff] %v14632_v18  ;;  %v8443_v41 = vsel %vm17130_vm13, %v14632_v18, 0 }
0x1342   : > { %6994 = vmatpush1.bf16.msra.mxu1 %v11809_v60  ;;  %6954 = vmatprep.subr.bf16.mxu0 %v11816_v55  ;;  %v8620_v60 = vrot.slane %v14632_v18, 6  ;;  %v8618_v55 = vrot.slane %v14618_v58, 6  ;;  %v11832_v28 = vcombine.high %v11703_v47, %v11707_v40  ;;  %v8664_v1 = vrot.slane %v8443_v41, 4 }
0x1343   : > { %6995 = vmatprep.subr.bf16.mxu1 %v11818_v63  ;;  %v11823_v63 = vcombine.low %v11695_v48, %v11699_v4  ;;  %v11834_v48 = vcombine.high %v11704_v30, %v11708_v29  ;;  %v11711_v4 = vld [vmem:[%s17339_s16 + $0x980] sm:$0xff]  ;;  %v11831_v37 = vcombine.low %v11703_v47, %v11707_v40  ;;  %v11842_v47 = vcombine.high %v11712_v7, %v11716_v14 }
0x1344   : > { %8631 = vrot.lane.b32.xlu1 %v8620_v60, %s17310_s26  ;;  %8627 = vrot.lane.b32.xlu0 %v8618_v55, %s17310_s26  ;;  %v11719_v40 = vld [vmem:[%s17339_s16 + $0x9c0] sm:$0xff] }
0x1345   : > { %6955 = vmatpush1.bf16.msra.mxu0 %v11815_v54  ;;  %v11715_v54 = vld [vmem:[%s17339_s16 + $0x9a0] sm:$0xff] }
0x1346   : > { %6996 = vmatpush1.bf16.msra.mxu1 %v11817_v22  ;;  %6956 = vmatprep.subr.bf16.mxu0 %v11824_v27  ;;  %v11833_v22 = vcombine.low %v11704_v30, %v11708_v29  ;;  %v11840_v27 = vcombine.high %v11711_v4, %v11715_v54  ;;  %v11724_v30 = vld [vmem:[%s17339_s16 + $0x9e8] sm:$0xff] }
0x1347   : > { %6997 = vmatprep.subr.bf16.mxu1 %v11826_v21  ;;  %v8483_v21 = vsel %vm17129_vm3, %v14611_v16, 0  ;;  %vm17412_vm3 = vcmask 15360  }
0x1348   : > { %8673 = vrot.lane.b32.xlu1 %v8663_v23, %s17309_s1  ;;  %8675 = vrot.lane.b32.xlu0 %v8664_v1, %s17309_s1  ;;  %v8707_v29 = vrot.slane %v8483_v21, 2  ;;  %v11839_v23 = vcombine.low %v11711_v4, %v11715_v54  ;;  %v11841_v21 = vcombine.low %v11712_v7, %v11716_v14  ;;  %v11731_v4 = vld [vmem:[%s17339_s16 + $0xa20] sm:$0xff]  ;;  %v14696_v54 = vsel %vm17397_vm9, %v14462_v9, %v14470_v43  ;;  %v11728_v14 = vld [vmem:[%s17339_s16 + $0xa08] sm:$0xff]  ;;  %vm17401_vm9 = vmmov %vm17399_vm4 }
0x1349   : > { %6957 = vmatpush1.bf16.msra.mxu0 %v11823_v63  ;;  %v8662_v63 = vrot.slane %v8441_v6, 4  ;;  %v8482_v6 = vsel %vm17220_vm14, %v14618_v58, 0  ;;  %17398 = vst [vmem:[#allocation51_spill] sm:$0xff] %v14696_v54  ;;  %v11732_v7 = vld [vmem:[%s17339_s16 + $0xa28] sm:$0xff]  ;;  %vm17128_vm10 = vcmp.ne.s16.totalorder %v14696_v54, 0  ;;  %v11771_v54 = vld [vmem:[%s17339_s16 + $0xb60] sm:$0xff]  ;;  %vm17414_vm13 = vmmov %vm17412_vm3 }
0x134a   : > { %6998 = vmatpush1.bf16.msra.mxu1 %v11825_v15  ;;  %6958 = vmatprep.subr.bf16.mxu0 %v11832_v28  ;;  %v11720_v28 = vld [vmem:[%s17339_s16 + $0x9c8] sm:$0xff] }
0x134b   : > { %v14666_v60 = vpop.f32.mrb[76].mxu0  ;;  %v14668_v55 = vpop.f32.mrb[48].mxu1  ;;  %6999 = vmatprep.subr.bf16.mxu1 %v11834_v48  ;;  %v8484_v48 = vsel %vm17194_vm5, %v14632_v18, 0  ;;  %v11849_v9 = vcombine.low %v11720_v28, %v11724_v30 }
0x134c   : > { %v14673_v41 = vpop.f32.mrb[77].mxu0  ;;  %v14675_v15 = vpop.f32.mrb[49].mxu1  ;;  %8671 = vrot.lane.b32.xlu1 %v8662_v63, %s17309_s1  ;;  %8717 = vrot.lane.b32.xlu0 %v8707_v29, %s17311_s3  ;;  %v11735_v63 = vld [vmem:[%s17339_s16 + $0xa40] sm:$0xff]  ;;  %v11736_v29 = vld [vmem:[%s17339_s16 + $0xa48] sm:$0xff] }
0x134d   : > { %17394 = vst [vmem:[#allocation49_spill] sm:$0xff] %v14675_v15  ;;  %6959 = vmatpush1.bf16.msra.mxu0 %v11831_v37  ;;  %v5245_v51 = vpop.f32.mrb[78].mxu0  ;;  %v5286_v46 = vpop.f32.mrb[50].mxu1  ;;  %v11848_v15 = vcombine.high %v11719_v40, %v11723_v59  ;;  %v8706_v37 = vrot.slane %v8482_v6, 2  ;;  %v11740_v6 = vld [vmem:[%s17339_s16 + $0xa68] sm:$0xff] }
0x134e   : > { %7000 = vmatpush1.bf16.msra.mxu1 %v11833_v22  ;;  %v5246_v26 = vpop.f32.mrb[79].mxu0  ;;  %v5287_v1 = vpop.f32.mrb[51].mxu1  ;;  %6960 = vmatprep.subr.bf16.mxu0 %v11840_v27  ;;  %v11850_v46 = vcombine.high %v11720_v28, %v11724_v30  ;;  %v11727_v51 = vld [vmem:[%s17339_s16 + $0xa00] sm:$0xff]  ;;  %v11847_v22 = vcombine.low %v11719_v40, %v11723_v59  ;;  %v8524_v40 = vsel %vm17136_vm8, %v14611_v16, 0  ;;  %v11857_v28 = vcombine.low %v11728_v14, %v11732_v7 }
0x134f   : > { %7001 = vmatprep.subr.bf16.mxu1 %v11842_v47  ;;  %v8708_v26 = vrot.slane %v8484_v48, 2  ;;  %v11856_v27 = vcombine.high %v11727_v51, %v11731_v4  ;;  %v11858_v47 = vcombine.high %v11728_v14, %v11732_v7  ;;  %v11739_v48 = vld [vmem:[%s17339_s16 + $0xa60] sm:$0xff]  ;;  %v11855_v59 = vcombine.low %v11727_v51, %v11731_v4  ;;  %v11748_v14 = vld [vmem:[%s17339_s16 + $0xaa8] sm:$0xff] }
0x1350   : > { %8715 = vrot.lane.b32.xlu0 %v8706_v37, %s17311_s3  ;;  %v11864_v30 = vcombine.high %v11735_v63, %v11739_v48  ;;  %v11866_v1 = vcombine.high %v11736_v29, %v11740_v6  ;;  %v14727_v51 = vsel %vm17401_vm9, %v14478_v57, %v14480_v5  ;;  %v8777_v4 = vrot.slane %v8524_v40, 6  ;;  %v11751_v40 = vld [vmem:[%s17339_s16 + $0xac0] sm:$0xff] }
0x1351   : > { %6961 = vmatpush1.bf16.msra.mxu0 %v11839_v23  ;;  %8719 = vrot.lane.b32.xlu1 %v8708_v26, %s17311_s3  ;;  %v14720_v23 = vsel %vm17399_vm4, %v14472_v3, %v14478_v57  ;;  %17402 = vst [vmem:[#allocation53_spill] sm:$0xff] %v14727_v51  ;;  %v11744_v26 = vld [vmem:[%s17339_s16 + $0xa88] sm:$0xff]  ;;  %v11863_v37 = vcombine.low %v11735_v63, %v11739_v48  ;;  %v8523_v57 = vsel %vm17216_vm15, %v14618_v58, 0  ;;  %vm17127_vm9 = vcmp.ne.s16.totalorder %v14727_v51, 0  ;;  %v11767_v51 = vld [vmem:[%s17339_s16 + $0xb40] sm:$0xff] }
0x1352   : > { %7002 = vmatpush1.bf16.msra.mxu1 %v11841_v21  ;;  %6962 = vmatprep.subr.bf16.mxu0 %v11848_v15  ;;  %v8525_v15 = vsel %vm17128_vm10, %v14632_v18, 0  ;;  %17400 = vst [vmem:[#allocation52_spill] sm:$0xff] %v14720_v23  ;;  %v11743_v21 = vld [vmem:[%s17339_s16 + $0xa80] sm:$0xff]  ;;  %vm17132_vm4 = vcmp.ne.s16.totalorder %v14720_v23, 0  ;;  %v11752_v63 = vld [vmem:[%s17339_s16 + $0xac8] sm:$0xff] }
0x1353   : > { %7003 = vmatprep.subr.bf16.mxu1 %v11850_v46  ;;  %v11747_v46 = vld [vmem:[%s17339_s16 + $0xaa0] sm:$0xff]  ;;  %v8778_v7 = vrot.slane %v8525_v15, 6  ;;  %v11756_v48 = vld [vmem:[%s17339_s16 + $0xae8] sm:$0xff]  ;;  %v8776_v15 = vrot.slane %v8523_v57, 6 }
0x1354   : > { %8745 = vrot.lane.b32.xlu0 %v14632_v18, %s17312_s5  ;;  %v11763_v57 = vld [vmem:[%s17339_s16 + $0xb20] sm:$0xff]  ;;  %v11772_v23 = vld [vmem:[%s17339_s16 + $0xb68] sm:$0xff] }
0x1355   : > { %6963 = vmatpush1.bf16.msra.mxu0 %v11847_v22  ;;  %8743 = vrot.lane.b32.xlu1 %v14611_v16, %s17312_s5  ;;  %v11865_v22 = vcombine.low %v11736_v29, %v11740_v6  ;;  %v8566_v29 = vsel %vm17132_vm4, %v14611_v16, 0  ;;  %v11871_v6 = vcombine.low %v11743_v21, %v11747_v46  ;;  %vm17419_vm4 = vcmask 15360  }
0x1356   : > { %7004 = vmatpush1.bf16.msra.mxu1 %v11849_v9  ;;  %6964 = vmatprep.subr.bf16.mxu0 %v11856_v27  ;;  %v11872_v9 = vcombine.high %v11743_v21, %v11747_v46  ;;  %v14740_v27 = vpop.permute.xlu0 %8505  ;;  %v14759_v21 = vpop.permute.xlu1 %8546  ;;  %v11760_v46 = vld [vmem:[%s17339_s16 + $0xb08] sm:$0xff] }
0x1357   : > { %7005 = vmatprep.subr.bf16.mxu1 %v11858_v47  ;;  %17403 = vst [vmem:[#allocation54_spill] sm:$0xff] %v14740_v27  ;;  %v11874_v47 = vcombine.high %v11744_v26, %v11748_v14  ;;  %17404 = vst [vmem:[#allocation55_spill] sm:$0xff] %v14759_v21  ;;  %v11764_v27 = vld [vmem:[%s17339_s16 + $0xb28] sm:$0xff] }
0x1358   : > { %8789 = vrot.lane.b32.xlu0 %v8778_v7, %s17329_s9  ;;  %v11759_v7 = vld [vmem:[%s17339_s16 + $0xb00] sm:$0xff]  ;;  %v11890_v21 = vcombine.high %v11760_v46, %v11764_v27 }
0x1359   : > { %6965 = vmatpush1.bf16.msra.mxu0 %v11855_v59  ;;  %v11755_v59 = vld [vmem:[%s17339_s16 + $0xae0] sm:$0xff]  ;;  %8787 = vrot.lane.b32.xlu1 %v8777_v4, %s17329_s9  ;;  %v11882_v4 = vcombine.high %v11752_v63, %v11756_v48 }
0x135a   : > { %7006 = vmatpush1.bf16.msra.mxu1 %v11857_v28  ;;  %6966 = vmatprep.subr.bf16.mxu0 %v11864_v30  ;;  %v8567_v28 = vsel %vm17127_vm9, %v14632_v18, 0  ;;  %v11873_v30 = vcombine.low %v11744_v26, %v11748_v14  ;;  %v8565_v26 = vsel %vm17225_vm1, %v14618_v58, 0  ;;  %v14767_v14 = vpop.permute.xlu0 %8588  ;;  %vm17410_vm9 = vcmask 15360  }
0x135b   : > { %7007 = vmatprep.subr.bf16.mxu1 %v11866_v1  ;;  %v11880_v1 = vcombine.high %v11751_v40, %v11755_v59  ;;  %17405 = vst [vmem:[#allocation56_spill] sm:$0xff] %v14767_v14  ;;  %v11780_v14 = vld [vmem:[%s17339_s16 + $0xba8] sm:$0xff] }
0x135c   : > { %8785 = vrot.lane.b32.xlu0 %v8776_v15, %s17329_s9  ;;  %v8820_v15 = vrot.slane %v8565_v26, 4  ;;  %v11776_v26 = vld [vmem:[%s17339_s16 + $0xb88] sm:$0xff] }
0x135d   : > { %6967 = vmatpush1.bf16.msra.mxu0 %v11863_v37  ;;  %8741 = vrot.lane.b32.xlu1 %v14618_v58, %s17312_s5  ;;  %v8821_v37 = vrot.slane %v8566_v29, 4  ;;  %v11888_v29 = vcombine.high %v11759_v7, %v11763_v57 }
0x135e   : > { %7008 = vmatpush1.bf16.msra.mxu1 %v11865_v22  ;;  %6968 = vmatprep.subr.bf16.mxu0 %v11872_v9  ;;  %v8822_v22 = vrot.slane %v8567_v28, 4  ;;  %v11879_v9 = vcombine.low %v11751_v40, %v11755_v59  ;;  %v11768_v28 = vld [vmem:[%s17339_s16 + $0xb48] sm:$0xff]  ;;  %v8856_v40 = vrot.slane %v14611_v16, 2  ;;  %v11887_v59 = vcombine.low %v11759_v7, %v11763_v57 }
0x135f   : > { %7009 = vmatprep.subr.bf16.mxu1 %v11874_v47  ;;  %v11881_v47 = vcombine.low %v11752_v63, %v11756_v48  ;;  %v8250_v63 = vpop.permute.xlu1 %8249  ;;  %v11889_v48 = vcombine.low %v11760_v46, %v11764_v27  ;;  %v8855_v7 = vrot.slane %v14618_v58, 2  ;;  %v11895_v57 = vcombine.low %v11767_v51, %v11771_v54 }
0x1360   : > { %8833 = vrot.lane.b32.xlu0 %v8822_v22, %s12764_s8  ;;  %v8857_v22 = vrot.slane %v14632_v18, 2  ;;  %v14785_v27 = vsel %vm8259_vm11, %v14621_v61, %v8250_v63  ;;  %v11897_v46 = vcombine.low %v11768_v28, %v11772_v23  ;;  %v14796_v61 = vsel %vm8590_vm6, %v14510_v44, %v14512_v13 }
0x1361   : > { %6969 = vmatpush1.bf16.msra.mxu0 %v11871_v6  ;;  %8831 = vrot.lane.b32.xlu1 %v8821_v37, %s12764_s8  ;;  %v11896_v6 = vcombine.high %v11767_v51, %v11771_v54  ;;  %v11779_v37 = vld [vmem:[%s17339_s16 + $0xba0] sm:$0xff]  ;;  %17406 = vst [vmem:[#allocation57_spill] sm:$0xff] %v14785_v27  ;;  %17408 = vst [vmem:[#allocation59_spill] sm:$0xff] %v14796_v61  ;;  %v8621_v54 = vrot.slane %v14785_v27, 6  ;;  %v11784_v51 = vld [vmem:[%s17339_s16 + $0xbc8] sm:$0xff]  ;;  %vm17229_vm0 = vcmp.ne.s16.totalorder %v14796_v61, 0 }
0x1362   : > { %7010 = vmatpush1.bf16.msra.mxu1 %v11873_v30  ;;  %6970 = vmatprep.subr.bf16.mxu0 %v11880_v1  ;;  %v8252_v30 = vpop.permute.xlu0 %8251  ;;  %v11898_v1 = vcombine.high %v11768_v28, %v11772_v23 }
0x1363   : > { %7011 = vmatprep.subr.bf16.mxu1 %v11882_v4  ;;  %v11775_v4 = vld [vmem:[%s17339_s16 + $0xb80] sm:$0xff] }
0x1364   : > { %8866 = vrot.lane.b32.xlu0 %v8856_v40, %s12768_s7  ;;  %v11788_v40 = vld [vmem:[%s17339_s16 + $0xbe8] sm:$0xff]  ;;  %v11903_v28 = vcombine.low %v11775_v4, %v11779_v37 }
0x1365   : > { %6971 = vmatpush1.bf16.msra.mxu0 %v11879_v9  ;;  %8829 = vrot.lane.b32.xlu1 %v8820_v15, %s12764_s8  ;;  %v11904_v9 = vcombine.high %v11775_v4, %v11779_v37  ;;  %v11787_v15 = vld [vmem:[%s17339_s16 + $0xbe0] sm:$0xff]  ;;  %v14816_v4 = vsel %vm17410_vm9, %v14437_v10, %v14486_v0  ;;  %v11670_v37 = vld [vmem:[%s17339_s16 + $0x838] sm:$0xff]  ;;  %v8608_v10 = vsel %vm17229_vm0, %v14611_v16, 0  ;;  %v11709_v16 = vld [vmem:[%s17339_s16 + $0x970] sm:$0xff] }
0x1366   : > { %7012 = vmatpush1.bf16.msra.mxu1 %v11881_v47  ;;  %6972 = vmatprep.subr.bf16.mxu0 %v11888_v29  ;;  %v11906_v47 = vcombine.high %v11776_v26, %v11780_v14  ;;  %v11783_v29 = vld [vmem:[%s17339_s16 + $0xbc0] sm:$0xff]  ;;  %17411 = vst [vmem:[#allocation61_spill] sm:$0xff] %v14816_v4  ;;  %vm17131_vm9 = vcmp.ne.s16.totalorder %v14816_v4, 0 }
0x1367   : > { %7013 = vmatprep.subr.bf16.mxu1 %v11890_v21  ;;  %v14789_v21 = vsel %vm8259_vm11, %v8250_v63, %v8252_v30  ;;  %v11912_v63 = vcombine.high %v11783_v29, %v11787_v15 }
0x1368   : > { %17407 = vst [vmem:[#allocation58_spill] sm:$0xff] %v14789_v21  ;;  %8864 = vrot.lane.b32.xlu0 %v8855_v7, %s12768_s7  ;;  %v8622_v23 = vrot.slane %v14789_v21, 6  ;;  %v11669_v7 = vld [vmem:[%s17339_s16 + $0x830] sm:$0xff] }
0x1369   : > { %6973 = vmatpush1.bf16.msra.mxu0 %v11887_v59  ;;  %8868 = vrot.lane.b32.xlu1 %v8857_v22, %s12768_s7  ;;  %v11905_v59 = vcombine.low %v11776_v26, %v11780_v14  ;;  %v11665_v22 = vld [vmem:[%s17339_s16 + $0x810] sm:$0xff]  ;;  %v11666_v14 = vld [vmem:[%s17339_s16 + $0x818] sm:$0xff]  ;;  %v11911_v26 = vcombine.low %v11783_v29, %v11787_v15  ;;  %v14836_v29 = vsel %vm17412_vm3, %v14488_v20, %v14494_v12 }
0x136a   : > { %7014 = vmatpush1.bf16.msra.mxu1 %v11889_v48  ;;  %6974 = vmatprep.subr.bf16.mxu0 %v11896_v6  ;;  %v14808_v48 = vsel %vm8590_vm6, %v14512_v13, %v14518_v2  ;;  %v8254_v6 = vpop.permute.xlu1 %8253  ;;  %v8607_v13 = vsel %vm17263_vm7, %v14618_v58, 0  ;;  %17413 = vst [vmem:[#allocation62_spill] sm:$0xff] %v14836_v29  ;;  %v11673_v15 = vld [vmem:[%s17339_s16 + $0x850] sm:$0xff]  ;;  %v11694_v58 = vld [vmem:[%s17339_s16 + $0x8f8] sm:$0xff] }
0x136b   : > { %7015 = vmatprep.subr.bf16.mxu1 %v11898_v1  ;;  %17409 = vst [vmem:[#allocation60_spill] sm:$0xff] %v14808_v48  ;;  %v11914_v1 = vcombine.high %v11784_v51, %v11788_v40  ;;  %vm17195_vm10 = vcmp.ne.s16.totalorder %v14808_v48, 0 }
0x136c   : > { %8635 = vrot.lane.b32.xlu0 %v8622_v23, %s17310_s26 }
0x136d   : > { %6975 = vmatpush1.bf16.msra.mxu0 %v11895_v57  ;;  %8633 = vrot.lane.b32.xlu1 %v8621_v54, %s17310_s26  ;;  %v14827_v57 = vsel %vm8259_vm11, %v8252_v30, %v8254_v6  ;;  %v14839_v30 = vpop.permute.xlu0 %8255  ;;  %v11677_v54 = vld [vmem:[%s17339_s16 + $0x870] sm:$0xff] }
0x136e   : > { %7016 = vmatpush1.bf16.msra.mxu1 %v11897_v46  ;;  %6976 = vmatprep.subr.bf16.mxu0 %v11904_v9  ;;  %v11913_v46 = vcombine.low %v11784_v51, %v11788_v40  ;;  %v11796_v9 = vcombine.high %v11665_v22, %v11669_v7  ;;  %v14846_v51 = vsel %vm17414_vm13, %v14486_v0, %v14488_v20  ;;  %v8609_v40 = vsel %vm17195_vm10, %v14632_v18, 0  ;;  %v11690_v18 = vld [vmem:[%s17339_s16 + $0x8d8] sm:$0xff] }
0x136f   : > { %7017 = vmatprep.subr.bf16.mxu1 %v11906_v47  ;;  %v11798_v47 = vcombine.high %v11666_v14, %v11670_v37  ;;  %17415 = vst [vmem:[#allocation63_spill] sm:$0xff] %v14846_v51  ;;  %v8623_v23 = vrot.slane %v14827_v57, 6  ;;  %v14859_v0 = vrot.slane %v14046_v49, 4  ;;  %v11797_v20 = vcombine.low %v11666_v14, %v11670_v37  ;;  %v11682_v37 = vld [vmem:[%s17339_s16 + $0x898] sm:$0xff] }
0x1370   : > { %8902 = vrot.lane.b32.xlu0 %v8608_v10, %s12769_s10  ;;  %vm17135_vm13 = vcmp.ne.s16.totalorder %v14836_v29, 0  ;;  %vm17137_vm3 = vcmp.ne.s16.totalorder %v14846_v51, 0 }
0x1371   : > { %6977 = vmatpush1.bf16.msra.mxu0 %v11903_v28  ;;  %8900 = vrot.lane.b32.xlu1 %v8607_v13, %s12769_s10  ;;  %v11795_v28 = vcombine.low %v11665_v22, %v11669_v7  ;;  %v14864_v13 = vsel %vm8259_vm11, %v8254_v6, %v14839_v30  ;;  %v11804_v22 = vcombine.high %v11673_v15, %v11677_v54  ;;  %v11681_v7 = vld [vmem:[%s17339_s16 + $0x890] sm:$0xff] }
0x1372   : > { %7018 = vmatpush1.bf16.msra.mxu1 %v11905_v59  ;;  %6978 = vmatprep.subr.bf16.mxu0 %v11912_v63  ;;  %v11674_v59 = vld [vmem:[%s17339_s16 + $0x858] sm:$0xff]  ;;  %17416 = vst [vmem:[#allocation64_spill] sm:$0xff] %v14864_v13  ;;  %v14881_v6 = vsel %vm17419_vm4, %v14494_v12, %v14496_v11 }
0x1373   : > { %7019 = vmatprep.subr.bf16.mxu1 %v11914_v1  ;;  %v11678_v63 = vld [vmem:[%s17339_s16 + $0x878] sm:$0xff]  ;;  %v8444_v1 = vsel %vm17131_vm9, %v14785_v27, 0  ;;  %vm17417_vm9 = vcmask 261120   ;;  %17420 = vst [vmem:[#allocation66_spill] sm:$0xff] %v14881_v6 }
0x1374   : > { %v14872_v10 = vsel %vm17417_vm9, %v14445_v32, %v14502_v50  ;;  %v11806_v14 = vcombine.high %v11674_v59, %v11678_v63  ;;  %8637 = vrot.lane.b32.xlu0 %v8623_v23, %s17310_s26  ;;  %v11803_v32 = vcombine.low %v11673_v15, %v11677_v54  ;;  %v11805_v12 = vcombine.low %v11674_v59, %v11678_v63  ;;  %v11689_v54 = vld [vmem:[%s17339_s16 + $0x8d0] sm:$0xff] }
0x1375   : > { %6979 = vmatpush1.bf16.msra.mxu0 %v11911_v26  ;;  %v11685_v26 = vld [vmem:[%s17339_s16 + $0x8b0] sm:$0xff]  ;;  %17418 = vst [vmem:[#allocation65_spill] sm:$0xff] %v14872_v10  ;;  %8904 = vrot.lane.b32.xlu1 %v8609_v40, %s12769_s10  ;;  %v8446_v40 = vsel %vm17135_vm13, %v14827_v57, 0  ;;  %vm17151_vm4 = vcmp.ne.s16.totalorder %v14872_v10, 0  ;;  %vm17139_vm9 = vcmp.ne.s16.totalorder %v14881_v6, 0  ;;  %vm17421_vm13 = vcmask 261120  }
0x1376   : > { %7020 = vmatpush1.bf16.msra.mxu1 %v11913_v46  ;;  %7030 = vmatprep.subr.bf16.mxu0 %v11796_v9  ;;  %v11686_v46 = vld [vmem:[%s17339_s16 + $0x8b8] sm:$0xff]  ;;  %v8665_v9 = vrot.slane %v8444_v1, 4  ;;  %v11812_v23 = vcombine.high %v11681_v7, %v11685_v26  ;;  %v11693_v1 = vld [vmem:[%s17339_s16 + $0x8f0] sm:$0xff]  ;;  %v14903_v59 = vsel %vm17421_vm13, %v14502_v50, %v14504_v38  ;;  %vm17423_vm8 = vmmov %vm17421_vm13  ;;  %v8485_v50 = vsel %vm17151_vm4, %v14785_v27, 0 }
0x1377   : > { %7071 = vmatprep.subr.bf16.mxu1 %v11798_v47  ;;  %v8624_v47 = vrot.slane %v14864_v13, 6  ;;  %v11814_v15 = vcombine.high %v11682_v37, %v11686_v46  ;;  %17422 = vst [vmem:[#allocation67_spill] sm:$0xff] %v14903_v59  ;;  %v14908_v63 = vsel %vm17423_vm8, %v14504_v38, %v14520_v33  ;;  %v11820_v38 = vcombine.high %v11689_v54, %v11693_v1 }
0x1378   : > { %6981 = vmatmul.mubr.bf16.vlgmr.msra.gmra.mrb[92].mxu0 %v14859_v0  ;;  %17424 = vst [vmem:[#allocation68_spill] sm:$0xff] %v14908_v63  ;;  %8677 = vrot.lane.b32.xlu0 %v8665_v9, %s17309_s1  ;;  %v8447_v9 = vsel %vm17139_vm9, %v14864_v13, 0  ;;  %vm17148_vm8 = vcmp.ne.s16.totalorder %v14903_v59, 0  ;;  %vm17141_vm13 = vcmp.ne.s16.totalorder %v14908_v63, 0  ;;  %vm17427_vm9 = vcmask 277504  }
0x1379   : > { %7022 = vmatmul.mubr.bf16.vlgmr.msra.gmra.mrb[64].mxu1 %v14859_v0  ;;  %7031 = vmatpush1.bf16.msra.mxu0 %v11795_v28  ;;  %v8445_v28 = vsel %vm17137_vm3, %v14789_v21, 0  ;;  %vm17425_vm3 = vcmask 261120  }
0x137a   : > { %7062 = vmatprep.mubr.bf16.mxu0 %v14583_v45  ;;  %7072 = vmatpush1.bf16.msra.mxu1 %v11797_v20  ;;  %v11811_v20 = vcombine.low %v11681_v7, %v11685_v26  ;;  %v11701_v7 = vld [vmem:[%s17339_s16 + $0x930] sm:$0xff]  ;;  %v11698_v26 = vld [vmem:[%s17339_s16 + $0x918] sm:$0xff] }
0x137b   : > { %7103 = vmatprep.mubr.bf16.mxu1 %v14583_v45  ;;  %7032 = vmatprep.subr.bf16.mxu0 %v11804_v22  ;;  %v8667_v45 = vrot.slane %v8446_v40, 4  ;;  %v8666_v22 = vrot.slane %v8445_v28, 4  ;;  %v11697_v40 = vld [vmem:[%s17339_s16 + $0x910] sm:$0xff]  ;;  %v11821_v28 = vcombine.low %v11690_v18, %v11694_v58 }
0x137c   : > { %7073 = vmatprep.subr.bf16.mxu1 %v11806_v14  ;;  %8639 = vrot.lane.b32.xlu1 %v8624_v47, %s17310_s26  ;;  %v11813_v14 = vcombine.low %v11682_v37, %v11686_v46  ;;  %v11702_v47 = vld [vmem:[%s17339_s16 + $0x938] sm:$0xff]  ;;  %v14927_v37 = vsel %vm17425_vm3, %v14520_v33, %v14526_v36  ;;  %v8709_v46 = vrot.slane %v8485_v50, 2  ;;  %v8486_v33 = vsel %vm17148_vm8, %v14789_v21, 0  ;;  %v11713_v36 = vld [vmem:[%s17339_s16 + $0x990] sm:$0xff] }
0x137d   : > { %7033 = vmatpush1.bf16.msra.mxu0 %v11803_v32  ;;  %v11822_v32 = vcombine.high %v11690_v18, %v11694_v58  ;;  %17426 = vst [vmem:[#allocation69_spill] sm:$0xff] %v14927_v37  ;;  %8681 = vrot.lane.b32.xlu0 %v8667_v45, %s17309_s1  ;;  %v8487_v45 = vsel %vm17141_vm13, %v14827_v57, 0  ;;  %v11830_v50 = vcombine.high %v11698_v26, %v11702_v47  ;;  %vm17142_vm3 = vcmp.ne.s16.totalorder %v14927_v37, 0 }
0x137e   : > { %7074 = vmatpush1.bf16.msra.mxu1 %v11805_v12  ;;  %7034 = vmatprep.subr.bf16.mxu0 %v11812_v23  ;;  %v11819_v12 = vcombine.low %v11689_v54, %v11693_v1  ;;  %v8668_v23 = vrot.slane %v8447_v9, 4  ;;  %v11706_v54 = vld [vmem:[%s17339_s16 + $0x958] sm:$0xff]  ;;  %v14945_v58 = vsel %vm17427_vm9, %v14470_v43, %v14528_v8  ;;  %v8711_v18 = vrot.slane %v8487_v45, 2 }
0x137f   : > { %7075 = vmatprep.subr.bf16.mxu1 %v11814_v15  ;;  %v11828_v15 = vcombine.high %v11697_v40, %v11701_v7  ;;  %v11710_v1 = vld [vmem:[%s17339_s16 + $0x978] sm:$0xff]  ;;  %17428 = vst [vmem:[#allocation70_spill] sm:$0xff] %v14945_v58  ;;  %vm17149_vm9 = vcmp.ne.s16.totalorder %v14945_v58, 0  ;;  %vm17429_vm13 = vcmask 277504   ;;  %vm17433_vm8 = vcmask 277504  }
0x1380   : > { %8679 = vrot.lane.b32.xlu1 %v8666_v22, %s17309_s1  ;;  %v11827_v22 = vcombine.low %v11697_v40, %v11701_v7  ;;  %v11838_v43 = vcombine.high %v11706_v54, %v11710_v1  ;;  %v11714_v45 = vld [vmem:[%s17339_s16 + $0x998] sm:$0xff]  ;;  %v14960_v40 = vsel %vm17429_vm13, %v14528_v8, %v14534_v25 }
0x1381   : > { %7035 = vmatpush1.bf16.msra.mxu0 %v11811_v20  ;;  %v11705_v20 = vld [vmem:[%s17339_s16 + $0x950] sm:$0xff]  ;;  %8721 = vrot.lane.b32.xlu0 %v8709_v46, %s17311_s3  ;;  %17430 = vst [vmem:[#allocation71_spill] sm:$0xff] %v14960_v40  ;;  %vm17150_vm13 = vcmp.ne.s16.totalorder %v14960_v40, 0 }
0x1382   : > { %7076 = vmatpush1.bf16.msra.mxu1 %v11813_v14  ;;  %7036 = vmatprep.subr.bf16.mxu0 %v11820_v38  ;;  %v8710_v14 = vrot.slane %v8486_v33, 2  ;;  %v11829_v38 = vcombine.low %v11698_v26, %v11702_v47  ;;  %v11836_v9 = vcombine.high %v11705_v20, %v11709_v16  ;;  %v11717_v46 = vld [vmem:[%s17339_s16 + $0x9b0] sm:$0xff]  ;;  %v11835_v7 = vcombine.low %v11705_v20, %v11709_v16 }
0x1383   : > { %7077 = vmatprep.subr.bf16.mxu1 %v11822_v32  ;;  %v8488_v32 = vsel %vm17142_vm3, %v14864_v13, 0  ;;  %v11837_v47 = vcombine.low %v11706_v54, %v11710_v1  ;;  %v11721_v16 = vld [vmem:[%s17339_s16 + $0x9d0] sm:$0xff]  ;;  %v11722_v54 = vld [vmem:[%s17339_s16 + $0x9d8] sm:$0xff]  ;;  %vm17431_vm3 = vcmask 277504   ;;  %v8527_v6 = vsel %vm17150_vm13, %v14789_v21, 0 }
0x1384   : > { %8683 = vrot.lane.b32.xlu1 %v8668_v23, %s17309_s1  ;;  %v8712_v26 = vrot.slane %v8488_v32, 2  ;;  %v11844_v23 = vcombine.high %v11713_v36, %v11717_v46  ;;  %v11726_v1 = vld [vmem:[%s17339_s16 + $0x9f8] sm:$0xff]  ;;  %v11843_v32 = vcombine.low %v11713_v36, %v11717_v46  ;;  %vm17437_vm13 = vcmask 523264  }
0x1385   : > { %7037 = vmatpush1.bf16.msra.mxu0 %v11819_v12  ;;  %v11718_v12 = vld [vmem:[%s17339_s16 + $0x9b8] sm:$0xff]  ;;  %8725 = vrot.lane.b32.xlu0 %v8711_v18, %s17311_s3  ;;  %vm17439_vm4 = vmmov %vm17437_vm13 }
0x1386   : > { %7078 = vmatpush1.bf16.msra.mxu1 %v11821_v28  ;;  %7038 = vmatprep.subr.bf16.mxu0 %v11828_v15  ;;  %v8526_v28 = vsel %vm17149_vm9, %v14785_v27, 0  ;;  %v11846_v33 = vcombine.high %v11714_v45, %v11718_v12  ;;  %v11734_v36 = vld [vmem:[%s17339_s16 + $0xa38] sm:$0xff]  ;;  %vm17435_vm9 = vcmask 523264  }
0x1387   : > { %7079 = vmatprep.subr.bf16.mxu1 %v11830_v50  ;;  %v11725_v50 = vld [vmem:[%s17339_s16 + $0x9f0] sm:$0xff]  ;;  %v15004_v46 = vsel %vm17435_vm9, %v14480_v5, %v14548_v39 }
0x1388   : > { %8723 = vrot.lane.b32.xlu1 %v8710_v14, %s17311_s3  ;;  %v8779_v14 = vrot.slane %v8526_v28, 6  ;;  %v11852_v11 = vcombine.high %v11721_v16, %v11725_v50  ;;  %v11854_v28 = vcombine.high %v11722_v54, %v11726_v1  ;;  %17436 = vst [vmem:[#allocation74_spill] sm:$0xff] %v15004_v46  ;;  %vm17200_vm9 = vcmp.ne.s16.totalorder %v15004_v46, 0 }
0x1389   : > { %7039 = vmatpush1.bf16.msra.mxu0 %v11827_v22  ;;  %v14983_v22 = vsel %vm17431_vm3, %v14534_v25, %v14536_v53  ;;  %8747 = vrot.lane.b32.xlu0 %v14785_v27, %s17312_s5  ;;  %v11845_v25 = vcombine.low %v11714_v45, %v11718_v12  ;;  %v11851_v45 = vcombine.low %v11721_v16, %v11725_v50  ;;  %v8780_v12 = vrot.slane %v8527_v6, 6  ;;  %v11738_v16 = vld [vmem:[%s17339_s16 + $0xa58] sm:$0xff] }
0x138a   : > { %7080 = vmatpush1.bf16.msra.mxu1 %v11829_v38  ;;  %7040 = vmatprep.subr.bf16.mxu0 %v11836_v9  ;;  %17432 = vst [vmem:[#allocation72_spill] sm:$0xff] %v14983_v22  ;;  %vm17152_vm3 = vcmp.ne.s16.totalorder %v14983_v22, 0  ;;  %v11742_v50 = vld [vmem:[%s17339_s16 + $0xa78] sm:$0xff]  ;;  %v15026_v6 = vsel %vm17439_vm4, %v14550_v24, %v14558_v62 }
0x138b   : > { %v14967_v8 = vpop.f32.mrb[80].mxu0  ;;  %v14969_v15 = vpop.f32.mrb[52].mxu1  ;;  %7081 = vmatprep.subr.bf16.mxu1 %v11838_v43  ;;  %17440 = vst [vmem:[#allocation76_spill] sm:$0xff] %v15026_v6 }
0x138c   : > { %v14974_v20 = vpop.f32.mrb[81].mxu0  ;;  %v14976_v18 = vpop.f32.mrb[53].mxu1  ;;  %8727 = vrot.lane.b32.xlu1 %v8712_v26, %s17311_s3 }
0x138d   : > { %v5327_v38 = vpop.f32.mrb[82].mxu0  ;;  %v5368_v9 = vpop.f32.mrb[54].mxu1  ;;  %7041 = vmatpush1.bf16.msra.mxu0 %v11835_v7  ;;  %v11730_v7 = vld [vmem:[%s17339_s16 + $0xa18] sm:$0xff]  ;;  %8791 = vrot.lane.b32.xlu0 %v8779_v14, %s17329_s9 }
0x138e   : > { %7082 = vmatpush1.bf16.msra.mxu1 %v11837_v47  ;;  %v5328_v43 = vpop.f32.mrb[83].mxu0  ;;  %v5369_v37 = vpop.f32.mrb[55].mxu1  ;;  %7042 = vmatprep.subr.bf16.mxu0 %v11844_v23  ;;  %v11729_v38 = vld [vmem:[%s17339_s16 + $0xa10] sm:$0xff]  ;;  %v8528_v47 = vsel %vm17152_vm3, %v14827_v57, 0  ;;  %v11862_v5 = vcombine.high %v11730_v7, %v11734_v36  ;;  %vm17441_vm3 = vcmask 523264  }
0x138f   : > { %7083 = vmatprep.subr.bf16.mxu1 %v11846_v33  ;;  %v11733_v9 = vld [vmem:[%s17339_s16 + $0xa30] sm:$0xff]  ;;  %v14999_v37 = vsel %vm17433_vm8, %v14536_v53, %v14542_v17  ;;  %v11853_v53 = vcombine.low %v11722_v54, %v11726_v1  ;;  %v8781_v54 = vrot.slane %v8528_v47, 6  ;;  %v11870_v43 = vcombine.high %v11738_v16, %v11742_v50 }
0x1390   : > { %17434 = vst [vmem:[#allocation73_spill] sm:$0xff] %v14999_v37  ;;  %8749 = vrot.lane.b32.xlu1 %v14789_v21, %s17312_s5  ;;  %v11860_v26 = vcombine.high %v11729_v38, %v11733_v9  ;;  %vm17156_vm8 = vcmp.ne.s16.totalorder %v14999_v37, 0  ;;  %v11737_v23 = vld [vmem:[%s17339_s16 + $0xa50] sm:$0xff]  ;;  %v11859_v1 = vcombine.low %v11729_v38, %v11733_v9  ;;  %v11746_v38 = vld [vmem:[%s17339_s16 + $0xa98] sm:$0xff] }
0x1391   : > { %7043 = vmatpush1.bf16.msra.mxu0 %v11843_v32  ;;  %v11741_v33 = vld [vmem:[%s17339_s16 + $0xa70] sm:$0xff]  ;;  %8751 = vrot.lane.b32.xlu0 %v14827_v57, %s17312_s5  ;;  %v8529_v32 = vsel %vm17156_vm8, %v14864_v13, 0  ;;  %v11750_v9 = vld [vmem:[%s17339_s16 + $0xab8] sm:$0xff] }
0x1392   : > { %7084 = vmatpush1.bf16.msra.mxu1 %v11845_v25  ;;  %7044 = vmatprep.subr.bf16.mxu0 %v11852_v11  ;;  %v15021_v11 = vsel %vm17437_vm13, %v14548_v39, %v14550_v24  ;;  %v11861_v39 = vcombine.low %v11730_v7, %v11734_v36  ;;  %v11868_v14 = vcombine.high %v11737_v23, %v11741_v33  ;;  %v8568_v24 = vsel %vm17200_vm9, %v14785_v27, 0  ;;  %v11745_v25 = vld [vmem:[%s17339_s16 + $0xa90] sm:$0xff] }
0x1393   : > { %7085 = vmatprep.subr.bf16.mxu1 %v11854_v28  ;;  %17438 = vst [vmem:[#allocation75_spill] sm:$0xff] %v15021_v11  ;;  %vm17205_vm4 = vcmp.ne.s16.totalorder %v15021_v11, 0  ;;  %v11749_v28 = vld [vmem:[%s17339_s16 + $0xab0] sm:$0xff]  ;;  %vm17213_vm13 = vcmp.ne.s16.totalorder %v15026_v6, 0  ;;  %v15046_v7 = vsel %vm17441_vm3, %v14558_v62, %v14556_v35  ;;  %v8823_v36 = vrot.slane %v8568_v24, 4 }
0x1394   : > { %8793 = vrot.lane.b32.xlu1 %v8780_v12, %s17329_s9  ;;  %17442 = vst [vmem:[#allocation77_spill] sm:$0xff] %v15046_v7  ;;  %v8782_v12 = vrot.slane %v8529_v32, 6  ;;  %v8570_v62 = vsel %vm17213_vm13, %v14827_v57, 0  ;;  %v8569_v47 = vsel %vm17205_vm4, %v14789_v21, 0  ;;  %vm17155_vm3 = vcmp.ne.s16.totalorder %v15046_v7, 0  ;;  %v11761_v35 = vld [vmem:[%s17339_s16 + $0xb10] sm:$0xff] }
0x1395   : > { %7045 = vmatpush1.bf16.msra.mxu0 %v11851_v45  ;;  %8795 = vrot.lane.b32.xlu0 %v8781_v54, %s17329_s9  ;;  %v11867_v45 = vcombine.low %v11737_v23, %v11741_v33  ;;  %v11753_v23 = vld [vmem:[%s17339_s16 + $0xad0] sm:$0xff]  ;;  %v11754_v54 = vld [vmem:[%s17339_s16 + $0xad8] sm:$0xff]  ;;  %v8571_v32 = vsel %vm17155_vm3, %v14864_v13, 0 }
0x1396   : > { %7086 = vmatpush1.bf16.msra.mxu1 %v11853_v53  ;;  %7046 = vmatprep.subr.bf16.mxu0 %v11860_v26  ;;  %v11869_v53 = vcombine.low %v11738_v16, %v11742_v50  ;;  %v11876_v26 = vcombine.high %v11745_v25, %v11749_v28  ;;  %v11757_v33 = vld [vmem:[%s17339_s16 + $0xaf0] sm:$0xff]  ;;  %v8825_v16 = vrot.slane %v8570_v62, 4  ;;  %v11875_v50 = vcombine.low %v11745_v25, %v11749_v28 }
0x1397   : > { %7087 = vmatprep.subr.bf16.mxu1 %v11862_v5  ;;  %v11878_v5 = vcombine.high %v11746_v38, %v11750_v9  ;;  %v11884_v24 = vcombine.high %v11753_v23, %v11757_v33  ;;  %v11765_v17 = vld [vmem:[%s17339_s16 + $0xb30] sm:$0xff]  ;;  %v8858_v25 = vrot.slane %v14785_v27, 2  ;;  %v11883_v28 = vcombine.low %v11753_v23, %v11757_v33 }
0x1398   : > { %8753 = vrot.lane.b32.xlu1 %v14864_v13, %s17312_s5  ;;  %v11769_v62 = vld [vmem:[%s17339_s16 + $0xb50] sm:$0xff]  ;;  %v8860_v23 = vrot.slane %v14827_v57, 2  ;;  %v11891_v33 = vcombine.low %v11761_v35, %v11765_v17 }
0x1399   : > { %7047 = vmatpush1.bf16.msra.mxu0 %v11859_v1  ;;  %v11758_v1 = vld [vmem:[%s17339_s16 + $0xaf8] sm:$0xff]  ;;  %8835 = vrot.lane.b32.xlu0 %v8823_v36, %s12764_s8  ;;  %v17522_v11 = vld [vmem:[#allocation66_spill] sm:$0xff] }
0x139a   : > { %7088 = vmatpush1.bf16.msra.mxu1 %v11861_v39  ;;  %7048 = vmatprep.subr.bf16.mxu0 %v11868_v14  ;;  %v8824_v39 = vrot.slane %v8569_v47, 4  ;;  %v11877_v14 = vcombine.low %v11746_v38, %v11750_v9  ;;  %v11762_v36 = vld [vmem:[%s17339_s16 + $0xb18] sm:$0xff]  ;;  %v8826_v38 = vrot.slane %v8571_v32, 4  ;;  %v11885_v9 = vcombine.low %v11754_v54, %v11758_v1  ;;  %v11773_v47 = vld [vmem:[%s17339_s16 + $0xb70] sm:$0xff] }
0x139b   : > { %7089 = vmatprep.subr.bf16.mxu1 %v11870_v43  ;;  %v11886_v43 = vcombine.high %v11754_v54, %v11758_v1  ;;  %v11900_v1 = vcombine.high %v11769_v62, %v11773_v47  ;;  %v15093_v32 = vsel %vm8590_vm6, %v14564_v34, %v14577_v52 }
0x139c   : > { %8797 = vrot.lane.b32.xlu1 %v8782_v12, %s17329_s9  ;;  %v11892_v12 = vcombine.high %v11761_v35, %v11765_v17  ;;  %17444 = vst [vmem:[#allocation79_spill] sm:$0xff] %v15093_v32  ;;  %v11778_v17 = vld [vmem:[%s17339_s16 + $0xb98] sm:$0xff]  ;;  %vm17201_vm8 = vcmp.ne.s16.totalorder %v15093_v32, 0  ;;  %v17525_v32 = vld [vmem:[#allocation33_spill] sm:$0xff] }
0x139d   : > { %7049 = vmatpush1.bf16.msra.mxu0 %v11867_v45  ;;  %v11766_v45 = vld [vmem:[%s17339_s16 + $0xb38] sm:$0xff]  ;;  %8839 = vrot.lane.b32.xlu0 %v8825_v16, %s12764_s8 }
0x139e   : > { %7090 = vmatpush1.bf16.msra.mxu1 %v11869_v53  ;;  %7050 = vmatprep.subr.bf16.mxu0 %v11876_v26  ;;  %v15077_v53 = vsel %vm8590_vm6, %v14518_v2, %v14564_v34  ;;  %v11894_v26 = vcombine.high %v11762_v36, %v11766_v45  ;;  %v11774_v16 = vld [vmem:[%s17339_s16 + $0xb78] sm:$0xff]  ;;  %v8859_v2 = vrot.slane %v14789_v21, 2  ;;  %v11893_v54 = vcombine.low %v11762_v36, %v11766_v45 }
0x139f   : > { %7091 = vmatprep.subr.bf16.mxu1 %v11878_v5  ;;  %17443 = vst [vmem:[#allocation78_spill] sm:$0xff] %v15077_v53  ;;  %v11770_v5 = vld [vmem:[%s17339_s16 + $0xb58] sm:$0xff]  ;;  %vm17192_vm3 = vcmp.ne.s16.totalorder %v15077_v53, 0  ;;  %v8861_v45 = vrot.slane %v14864_v13, 2 }
0x13a0   : > { %8837 = vrot.lane.b32.xlu1 %v8824_v39, %s12764_s8  ;;  %v11902_v39 = vcombine.high %v11770_v5, %v11774_v16  ;;  %v11782_v35 = vld [vmem:[%s17339_s16 + $0xbb8] sm:$0xff]  ;;  %v8610_v34 = vsel %vm17192_vm3, %v14785_v27, 0 }
0x13a1   : > { %7051 = vmatpush1.bf16.msra.mxu0 %v11875_v50  ;;  %8870 = vrot.lane.b32.xlu0 %v8858_v25, %s12768_s7  ;;  %v11901_v25 = vcombine.low %v11770_v5, %v11774_v16  ;;  %v11909_v5 = vcombine.low %v11778_v17, %v11782_v35 }
0x13a2   : > { %7092 = vmatpush1.bf16.msra.mxu1 %v11877_v14  ;;  %7052 = vmatprep.subr.bf16.mxu0 %v11884_v24  ;;  %v8258_v50 = vpop.permute.xlu1 %8257  ;;  %v11777_v14 = vld [vmem:[%s17339_s16 + $0xb90] sm:$0xff] }
0x13a3   : > { %7093 = vmatprep.subr.bf16.mxu1 %v11886_v43  ;;  %v11781_v24 = vld [vmem:[%s17339_s16 + $0xbb0] sm:$0xff]  ;;  %v11899_v43 = vcombine.low %v11769_v62, %v11773_v47  ;;  %v15101_v36 = vsel %vm8259_vm11, %v14839_v30, %v8258_v50  ;;  %v11790_v30 = vld [vmem:[%s17339_s16 + $0xbf8] sm:$0xff] }
0x13a4   : > { %8841 = vrot.lane.b32.xlu1 %v8826_v38, %s12764_s8  ;;  %17445 = vst [vmem:[#allocation80_spill] sm:$0xff] %v15101_v36  ;;  %v11910_v38 = vcombine.high %v11778_v17, %v11782_v35  ;;  %v8625_v62 = vrot.slane %v15101_v36, 6  ;;  %v11907_v47 = vcombine.low %v11777_v14, %v11781_v24 }
0x13a5   : > { %7053 = vmatpush1.bf16.msra.mxu0 %v11883_v28  ;;  %8874 = vrot.lane.b32.xlu0 %v8860_v23, %s12768_s7  ;;  %v11908_v28 = vcombine.high %v11777_v14, %v11781_v24  ;;  %v15116_v23 = vsel %vm8259_vm11, %v8258_v50, 0  ;;  %v11924_v14 = vld [vmem:[%s17339_s16 + $0xc28] sm:$0xff] }
0x13a6   : > { %7094 = vmatpush1.bf16.msra.mxu1 %v11885_v9  ;;  %7054 = vmatprep.subr.bf16.mxu0 %v11892_v12  ;;  %v11785_v9 = vld [vmem:[%s17339_s16 + $0xbd0] sm:$0xff]  ;;  %v8626_v50 = vrot.slane %v15116_v23, 6 }
0x13a7   : > { %7095 = vmatprep.subr.bf16.mxu1 %v11894_v26  ;;  %v11789_v12 = vld [vmem:[%s17339_s16 + $0xbf0] sm:$0xff]  ;;  %v11786_v26 = vld [vmem:[%s17339_s16 + $0xbd8] sm:$0xff] }
0x13a8   : > { %8872 = vrot.lane.b32.xlu1 %v8859_v2, %s12768_s7  ;;  %v11916_v16 = vcombine.high %v11785_v9, %v11789_v12  ;;  %v11918_v2 = vcombine.high %v11786_v26, %v11790_v30  ;;  %v11915_v24 = vcombine.low %v11785_v9, %v11789_v12  ;;  %v11917_v17 = vcombine.low %v11786_v26, %v11790_v30  ;;  %v11935_v26 = vld [vmem:[%s17339_s16 + $0xc80] sm:$0xff] }
0x13a9   : > { %7055 = vmatpush1.bf16.msra.mxu0 %v11891_v33  ;;  %8906 = vrot.lane.b32.xlu0 %v8610_v34, %s12769_s10  ;;  %v8611_v33 = vsel %vm17201_vm8, %v14789_v21, 0  ;;  %v11927_v34 = vld [vmem:[%s17339_s16 + $0xc40] sm:$0xff] }
0x13aa   : > { %7096 = vmatpush1.bf16.msra.mxu1 %v11893_v54  ;;  %7056 = vmatprep.subr.bf16.mxu0 %v11900_v1  ;;  %v11919_v54 = vld [vmem:[%s17339_s16 + $0xc00] sm:$0xff] }
0x13ab   : > { %7097 = vmatprep.subr.bf16.mxu1 %v11902_v39  ;;  %v11923_v1 = vld [vmem:[%s17339_s16 + $0xc20] sm:$0xff]  ;;  %v11920_v39 = vld [vmem:[%s17339_s16 + $0xc08] sm:$0xff] }
0x13ac   : > { %8876 = vrot.lane.b32.xlu1 %v8861_v45, %s12768_s7  ;;  %v12048_v35 = vcombine.high %v11919_v54, %v11923_v1  ;;  %v11931_v45 = vld [vmem:[%s17339_s16 + $0xc60] sm:$0xff]  ;;  %v12049_v9 = vcombine.low %v11920_v39, %v11924_v14 }
0x13ad   : > { %7057 = vmatpush1.bf16.msra.mxu0 %v11899_v43  ;;  %8641 = vrot.lane.b32.xlu0 %v8625_v62, %s17310_s26  ;;  %v12050_v43 = vcombine.high %v11920_v39, %v11924_v14  ;;  %v12056_v12 = vcombine.high %v11927_v34, %v11931_v45  ;;  %v11939_v30 = vld [vmem:[%s17339_s16 + $0xca0] sm:$0xff]  ;;  %v15137_v62 = vrot.slane %v14048_v56, 6  ;;  %v11944_v14 = vld [vmem:[%s17339_s16 + $0xcc8] sm:$0xff] }
0x13ae   : > { %7098 = vmatpush1.bf16.msra.mxu1 %v11901_v25  ;;  %7058 = vmatprep.subr.bf16.mxu0 %v11908_v28  ;;  %v12047_v25 = vcombine.low %v11919_v54, %v11923_v1  ;;  %v11928_v28 = vld [vmem:[%s17339_s16 + $0xc48] sm:$0xff]  ;;  %v12064_v54 = vcombine.high %v11935_v26, %v11939_v30  ;;  %v11943_v1 = vld [vmem:[%s17339_s16 + $0xcc0] sm:$0xff] }
0x13af   : > { %7099 = vmatprep.subr.bf16.mxu1 %v11910_v38  ;;  %v11932_v38 = vld [vmem:[%s17339_s16 + $0xc68] sm:$0xff]  ;;  %v11947_v39 = vld [vmem:[%s17339_s16 + $0xce0] sm:$0xff] }
0x13b0   : > { %8908 = vrot.lane.b32.xlu1 %v8611_v33, %s12769_s10  ;;  %v12055_v33 = vcombine.low %v11927_v34, %v11931_v45  ;;  %v11955_v34 = vld [vmem:[%s17339_s16 + $0xd20] sm:$0xff]  ;;  %v11952_v45 = vld [vmem:[%s17339_s16 + $0xd08] sm:$0xff] }
0x13b1   : > { %7059 = vmatpush1.bf16.msra.mxu0 %v11907_v47  ;;  %v12058_v47 = vcombine.high %v11928_v28, %v11932_v38 }
0x13b2   : > { %7100 = vmatpush1.bf16.msra.mxu1 %v11909_v5  ;;  %7060 = vmatprep.subr.bf16.mxu0 %v11916_v16  ;;  %v11936_v5 = vld [vmem:[%s17339_s16 + $0xc88] sm:$0xff] }
0x13b3   : > { %7101 = vmatprep.subr.bf16.mxu1 %v11918_v2  ;;  %v11940_v16 = vld [vmem:[%s17339_s16 + $0xca8] sm:$0xff]  ;;  %v12057_v2 = vcombine.low %v11928_v28, %v11932_v38  ;;  %v12071_v28 = vcombine.low %v11943_v1, %v11947_v39 }
0x13b4   : > { %8643 = vrot.lane.b32.xlu1 %v8626_v50, %s17310_s26  ;;  %v12066_v56 = vcombine.high %v11936_v5, %v11940_v16  ;;  %v12065_v50 = vcombine.low %v11936_v5, %v11940_v16  ;;  %v11964_v5 = vld [vmem:[%s17339_s16 + $0xd68] sm:$0xff] }
0x13b5   : > { %7061 = vmatpush1.bf16.msra.mxu0 %v11915_v24  ;;  %v12063_v24 = vcombine.low %v11935_v26, %v11939_v30  ;;  %v11959_v26 = vld [vmem:[%s17339_s16 + $0xd40] sm:$0xff] }
0x13b6   : > { %7102 = vmatpush1.bf16.msra.mxu1 %v11917_v17  ;;  %7893 = vmatprep.subr.bf16.mxu0 %v12048_v35  ;;  %v12072_v17 = vcombine.high %v11943_v1, %v11947_v39  ;;  %v11963_v30 = vld [vmem:[%s17339_s16 + $0xd60] sm:$0xff]  ;;  %v11968_v39 = vld [vmem:[%s17339_s16 + $0xd88] sm:$0xff] }
0x13b7   : > { %7934 = vmatprep.subr.bf16.mxu1 %v12050_v43  ;;  %v11951_v43 = vld [vmem:[%s17339_s16 + $0xd00] sm:$0xff] }
0x13b8   : > { %7063 = vmatmul.mubr.bf16.vlgmr.msra.gmra.mrb[96].mxu0 %v14859_v0  ;;  %v12079_v16 = vcombine.low %v11951_v43, %v11955_v34  ;;  %v11971_v1 = vld [vmem:[%s17339_s16 + $0xda0] sm:$0xff] }
0x13b9   : > { %7104 = vmatmul.mubr.bf16.vlgmr.msra.gmra.mrb[68].mxu1 %v14859_v0  ;;  %7894 = vmatpush1.bf16.msra.mxu0 %v12047_v25  ;;  %v11948_v0 = vld [vmem:[%s17339_s16 + $0xce8] sm:$0xff] }
0x13ba   : > { %7925 = vmatprep.mubr.bf16.mxu0 %v15137_v62  ;;  %7935 = vmatpush1.bf16.msra.mxu1 %v12049_v9  ;;  %v12074_v35 = vcombine.high %v11944_v14, %v11948_v0  ;;  %v11956_v25 = vld [vmem:[%s17339_s16 + $0xd28] sm:$0xff]  ;;  %v12073_v38 = vcombine.low %v11944_v14, %v11948_v0  ;;  %v12080_v9 = vcombine.high %v11951_v43, %v11955_v34  ;;  %v11975_v43 = vld [vmem:[%s17339_s16 + $0xdc0] sm:$0xff] }
0x13bb   : > { %7966 = vmatprep.mubr.bf16.mxu1 %v15137_v62  ;;  %7895 = vmatprep.subr.bf16.mxu0 %v12056_v12  ;;  %v12082_v12 = vcombine.high %v11952_v45, %v11956_v25  ;;  %v11972_v14 = vld [vmem:[%s17339_s16 + $0xda8] sm:$0xff]  ;;  %v12087_v0 = vcombine.low %v11959_v26, %v11963_v30  ;;  %v11979_v34 = vld [vmem:[%s17339_s16 + $0xde0] sm:$0xff] }
0x13bc   : > { %7936 = vmatprep.subr.bf16.mxu1 %v12058_v47  ;;  %v11960_v47 = vld [vmem:[%s17339_s16 + $0xd48] sm:$0xff] }
0x13bd   : > { %7896 = vmatpush1.bf16.msra.mxu0 %v12055_v33  ;;  %v12081_v33 = vcombine.low %v11952_v45, %v11956_v25 }
0x13be   : > { %7937 = vmatpush1.bf16.msra.mxu1 %v12057_v2  ;;  %7897 = vmatprep.subr.bf16.mxu0 %v12064_v54  ;;  %v12088_v2 = vcombine.high %v11959_v26, %v11963_v30  ;;  %v12090_v54 = vcombine.high %v11960_v47, %v11964_v5 }
0x13bf   : > { %7938 = vmatprep.subr.bf16.mxu1 %v12066_v56  ;;  %v11967_v56 = vld [vmem:[%s17339_s16 + $0xd80] sm:$0xff] }
0x13c1   : > { %7898 = vmatpush1.bf16.msra.mxu0 %v12063_v24  ;;  %v12089_v24 = vcombine.low %v11960_v47, %v11964_v5  ;;  %v12095_v5 = vcombine.low %v11967_v56, %v11971_v1 }
0x13c2   : > { %7939 = vmatpush1.bf16.msra.mxu1 %v12065_v50  ;;  %7899 = vmatprep.subr.bf16.mxu0 %v12072_v17  ;;  %v12096_v50 = vcombine.high %v11967_v56, %v11971_v1  ;;  %v11988_v56 = vld [vmem:[%s17339_s16 + $0xe28] sm:$0xff]  ;;  %v12103_v1 = vcombine.low %v11975_v43, %v11979_v34 }
0x13c3   : > { %7940 = vmatprep.subr.bf16.mxu1 %v12074_v35  ;;  %v12098_v35 = vcombine.high %v11968_v39, %v11972_v14 }
0x13c5   : > { %7900 = vmatpush1.bf16.msra.mxu0 %v12071_v28 }
0x13c6   : > { %7941 = vmatpush1.bf16.msra.mxu1 %v12073_v38  ;;  %7901 = vmatprep.subr.bf16.mxu0 %v12080_v9  ;;  %v11976_v38 = vld [vmem:[%s17339_s16 + $0xdc8] sm:$0xff] }
0x13c7   : > { %7942 = vmatprep.subr.bf16.mxu1 %v12082_v12  ;;  %v11980_v9 = vld [vmem:[%s17339_s16 + $0xde8] sm:$0xff] }
0x13c9   : > { %7902 = vmatpush1.bf16.msra.mxu0 %v12079_v16 }
0x13ca   : > { %7943 = vmatpush1.bf16.msra.mxu1 %v12081_v33  ;;  %7903 = vmatprep.subr.bf16.mxu0 %v12088_v2 }
0x13cb   : > { %v6045_v17 = vpop.f32.mrb[84].mxu0  ;;  %7944 = vmatprep.subr.bf16.mxu1 %v12090_v54  ;;  %v12104_v54 = vcombine.high %v11975_v43, %v11979_v34 }
0x13cc   : > { %v15163_v45 = vadd.f32 %v6045_v17, %v14666_v60  ;;  %v6086_v25 = vpop.f32.mrb[56].mxu1  ;;  %v6047_v28 = vpop.f32.mrb[85].mxu0  ;;  %v17446_v60 = vld [vmem:[#allocation49_spill] sm:$0xff] }
0x13cd   : > { %v15168_v12 = vadd.f32 %v6086_v25, %v14668_v55  ;;  %v15171_v26 = vadd.f32 %v6047_v28, %v14673_v41  ;;  %v6088_v30 = vpop.f32.mrb[57].mxu1  ;;  %v6049_v47 = vpop.f32.mrb[86].mxu0  ;;  %7904 = vmatpush1.bf16.msra.mxu0 %v12087_v0  ;;  %v12097_v55 = vcombine.low %v11968_v39, %v11972_v14  ;;  %v12106_v41 = vcombine.high %v11976_v38, %v11980_v9  ;;  %v11983_v25 = vld [vmem:[%s17339_s16 + $0xe00] sm:$0xff]  ;;  %v11984_v0 = vld [vmem:[%s17339_s16 + $0xe08] sm:$0xff] }
0x13ce   : > { %v15174_v16 = vadd.f32 %v6088_v30, %v17446_v60  ;;  %v6090_v33 = vpop.f32.mrb[58].mxu1  ;;  %7945 = vmatpush1.bf16.msra.mxu1 %v12089_v24  ;;  %v6050_v2 = vpop.f32.mrb[87].mxu0  ;;  %7905 = vmatprep.subr.bf16.mxu0 %v12096_v50  ;;  %v11987_v28 = vld [vmem:[%s17339_s16 + $0xe20] sm:$0xff]  ;;  %v12105_v24 = vcombine.low %v11976_v38, %v11980_v9  ;;  %v12114_v39 = vcombine.high %v11984_v0, %v11988_v56  ;;  %v11992_v30 = vld [vmem:[%s17339_s16 + $0xe48] sm:$0xff] }
0x13cf   : > { %v6091_v17 = vpop.f32.mrb[59].mxu1  ;;  %7946 = vmatprep.subr.bf16.mxu1 %v12098_v35  ;;  %v12112_v50 = vcombine.high %v11983_v25, %v11987_v28  ;;  %v11991_v14 = vld [vmem:[%s17339_s16 + $0xe40] sm:$0xff]  ;;  %v11996_v47 = vld [vmem:[%s17339_s16 + $0xe68] sm:$0xff]  ;;  %v12111_v60 = vcombine.low %v11983_v25, %v11987_v28 }
0x13d0   : > { %v11995_v35 = vld [vmem:[%s17339_s16 + $0xe60] sm:$0xff]  ;;  %v12122_v34 = vcombine.high %v11992_v30, %v11996_v47  ;;  %v12000_v33 = vld [vmem:[%s17339_s16 + $0xe88] sm:$0xff] }
0x13d1   : > { %7906 = vmatpush1.bf16.msra.mxu0 %v12095_v5  ;;  %v12113_v5 = vcombine.low %v11984_v0, %v11988_v56  ;;  %v12120_v43 = vcombine.high %v11991_v14, %v11995_v35  ;;  %v11999_v38 = vld [vmem:[%s17339_s16 + $0xe80] sm:$0xff]  ;;  %v12004_v2 = vld [vmem:[%s17339_s16 + $0xea8] sm:$0xff] }
0x13d2   : > { %7947 = vmatpush1.bf16.msra.mxu1 %v12097_v55  ;;  %7907 = vmatprep.subr.bf16.mxu0 %v12104_v54  ;;  %v12003_v9 = vld [vmem:[%s17339_s16 + $0xea0] sm:$0xff]  ;;  %v12119_v55 = vcombine.low %v11991_v14, %v11995_v35  ;;  %v12121_v54 = vcombine.low %v11992_v30, %v11996_v47  ;;  %v12008_v0 = vld [vmem:[%s17339_s16 + $0xec8] sm:$0xff] }
0x13d3   : > { %7948 = vmatprep.subr.bf16.mxu1 %v12106_v41  ;;  %v12128_v17 = vcombine.high %v11999_v38, %v12003_v9  ;;  %v12130_v41 = vcombine.high %v12000_v33, %v12004_v2  ;;  %v12007_v25 = vld [vmem:[%s17339_s16 + $0xec0] sm:$0xff]  ;;  %v12012_v56 = vld [vmem:[%s17339_s16 + $0xee8] sm:$0xff] }
0x13d4   : > { %v12011_v28 = vld [vmem:[%s17339_s16 + $0xee0] sm:$0xff]  ;;  %v12016_v30 = vld [vmem:[%s17339_s16 + $0xf08] sm:$0xff] }
0x13d5   : > { %7908 = vmatpush1.bf16.msra.mxu0 %v12103_v1  ;;  %v12127_v1 = vcombine.low %v11999_v38, %v12003_v9  ;;  %v12015_v14 = vld [vmem:[%s17339_s16 + $0xf00] sm:$0xff]  ;;  %v12020_v47 = vld [vmem:[%s17339_s16 + $0xf28] sm:$0xff] }
0x13d6   : > { %7949 = vmatpush1.bf16.msra.mxu1 %v12105_v24  ;;  %7909 = vmatprep.subr.bf16.mxu0 %v12112_v50  ;;  %v12129_v24 = vcombine.low %v12000_v33, %v12004_v2  ;;  %v12136_v50 = vcombine.high %v12007_v25, %v12011_v28  ;;  %v12019_v35 = vld [vmem:[%s17339_s16 + $0xf20] sm:$0xff]  ;;  %v12024_v33 = vld [vmem:[%s17339_s16 + $0xf48] sm:$0xff] }
0x13d7   : > { %7950 = vmatprep.subr.bf16.mxu1 %v12114_v39  ;;  %v12138_v39 = vcombine.high %v12008_v0, %v12012_v56  ;;  %v12023_v38 = vld [vmem:[%s17339_s16 + $0xf40] sm:$0xff]  ;;  %v12028_v2 = vld [vmem:[%s17339_s16 + $0xf68] sm:$0xff] }
0x13d8   : > { %v12027_v9 = vld [vmem:[%s17339_s16 + $0xf60] sm:$0xff] }
0x13d9   : > { %7910 = vmatpush1.bf16.msra.mxu0 %v12111_v60  ;;  %v12135_v60 = vcombine.low %v12007_v25, %v12011_v28  ;;  %v12031_v25 = vld [vmem:[%s17339_s16 + $0xf80] sm:$0xff] }
0x13da   : > { %7951 = vmatpush1.bf16.msra.mxu1 %v12113_v5  ;;  %7911 = vmatprep.subr.bf16.mxu0 %v12120_v43  ;;  %v12137_v5 = vcombine.low %v12008_v0, %v12012_v56  ;;  %v12144_v43 = vcombine.high %v12015_v14, %v12019_v35  ;;  %v12035_v28 = vld [vmem:[%s17339_s16 + $0xfa0] sm:$0xff]  ;;  %v12032_v0 = vld [vmem:[%s17339_s16 + $0xf88] sm:$0xff] }
0x13db   : > { %7952 = vmatprep.subr.bf16.mxu1 %v12122_v34  ;;  %v12146_v34 = vcombine.high %v12016_v30, %v12020_v47  ;;  %v12036_v56 = vld [vmem:[%s17339_s16 + $0xfa8] sm:$0xff] }
0x13dd   : > { %7912 = vmatpush1.bf16.msra.mxu0 %v12119_v55  ;;  %v12143_v55 = vcombine.low %v12015_v14, %v12019_v35  ;;  %v12039_v14 = vld [vmem:[%s17339_s16 + $0xfc0] sm:$0xff] }
0x13de   : > { %7953 = vmatpush1.bf16.msra.mxu1 %v12121_v54  ;;  %7913 = vmatprep.subr.bf16.mxu0 %v12128_v17  ;;  %v12145_v54 = vcombine.low %v12016_v30, %v12020_v47  ;;  %v12152_v17 = vcombine.high %v12023_v38, %v12027_v9  ;;  %v12043_v35 = vld [vmem:[%s17339_s16 + $0xfe0] sm:$0xff]  ;;  %v12040_v30 = vld [vmem:[%s17339_s16 + $0xfc8] sm:$0xff] }
0x13df   : > { %7954 = vmatprep.subr.bf16.mxu1 %v12130_v41  ;;  %v12154_v41 = vcombine.high %v12024_v33, %v12028_v2  ;;  %v12044_v47 = vld [vmem:[%s17339_s16 + $0xfe8] sm:$0xff] }
0x13e1   : > { %7914 = vmatpush1.bf16.msra.mxu0 %v12127_v1  ;;  %v12151_v1 = vcombine.low %v12023_v38, %v12027_v9  ;;  %v11921_v38 = vld [vmem:[%s17339_s16 + $0xc10] sm:$0xff] }
0x13e2   : > { %7955 = vmatpush1.bf16.msra.mxu1 %v12129_v24  ;;  %7915 = vmatprep.subr.bf16.mxu0 %v12136_v50  ;;  %v12153_v24 = vcombine.low %v12024_v33, %v12028_v2  ;;  %v12160_v50 = vcombine.high %v12031_v25, %v12035_v28  ;;  %v11925_v9 = vld [vmem:[%s17339_s16 + $0xc30] sm:$0xff]  ;;  %v11922_v33 = vld [vmem:[%s17339_s16 + $0xc18] sm:$0xff] }
0x13e3   : > { %7956 = vmatprep.subr.bf16.mxu1 %v12138_v39  ;;  %v12162_v39 = vcombine.high %v12032_v0, %v12036_v56  ;;  %v11926_v2 = vld [vmem:[%s17339_s16 + $0xc38] sm:$0xff] }
0x13e5   : > { %7916 = vmatpush1.bf16.msra.mxu0 %v12135_v60  ;;  %v12159_v60 = vcombine.low %v12031_v25, %v12035_v28  ;;  %v11929_v25 = vld [vmem:[%s17339_s16 + $0xc50] sm:$0xff] }
0x13e6   : > { %7957 = vmatpush1.bf16.msra.mxu1 %v12137_v5  ;;  %7917 = vmatprep.subr.bf16.mxu0 %v12144_v43  ;;  %v12161_v5 = vcombine.low %v12032_v0, %v12036_v56  ;;  %v12168_v43 = vcombine.high %v12039_v14, %v12043_v35  ;;  %v11933_v28 = vld [vmem:[%s17339_s16 + $0xc70] sm:$0xff]  ;;  %v12051_v0 = vcombine.low %v11921_v38, %v11925_v9  ;;  %v11930_v56 = vld [vmem:[%s17339_s16 + $0xc58] sm:$0xff] }
0x13e7   : > { %7958 = vmatprep.subr.bf16.mxu1 %v12146_v34  ;;  %v12170_v34 = vcombine.high %v12040_v30, %v12044_v47 }
0x13e9   : > { %7918 = vmatpush1.bf16.msra.mxu0 %v12143_v55  ;;  %v12167_v55 = vcombine.low %v12039_v14, %v12043_v35  ;;  %v11937_v14 = vld [vmem:[%s17339_s16 + $0xc90] sm:$0xff] }
0x13ea   : > { %7959 = vmatpush1.bf16.msra.mxu1 %v12145_v54  ;;  %7919 = vmatprep.subr.bf16.mxu0 %v12152_v17  ;;  %v12169_v54 = vcombine.low %v12040_v30, %v12044_v47  ;;  %v12052_v17 = vcombine.high %v11921_v38, %v11925_v9  ;;  %v11941_v35 = vld [vmem:[%s17339_s16 + $0xcb0] sm:$0xff]  ;;  %v11938_v47 = vld [vmem:[%s17339_s16 + $0xc98] sm:$0xff] }
0x13eb   : > { %7960 = vmatprep.subr.bf16.mxu1 %v12154_v41  ;;  %v12054_v41 = vcombine.high %v11922_v33, %v11926_v2  ;;  %v11945_v38 = vld [vmem:[%s17339_s16 + $0xcd0] sm:$0xff] }
0x13ec   : > { %v11949_v9 = vld [vmem:[%s17339_s16 + $0xcf0] sm:$0xff] }
0x13ed   : > { %7920 = vmatpush1.bf16.msra.mxu0 %v12151_v1  ;;  %v11934_v1 = vld [vmem:[%s17339_s16 + $0xc78] sm:$0xff] }
0x13ee   : > { %7961 = vmatpush1.bf16.msra.mxu1 %v12153_v24  ;;  %7921 = vmatprep.subr.bf16.mxu0 %v12160_v50  ;;  %v15217_v24 = vrot.slane %v14046_v49, 6  ;;  %v12053_v50 = vcombine.low %v11922_v33, %v11926_v2  ;;  %v12062_v30 = vcombine.high %v11930_v56, %v11934_v1  ;;  %v12059_v49 = vcombine.low %v11929_v25, %v11933_v28  ;;  %v11946_v33 = vld [vmem:[%s17339_s16 + $0xcd8] sm:$0xff] }
0x13ef   : > { %7962 = vmatprep.subr.bf16.mxu1 %v12162_v39  ;;  %v12060_v39 = vcombine.high %v11929_v25, %v11933_v28  ;;  %v11950_v2 = vld [vmem:[%s17339_s16 + $0xcf8] sm:$0xff]  ;;  %v11957_v25 = vld [vmem:[%s17339_s16 + $0xd30] sm:$0xff] }
0x13f0   : > { %v11954_v28 = vld [vmem:[%s17339_s16 + $0xd18] sm:$0xff] }
0x13f1   : > { %7922 = vmatpush1.bf16.msra.mxu0 %v12159_v60  ;;  %v11942_v60 = vld [vmem:[%s17339_s16 + $0xcb8] sm:$0xff] }
0x13f2   : > { %7963 = vmatpush1.bf16.msra.mxu1 %v12161_v5  ;;  %7923 = vmatprep.subr.bf16.mxu0 %v12168_v43  ;;  %v12061_v5 = vcombine.low %v11930_v56, %v11934_v1  ;;  %v12068_v43 = vcombine.high %v11937_v14, %v11941_v35  ;;  %v12075_v56 = vcombine.low %v11945_v38, %v11949_v9 }
0x13f3   : > { %7964 = vmatprep.subr.bf16.mxu1 %v12170_v34  ;;  %v12070_v34 = vcombine.high %v11938_v47, %v11942_v60  ;;  %v12077_v1 = vcombine.low %v11946_v33, %v11950_v2 }
0x13f5   : > { %7924 = vmatpush1.bf16.msra.mxu0 %v12167_v55  ;;  %v12067_v55 = vcombine.low %v11937_v14, %v11941_v35  ;;  %v11961_v14 = vld [vmem:[%s17339_s16 + $0xd50] sm:$0xff] }
0x13f6   : > { %7965 = vmatpush1.bf16.msra.mxu1 %v12169_v54  ;;  %7975 = vmatprep.subr.bf16.mxu0 %v12052_v17  ;;  %v12069_v54 = vcombine.low %v11938_v47, %v11942_v60  ;;  %v12076_v17 = vcombine.high %v11945_v38, %v11949_v9  ;;  %v11965_v35 = vld [vmem:[%s17339_s16 + $0xd70] sm:$0xff]  ;;  %v11966_v47 = vld [vmem:[%s17339_s16 + $0xd78] sm:$0xff] }
0x13f7   : > { %8016 = vmatprep.subr.bf16.mxu1 %v12054_v41  ;;  %v11953_v41 = vld [vmem:[%s17339_s16 + $0xd10] sm:$0xff]  ;;  %v11970_v9 = vld [vmem:[%s17339_s16 + $0xd98] sm:$0xff] }
0x13f8   : > { %7926 = vmatmul.mubr.bf16.vlgmr.msra.gmra.mrb[100].mxu0 %v15217_v24  ;;  %v12083_v60 = vcombine.low %v11953_v41, %v11957_v25  ;;  %v11973_v38 = vld [vmem:[%s17339_s16 + $0xdb0] sm:$0xff] }
0x13f9   : > { %7967 = vmatmul.mubr.bf16.vlgmr.msra.gmra.mrb[72].mxu1 %v15217_v24  ;;  %7976 = vmatpush1.bf16.msra.mxu0 %v12051_v0  ;;  %v11958_v0 = vld [vmem:[%s17339_s16 + $0xd38] sm:$0xff] }
0x13fa   : > { %8007 = vmatprep.mubr.bf16.mxu0 %v15137_v62  ;;  %8017 = vmatpush1.bf16.msra.mxu1 %v12053_v50  ;;  %v12084_v50 = vcombine.high %v11953_v41, %v11957_v25  ;;  %v11977_v41 = vld [vmem:[%s17339_s16 + $0xdd0] sm:$0xff] }
0x13fb   : > { %8048 = vmatprep.mubr.bf16.mxu1 %v15137_v62  ;;  %7977 = vmatprep.subr.bf16.mxu0 %v12060_v39  ;;  %v12078_v62 = vcombine.high %v11946_v33, %v11950_v2  ;;  %v12086_v39 = vcombine.high %v11954_v28, %v11958_v0  ;;  %v11974_v33 = vld [vmem:[%s17339_s16 + $0xdb8] sm:$0xff]  ;;  %v12091_v2 = vcombine.low %v11961_v14, %v11965_v35  ;;  %v11981_v25 = vld [vmem:[%s17339_s16 + $0xdf0] sm:$0xff] }
0x13fc   : > { %8018 = vmatprep.subr.bf16.mxu1 %v12062_v30  ;;  %v11962_v30 = vld [vmem:[%s17339_s16 + $0xd58] sm:$0xff] }
0x13fd   : > { %7978 = vmatpush1.bf16.msra.mxu0 %v12059_v49  ;;  %v12085_v49 = vcombine.low %v11954_v28, %v11958_v0 }
0x13fe   : > { %8019 = vmatpush1.bf16.msra.mxu1 %v12061_v5  ;;  %7979 = vmatprep.subr.bf16.mxu0 %v12068_v43  ;;  %v12092_v5 = vcombine.high %v11961_v14, %v11965_v35  ;;  %v12094_v43 = vcombine.high %v11962_v30, %v11966_v47 }
0x13ff   : > { %8020 = vmatprep.subr.bf16.mxu1 %v12070_v34  ;;  %v11969_v34 = vld [vmem:[%s17339_s16 + $0xd90] sm:$0xff] }
0x1401   : > { %7980 = vmatpush1.bf16.msra.mxu0 %v12067_v55  ;;  %v12093_v55 = vcombine.low %v11962_v30, %v11966_v47  ;;  %v12099_v47 = vcombine.low %v11969_v34, %v11973_v38 }
0x1402   : > { %8021 = vmatpush1.bf16.msra.mxu1 %v12069_v54  ;;  %7981 = vmatprep.subr.bf16.mxu0 %v12076_v17  ;;  %v12100_v54 = vcombine.high %v11969_v34, %v11973_v38  ;;  %v11990_v34 = vld [vmem:[%s17339_s16 + $0xe38] sm:$0xff] }
0x1403   : > { %8022 = vmatprep.subr.bf16.mxu1 %v12078_v62  ;;  %v12102_v62 = vcombine.high %v11970_v9, %v11974_v33 }
0x1405   : > { %7982 = vmatpush1.bf16.msra.mxu0 %v12075_v56 }
0x1406   : > { %8023 = vmatpush1.bf16.msra.mxu1 %v12077_v1  ;;  %7983 = vmatprep.subr.bf16.mxu0 %v12084_v50  ;;  %v11978_v1 = vld [vmem:[%s17339_s16 + $0xdd8] sm:$0xff] }
0x1407   : > { %8024 = vmatprep.subr.bf16.mxu1 %v12086_v39  ;;  %v11982_v50 = vld [vmem:[%s17339_s16 + $0xdf8] sm:$0xff] }
0x1408   : > { %v12109_v38 = vcombine.low %v11978_v1, %v11982_v50 }
0x1409   : > { %7984 = vmatpush1.bf16.msra.mxu0 %v12083_v60 }
0x140a   : > { %8025 = vmatpush1.bf16.msra.mxu1 %v12085_v49  ;;  %7985 = vmatprep.subr.bf16.mxu0 %v12092_v5  ;;  %v12108_v5 = vcombine.high %v11977_v41, %v11981_v25 }
0x140b   : > { %v6127_v17 = vpop.f32.mrb[88].mxu0  ;;  %8026 = vmatprep.subr.bf16.mxu1 %v12094_v43 }
0x140c   : > { %v15246_v28 = vadd.f32 %v6127_v17, %v14967_v8  ;;  %v6168_v0 = vpop.f32.mrb[60].mxu1  ;;  %v6129_v56 = vpop.f32.mrb[89].mxu0  ;;  %v11985_v17 = vld [vmem:[%s17339_s16 + $0xe10] sm:$0xff] }
0x140d   : > { %v15251_v39 = vadd.f32 %v6168_v0, %v14969_v15  ;;  %v15254_v14 = vadd.f32 %v6129_v56, %v14974_v20  ;;  %v6170_v35 = vpop.f32.mrb[61].mxu1  ;;  %v6131_v30 = vpop.f32.mrb[90].mxu0  ;;  %7986 = vmatpush1.bf16.msra.mxu0 %v12091_v2  ;;  %v12101_v15 = vcombine.low %v11970_v9, %v11974_v33  ;;  %v12110_v20 = vcombine.high %v11978_v1, %v11982_v50  ;;  %v11989_v0 = vld [vmem:[%s17339_s16 + $0xe30] sm:$0xff]  ;;  %v11986_v2 = vld [vmem:[%s17339_s16 + $0xe18] sm:$0xff] }
0x140e   : > { %v15257_v8 = vadd.f32 %v6170_v35, %v14976_v18  ;;  %v6172_v60 = vpop.f32.mrb[62].mxu1  ;;  %8027 = vmatpush1.bf16.msra.mxu1 %v12093_v55  ;;  %v6132_v49 = vpop.f32.mrb[91].mxu0  ;;  %7987 = vmatprep.subr.bf16.mxu0 %v12100_v54  ;;  %v12107_v18 = vcombine.low %v11977_v41, %v11981_v25  ;;  %v12116_v55 = vcombine.high %v11985_v17, %v11989_v0  ;;  %v11993_v33 = vld [vmem:[%s17339_s16 + $0xe50] sm:$0xff]  ;;  %v11998_v56 = vld [vmem:[%s17339_s16 + $0xe78] sm:$0xff] }
0x140f   : > { %v6173_v43 = vpop.f32.mrb[63].mxu1  ;;  %8028 = vmatprep.subr.bf16.mxu1 %v12102_v62  ;;  %v12118_v9 = vcombine.high %v11986_v2, %v11990_v34  ;;  %v11997_v54 = vld [vmem:[%s17339_s16 + $0xe70] sm:$0xff]  ;;  %v11994_v62 = vld [vmem:[%s17339_s16 + $0xe58] sm:$0xff]  ;;  %v12115_v35 = vcombine.low %v11985_v17, %v11989_v0  ;;  %v12117_v30 = vcombine.low %v11986_v2, %v11990_v34 }
0x1410   : > { %v12124_v41 = vcombine.high %v11993_v33, %v11997_v54  ;;  %v12126_v25 = vcombine.high %v11994_v62, %v11998_v56  ;;  %v12001_v1 = vld [vmem:[%s17339_s16 + $0xe90] sm:$0xff]  ;;  %v12006_v60 = vld [vmem:[%s17339_s16 + $0xeb8] sm:$0xff]  ;;  %v12123_v49 = vcombine.low %v11993_v33, %v11997_v54 }
0x1411   : > { %7988 = vmatpush1.bf16.msra.mxu0 %v12099_v47  ;;  %v12005_v50 = vld [vmem:[%s17339_s16 + $0xeb0] sm:$0xff]  ;;  %v12002_v47 = vld [vmem:[%s17339_s16 + $0xe98] sm:$0xff] }
0x1412   : > { %8029 = vmatpush1.bf16.msra.mxu1 %v12101_v15  ;;  %7989 = vmatprep.subr.bf16.mxu0 %v12108_v5  ;;  %v12125_v15 = vcombine.low %v11994_v62, %v11998_v56  ;;  %v12132_v5 = vcombine.high %v12001_v1, %v12005_v50  ;;  %v12134_v43 = vcombine.high %v12002_v47, %v12006_v60  ;;  %v12013_v17 = vld [vmem:[%s17339_s16 + $0xef0] sm:$0xff]  ;;  %v12010_v0 = vld [vmem:[%s17339_s16 + $0xed8] sm:$0xff] }
0x1413   : > { %8030 = vmatprep.subr.bf16.mxu1 %v12110_v20  ;;  %v12009_v20 = vld [vmem:[%s17339_s16 + $0xed0] sm:$0xff]  ;;  %v12014_v2 = vld [vmem:[%s17339_s16 + $0xef8] sm:$0xff]  ;;  %v12131_v34 = vcombine.low %v12001_v1, %v12005_v50 }
0x1414   : > { %v12021_v33 = vld [vmem:[%s17339_s16 + $0xf30] sm:$0xff]  ;;  %v12018_v54 = vld [vmem:[%s17339_s16 + $0xf18] sm:$0xff]  ;;  %v12139_v56 = vcombine.low %v12009_v20, %v12013_v17 }
0x1415   : > { %7990 = vmatpush1.bf16.msra.mxu0 %v12107_v18  ;;  %v12133_v18 = vcombine.low %v12002_v47, %v12006_v60  ;;  %v12022_v62 = vld [vmem:[%s17339_s16 + $0xf38] sm:$0xff]  ;;  %v12029_v1 = vld [vmem:[%s17339_s16 + $0xf70] sm:$0xff] }
0x1416   : > { %8031 = vmatpush1.bf16.msra.mxu1 %v12109_v38  ;;  %7991 = vmatprep.subr.bf16.mxu0 %v12116_v55  ;;  %v12140_v38 = vcombine.high %v12009_v20, %v12013_v17  ;;  %v12142_v55 = vcombine.high %v12010_v0, %v12014_v2  ;;  %v12026_v50 = vld [vmem:[%s17339_s16 + $0xf58] sm:$0xff]  ;;  %v12037_v20 = vld [vmem:[%s17339_s16 + $0xfb0] sm:$0xff] }
0x1417   : > { %8032 = vmatprep.subr.bf16.mxu1 %v12118_v9  ;;  %v12017_v9 = vld [vmem:[%s17339_s16 + $0xf10] sm:$0xff]  ;;  %v12030_v47 = vld [vmem:[%s17339_s16 + $0xf78] sm:$0xff] }
0x1418   : > { %v12147_v60 = vcombine.low %v12017_v9, %v12021_v33  ;;  %v12034_v17 = vld [vmem:[%s17339_s16 + $0xf98] sm:$0xff] }
0x1419   : > { %7992 = vmatpush1.bf16.msra.mxu0 %v12115_v35  ;;  %v12141_v35 = vcombine.low %v12010_v0, %v12014_v2  ;;  %v12038_v0 = vld [vmem:[%s17339_s16 + $0xfb8] sm:$0xff] }
0x141a   : > { %8033 = vmatpush1.bf16.msra.mxu1 %v12117_v30  ;;  %7993 = vmatprep.subr.bf16.mxu0 %v12124_v41  ;;  %v12148_v30 = vcombine.high %v12017_v9, %v12021_v33  ;;  %v12150_v41 = vcombine.high %v12018_v54, %v12022_v62  ;;  %v12045_v9 = vld [vmem:[%s17339_s16 + $0xff0] sm:$0xff]  ;;  %v12042_v33 = vld [vmem:[%s17339_s16 + $0xfd8] sm:$0xff] }
0x141b   : > { %8034 = vmatprep.subr.bf16.mxu1 %v12126_v25  ;;  %v12025_v25 = vld [vmem:[%s17339_s16 + $0xf50] sm:$0xff] }
0x141c   : > { %v12155_v2 = vcombine.low %v12025_v25, %v12029_v1 }
0x141d   : > { %7994 = vmatpush1.bf16.msra.mxu0 %v12123_v49  ;;  %v12149_v49 = vcombine.low %v12018_v54, %v12022_v62  ;;  %v12046_v54 = vld [vmem:[%s17339_s16 + $0xff8] sm:$0xff] }
0x141e   : > { %8035 = vmatpush1.bf16.msra.mxu1 %v12125_v15  ;;  %7995 = vmatprep.subr.bf16.mxu0 %v12132_v5  ;;  %v12156_v15 = vcombine.high %v12025_v25, %v12029_v1  ;;  %v12158_v5 = vcombine.high %v12026_v50, %v12030_v47  ;;  %v12173_v25 = vcombine.low %v12042_v33, %v12046_v54  ;;  %v17447_v1 = vmov 0  }
0x141f   : > { %8036 = vmatprep.subr.bf16.mxu1 %v12134_v43  ;;  %v12033_v43 = vld [vmem:[%s17339_s16 + $0xf90] sm:$0xff] }
0x1420   : > { %v12163_v62 = vcombine.low %v12033_v43, %v12037_v20 }
0x1421   : > { %7996 = vmatpush1.bf16.msra.mxu0 %v12131_v34  ;;  %v12157_v34 = vcombine.low %v12026_v50, %v12030_v47 }
0x1422   : > { %8037 = vmatpush1.bf16.msra.mxu1 %v12133_v18  ;;  %7997 = vmatprep.subr.bf16.mxu0 %v12140_v38  ;;  %v12164_v18 = vcombine.high %v12033_v43, %v12037_v20  ;;  %v12166_v38 = vcombine.high %v12034_v17, %v12038_v0 }
0x1423   : > { %8038 = vmatprep.subr.bf16.mxu1 %v12142_v55  ;;  %v12041_v55 = vld [vmem:[%s17339_s16 + $0xfd0] sm:$0xff] }
0x1425   : > { %7998 = vmatpush1.bf16.msra.mxu0 %v12139_v56  ;;  %v12165_v56 = vcombine.low %v12034_v17, %v12038_v0 }
0x1426   : > { %8039 = vmatpush1.bf16.msra.mxu1 %v12141_v35  ;;  %7999 = vmatprep.subr.bf16.mxu0 %v12148_v30  ;;  %v12172_v35 = vcombine.high %v12041_v55, %v12045_v9  ;;  %v12174_v30 = vcombine.high %v12042_v33, %v12046_v54 }
0x1427   : > { %8040 = vmatprep.subr.bf16.mxu1 %v12150_v41  ;;  %v12171_v41 = vcombine.low %v12041_v55, %v12045_v9 }
0x1429   : > { %8000 = vmatpush1.bf16.msra.mxu0 %v12147_v60 }
0x142a   : > { %8041 = vmatpush1.bf16.msra.mxu1 %v12149_v49  ;;  %8001 = vmatprep.subr.bf16.mxu0 %v12156_v15 }
0x142b   : > { %8042 = vmatprep.subr.bf16.mxu1 %v12158_v5 }
0x142d   : > { %8002 = vmatpush1.bf16.msra.mxu0 %v12155_v2 }
0x142e   : > { %8043 = vmatpush1.bf16.msra.mxu1 %v12157_v34  ;;  %8003 = vmatprep.subr.bf16.mxu0 %v12164_v18 }
0x142f   : > { %8044 = vmatprep.subr.bf16.mxu1 %v12166_v38 }
0x1431   : > { %8004 = vmatpush1.bf16.msra.mxu0 %v12163_v62 }
0x1432   : > { %8045 = vmatpush1.bf16.msra.mxu1 %v12165_v56  ;;  %8005 = vmatprep.subr.bf16.mxu0 %v12172_v35  ;;  %v15311_v56 = vpop.permute.xlu0 %8629 }
0x1433   : > { %8046 = vmatprep.subr.bf16.mxu1 %v12174_v30 }
0x1435   : > { %8006 = vmatpush1.bf16.msra.mxu0 %v12171_v41 }
0x1436   : > { %8047 = vmatpush1.bf16.msra.mxu1 %v12173_v25  ;;  %v15315_v35 = vpop.permute.xlu0 %8627 }
0x1438   : > { %8008 = vmatmul.mubr.bf16.vlgmr.msra.gmra.mrb[104].mxu0 %v15217_v24 }
0x1439   : > { %8049 = vmatmul.mubr.bf16.vlgmr.msra.gmra.mrb[76].mxu1 %v15217_v24  ;;  %9651 = vmatprep.mubr.bf16.mxu0 %v17447_v1 }
0x143a   : > { %9692 = vmatprep.mubr.bf16.mxu1 %v17447_v1 }
0x144b   : > { %v6982_v50 = vpop.f32.mrb[92].mxu0 }
0x144c   : > { %v7112_v47 = vadd.f32 %v6982_v50, %v15163_v45  ;;  %v7023_v60 = vpop.f32.mrb[64].mxu1  ;;  %v6984_v49 = vpop.f32.mrb[93].mxu0 }
0x144d   : > { %v7114_v15 = vadd.f32 %v7023_v60, %v15168_v12  ;;  %v7113_v5 = vadd.f32 %v6984_v49, %v15171_v26  ;;  %v7025_v43 = vpop.f32.mrb[65].mxu1  ;;  %v6986_v20 = vpop.f32.mrb[94].mxu0 }
0x144e   : > { %v7115_v17 = vadd.f32 %v7025_v43, %v15174_v16  ;;  %v7027_v0 = vpop.f32.mrb[66].mxu1  ;;  %v6987_v2 = vpop.f32.mrb[95].mxu0 }
0x144f   : > { %v7028_v24 = vpop.f32.mrb[67].mxu1 }
0x148b   : > { %v7064_v34 = vpop.f32.mrb[96].mxu0 }
0x148c   : > { %v15300_v18 = vadd.f32 %v7064_v34, %v15246_v28  ;;  %v7105_v38 = vpop.f32.mrb[68].mxu1  ;;  %v7066_v55 = vpop.f32.mrb[97].mxu0 }
0x148d   : > { %v15303_v45 = vadd.f32 %v7105_v38, %v15251_v39  ;;  %v15306_v12 = vadd.f32 %v7066_v55, %v15254_v14  ;;  %v7107_v26 = vpop.f32.mrb[69].mxu1  ;;  %v7068_v9 = vpop.f32.mrb[98].mxu0 }
0x148e   : > { %v15309_v33 = vadd.f32 %v7107_v26, %v15257_v8  ;;  %v7109_v16 = vpop.f32.mrb[70].mxu1  ;;  %v7069_v54 = vpop.f32.mrb[99].mxu0 }
0x148f   : > { %v7110_v62 = vpop.f32.mrb[71].mxu1  ;;  %v15313_v28 = vpop.permute.xlu1 %8631 }
0x1490   : > { %v15319_v39 = vpop.permute.xlu0 %8675  ;;  %v17455_v62 = vld [vmem:[#allocation28_spill] sm:$0xff] }
0x1491   : > { %17448 = vst [vmem:[#allocation49_spill] sm:$0xff] %v15319_v39 }
0x1493   : > { %v15317_v30 = vpop.permute.xlu1 %8673 }
0x1494   : > { %v15323_v41 = vpop.permute.xlu0 %8717 }
0x1495   : > { %17449 = vst [vmem:[#allocation81_spill] sm:$0xff] %v15323_v41 }
0x1497   : > { %v15321_v14 = vpop.permute.xlu1 %8671 }
0x1498   : > { %v15327_v8 = vpop.permute.xlu0 %8715 }
0x1499   : > { %17451 = vst [vmem:[#allocation83_spill] sm:$0xff] %v15327_v8 }
0x149b   : > { %v15325_v25 = vpop.permute.xlu1 %8719 }
0x149c   : > { %17450 = vst [vmem:[#allocation82_spill] sm:$0xff] %v15325_v25  ;;  %v15331_v60 = vpop.permute.xlu0 %8745 }
0x149d   : > { %17452 = vst [vmem:[#allocation84_spill] sm:$0xff] %v15331_v60 }
0x149f   : > { %v15329_v50 = vpop.permute.xlu1 %8743 }
0x14a0   : > { %v15335_v43 = vpop.permute.xlu0 %8789 }
0x14a1   : > { %17453 = vst [vmem:[#allocation85_spill] sm:$0xff] %v15335_v43 }
0x14a3   : > { %v15333_v49 = vpop.permute.xlu1 %8787 }
0x14a4   : > { %v15339_v0 = vpop.permute.xlu0 %8785 }
0x14a7   : > { %v15337_v20 = vpop.permute.xlu1 %8741 }
0x14a8   : > { %v15345_v25 = vpop.permute.xlu0 %8833 }
0x14ab   : > { %v15341_v2 = vpop.permute.xlu1 %8831 }
0x14ac   : > { %17454 = vst [vmem:[#allocation86_spill] sm:$0xff] %v15341_v2 }
0x14cb   : > { %v7927_v24 = vpop.f32.mrb[100].mxu0 }
0x14cc   : > { %v8057_v34 = vadd.f32 %v7927_v24, %v7112_v47  ;;  %v7968_v38 = vpop.f32.mrb[72].mxu1  ;;  %v7929_v55 = vpop.f32.mrb[101].mxu0 }
0x14cd   : > { %v8059_v26 = vadd.f32 %v7968_v38, %v7114_v15  ;;  %v8058_v9 = vadd.f32 %v7929_v55, %v7113_v5  ;;  %v7970_v16 = vpop.f32.mrb[73].mxu1  ;;  %v7931_v54 = vpop.f32.mrb[102].mxu0 }
0x14ce   : > { %v8070_v21 = vadd.f32 %v17455_v62, %v8057_v34  ;;  %v8060_v27 = vadd.f32 %v7970_v16, %v7115_v17  ;;  %v7972_v8 = vpop.f32.mrb[74].mxu1  ;;  %v7932_v60 = vpop.f32.mrb[103].mxu0 }
0x14cf   : > { %v8071_v43 = vadd.f32 %v17455_v62, %v8058_v9  ;;  %v7973_v41 = vpop.f32.mrb[75].mxu1  ;;  %v8072_v2 = vadd.f32 %v17455_v62, %v8059_v26  ;;  %v15348_v47 = vpop.permute.xlu1 %8829 }
0x14d0   : > { %v8078_v39 = vpack.c.bf16 %v8070_v21, %v8070_v21  ;;  %v8073_v5 = vadd.f32 %v17455_v62, %v8060_v27  ;;  %v15353_v17 = vpop.permute.xlu0 %8866 }
0x14d1   : > { %v8079_v24 = vpack.c.bf16 %v8071_v43, %v8071_v43  ;;  %v8080_v15 = vpack.c.bf16 %v8072_v2, %v8072_v2 }
0x14d2   : > { %9065 = vrot.lane.b32.xlu0 %v8078_v39, %s12767_s11  ;;  %v8081_v8 = vpack.c.bf16 %v8073_v5, %v8073_v5 }
0x14d3   : > { %9067 = vrot.lane.b32.xlu1 %v8079_v24, %s12767_s11  ;;  %v15356_v41 = vpop.permute.xlu1 %8868 }
0x14d4   : > { %v15359_v21 = vpop.permute.xlu0 %8864 }
0x14d5   : > { %17456 = vst [vmem:[#allocation28_spill] sm:$0xff] %v15359_v21 }
0x14d6   : > { %9069 = vrot.lane.b32.xlu0 %v8080_v15, %s12767_s11 }
0x14d7   : > { %v15361_v60 = vpop.permute.xlu1 %8633 }
0x14d8   : > { %v15363_v43 = vpop.permute.xlu0 %8635 }
0x14d9   : > { %17457 = vst [vmem:[#allocation87_spill] sm:$0xff] %v15363_v43 }
0x14da   : > { %9071 = vrot.lane.b32.xlu0 %v8081_v8, %s12767_s11 }
0x14db   : > { %v15365_v39 = vpop.permute.xlu1 %8900 }
0x14dc   : > { %17458 = vst [vmem:[#allocation88_spill] sm:$0xff] %v15365_v39  ;;  %v15367_v2 = vpop.permute.xlu0 %8902 }
0x14dd   : > { %17459 = vst [vmem:[#allocation89_spill] sm:$0xff] %v15367_v2 }
0x14df   : > { %v15369_v27 = vpop.permute.xlu1 %8904 }
0x14e0   : > { %17460 = vst [vmem:[#allocation90_spill] sm:$0xff] %v15369_v27  ;;  %v15371_v34 = vpop.permute.xlu0 %8637 }
0x14e1   : > { %17461 = vst [vmem:[#allocation91_spill] sm:$0xff] %v15371_v34 }
0x14e3   : > { %v15373_v38 = vpop.permute.xlu1 %8639 }
0x14e4   : > { %17462 = vst [vmem:[#allocation92_spill] sm:$0xff] %v15373_v38  ;;  %v15375_v55 = vpop.permute.xlu0 %8677 }
0x14e5   : > { %17463 = vst [vmem:[#allocation93_spill] sm:$0xff] %v15375_v55 }
0x14e7   : > { %v15377_v26 = vpop.permute.xlu1 %8679 }
0x14e8   : > { %17464 = vst [vmem:[#allocation94_spill] sm:$0xff] %v15377_v26  ;;  %v15379_v9 = vpop.permute.xlu0 %8681 }
0x14e9   : > { %17465 = vst [vmem:[#allocation95_spill] sm:$0xff] %v15379_v9 }
0x14eb   : > { %v15381_v16 = vpop.permute.xlu1 %8683 }
0x14ec   : > { %17466 = vst [vmem:[#allocation96_spill] sm:$0xff] %v15381_v16  ;;  %v15383_v54 = vpop.permute.xlu0 %8721 }
0x14ed   : > { %17467 = vst [vmem:[#allocation97_spill] sm:$0xff] %v15383_v54 }
0x14ef   : > { %v15385_v24 = vpop.permute.xlu1 %8723 }
0x14f0   : > { %17468 = vst [vmem:[#allocation98_spill] sm:$0xff] %v15385_v24  ;;  %v15387_v15 = vpop.permute.xlu0 %8725 }
0x14f1   : > { %17469 = vst [vmem:[#allocation99_spill] sm:$0xff] %v15387_v15 }
0x14f3   : > { %v15389_v5 = vpop.permute.xlu1 %8727 }
0x14f4   : > { %17470 = vst [vmem:[#allocation100_spill] sm:$0xff] %v15389_v5  ;;  %v15391_v8 = vpop.permute.xlu0 %8747 }
0x14f5   : > { %17471 = vst [vmem:[#allocation101_spill] sm:$0xff] %v15391_v8 }
0x14f7   : > { %v15393_v27 = vpop.permute.xlu1 %8749 }
0x14f8   : > { %17472 = vst [vmem:[#allocation102_spill] sm:$0xff] %v15393_v27  ;;  %v15401_v34 = vpop.permute.xlu0 %8791 }
0x14f9   : > { %17473 = vst [vmem:[#allocation103_spill] sm:$0xff] %v15401_v34 }
0x150b   : > { %v8009_v39 = vpop.f32.mrb[104].mxu0 }
0x150c   : > { %v8061_v55 = vadd.f32 %v8009_v39, %v15300_v18  ;;  %v8050_v26 = vpop.f32.mrb[76].mxu1  ;;  %v8011_v2 = vpop.f32.mrb[105].mxu0 }
0x150d   : > { %v8063_v9 = vadd.f32 %v8050_v26, %v15303_v45  ;;  %v8062_v16 = vadd.f32 %v8011_v2, %v15306_v12  ;;  %v8052_v54 = vpop.f32.mrb[77].mxu1  ;;  %v8013_v21 = vpop.f32.mrb[106].mxu0 }
0x150e   : > { %v8074_v24 = vadd.f32 %v17455_v62, %v8061_v55  ;;  %v8064_v15 = vadd.f32 %v8052_v54, %v15309_v33  ;;  %v8054_v5 = vpop.f32.mrb[78].mxu1  ;;  %v8014_v38 = vpop.f32.mrb[107].mxu0 }
0x150f   : > { %v8075_v8 = vadd.f32 %v17455_v62, %v8062_v16  ;;  %v8055_v27 = vpop.f32.mrb[79].mxu1  ;;  %v8076_v39 = vadd.f32 %v17455_v62, %v8063_v9  ;;  %v15405_v12 = vpop.permute.xlu1 %8793 }
0x1510   : > { %v8082_v18 = vpack.c.bf16 %v8074_v24, %v8074_v24  ;;  %v8077_v45 = vadd.f32 %v17455_v62, %v8064_v15  ;;  %17474 = vst [vmem:[#allocation104_spill] sm:$0xff] %v15405_v12  ;;  %v15409_v2 = vpop.permute.xlu0 %8751 }
0x1511   : > { %v8083_v43 = vpack.c.bf16 %v8075_v8, %v8075_v8  ;;  %v8084_v33 = vpack.c.bf16 %v8076_v39, %v8076_v39  ;;  %17475 = vst [vmem:[#allocation105_spill] sm:$0xff] %v15409_v2 }
0x1512   : > { %9073 = vrot.lane.b32.xlu1 %v8082_v18, %s12767_s11  ;;  %v8085_v21 = vpack.c.bf16 %v8077_v45, %v8077_v45 }
0x1513   : > { %9075 = vrot.lane.b32.xlu0 %v8083_v43, %s12767_s11  ;;  %v15413_v27 = vpop.permute.xlu1 %8753 }
0x1514   : > { %17476 = vst [vmem:[#allocation106_spill] sm:$0xff] %v15413_v27  ;;  %v15415_v38 = vpop.permute.xlu0 %8795 }
0x1515   : > { %17477 = vst [vmem:[#allocation107_spill] sm:$0xff] %v15415_v38  ;;  %v17541_v38 = vld [vmem:[#allocation37_spill] sm:$0xff] }
0x1516   : > { %9077 = vrot.lane.b32.xlu1 %v8084_v33, %s12767_s11 }
0x1517   : > { %9079 = vrot.lane.b32.xlu0 %v8085_v21, %s12767_s11  ;;  %v15417_v55 = vpop.permute.xlu1 %8797 }
0x1518   : > { %17478 = vst [vmem:[#allocation108_spill] sm:$0xff] %v15417_v55  ;;  %v15419_v62 = vpop.permute.xlu0 %8835 }
0x1519   : > { %17479 = vst [vmem:[#allocation109_spill] sm:$0xff] %v15419_v62 }
0x151b   : > { %v15421_v26 = vpop.permute.xlu1 %8837 }
0x151c   : > { %17480 = vst [vmem:[#allocation110_spill] sm:$0xff] %v15421_v26  ;;  %v15423_v9 = vpop.permute.xlu0 %8839 }
0x151d   : > { %17481 = vst [vmem:[#allocation111_spill] sm:$0xff] %v15423_v9 }
0x151f   : > { %v15425_v43 = vpop.permute.xlu1 %8841 }
0x1520   : > { %17482 = vst [vmem:[#allocation112_spill] sm:$0xff] %v15425_v43  ;;  %v15427_v16 = vpop.permute.xlu0 %8870  ;;  %v17538_v43 = vld [vmem:[#allocation36_spill] sm:$0xff] }
0x1521   : > { %17483 = vst [vmem:[#allocation113_spill] sm:$0xff] %v15427_v16 }
0x1523   : > { %v15429_v54 = vpop.permute.xlu1 %8872 }
0x1524   : > { %17484 = vst [vmem:[#allocation114_spill] sm:$0xff] %v15429_v54  ;;  %v15431_v24 = vpop.permute.xlu0 %8874 }
0x1525   : > { %17485 = vst [vmem:[#allocation115_spill] sm:$0xff] %v15431_v24 }
0x1527   : > { %v15433_v15 = vpop.permute.xlu1 %8876 }
0x1528   : > { %17486 = vst [vmem:[#allocation116_spill] sm:$0xff] %v15433_v15  ;;  %v15435_v5 = vpop.permute.xlu0 %8906 }
0x1529   : > { %17487 = vst [vmem:[#allocation117_spill] sm:$0xff] %v15435_v5 }
0x152b   : > { %v15437_v8 = vpop.permute.xlu1 %8908 }
0x152c   : > { %17488 = vst [vmem:[#allocation118_spill] sm:$0xff] %v15437_v8  ;;  %v15439_v18 = vpop.permute.xlu0 %8641 }
0x152d   : > { %17489 = vst [vmem:[#allocation119_spill] sm:$0xff] %v15439_v18 }
0x152f   : > { %v15441_v39 = vpop.permute.xlu1 %8643 }
0x1530   : > { %17490 = vst [vmem:[#allocation120_spill] sm:$0xff] %v15441_v39 }
0x1544   : > { %v9066_v45 = vpop.permute.xlu0 %9065 }
0x1545   : > { %v15444_v33 = vsel %vm8259_vm11, 0, %v9066_v45  ;;  %v9068_v21 = vpop.permute.xlu1 %9067 }
0x1546   : > { %9279 = vrot.lane.b32.xlu1 %v15444_v33, %s17312_s5  ;;  %v15449_v54 = vsel %vm8259_vm11, %v9066_v45, %v9068_v21  ;;  %v9145_v45 = vsel %vm17263_vm7, %v15444_v33, 0  ;;  %v9393_v44 = vrot.slane %v15444_v33, 2  ;;  %v9118_v3 = vsel %vm17220_vm14, %v15444_v33, 0 }
0x1547   : > { %v9146_v48 = vsel %vm17229_vm0, %v15449_v54, 0 }
0x1548   : > { %v9070_v16 = vpop.permute.xlu0 %9069 }
0x1549   : > { %v15452_v5 = vsel %vm8259_vm11, %v9068_v21, %v9070_v16  ;;  %v9156_v21 = vrot.slane %v15444_v33, 6 }
0x154a   : > { %9281 = vrot.lane.b32.xlu1 %v15449_v54, %s17312_s5  ;;  %9283 = vrot.lane.b32.xlu0 %v15452_v5, %s17312_s5  ;;  %v9147_v8 = vsel %vm17195_vm10, %v15452_v5, 0 }
0x154c   : > { %v15458_v18 = vpop.permute.xlu0 %9071 }
0x154d   : > { %v15462_v39 = vsel %vm8259_vm11, %v9070_v16, %v15458_v18  ;;  %v9158_v16 = vrot.slane %v15452_v5, 6 }
0x154e   : > { %9437 = vrot.lane.b32.xlu1 %v9145_v45, %s12769_s10  ;;  %9285 = vrot.lane.b32.xlu0 %v15462_v39, %s17312_s5  ;;  %v9109_v45 = vsel %vm17260_vm2, %v15444_v33, 0 }
0x154f   : > { %v9200_v24 = vrot.slane %v9109_v45, 4  ;;  %v9157_v45 = vrot.slane %v15449_v54, 6 }
0x1552   : > { %9441 = vrot.lane.b32.xlu1 %v9147_v8, %s12769_s10  ;;  %9165 = vrot.lane.b32.xlu0 %v9156_v21, %s17310_s26  ;;  %v9136_v8 = vsel %vm17225_vm1, %v15444_v33, 0 }
0x1553   : > { %v9358_v21 = vrot.slane %v9136_v8, 4  ;;  %v9394_v8 = vrot.slane %v15449_v54, 2 }
0x1556   : > { %9169 = vrot.lane.b32.xlu1 %v9158_v16, %s17310_s26  ;;  %9402 = vrot.lane.b32.xlu0 %v9393_v44, %s12768_s7  ;;  %v9148_v16 = vsel %vm17192_vm3, %v15462_v39, 0  ;;  %v9395_v44 = vrot.slane %v15452_v5, 2  ;;  %vm17494_vm3 = vcmp.ne.s16.totalorder %v14689_v42, 0 }
0x1557   : > { %v9128_v31 = vsel %vm17494_vm3, %v15449_v54, 0 }
0x155a   : > { %9209 = vrot.lane.b32.xlu1 %v9200_v24, %s17309_s1  ;;  %9439 = vrot.lane.b32.xlu0 %v9146_v48, %s12769_s10  ;;  %v9159_v48 = vrot.slane %v15462_v39, 6  ;;  %v9244_v24 = vrot.slane %v9118_v3, 2 }
0x155e   : > { %9367 = vrot.lane.b32.xlu1 %v9358_v21, %s12764_s8  ;;  %9443 = vrot.lane.b32.xlu0 %v9148_v16, %s12769_s10  ;;  %v9110_v21 = vsel %vm17219_vm12, %v15449_v54, 0  ;;  %v9127_v16 = vsel %vm17216_vm15, %v15444_v33, 0 }
0x155f   : > { %v9201_v53 = vrot.slane %v9110_v21, 4  ;;  %v9314_v19 = vrot.slane %v9127_v16, 6  ;;  %v17495_v21 = vld [vmem:[#allocation52_spill] sm:$0xff] }
0x1562   : > { %9406 = vrot.lane.b32.xlu1 %v9395_v44, %s12768_s7  ;;  %9167 = vrot.lane.b32.xlu0 %v9157_v45, %s17310_s26  ;;  %v9120_v45 = vsel %vm17194_vm5, %v15452_v5, 0  ;;  %vm17496_vm5 = vcmp.ne.s16.totalorder %v17495_v21, 0  ;;  %v17501_v21 = vld [vmem:[#allocation51_spill] sm:$0xff] }
0x1563   : > { %v9246_v3 = vrot.slane %v9120_v45, 2 }
0x1566   : > { %9171 = vrot.lane.b32.xlu1 %v9159_v48, %s17310_s26  ;;  %9253 = vrot.lane.b32.xlu0 %v9244_v24, %s17311_s3  ;;  %v9315_v48 = vrot.slane %v9128_v31, 6  ;;  %v9396_v24 = vrot.slane %v15462_v39, 2 }
0x156a   : > { %9211 = vrot.lane.b32.xlu1 %v9201_v53, %s17309_s1  ;;  %9323 = vrot.lane.b32.xlu0 %v9314_v19, %s17329_s9  ;;  %v9137_v53 = vsel %vm17496_vm5, %v15449_v54, 0  ;;  %v17497_v19 = vld [vmem:[#allocation43_spill] sm:$0xff]  ;;  %vm17502_vm5 = vcmp.ne.s16.totalorder %v17501_v21, 0 }
0x156b   : > { %vm17498_vm10 = vcmp.ne.s16.totalorder %v17497_v19, 0  ;;  %v9359_v45 = vrot.slane %v9137_v53, 4  ;;  %v9129_v19 = vsel %vm17502_vm5, %v15452_v5, 0  ;;  %vm17506_vm5 = vcmp.ne.s16.totalorder %v14872_v10, 0 }
0x156c   : > { %v9111_v16 = vsel %vm17498_vm10, %v15452_v5, 0 }
0x156d   : > { %v9202_v44 = vrot.slane %v9111_v16, 4 }
0x156e   : > { %9257 = vrot.lane.b32.xlu1 %v9246_v3, %s17311_s3  ;;  %9404 = vrot.lane.b32.xlu0 %v9394_v8, %s12768_s7  ;;  %v17499_v3 = vld [vmem:[#allocation46_spill] sm:$0xff] }
0x156f   : > { %vm17500_vm3 = vcmp.ne.s16.totalorder %v17499_v3, 0 }
0x1570   : > { %v9119_v31 = vsel %vm17500_vm3, %v15449_v54, 0  ;;  %vm17505_vm3 = vcmp.ne.s16.totalorder %v14816_v4, 0  ;;  %v17510_v4 = vld [vmem:[#allocation40_spill] sm:$0xff] }
0x1571   : > { %v9245_v8 = vrot.slane %v9119_v31, 2 }
0x1572   : > { %9325 = vrot.lane.b32.xlu1 %v9315_v48, %s17329_s9  ;;  %9408 = vrot.lane.b32.xlu0 %v9396_v24, %s12768_s7  ;;  %v9316_v48 = vrot.slane %v9129_v19, 6  ;;  %v17503_v24 = vld [vmem:[#allocation53_spill] sm:$0xff]  ;;  %v9121_v19 = vsel %vm17506_vm5, %v15462_v39, 0 }
0x1573   : > { %vm17504_vm10 = vcmp.ne.s16.totalorder %v17503_v24, 0  ;;  %v17511_v24 = vld [vmem:[#allocation41_spill] sm:$0xff] }
0x1574   : > { %v9138_v53 = vsel %vm17504_vm10, %v15452_v5, 0  ;;  %vm17508_vm10 = vcmp.ne.s16.totalorder %v14945_v58, 0  ;;  %v15586_v46 = vsel %vm8590_vm6, %v17511_v24, %v17510_v4 }
0x1575   : > { %v9360_v16 = vrot.slane %v9138_v53, 4  ;;  %v9247_v53 = vrot.slane %v9121_v19, 2  ;;  %v9139_v19 = vsel %vm17200_vm9, %v15462_v39, 0  ;;  %17512 = vst [vmem:[#allocation40_spill] sm:$0xff] %v15586_v46 }
0x1576   : > { %9369 = vrot.lane.b32.xlu1 %v9359_v45, %s12764_s8  ;;  %9213 = vrot.lane.b32.xlu0 %v9202_v44, %s17309_s1  ;;  %v9112_v45 = vsel %vm17505_vm3, %v15462_v39, 0  ;;  %v9361_v58 = vrot.slane %v9139_v19, 4  ;;  %vm17241_vm3 = vcmp.ne.s16.totalorder %v15586_v46, 0 }
0x1577   : > { %v9203_v31 = vrot.slane %v9112_v45, 4 }
0x157a   : > { %9255 = vrot.lane.b32.xlu0 %v9245_v8, %s17311_s3 }
0x157e   : > { %9327 = vrot.lane.b32.xlu0 %v9316_v48, %s17329_s9 }
0x1582   : > { %9371 = vrot.lane.b32.xlu0 %v9360_v16, %s12764_s8 }
0x1584   : > { %v9074_v44 = vpop.permute.xlu1 %9073 }
0x1585   : > { %v15551_v21 = vsel %vm8259_vm11, %v15458_v18, %v9074_v44  ;;  %v9076_v8 = vpop.permute.xlu0 %9075  ;;  %v9130_v18 = vsel %vm17508_vm10, %v15462_v39, 0 }
0x1586   : > { %9287 = vrot.lane.b32.xlu1 %v15551_v21, %s17312_s5  ;;  %9215 = vrot.lane.b32.xlu0 %v9203_v31, %s17309_s1  ;;  %v9317_v45 = vrot.slane %v9130_v18, 6  ;;  %v9149_v31 = vsel %vm17201_vm8, %v15551_v21, 0  ;;  %v9397_v18 = vrot.slane %v15551_v21, 2  ;;  %vm17517_vm8 = vcmp.ne.s16.totalorder %v14903_v59, 0  ;;  %v17524_v59 = vld [vmem:[#allocation38_spill] sm:$0xff] }
0x1588   : > { %v9078_v48 = vpop.permute.xlu1 %9077 }
0x1589   : > { %v15560_v16 = vsel %vm8259_vm11, %v9076_v8, %v9078_v48  ;;  %v9080_v10 = vpop.permute.xlu0 %9079 }
0x158a   : > { %17507 = vst [vmem:[#allocation121_spill] sm:$0xff] %v15560_v16  ;;  %9259 = vrot.lane.b32.xlu0 %v9247_v53, %s17311_s3  ;;  %9291 = vrot.lane.b32.xlu1 %v15560_v16, %s17312_s5  ;;  %v15577_v53 = vsel %vm8259_vm11, %v9078_v48, %v9080_v10  ;;  %v9162_v19 = vrot.slane %v15560_v16, 6 }
0x158b   : > { %17509 = vst [vmem:[#allocation122_spill] sm:$0xff] %v15577_v53 }
0x158e   : > { %9329 = vrot.lane.b32.xlu0 %v9317_v45, %s17329_s9  ;;  %9445 = vrot.lane.b32.xlu1 %v9149_v31, %s12769_s10  ;;  %v15589_v45 = vsel %vm8259_vm11, %v9074_v44, %v9076_v8  ;;  %v15601_v31 = vsel %vm8259_vm11, %v9080_v10, 0  ;;  %v9151_v44 = vsel %vm17241_vm3, %v15560_v16, 0  ;;  %v9160_v8 = vrot.slane %v15551_v21, 6 }
0x1592   : > { %9373 = vrot.lane.b32.xlu0 %v9361_v58, %s12764_s8  ;;  %9293 = vrot.lane.b32.xlu1 %v15577_v53, %s17312_s5  ;;  %v17513_v58 = vld [vmem:[#allocation56_spill] sm:$0xff] }
0x1593   : > { %v15598_v48 = vsel %vm8590_vm6, %v17510_v4, %v17513_v58  ;;  %v15614_v4 = vsel %vm8590_vm6, %v14577_v52, %v17511_v24  ;;  %vm17516_vm6 = vcmp.ne.s16.totalorder %v14846_v51, 0  ;;  %vm17252_vm9 = vcmp.ne.s16.totalorder %v17513_v58, 0 }
0x1594   : > { %17514 = vst [vmem:[#allocation41_spill] sm:$0xff] %v15598_v48  ;;  %vm17251_vm5 = vcmp.ne.s16.totalorder %v15598_v48, 0  ;;  %17515 = vst [vmem:[#allocation123_spill] sm:$0xff] %v15614_v4  ;;  %vm17237_vm10 = vcmp.ne.s16.totalorder %v15614_v4, 0  ;;  %v9113_v52 = vsel %vm17516_vm6, %v15551_v21, 0  ;;  %vm17518_vm6 = vcmp.ne.s16.totalorder %v14960_v40, 0 }
0x1595   : > { %v9152_v10 = vsel %vm17251_vm5, %v15577_v53, 0  ;;  %v9204_v24 = vrot.slane %v9113_v52, 4  ;;  %v9398_v52 = vrot.slane %v15589_v45, 2 }
0x1596   : > { %9289 = vrot.lane.b32.xlu0 %v15589_v45, %s17312_s5  ;;  %9410 = vrot.lane.b32.xlu1 %v9397_v18, %s12768_s7  ;;  %v9150_v18 = vsel %vm17237_vm10, %v15589_v45, 0 }
0x159a   : > { %9295 = vrot.lane.b32.xlu0 %v15601_v31, %s17312_s5  ;;  %9449 = vrot.lane.b32.xlu1 %v9151_v44, %s12769_s10  ;;  %v9153_v44 = vsel %vm17252_vm9, %v15601_v31, 0 }
0x159e   : > { %9173 = vrot.lane.b32.xlu0 %v9160_v8, %s17310_s26  ;;  %9451 = vrot.lane.b32.xlu1 %v9152_v10, %s12769_s10  ;;  %v9122_v8 = vsel %vm17517_vm8, %v15551_v21, 0  ;;  %v9161_v10 = vrot.slane %v15589_v45, 6  ;;  %vm17519_vm8 = vcmp.ne.s16.totalorder %v14836_v29, 0 }
0x15a2   : > { %9447 = vrot.lane.b32.xlu0 %v9150_v18, %s12769_s10  ;;  %9177 = vrot.lane.b32.xlu1 %v9162_v19, %s17310_s26  ;;  %v9248_v18 = vrot.slane %v9122_v8, 2  ;;  %v9131_v19 = vsel %vm17518_vm6, %v15551_v21, 0  ;;  %vm17520_vm6 = vcmp.ne.s16.totalorder %v14908_v63, 0 }
0x15a3   : > { %v9318_v51 = vrot.slane %v9131_v19, 6  ;;  %v9114_v19 = vsel %vm17519_vm8, %v15589_v45, 0  ;;  %vm17521_vm8 = vcmp.ne.s16.totalorder %v14983_v22, 0  ;;  %v9141_v22 = vsel %vm17213_vm13, %v15589_v45, 0 }
0x15a4   : > { %vm17532_vm13 = vcmp.ne.s16.totalorder %v15046_v7, 0  ;;  %v17534_v7 = vld [vmem:[#allocation35_spill] sm:$0xff] }
0x15a6   : > { %9453 = vrot.lane.b32.xlu0 %v9153_v44, %s12769_s10  ;;  %9217 = vrot.lane.b32.xlu1 %v9204_v24, %s17309_s1  ;;  %v9140_v44 = vsel %vm17205_vm4, %v15551_v21, 0  ;;  %v9163_v24 = vrot.slane %v15577_v53, 6  ;;  %vm17523_vm4 = vcmp.ne.s16.totalorder %v17522_v11, 0  ;;  %v17528_v11 = vld [vmem:[#allocation69_spill] sm:$0xff] }
0x15a7   : > { %v9362_v8 = vrot.slane %v9140_v44, 4  ;;  %v9164_v44 = vrot.slane %v15601_v31, 6  ;;  %v9115_v63 = vsel %vm17523_vm4, %v15560_v16, 0  ;;  %vm17529_vm4 = vcmp.ne.s16.totalorder %v17528_v11, 0 }
0x15aa   : > { %9175 = vrot.lane.b32.xlu0 %v9161_v10, %s17310_s26  ;;  %9261 = vrot.lane.b32.xlu1 %v9248_v18, %s17311_s3  ;;  %v9401_v10 = vrot.slane %v15601_v31, 2  ;;  %v9399_v18 = vrot.slane %v15560_v16, 2 }
0x15ae   : > { %9412 = vrot.lane.b32.xlu0 %v9398_v52, %s12768_s7  ;;  %9331 = vrot.lane.b32.xlu1 %v9318_v51, %s17329_s9  ;;  %v9205_v52 = vrot.slane %v9114_v19, 4  ;;  %v9132_v19 = vsel %vm17521_vm8, %v15589_v45, 0 }
0x15af   : > { %v9319_v40 = vrot.slane %v9132_v19, 6 }
0x15b2   : > { %9179 = vrot.lane.b32.xlu0 %v9163_v24, %s17310_s26  ;;  %9375 = vrot.lane.b32.xlu1 %v9362_v8, %s12764_s8  ;;  %v9123_v24 = vsel %vm17520_vm6, %v15589_v45, 0  ;;  %vm17526_vm6 = vcmask 15360  }
0x15b3   : > { %v15690_v3 = vsel %vm17526_vm6, %v17525_v32, %v17524_v59  ;;  %v9363_v32 = vrot.slane %v9141_v22, 4  ;;  %vm17530_vm6 = vcmp.ne.s16.totalorder %v14999_v37, 0  ;;  %v9142_v37 = vsel %vm17532_vm13, %v15560_v16, 0 }
0x15b4   : > { %17527 = vst [vmem:[#allocation33_spill] sm:$0xff] %v15690_v3  ;;  %vm17249_vm8 = vcmp.ne.s16.totalorder %v15690_v3, 0  ;;  %v9133_v6 = vsel %vm17530_vm6, %v15560_v16, 0  ;;  %vm17250_vm6 = vcmp.ne.s16.totalorder %v17524_v59, 0  ;;  %vm17535_vm13 = vcmask 261120   ;;  %v17546_v59 = vld [vmem:[#allocation22_spill] sm:$0xff] }
0x15b5   : > { %v9116_v11 = vsel %vm17249_vm8, %v15577_v53, 0  ;;  %v9320_v22 = vrot.slane %v9133_v6, 6 }
0x15b6   : > { %9418 = vrot.lane.b32.xlu0 %v9401_v10, %s12768_s7  ;;  %9414 = vrot.lane.b32.xlu1 %v9399_v18, %s12768_s7  ;;  %v9249_v10 = vrot.slane %v9123_v24, 2  ;;  %v9400_v18 = vrot.slane %v15577_v53, 2  ;;  %v9206_v24 = vrot.slane %v9115_v63, 4 }
0x15b8   : > { %v15662_v51 = vpop.permute.xlu1 %9279 }
0x15ba   : > { %9219 = vrot.lane.b32.xlu0 %v9205_v52, %s17309_s1  ;;  %9181 = vrot.lane.b32.xlu1 %v9164_v44, %s17310_s26 }
0x15bc   : > { %v15670_v8 = vpop.permute.xlu1 %9281  ;;  %v15672_v29 = vpop.permute.xlu0 %9283 }
0x15be   : > { %9263 = vrot.lane.b32.xlu0 %v9249_v10, %s17311_s3  ;;  %9416 = vrot.lane.b32.xlu1 %v9400_v18, %s12768_s7  ;;  %v9124_v10 = vsel %vm17529_vm4, %v15560_v16, 0 }
0x15bf   : > { %v9250_v19 = vrot.slane %v9124_v10, 2  ;;  %v9207_v10 = vrot.slane %v9116_v11, 4  ;;  %v9364_v11 = vrot.slane %v9142_v37, 4 }
0x15c0   : > { %v15683_v52 = vpop.permute.xlu1 %9437  ;;  %v15685_v44 = vpop.permute.xlu0 %9285 }
0x15c2   : > { %9333 = vrot.lane.b32.xlu0 %v9319_v40, %s17329_s9  ;;  %9221 = vrot.lane.b32.xlu1 %v9206_v24, %s17309_s1  ;;  %v17531_v40 = vld [vmem:[#allocation39_spill] sm:$0xff] }
0x15c3   : > { %vm17245_vm4 = vcmp.ne.s16.totalorder %v17531_v40, 0  ;;  %v15735_v15 = vsel %vm17535_vm13, %v17534_v7, %v17531_v40  ;;  %vm17539_vm13 = vcmask 277504  }
0x15c4   : > { %v15701_v63 = vpop.permute.xlu1 %9441  ;;  %v15703_v18 = vpop.permute.xlu0 %9165  ;;  %v9126_v61 = vsel %vm17245_vm4, %v15601_v31, 0  ;;  %17536 = vst [vmem:[#allocation35_spill] sm:$0xff] %v15735_v15  ;;  %vm17243_vm12 = vcmp.ne.s16.totalorder %v15735_v15, 0 }
0x15c5   : > { %v9252_v62 = vrot.slane %v9126_v61, 2  ;;  %v17537_v61 = vld [vmem:[#allocation55_spill] sm:$0xff]  ;;  %v8489_v4 = vsel %vm17243_vm12, %v15101_v36, 0 }
0x15c6   : > { %9377 = vrot.lane.b32.xlu0 %v9363_v32, %s12764_s8  ;;  %9265 = vrot.lane.b32.xlu1 %v9250_v19, %s17311_s3  ;;  %v17533_v32 = vld [vmem:[#allocation54_spill] sm:$0xff]  ;;  %vm17253_vm14 = vcmp.ne.s16.totalorder %v17537_v61, 0  ;;  %v8713_v3 = vrot.slane %v8489_v4, 2  ;;  %v8490_v4 = vsel %vm17245_vm4, %v15116_v23, 0 }
0x15c7   : > { %vm17259_vm15 = vcmp.ne.s16.totalorder %v17533_v32, 0  ;;  %v15754_v55 = vsel %vm17539_vm13, %v17538_v43, %v17533_v32  ;;  %vm17542_vm13 = vcmask 523264  }
0x15c8   : > { %v15714_v24 = vpop.permute.xlu1 %9169  ;;  %v15716_v42 = vpop.permute.xlu0 %9402  ;;  %17540 = vst [vmem:[#allocation36_spill] sm:$0xff] %v15754_v55  ;;  %vm17242_vm1 = vcmp.ne.s16.totalorder %v15754_v55, 0  ;;  %v15770_v27 = vsel %vm17542_vm13, %v17541_v38, %v17537_v61  ;;  %vm17544_vm13 = vcmask 1039360  }
0x15c9   : > { %17543 = vst [vmem:[#allocation37_spill] sm:$0xff] %v15770_v27  ;;  %vm17248_vm0 = vcmp.ne.s16.totalorder %v15770_v27, 0 }
0x15ca   : > { %9335 = vrot.lane.b32.xlu1 %v9320_v22, %s17329_s9  ;;  %9223 = vrot.lane.b32.xlu0 %v9207_v10, %s17309_s1  ;;  %v9117_v22 = vsel %vm17250_vm6, %v15601_v31, 0  ;;  %v9135_v10 = vsel %vm17259_vm15, %v15601_v31, 0  ;;  %v9143_v38 = vsel %vm17248_vm0, %v15577_v53, 0 }
0x15cb   : > { %v9208_v26 = vrot.slane %v9117_v22, 4  ;;  %v9322_v9 = vrot.slane %v9135_v10, 6  ;;  %v9365_v2 = vrot.slane %v9143_v38, 4 }
0x15cc   : > { %v15728_v19 = vpop.permute.xlu1 %9209  ;;  %v15730_v6 = vpop.permute.xlu0 %9439 }
0x15ce   : > { %9379 = vrot.lane.b32.xlu1 %v9364_v11, %s12764_s8  ;;  %9269 = vrot.lane.b32.xlu0 %v9252_v62, %s17311_s3  ;;  %v9125_v11 = vsel %vm17243_vm12, %v15577_v53, 0  ;;  %v9144_v62 = vsel %vm17253_vm14, %v15601_v31, 0  ;;  %v9134_v31 = vsel %vm17242_vm1, %v15577_v53, 0  ;;  %vm17548_vm12 = vcmask 1031168  }
0x15cf   : > { %v9251_v12 = vrot.slane %v9125_v11, 2  ;;  %v9366_v43 = vrot.slane %v9144_v62, 4  ;;  %v9321_v11 = vrot.slane %v9134_v31, 6  ;;  %v8612_v62 = vsel %vm17237_vm10, %v14827_v57, 0  ;;  %vm17545_vm10 = vmmov %vm17544_vm13 }
0x15d0   : > { %v15747_v37 = vpop.permute.xlu1 %9367  ;;  %v15749_v7 = vpop.permute.xlu0 %9443  ;;  %vm17549_vm4 = vmmov %vm17548_vm12 }
0x15d2   : > { %9225 = vrot.lane.b32.xlu1 %v9208_v26, %s17309_s1  ;;  %9339 = vrot.lane.b32.xlu0 %v9322_v9, %s17329_s9 }
0x15d4   : > { %v15765_v22 = vpop.permute.xlu1 %9406  ;;  %v9168_v10 = vpop.permute.xlu0 %9167 }
0x15d5   : > { %v9183_v15 = vsel %vm17544_vm13, %v15703_v18, %v9168_v10  ;;  %v9184_v55 = vsel %vm17545_vm10, %v9168_v10, %v15714_v24  ;;  %vm17550_vm10 = vcmask 1041408  }
0x15d6   : > { %9267 = vrot.lane.b32.xlu1 %v9251_v12, %s17311_s3  ;;  %9383 = vrot.lane.b32.xlu0 %v9366_v43, %s12764_s8  ;;  %v8448_v12 = vsel %vm17249_vm8, %v15101_v36, 0  ;;  %vm17551_vm13 = vmmov %vm17550_vm10  ;;  %vm17554_vm8 = vcmask 1043456  }
0x15d7   : > { %v8669_v34 = vrot.slane %v8448_v12, 4  ;;  %v8530_v12 = vsel %vm17242_vm1, %v15101_v36, 0 }
0x15d8   : > { %v15778_v26 = vpop.permute.xlu1 %9171  ;;  %v9254_v9 = vpop.permute.xlu0 %9253  ;;  %v8783_v46 = vrot.slane %v8530_v12, 6 }
0x15da   : > { %9337 = vrot.lane.b32.xlu1 %v9321_v11, %s17329_s9  ;;  %8910 = vrot.lane.b32.xlu0 %v8612_v62, %s12769_s10  ;;  %v8613_v11 = vsel %vm17241_vm3, %v14864_v13, 0  ;;  %v8449_v62 = vsel %vm17250_vm6, %v15116_v23, 0  ;;  %vm17262_vm3 = vcmp.ne.s16.totalorder %v17546_v59, 0  ;;  %vm17555_vm6 = vmmov %vm17554_vm8 }
0x15db   : > { %v9102_v10 = vsel %vm17262_vm3, %v15449_v54, 0 }
0x15dc   : > { %v9324_v43 = vpop.permute.xlu0 %9323  ;;  %v9212_v31 = vpop.permute.xlu1 %9211 }
0x15dd   : > { %v9227_v13 = vsel %vm17548_vm12, %v15728_v19, %v9212_v31  ;;  %v9468_v19 = vsel %vm17551_vm13, %v9102_v10, %v9184_v55  ;;  %vm8967_vm12 = vcmask 1045504   ;;  %vm8882_vm13 = vcmask 515072  }
0x15de   : > { %9381 = vrot.lane.b32.xlu1 %v9365_v2, %s12764_s8  ;;  %8685 = vrot.lane.b32.xlu0 %v8669_v34, %s17309_s1  ;;  %v8670_v34 = vrot.slane %v8449_v62, 4  ;;  %v8572_v62 = vsel %vm17248_vm0, %v15101_v36, 0 }
0x15df   : > { %v8827_v12 = vrot.slane %v8572_v62, 4 }
0x15e0   : > { %v15796_v53 = vpop.permute.xlu0 %9404  ;;  %v15806_v38 = vpop.permute.xlu1 %9257 }
0x15e2   : > { %8912 = vrot.lane.b32.xlu1 %v8613_v11, %s12769_s10  ;;  %8729 = vrot.lane.b32.xlu0 %v8713_v3, %s17311_s3  ;;  %v8714_v3 = vrot.slane %v8490_v4, 2 }
0x15e4   : > { %v15808_v2 = vpop.permute.xlu0 %9408  ;;  %v9326_v40 = vpop.permute.xlu1 %9325 }
0x15e6   : > { %8687 = vrot.lane.b32.xlu1 %v8670_v34, %s17309_s1  ;;  %8755 = vrot.lane.b32.xlu0 %v15101_v36, %s17312_s5  ;;  %v17547_v34 = vld [vmem:[#allocation20_spill] sm:$0xff] }
0x15e7   : > { %vm17261_vm1 = vcmp.ne.s16.totalorder %v17547_v34, 0 }
0x15e8   : > { %v15819_v11 = vpop.permute.xlu0 %9213  ;;  %v9101_v18 = vsel %vm17261_vm1, %v15444_v33, 0  ;;  %v9370_v62 = vpop.permute.xlu1 %9369 }
0x15e9   : > { %v9228_v4 = vsel %vm17549_vm4, %v9212_v31, %v15819_v11  ;;  %v9465_v27 = vsel %vm17550_vm10, %v9101_v18, %v9183_v15  ;;  %v8531_v31 = vsel %vm17259_vm15, %v15116_v23, 0  ;;  %vm17552_vm4 = vcmask 785408  }
0x15ea   : > { %8731 = vrot.lane.b32.xlu1 %v8714_v3, %s17311_s3  ;;  %8799 = vrot.lane.b32.xlu0 %v8783_v46, %s17329_s9  ;;  %vm17553_vm0 = vmmov %vm17552_vm4  ;;  %v9490_v3 = vsel %vm17554_vm8, %v9468_v19, %v9228_v4  ;;  %v9488_v54 = vsel %vm17555_vm6, %v9465_v27, %v9227_v13  ;;  %v8784_v18 = vrot.slane %v8531_v31, 6  ;;  %v8573_v13 = vsel %vm17253_vm14, %v15116_v23, 0 }
0x15eb   : > { %vm17557_vm8 = vcmask 523264   ;;  %vm17559_vm10 = vcmask 777216   ;;  %vm17580_vm15 = vcmask 1043456  }
0x15ec   : > { %v9256_v16 = vpop.permute.xlu0 %9255  ;;  %v9385_v27 = vsel %vm17557_vm8, %v15747_v37, %v9370_v62  ;;  %v8828_v37 = vrot.slane %v8573_v13, 4  ;;  %vm17581_vm2 = vmmov %vm17580_vm15 }
0x15ed   : > { %v9271_v46 = vsel %vm17552_vm4, %v9254_v9, %v9256_v16  ;;  %v9272_v33 = vsel %vm17553_vm0, %v9256_v16, %v15806_v38  ;;  %v8862_v16 = vrot.slane %v15101_v36, 2  ;;  %vm17556_vm0 = vcmask 769024   ;;  %vm17560_vm4 = vmmov %vm17559_vm10 }
0x15ee   : > { %8757 = vrot.lane.b32.xlu1 %v15116_v23, %s17312_s5  ;;  %8843 = vrot.lane.b32.xlu0 %v8827_v12, %s12764_s8  ;;  %v9507_v55 = vsel %vm8967_vm12, %v9490_v3, %v9272_v33  ;;  %v9504_v15 = vsel %vm8967_vm12, %v9488_v54, %v9271_v46  ;;  %v9341_v4 = vsel %vm17556_vm0, %v9324_v43, %v9326_v40  ;;  %vm17558_vm6 = vmmov %vm17556_vm0  ;;  %vm17561_vm0 = vcmask 1041408  }
0x15ef   : > { %9619 = vmatprep.subr.bf16.mxu0 %v9507_v55  ;;  %v9297_v12 = vsel %vm17559_vm10, %v15662_v51, %v15670_v8  ;;  %v9298_v43 = vsel %vm17560_vm4, %v15670_v8, %v15672_v29  ;;  %vm17562_vm8 = vmmov %vm17561_vm0  ;;  %v8614_v33 = vsel %vm17251_vm5, %v15101_v36, 0  ;;  %vm17564_vm10 = vcmask 1043456  }
0x15f0   : > { %9620 = vmatpush1.bf16.msra.mxu0 %v9504_v15  ;;  %v15857_v9 = vpop.permute.xlu0 %9327  ;;  %v9529_v19 = vsel %vm17561_vm0, %v9297_v12, %v9341_v4  ;;  %v9421_v8 = vsel %vm8882_vm13, %v15796_v53, %v15765_v22  ;;  %vm17565_vm4 = vmmov %vm17564_vm10  ;;  %v9420_v54 = vsel %vm8882_vm13, %v15716_v42, %v15796_v53  ;;  %vm8918_vm0 = vcmask 506880   ;;  %v12692_v53 = vld [vmem:[%s12918_s27] sm:$0xf] }
0x15f1   : > { %v9342_v10 = vsel %vm17558_vm6, %v9326_v40, %v15857_v9  ;;  %vm17563_vm6 = vcmask 523264   ;;  %v9552_v51 = vsel %vm17564_vm10, %v9529_v19, %v9385_v27  ;;  %v9455_v4 = vsel %vm8918_vm0, %v15683_v52, %v15730_v6  ;;  %v15916_v12 = vld [vmem:[%s17566_s2] sm:$0x3] }
0x15f2   : > { %8801 = vrot.lane.b32.xlu1 %v8784_v18, %s17329_s9  ;;  %8878 = vrot.lane.b32.xlu0 %v8862_v16, %s12768_s7  ;;  %v9532_v40 = vsel %vm17562_vm8, %v9298_v43, %v9342_v10  ;;  %v9568_v18 = vsel %vm8967_vm12, %v9552_v51, %v9420_v54  ;;  %v8863_v16 = vrot.slane %v15116_v23, 2  ;;  %v9456_v42 = vsel %vm8918_vm0, %v15730_v6, %v15701_v63 }
0x15f3   : > { %v8615_v52 = vsel %vm17252_vm9, %v15116_v23, 0  ;;  %vm9591_vm10 = vcmask 293888   ;;  %v17568_v6 = vmov 2   ;;  %vm17573_vm5 = vcmask 1031168  }
0x15f4   : > { %v15877_v31 = vpop.permute.xlu0 %9371  ;;  %vm17575_vm14 = vmmov %vm17573_vm5 }
0x15f5   : > { %v9386_v46 = vsel %vm17563_vm6, %v9370_v62, %v15877_v31  ;;  %vm17567_vm6 = vmmov %vm17562_vm8 }
0x15f6   : > { %8845 = vrot.lane.b32.xlu1 %v8828_v37, %s12764_s8  ;;  %8914 = vrot.lane.b32.xlu0 %v8614_v33, %s12769_s10  ;;  %v9554_v3 = vsel %vm17565_vm4, %v9532_v40, %v9386_v46  ;;  %v9596_v10 = vsel %vm17567_vm6, %v9455_v4, 0  ;;  %vm17570_vm4 = vcmask 1039360  }
0x15f7   : > { %v9571_v55 = vsel %vm8967_vm12, %v9554_v3, %v9421_v8  ;;  %vm17572_vm6 = vmmov %vm17570_vm4 }
0x15f8   : > { %v15896_v15 = vpop.permute.xlu1 %9287  ;;  %9621 = vmatprep.subr.bf16.mxu0 %v9571_v55  ;;  %v9216_v62 = vpop.permute.xlu0 %9215 }
0x15f9   : > { %9622 = vmatpush1.bf16.msra.mxu0 %v9568_v18 }
0x15fa   : > { %8880 = vrot.lane.b32.xlu1 %v8863_v16, %s12768_s7  ;;  %12175 = vmatprep.subr.msk.bf16.mxu0 %vm17562_vm8, %v9456_v42  ;;  %v17571_v42 = vld [vmem:[#allocation23_spill] sm:$0xff] }
0x15fb   : > { %9975 = vperm.xlu0 %12579, %v12692_v53   ;;  %vm8340_vm8 = vcmp.ne.s16.totalorder %v17571_v42, 0  ;;  %v9185_v53 = vsel %vm17572_vm6, %v15714_v24, %v15778_v26  ;;  %vm17577_vm6 = vcmask 1041408   ;;  %v17650_v42 = vld [vmem:[#allocation28_spill] sm:$0xff] }
0x15fc   : > { %v15909_v13 = vpop.permute.xlu1 %9291  ;;  %v9260_v27 = vpop.permute.xlu0 %9259  ;;  %v9104_v48 = vsel %vm8340_vm8, %v15462_v39, 0 }
0x15fd   : > { %9624 = vmatpush1.bf16.msra.mxu0 %v9596_v10 }
0x15fe   : > { %8916 = vrot.lane.b32.xlu1 %v8615_v52, %s12769_s10  ;;  %v17574_v52 = vld [vmem:[#allocation21_spill] sm:$0xff] }
0x15ff   : > { %12580 = vset.pattern.permute.xlu0 %v17568_v6  ;;  %vm8339_vm9 = vcmp.ne.s16.totalorder %v17574_v52, 0  ;;  %v9229_v6 = vsel %vm17575_vm14, %v15819_v11, %v9216_v62  ;;  %v17655_v52 = vld [vmem:[#allocation88_spill] sm:$0xff] }
0x1600   : > { %v15920_v43 = vpop.permute.xlu1 %9445  ;;  %v9330_v19 = vpop.permute.xlu0 %9329  ;;  %12176 = vmatmul.mubr.msk.bf16.vlgmr.msra.gmra.mrb[108].mxu0 %vm9591_vm10, %v15916_v12  ;;  %v9103_v58 = vsel %vm8339_vm9, %v15452_v5, 0 }
0x1601   : > { %9733 = vmatprep.mubr.bf16.mxu0 %v17447_v1 }
0x1604   : > { %v15925_v37 = vpop.permute.xlu1 %9293  ;;  %v9374_v40 = vpop.permute.xlu0 %9373 }
0x1608   : > { %v15927_v46 = vpop.permute.xlu1 %9410  ;;  %v15929_v23 = vpop.permute.xlu0 %9289 }
0x160c   : > { %v15931_v33 = vpop.permute.xlu1 %9449  ;;  %v15933_v51 = vpop.permute.xlu0 %9295 }
0x1610   : > { %v15935_v8 = vpop.permute.xlu1 %9451  ;;  %v15937_v3 = vpop.permute.xlu0 %9173 }
0x1611   : > { %v9186_v4 = vsel %vm17570_vm4, %v15778_v26, %v15937_v3  ;;  %vm17576_vm4 = vcmask 785408  }
0x1612   : > { %v9273_v61 = vsel %vm17576_vm4, %v15806_v38, %v9260_v27  ;;  %v9474_v24 = vsel %vm17577_vm6, %v9104_v48, %v9186_v4  ;;  %vm17579_vm14 = vmmov %vm17576_vm4  ;;  %vm17582_vm4 = vcmask 769024  }
0x1614   : > { %v15939_v54 = vpop.permute.xlu1 %9177  ;;  %v15941_v55 = vpop.permute.xlu0 %9447 }
0x1618   : > { %v15943_v18 = vpop.permute.xlu1 %9217  ;;  %v15945_v16 = vpop.permute.xlu0 %9453 }
0x1619   : > { %17569 = vst [vmem:[#allocation22_spill] sm:$0xff] %v15945_v16  ;;  %v9230_v10 = vsel %vm17573_vm5, %v9216_v62, %v15943_v18  ;;  %vm17578_vm5 = vmmov %vm17577_vm6  ;;  %vm17583_vm6 = vcmask 523264  }
0x161a   : > { %v9471_v36 = vsel %vm17578_vm5, %v9103_v58, %v9185_v53  ;;  %v9494_v62 = vsel %vm17580_vm15, %v9474_v24, %v9230_v10  ;;  %v9343_v58 = vsel %vm17582_vm4, %v15857_v9, %v9330_v19  ;;  %vm17584_vm15 = vmmov %vm17582_vm4 }
0x161b   : > { %v9492_v16 = vsel %vm17581_vm2, %v9471_v36, %v9229_v6  ;;  %vm17585_vm2 = vcmask 777216  }
0x161c   : > { %v15968_v26 = vpop.permute.xlu1 %9261  ;;  %v9176_v32 = vpop.permute.xlu0 %9175  ;;  %v9510_v5 = vsel %vm8967_vm12, %v9492_v16, %v9273_v61  ;;  %v9299_v36 = vsel %vm17585_vm2, %v15672_v29, %v15685_v44  ;;  %vm17586_vm5 = vmmov %vm17585_vm2  ;;  %v9423_v29 = vsel %vm8882_vm13, %v15808_v2, %v15927_v46 }
0x161d   : > { %v9274_v11 = vsel %vm17579_vm14, %v9260_v27, %v15968_v26  ;;  %v9387_v27 = vsel %vm17583_vm6, %v15877_v31, %v9374_v40  ;;  %v9300_v61 = vsel %vm17586_vm5, %v15685_v44, %v15896_v15  ;;  %vm17587_vm14 = vcmask 1041408  }
0x161e   : > { %v9513_v39 = vsel %vm8967_vm12, %v9494_v62, %v9274_v11  ;;  %v9535_v16 = vsel %vm17587_vm14, %v9299_v36, %v9343_v58  ;;  %vm17588_vm4 = vmmov %vm17587_vm14  ;;  %v9422_v44 = vsel %vm8882_vm13, %v15765_v22, %v15808_v2 }
0x161f   : > { %9660 = vmatprep.subr.bf16.mxu1 %v9513_v39  ;;  %v9457_v39 = vsel %vm8918_vm0, %v15701_v63, %v15749_v7  ;;  %vm17591_vm5 = vmmov %vm17588_vm4  ;;  %v17593_v63 = vld [vmem:[#allocation44_spill] sm:$0xff] }
0x1620   : > { %v15977_v38 = vpop.permute.xlu1 %9331  ;;  %9661 = vmatpush1.bf16.msra.mxu1 %v9510_v5  ;;  %v15979_v48 = vpop.permute.xlu0 %9412  ;;  %v9458_v5 = vsel %vm8918_vm0, %v15749_v7, %v15920_v43  ;;  %vm17592_vm14 = vmmov %vm17588_vm4  ;;  %v8346_v7 = vsel %vm17262_vm3, %v17593_v63, 0  ;;  %vm17611_vm3 = vcmask 1043456  }
0x1621   : > { %v9344_v4 = vsel %vm17584_vm15, %v9330_v19, %v15977_v38  ;;  %vm17589_vm15 = vcmask 1043456   ;;  %v9602_v58 = vsel %vm17592_vm14, %v9457_v39, 0  ;;  %vm17614_vm7 = vmmov %vm17611_vm3 }
0x1622   : > { %v9538_v9 = vsel %vm17588_vm4, %v9300_v61, %v9344_v4  ;;  %v9556_v19 = vsel %vm17589_vm15, %v9535_v16, %v9387_v27  ;;  %vm17590_vm2 = vmmov %vm17589_vm15  ;;  %vm17594_vm4 = vcmask 1039360   ;;  %v17595_v61 = vld [vmem:[#allocation45_spill] sm:$0xff] }
0x1623   : > { %v8646_v36 = vsel %vm17594_vm4, %v15311_v56, %v15313_v28  ;;  %v8345_v16 = vsel %vm17261_vm1, %v17595_v61, 0  ;;  %vm17597_vm15 = vmmov %vm17591_vm5  ;;  %vm17601_vm1 = vcmask 1031168  }
0x1624   : > { %v15994_v53 = vpop.permute.xlu1 %9375  ;;  %v15996_v10 = vpop.permute.xlu0 %9179 }
0x1625   : > { %v9388_v31 = vsel %vm17583_vm6, %v9374_v40, %v15994_v53  ;;  %v9574_v40 = vsel %vm8967_vm12, %v9556_v19, %v9422_v44  ;;  %vm17596_vm6 = vmmov %vm17594_vm4 }
0x1626   : > { %v9558_v6 = vsel %vm17590_vm2, %v9538_v9, %v9388_v31  ;;  %v8645_v9 = vsel %vm17596_vm6, %v15315_v35, %v15311_v56  ;;  %vm17598_vm2 = vmmov %vm17594_vm4  ;;  %v17603_v35 = vld [vmem:[#allocation24_spill] sm:$0xff] }
0x1627   : > { %v9577_v24 = vsel %vm8967_vm12, %v9558_v6, %v9423_v29  ;;  %v16045_v29 = vsel %vm17597_vm15, %v8346_v7, %v8646_v36  ;;  %v9188_v6 = vsel %vm17598_vm2, %v9176_v32, %v15939_v54  ;;  %v8929_v44 = vsel %vm17591_vm5, %v8345_v16, %v8645_v9  ;;  %vm17600_vm4 = vmmov %vm17598_vm2 }
0x1628   : > { %v16010_v11 = vpop.permute.xlu1 %9414  ;;  %9662 = vmatprep.subr.bf16.mxu1 %v9577_v24  ;;  %v16012_v62 = vpop.permute.xlu0 %9418  ;;  %v17599_v24 = vld [vmem:[#allocation25_spill] sm:$0xff]  ;;  %vm17602_vm6 = vmmov %vm17601_vm1  ;;  %vm17268_vm15 = vcmp.ne.s16.totalorder %v17603_v35, 0  ;;  %v17645_v35 = vld [vmem:[#allocation92_spill] sm:$0xff] }
0x1629   : > { %9663 = vmatpush1.bf16.msra.mxu1 %v9574_v40  ;;  %vm17269_vm14 = vcmp.ne.s16.totalorder %v17599_v24, 0  ;;  %v9187_v40 = vsel %vm17600_vm4, %v15937_v3, %v9176_v32  ;;  %v8689_v56 = vsel %vm17602_vm6, %v15321_v14, %v15317_v30  ;;  %vm17604_vm2 = vmmov %vm17601_vm1  ;;  %v9105_v3 = vsel %vm17268_vm15, %v15551_v21, 0  ;;  %v17612_v21 = vld [vmem:[#allocation49_spill] sm:$0xff] }
0x162a   : > { %12177 = vmatprep.subr.msk.bf16.mxu1 %vm17591_vm5, %v9458_v5  ;;  %v9106_v5 = vsel %vm17269_vm14, %v15589_v45, 0  ;;  %vm17605_vm5 = vcmask 777216   ;;  %vm17607_vm4 = vcmask 785408   ;;  %vm17608_vm6 = vcmask 769024  }
0x162b   : > { %v8759_v32 = vsel %vm17605_vm5, %v15337_v20, %v15329_v50  ;;  %v8803_v45 = vsel %vm17608_vm6, %v15339_v0, %v15333_v49  ;;  %vm17610_vm5 = vmmov %vm17607_vm4  ;;  %v17617_v0 = vld [vmem:[#allocation81_spill] sm:$0xff] }
0x162c   : > { %v16022_v22 = vpop.permute.xlu1 %9181  ;;  %v9220_v2 = vpop.permute.xlu0 %9219  ;;  %vm17618_vm6 = vmmov %vm17610_vm5 }
0x162d   : > { %9665 = vmatpush1.bf16.msra.mxu1 %v9602_v58  ;;  %v9231_v58 = vsel %vm17604_vm2, %v15943_v18, %v9220_v2 }
0x1630   : > { %v16025_v27 = vpop.permute.xlu1 %9416  ;;  %v9264_v4 = vpop.permute.xlu0 %9263  ;;  %12178 = vmatmul.mubr.msk.bf16.vlgmr.msra.gmra.mrb[80].mxu1 %vm9591_vm10, %v15916_v12 }
0x1631   : > { %9774 = vmatprep.mubr.bf16.mxu1 %v17447_v1  ;;  %v9275_v14 = vsel %vm17607_vm4, %v15968_v26, %v9264_v4  ;;  %v16086_v26 = vsel %vm17614_vm7, %v8929_v44, %v8689_v56  ;;  %vm17615_vm4 = vmmov %vm17611_vm3  ;;  %v17623_v56 = vld [vmem:[#allocation83_spill] sm:$0xff] }
0x1632   : > { %vm17624_vm7 = vmmov %vm17610_vm5 }
0x1634   : > { %v16042_v31 = vpop.permute.xlu1 %9221  ;;  %v9334_v19 = vpop.permute.xlu0 %9333 }
0x1635   : > { %v9232_v39 = vsel %vm17601_vm1, %v9220_v2, %v16042_v31  ;;  %vm17606_vm1 = vcmask 1041408  }
0x1636   : > { %v9480_v63 = vsel %vm17606_vm1, %v9106_v5, %v9188_v6  ;;  %vm17609_vm2 = vmmov %vm17606_vm1  ;;  %vm17613_vm1 = vcmask 1031168   ;;  %v17616_v6 = vld [vmem:[#allocation82_spill] sm:$0xff]  ;;  %v17619_v5 = vld [vmem:[#allocation84_spill] sm:$0xff] }
0x1637   : > { %v9477_v18 = vsel %vm17609_vm2, %v9105_v3, %v9187_v40  ;;  %v9498_v2 = vsel %vm17611_vm3, %v9480_v63, %v9232_v39  ;;  %v8690_v61 = vsel %vm17613_vm1, %v15317_v30, %v17612_v21  ;;  %v16093_v40 = vsel %vm17618_vm6, %v17617_v0, %v17616_v6  ;;  %v17621_v39 = vld [vmem:[#allocation85_spill] sm:$0xff]  ;;  %v17626_v63 = vld [vmem:[#allocation86_spill] sm:$0xff] }
0x1638   : > { %v16073_v7 = vpop.permute.xlu1 %9265  ;;  %v9378_v36 = vpop.permute.xlu0 %9377  ;;  %v9496_v9 = vsel %vm17615_vm4, %v9477_v18, %v9231_v58  ;;  %vm17620_vm2 = vcmask 777216   ;;  %vm17622_vm3 = vcmask 769024   ;;  %v16105_v58 = vsel %vm17624_vm7, %v17623_v56, %v17617_v0 }
0x1639   : > { %v9276_v20 = vsel %vm17610_vm5, %v9264_v4, %v16073_v7  ;;  %v8760_v4 = vsel %vm17620_vm2, %v15329_v50, %v17619_v5  ;;  %v8804_v30 = vsel %vm17622_vm3, %v15333_v49, %v17621_v39  ;;  %v9516_v44 = vsel %vm8967_vm12, %v9496_v9, %v9275_v14  ;;  %v17629_v14 = vld [vmem:[#allocation57_spill] sm:$0xff]  ;;  %v17630_v9 = vld [vmem:[#allocation58_spill] sm:$0xff]  ;;  %vm17631_vm4 = vmmov %vm17622_vm3 }
0x163a   : > { %v9519_v16 = vsel %vm8967_vm12, %v9498_v2, %v9276_v20  ;;  %vm17625_vm5 = vcmask 1041408   ;;  %vm17627_vm1 = vcmask 523264   ;;  %v17628_v20 = vld [vmem:[#allocation47_spill] sm:$0xff]  ;;  %vm17635_vm7 = vmmov %vm17631_vm4 }
0x163b   : > { %9701 = vmatprep.subr.bf16.mxu0 %v9519_v16  ;;  %v8994_v3 = vsel %vm17625_vm5, %v8759_v32, %v8803_v45  ;;  %v8847_v18 = vsel %vm17627_vm1, %v15348_v47, %v17626_v63  ;;  %v8347_v50 = vsel %vm8339_vm9, %v17628_v20, 0  ;;  %v8348_v16 = vsel %vm8340_vm8, %v17629_v14, 0  ;;  %vm17632_vm6 = vmmov %vm17625_vm5 }
0x163c   : > { %v16114_v2 = vpop.permute.xlu1 %9335  ;;  %9702 = vmatpush1.bf16.msra.mxu0 %v9516_v44  ;;  %v9224_v49 = vpop.permute.xlu0 %9223  ;;  %v8349_v32 = vsel %vm17268_vm15, %v17630_v9, 0  ;;  %v8350_v47 = vsel %vm17269_vm14, %v14827_v57, 0  ;;  %v9345_v45 = vsel %vm17631_vm4, %v15977_v38, %v9334_v19  ;;  %v16128_v0 = vsel %vm17632_vm6, %v8760_v4, %v8804_v30  ;;  %vm17633_vm2 = vmmov %vm17627_vm1  ;;  %v17641_v30 = vld [vmem:[#allocation91_spill] sm:$0xff] }
0x163d   : > { %v8848_v44 = vsel %vm17633_vm2, %v17626_v63, %v15345_v25  ;;  %vm17634_vm3 = vmmov %vm17627_vm1  ;;  %v9346_v20 = vsel %vm17635_vm7, %v9334_v19, %v16114_v2  ;;  %vm17636_vm5 = vcmask 1043456   ;;  %v16143_v57 = vsel %vm8882_vm13, %v15353_v17, %v15356_v41 }
0x163e   : > { %v9389_v56 = vsel %vm17634_vm3, %v15994_v53, %v9378_v36  ;;  %v16138_v14 = vsel %vm17636_vm5, %v8994_v3, %v8847_v18  ;;  %vm17637_vm1 = vcmask 1039360   ;;  %vm17638_vm4 = vcmask 777216   ;;  %v17639_v53 = vld [vmem:[#allocation87_spill] sm:$0xff] }
0x163f   : > { %v8647_v38 = vsel %vm17637_vm1, %v15313_v28, %v15361_v60  ;;  %v9301_v4 = vsel %vm17638_vm4, %v15896_v15, %v15929_v23  ;;  %vm17640_vm6 = vmmov %vm17637_vm1  ;;  %vm17644_vm7 = vcmask 1041408   ;;  %vm17676_vm15 = vcmask 1043456  }
0x1640   : > { %v8648_v19 = vsel %vm17640_vm6, %v15361_v60, %v17639_v53  ;;  %vm17642_vm2 = vmmov %vm17637_vm1  ;;  %v9541_v18 = vsel %vm17644_vm7, %v9301_v4, %v9345_v45  ;;  %v16161_v9 = vpop.permute.xlu1 %9379  ;;  %v9270_v28 = vpop.permute.xlu0 %9269  ;;  %vm17649_vm6 = vcmask 1043456   ;;  %v9425_v4 = vsel %vm8882_vm13, %v15979_v48, %v16010_v11 }
0x1641   : > { %v8649_v3 = vsel %vm17642_vm2, %v17639_v53, %v17641_v30  ;;  %vm17643_vm3 = vmmov %vm17638_vm4  ;;  %vm17648_vm4 = vcmask 523264   ;;  %v9560_v53 = vsel %vm17649_vm6, %v9541_v18, %v9389_v56 }
0x1642   : > { %v9302_v63 = vsel %vm17643_vm3, %v15929_v23, %v15909_v13  ;;  %vm17646_vm5 = vmmov %vm17637_vm1  ;;  %v9390_v60 = vsel %vm17648_vm4, %v9378_v36, %v16161_v9  ;;  %v16173_v23 = vsel %vm8882_vm13, %v17650_v42, %v15353_v17  ;;  %v9424_v17 = vsel %vm8882_vm13, %v15927_v46, %v15979_v48 }
0x1643   : > { %v8650_v15 = vsel %vm17646_vm5, %v17641_v30, %v17645_v35  ;;  %vm17647_vm1 = vmmov %vm17644_vm7 }
0x1644   : > { %v9544_v24 = vsel %vm17647_vm1, %v9302_v63, %v9346_v20  ;;  %vm17651_vm2 = vmmov %vm17647_vm1  ;;  %v17654_v63 = vld [vmem:[#allocation89_spill] sm:$0xff]  ;;  %v8944_v56 = vsel %vm17647_vm1, %v8350_v47, %v8650_v15  ;;  %v17660_v47 = vld [vmem:[#allocation26_spill] sm:$0xff] }
0x1645   : > { %v8935_v45 = vsel %vm17651_vm2, %v8347_v50, %v8647_v38  ;;  %vm17652_vm3 = vmmov %vm17649_vm6  ;;  %v16184_v36 = vsel %vm8918_vm0, %v17655_v52, %v17654_v63  ;;  %v9226_v38 = vpop.permute.xlu1 %9225  ;;  %vm17658_vm6 = vcmask 1039360   ;;  %v17670_v15 = vld [vmem:[#allocation122_spill] sm:$0xff] }
0x1646   : > { %v9562_v30 = vsel %vm17652_vm3, %v9544_v24, %v9390_v60  ;;  %vm17653_vm7 = vmmov %vm17647_vm1  ;;  %v9340_v24 = vpop.permute.xlu0 %9339  ;;  %v9189_v46 = vsel %vm17658_vm6, %v15939_v54, %v15996_v10  ;;  %v17665_v54 = vld [vmem:[#allocation93_spill] sm:$0xff] }
0x1647   : > { %v8938_v20 = vsel %vm17653_vm7, %v8348_v16, %v8648_v19  ;;  %v9583_v42 = vsel %vm8967_vm12, %v9562_v30, %v9425_v4  ;;  %vm17656_vm5 = vmmov %vm17647_vm1  ;;  %v9580_v16 = vsel %vm8967_vm12, %v9560_v53, %v9424_v17  ;;  %v9459_v19 = vsel %vm8918_vm0, %v15920_v43, %v15941_v55 }
0x1648   : > { %v16191_v50 = vsel %vm17656_vm5, %v8349_v32, %v8649_v3  ;;  %9703 = vmatprep.subr.bf16.mxu0 %v9583_v42  ;;  %vm17657_vm4 = vmmov %vm17652_vm3  ;;  %v9460_v32 = vsel %vm8918_vm0, %v15941_v55, %v15931_v33  ;;  %vm8343_vm3 = vcmp.ne.s16.totalorder %v17660_v47, 0  ;;  %vm17662_vm5 = vcmask 1031168   ;;  %v17669_v55 = vld [vmem:[#allocation121_spill] sm:$0xff] }
0x1649   : > { %v8954_v52 = vsel %vm17657_vm4, %v16045_v29, %v8690_v61  ;;  %vm17659_vm2 = vmmov %vm17658_vm6  ;;  %9704 = vmatpush1.bf16.msra.mxu0 %v9580_v16  ;;  %v17661_v29 = vld [vmem:[#allocation27_spill] sm:$0xff]  ;;  %v9233_v43 = vsel %vm17662_vm5, %v16042_v31, %v9224_v49  ;;  %vm17664_vm4 = vcmask 1041408   ;;  %v9107_v18 = vsel %vm8343_vm3, %v17669_v55, 0  ;;  %v9268_v53 = vpop.permute.xlu1 %9267 }
0x164a   : > { %v9190_v48 = vsel %vm17659_vm2, %v15996_v10, %v16022_v22  ;;  %vm17270_vm7 = vcmp.ne.s16.totalorder %v17661_v29, 0  ;;  %vm17663_vm1 = vmmov %vm17662_vm5  ;;  %12179 = vmatprep.subr.msk.bf16.mxu0 %vm17664_vm4, %v9460_v32  ;;  %v17667_v22 = vld [vmem:[#allocation94_spill] sm:$0xff]  ;;  %v9384_v4 = vpop.permute.xlu0 %9383  ;;  %v8972_v30 = vsel %vm8967_vm12, %v8954_v52, %v16093_v40  ;;  %v17687_v55 = vld [vmem:[#allocation99_spill] sm:$0xff] }
0x164b   : > { %v9234_v61 = vsel %vm17663_vm1, %v9224_v49, %v9226_v38  ;;  %vm17666_vm6 = vmmov %vm17663_vm1  ;;  %v9108_v31 = vsel %vm17270_vm7, %v17670_v15, 0  ;;  %v17683_v52 = vld [vmem:[#allocation98_spill] sm:$0xff] }
0x164c   : > { %v8691_v10 = vsel %vm17666_vm6, %v17612_v21, %v17665_v54  ;;  %vm17668_vm2 = vmmov %vm17663_vm1  ;;  %vm17674_vm6 = vcmask 785408  }
0x164d   : > { %v8692_v3 = vsel %vm17668_vm2, %v17665_v54, %v17667_v22  ;;  %vm17671_vm5 = vmmov %vm17664_vm4  ;;  %v9277_v17 = vsel %vm17674_vm6, %v16073_v7, %v9268_v53  ;;  %v17681_v7 = vld [vmem:[#allocation96_spill] sm:$0xff]  ;;  %v8969_v54 = vsel %vm8967_vm12, %v16086_v26, %v16105_v58  ;;  %v9338_v15 = vpop.permute.xlu1 %9337  ;;  %v17691_v58 = vld [vmem:[#allocation101_spill] sm:$0xff] }
0x164e   : > { %v9483_v49 = vsel %vm17671_vm5, %v9107_v18, %v9189_v46  ;;  %vm17672_vm1 = vmmov %vm17664_vm4  ;;  %v17678_v46 = vld [vmem:[#allocation95_spill] sm:$0xff]  ;;  %vm17679_vm5 = vcmask 1031168  }
0x164f   : > { %v9486_v60 = vsel %vm17672_vm1, %v9108_v31, %v9190_v48  ;;  %vm17673_vm4 = vmmov %vm17672_vm1  ;;  %v8693_v48 = vsel %vm17679_vm5, %v17667_v22, %v17678_v46  ;;  %v16268_v31 = vpop.permute.xlu0 %8910 }
0x1650   : > { %v9608_v21 = vsel %vm17673_vm4, %v9459_v19, 0  ;;  %vm17675_vm2 = vmmov %vm17674_vm6  ;;  %v9502_v38 = vsel %vm17676_vm15, %v9486_v60, %v9234_v61  ;;  %v17684_v61 = vld [vmem:[#allocation97_spill] sm:$0xff] }
0x1651   : > { %v9278_v42 = vsel %vm17675_vm2, %v9268_v53, %v9270_v28  ;;  %9706 = vmatpush1.bf16.msra.mxu0 %v9608_v21  ;;  %vm17677_vm14 = vmmov %vm17676_vm15  ;;  %v17695_v53 = vld [vmem:[#allocation103_spill] sm:$0xff] }
0x1652   : > { %v9500_v16 = vsel %vm17677_vm14, %v9483_v49, %v9233_v43  ;;  %9810 = vmatprep.subr.bf16.mxu0 %v8972_v30  ;;  %v9525_v19 = vsel %vm8967_vm12, %v9502_v38, %v9278_v42  ;;  %vm17680_vm1 = vmmov %vm17677_vm14  ;;  %v17697_v30 = vld [vmem:[#allocation105_spill] sm:$0xff]  ;;  %v17703_v42 = vld [vmem:[#allocation107_spill] sm:$0xff] }
0x1653   : > { %v9522_v32 = vsel %vm8967_vm12, %v9500_v16, %v9277_v17  ;;  %v9019_v40 = vsel %vm17680_vm1, %v16128_v0, %v8848_v44  ;;  %vm17682_vm4 = vmmov %vm17679_vm5  ;;  %9742 = vmatprep.subr.bf16.mxu1 %v9525_v19  ;;  %v17689_v44 = vld [vmem:[#allocation100_spill] sm:$0xff]  ;;  %v17701_v17 = vld [vmem:[#allocation106_spill] sm:$0xff] }
0x1654   : > { %v8694_v28 = vsel %vm17682_vm4, %v17678_v46, %v17681_v7  ;;  %vm17685_vm15 = vmmov %vm17675_vm2  ;;  %v8738_v18 = vsel %vm17675_vm2, %v17687_v55, %v17689_v44  ;;  %12180 = vmatmul.mubr.msk.bf16.vlgmr.msra.gmra.mrb[112].mxu0 %vm9591_vm10, %v15916_v12  ;;  %9743 = vmatpush1.bf16.msra.mxu1 %v9522_v32  ;;  %v9036_v60 = vsel %vm8967_vm12, %v9019_v40, %v16143_v57  ;;  %v17704_v38 = vld [vmem:[#allocation104_spill] sm:$0xff]  ;;  %v9382_v32 = vpop.permute.xlu1 %9381  ;;  %v16305_v40 = vpop.permute.xlu0 %8685 }
0x1655   : > { %v16250_v43 = vsel %vm17685_vm15, %v17684_v61, %v17683_v52  ;;  %vm17686_vm14 = vmmov %vm17680_vm1  ;;  %9811 = vmatpush1.bf16.msra.mxu0 %v8969_v54  ;;  %9842 = vmatprep.mubr.bf16.mxu0 %v17447_v1  ;;  %vm17696_vm15 = vcmask 769024   ;;  %v17706_v46 = vld [vmem:[#allocation108_spill] sm:$0xff]  ;;  %v17711_v54 = vld [vmem:[#allocation90_spill] sm:$0xff] }
0x1656   : > { %v16256_v22 = vsel %vm17686_vm14, %v8935_v45, %v8691_v10  ;;  %vm17688_vm6 = vmmov %vm17675_vm2  ;;  %v17693_v10 = vld [vmem:[#allocation102_spill] sm:$0xff]  ;;  %v8805_v21 = vsel %vm17696_vm15, %v17621_v39, %v17695_v53  ;;  %9812 = vmatprep.subr.bf16.mxu0 %v9036_v60 }
0x1657   : > { %v16261_v0 = vsel %vm17688_vm6, %v17683_v52, %v17687_v55  ;;  %vm17690_vm5 = vmmov %vm17680_vm1  ;;  %vm17692_vm1 = vcmask 777216   ;;  %v9033_v52 = vsel %vm8967_vm12, %v16138_v14, %v16173_v23  ;;  %v8920_v55 = vsel %vm8918_vm0, %v17654_v63, %v17711_v54 }
0x1658   : > { %v8958_v26 = vsel %vm17690_vm5, %v8938_v20, %v8692_v3  ;;  %v8761_v45 = vsel %vm17692_vm1, %v17619_v5, %v17691_v58  ;;  %vm17694_vm4 = vmmov %vm17692_vm1  ;;  %v9427_v14 = vsel %vm8882_vm13, %v16025_v27, %v16012_v62  ;;  %v16337_v60 = vpop.permute.xlu1 %8912 }
0x1659   : > { %v8762_v49 = vsel %vm17694_vm4, %v17691_v58, %v17693_v10  ;;  %vm17698_vm14 = vmmov %vm17692_vm1  ;;  %9813 = vmatpush1.bf16.msra.mxu0 %v9033_v52  ;;  %v17720_v58 = vld [vmem:[#allocation111_spill] sm:$0xff] }
0x165a   : > { %v8763_v20 = vsel %vm17698_vm14, %v17693_v10, %v17697_v30  ;;  %vm17699_vm6 = vmmov %vm17696_vm15  ;;  %vm17708_vm15 = vcmask 1043456  }
0x165b   : > { %v9347_v5 = vsel %vm17699_vm6, %v16114_v2, %v9338_v15  ;;  %vm17700_vm2 = vmmov %vm17699_vm6  ;;  %v8962_v19 = vsel %vm17708_vm15, %v8944_v56, %v8694_v28 }
0x165c   : > { %v9348_v3 = vsel %vm17700_vm2, %v9338_v15, %v9340_v24  ;;  %vm17702_vm5 = vmmov %vm17692_vm1 }
0x165d   : > { %v8764_v57 = vsel %vm17702_vm5, %v17697_v30, %v17701_v17  ;;  %vm17705_vm1 = vmmov %vm17700_vm2  ;;  %vm17712_vm2 = vcmask 1041408   ;;  %v16339_v30 = vpop.permute.xlu0 %8729 }
0x165e   : > { %v8807_v16 = vsel %vm17705_vm1, %v17704_v38, %v17703_v42  ;;  %vm17707_vm4 = vmmov %vm17705_vm1  ;;  %vm17714_vm1 = vcmask 523264  }
0x165f   : > { %v8808_v39 = vsel %vm17707_vm4, %v17703_v42, %v17706_v46  ;;  %vm17709_vm14 = vmmov %vm17702_vm5  ;;  %v17727_v42 = vld [vmem:[#allocation22_spill] sm:$0xff] }
0x1660   : > { %v9303_v2 = vsel %vm17709_vm14, %v15909_v13, %v15925_v37  ;;  %vm17710_vm6 = vmmov %vm17702_vm5  ;;  %v9391_v13 = vsel %vm17714_vm1, %v16161_v9, %v9382_v32  ;;  %vm17717_vm14 = vcmask 1043456   ;;  %v9009_v15 = vsel %vm17712_vm2, %v8764_v57, %v8808_v39  ;;  %v17719_v9 = vld [vmem:[#allocation112_spill] sm:$0xff] }
0x1661   : > { %v9304_v24 = vsel %vm17710_vm6, %v15925_v37, %v15933_v51  ;;  %v9547_v56 = vsel %vm17712_vm2, %v9303_v2, %v9347_v5  ;;  %vm17713_vm5 = vmmov %vm17712_vm2  ;;  %v9426_v51 = vsel %vm8882_vm13, %v16010_v11, %v16025_v27  ;;  %v9461_v57 = vsel %vm8918_vm0, %v15931_v33, %v15935_v8  ;;  %v17730_v39 = vld [vmem:[#allocation116_spill] sm:$0xff] }
0x1662   : > { %v9550_v28 = vsel %vm17713_vm5, %v9304_v24, %v9348_v3  ;;  %vm17715_vm4 = vmmov %vm17714_vm1  ;;  %v8978_v24 = vsel %vm8967_vm12, %v8958_v26, %v16250_v43 }
0x1663   : > { %v9392_v37 = vsel %vm17715_vm4, %v9382_v32, %v9384_v4  ;;  %vm17716_vm15 = vmmov %vm17712_vm2 }
0x1664   : > { %12183 = vmatprep.subr.msk.bf16.mxu0 %vm17716_vm15, %v8920_v55  ;;  %v9566_v23 = vsel %vm17717_vm14, %v9550_v28, %v9392_v37  ;;  %vm17718_vm6 = vmmov %vm17717_vm14  ;;  %v8688_v55 = vpop.permute.xlu1 %8687 }
0x1665   : > { %v9564_v63 = vsel %vm17718_vm6, %v9547_v56, %v9391_v13  ;;  %vm17721_vm5 = vmmov %vm17714_vm1  ;;  %v9589_v10 = vsel %vm8967_vm12, %v9566_v23, %v9427_v14  ;;  %vm17723_vm1 = vcmask 769024   ;;  %v17738_v56 = vld [vmem:[#allocation114_spill] sm:$0xff] }
0x1666   : > { %v8852_v4 = vsel %vm17721_vm5, %v17720_v58, %v17719_v9  ;;  %v9586_v11 = vsel %vm8967_vm12, %v9564_v63, %v9426_v51  ;;  %v8806_v62 = vsel %vm17723_vm1, %v17695_v53, %v17704_v38  ;;  %vm17724_vm4 = vmmov %vm17712_vm2  ;;  %9744 = vmatprep.subr.bf16.mxu1 %v9589_v10  ;;  %v9462_v53 = vsel %vm8918_vm0, %v15935_v8, %v17727_v42  ;;  %v16353_v38 = vld [vmem:[%s17722_s28] sm:$0x3]  ;;  %v17742_v63 = vld [vmem:[#allocation118_spill] sm:$0xff] }
0x1667   : > { %v9006_v27 = vsel %vm17724_vm4, %v8763_v20, %v8807_v16  ;;  %vm17725_vm15 = vmmov %vm17712_vm2  ;;  %9745 = vmatpush1.bf16.msra.mxu1 %v9586_v11  ;;  %v8984_v20 = vsel %vm8967_vm12, %v8962_v19, %v8738_v18  ;;  %v17728_v16 = vld [vmem:[#allocation110_spill] sm:$0xff]  ;;  %vm17733_vm1 = vcmask 785408   ;;  %v17735_v19 = vld [vmem:[#allocation109_spill] sm:$0xff] }
0x1668   : > { %v9787_v5 = vsel %vm17725_vm15, %v16184_v36, 0  ;;  %vm17726_vm14 = vmmov %vm17718_vm6  ;;  %12181 = vmatprep.subr.msk.bf16.mxu1 %vm17712_vm2, %v9462_v53  ;;  %v8735_v8 = vsel %vm17733_vm1, %v17616_v6, %v17684_v61  ;;  %v16378_v6 = vpop.permute.xlu0 %8755  ;;  %v9614_v61 = vsel %vm17712_vm2, %v9461_v57, 0  ;;  %v8732_v13 = vpop.permute.xlu1 %8731  ;;  %v17746_v10 = vld [vmem:[#allocation119_spill] sm:$0xff] }
0x1669   : > { %v8960_v3 = vsel %vm17726_vm14, %v16191_v50, %v8693_v48  ;;  %9815 = vmatpush1.bf16.msra.mxu0 %v9787_v5  ;;  %vm17729_vm6 = vmmov %vm17721_vm5  ;;  %v17731_v50 = vld [vmem:[#allocation115_spill] sm:$0xff]  ;;  %v8975_v51 = vsel %vm8967_vm12, %v16256_v22, %v8735_v8 }
0x166a   : > { %v8851_v36 = vsel %vm17729_vm6, %v17728_v16, %v17720_v58  ;;  %v8888_v48 = vsel %vm8882_vm13, %v17731_v50, %v17730_v39  ;;  %9892 = vmatprep.subr.bf16.mxu0 %v8984_v20  ;;  %vm17732_vm5 = vmmov %vm17726_vm14  ;;  %v8849_v52 = vsel %vm17729_vm6, %v15345_v25, %v17735_v19  ;;  %v8887_v43 = vsel %vm8882_vm13, %v17738_v56, %v17731_v50 }
0x166b   : > { %v9027_v33 = vsel %vm17732_vm5, %v9009_v15, %v8852_v4  ;;  %vm17734_vm4 = vmmov %vm17712_vm2  ;;  %9747 = vmatpush1.bf16.msra.mxu1 %v9614_v61  ;;  %v9025_v25 = vsel %vm17732_vm5, %v9006_v27, %v8851_v36  ;;  %v8923_v15 = vsel %vm8918_vm0, %v17742_v63, %v16268_v31  ;;  %v8924_v58 = vsel %vm8918_vm0, %v16268_v31, %v16337_v60  ;;  %v17745_v4 = vld [vmem:[#allocation120_spill] sm:$0xff] }
0x166c   : > { %v9003_v18 = vsel %vm17734_vm4, %v8762_v49, %v8806_v62  ;;  %vm17736_vm15 = vmmov %vm17729_vm6  ;;  %12184 = vmatmul.mubr.msk.bf16.vlgmr.msra.gmra.mrb[116].mxu0 %vm9591_vm10, %v16353_v38  ;;  %v8981_v49 = vsel %vm8967_vm12, %v8960_v3, %v16261_v0  ;;  %v9048_v26 = vsel %vm8967_vm12, %v9027_v33, %v8888_v48  ;;  %9851 = vmatprep.subr.bf16.mxu1 %v8978_v24  ;;  %v8800_v37 = vpop.permute.xlu0 %8799  ;;  %v8758_v27 = vpop.permute.xlu1 %8757  ;;  %v17749_v3 = vld [vmem:[#allocation117_spill] sm:$0xff] }
0x166d   : > { %v8850_v2 = vsel %vm17736_vm15, %v17735_v19, %v17728_v16  ;;  %vm17737_vm14 = vmmov %vm17712_vm2  ;;  %9893 = vmatpush1.bf16.msra.mxu0 %v8981_v49  ;;  %9924 = vmatprep.mubr.bf16.mxu0 %v17447_v1  ;;  %v9045_v14 = vsel %vm8967_vm12, %v9025_v25, %v8887_v43  ;;  %v8921_v31 = vsel %vm8918_vm0, %v17711_v54, %v17749_v3  ;;  %v17753_v16 = vld [vmem:[#allocation64_spill] sm:$0xff] }
0x166e   : > { %v9000_v32 = vsel %vm17737_vm14, %v8761_v45, %v8805_v21  ;;  %v17739_v45 = vld [vmem:[#allocation113_spill] sm:$0xff]  ;;  %9894 = vmatprep.subr.bf16.mxu0 %v9048_v26  ;;  %vm17740_vm1 = vmmov %vm17732_vm5  ;;  %12182 = vmatmul.mubr.msk.bf16.vlgmr.msra.gmra.mrb[84].mxu1 %vm9591_vm10, %v15916_v12  ;;  %v17744_v12 = vld [vmem:[#allocation80_spill] sm:$0xff]  ;;  %vm17747_vm14 = vcmask 1039360   ;;  %v8922_v53 = vsel %vm8918_vm0, %v17749_v3, %v17742_v63  ;;  %vm17751_vm5 = vcmask 785408  }
0x166f   : > { %v8886_v21 = vsel %vm8882_vm13, %v17739_v45, %v17738_v56  ;;  %v9023_v28 = vsel %vm17740_vm1, %v9003_v18, %v8850_v2  ;;  %v8885_v0 = vsel %vm8882_vm13, %v15356_v41, %v17739_v45  ;;  %vm17741_vm4 = vmmov %vm17740_vm1  ;;  %9852 = vmatpush1.bf16.msra.mxu1 %v8975_v51  ;;  %9883 = vmatprep.mubr.bf16.mxu1 %v17447_v1  ;;  %v8352_v22 = vsel %vm17270_vm7, %v17744_v12, 0 }
0x1670   : > { %v9021_v23 = vsel %vm17741_vm4, %v9000_v32, %v8849_v52  ;;  %v9042_v41 = vsel %vm8967_vm12, %v9023_v28, %v8886_v21  ;;  %vm17743_vm15 = vmmov %vm17712_vm2  ;;  %v8652_v11 = vsel %vm17747_vm14, %v17746_v10, %v17745_v4  ;;  %v8844_v42 = vpop.permute.xlu0 %8843  ;;  %v8740_v20 = vsel %vm17751_vm5, %v16339_v30, %v8732_v13  ;;  %v8802_v33 = vpop.permute.xlu1 %8801 }
0x1671   : > { %9895 = vmatpush1.bf16.msra.mxu0 %v9045_v14  ;;  %9853 = vmatprep.subr.bf16.mxu1 %v9042_v41  ;;  %vm17748_vm6 = vmmov %vm17712_vm2  ;;  %v9039_v5 = vsel %vm8967_vm12, %v9021_v23, %v8885_v0  ;;  %vm17750_vm2 = vcmask 1031168   ;;  %v8351_v36 = vsel %vm8343_vm3, %v17753_v16, 0  ;;  %v8739_v19 = vsel %vm17751_vm5, %v17689_v44, %v16339_v30 }
0x1672   : > { %12187 = vmatprep.subr.msk.bf16.mxu0 %vm17743_vm15, %v8924_v58  ;;  %v9799_v62 = vsel %vm17748_vm6, %v8923_v15, 0  ;;  %v8696_v57 = vsel %vm17750_vm2, %v16305_v40, %v8688_v55  ;;  %vm17752_vm1 = vmmov %vm17748_vm6 }
0x1673   : > { %9854 = vmatpush1.bf16.msra.mxu1 %v9039_v5  ;;  %vm17754_vm4 = vmmov %vm17747_vm14 }
0x1674   : > { %12185 = vmatprep.subr.msk.bf16.mxu1 %vm17752_vm1, %v8922_v53  ;;  %v8651_v54 = vsel %vm17754_vm4, %v17645_v35, %v17746_v10  ;;  %vm17755_vm15 = vmmov %vm17752_vm1  ;;  %v8846_v24 = vpop.permute.xlu1 %8845 }
0x1675   : > { %9897 = vmatpush1.bf16.msra.mxu0 %v9799_v62  ;;  %v8950_v50 = vsel %vm17755_vm15, %v8352_v22, %v8652_v11  ;;  %vm17756_vm14 = vmmov %vm17750_vm2  ;;  %vm17758_vm2 = vcmask 1043456   ;;  %v8947_v2 = vsel %vm17752_vm1, %v8351_v36, %v8651_v54  ;;  %vm17760_vm15 = vcmask 769024  }
0x1676   : > { %v8695_v48 = vsel %vm17756_vm14, %v17681_v7, %v16305_v40  ;;  %vm17757_vm6 = vmmov %vm17752_vm1  ;;  %v8966_v18 = vsel %vm17758_vm2, %v8950_v50, %v8696_v57  ;;  %v8879_v40 = vpop.permute.xlu0 %8878  ;;  %v8810_v52 = vsel %vm17760_vm15, %v8800_v37, %v8802_v33 }
0x1677   : > { %v9793_v8 = vsel %vm17757_vm6, %v8921_v31, 0  ;;  %v8990_v35 = vsel %vm8967_vm12, %v8966_v18, %v8740_v20  ;;  %vm17759_vm4 = vmmov %vm17758_vm2  ;;  %vm17762_vm6 = vcmask 523264   ;;  %vm17763_vm2 = vcmask 777216  }
0x1678   : > { %12188 = vmatmul.mubr.msk.bf16.vlgmr.msra.gmra.mrb[120].mxu0 %vm9591_vm10, %v16353_v38  ;;  %9856 = vmatpush1.bf16.msra.mxu1 %v9793_v8  ;;  %v8964_v7 = vsel %vm17759_vm4, %v8947_v2, %v8695_v48  ;;  %vm17761_vm14 = vmmov %vm17760_vm15  ;;  %v8854_v30 = vsel %vm17762_vm6, %v8844_v42, %v8846_v24  ;;  %v8766_v55 = vsel %vm17763_vm2, %v16378_v6, %v8758_v27  ;;  %vm17766_vm4 = vcmask 1041408   ;;  %v8881_v26 = vpop.permute.xlu1 %8880 }
0x1679   : > { %10600 = vmatprep.mubr.bf16.mxu0 %v17447_v1  ;;  %9933 = vmatprep.subr.bf16.mxu1 %v8990_v35  ;;  %v8987_v32 = vsel %vm8967_vm12, %v8964_v7, %v8739_v19  ;;  %v8809_v44 = vsel %vm17761_vm14, %v17706_v46, %v8800_v37  ;;  %vm17764_vm5 = vmmov %vm17762_vm6  ;;  %v9015_v56 = vsel %vm17766_vm4, %v8766_v55, %v8810_v52  ;;  %vm17768_vm14 = vcmask 1043456  }
0x167a   : > { %v8853_v61 = vsel %vm17764_vm5, %v17719_v9, %v8844_v42  ;;  %vm17765_vm1 = vmmov %vm17763_vm2  ;;  %v8889_v43 = vsel %vm8882_vm13, %v17730_v39, %v8879_v40  ;;  %v8915_v25 = vpop.permute.xlu0 %8914  ;;  %v8890_v45 = vsel %vm8882_vm13, %v8879_v40, %v8881_v26  ;;  %v9031_v21 = vsel %vm17768_vm14, %v9015_v56, %v8854_v30 }
0x167b   : > { %12186 = vmatmul.mubr.msk.bf16.vlgmr.msra.gmra.mrb[88].mxu1 %vm9591_vm10, %v16353_v38  ;;  %v8765_v49 = vsel %vm17765_vm1, %v17701_v17, %v16378_v6  ;;  %vm17767_vm15 = vmmov %vm17766_vm4  ;;  %v9054_v9 = vsel %vm8967_vm12, %v9031_v21, %v8890_v45  ;;  %v8925_v6 = vsel %vm8918_vm0, %v16337_v60, %v8915_v25 }
0x167c   : > { %9934 = vmatpush1.bf16.msra.mxu1 %v8987_v32  ;;  %9965 = vmatprep.mubr.bf16.mxu1 %v17447_v1  ;;  %v9012_v46 = vsel %vm17767_vm15, %v8765_v49, %v8809_v44  ;;  %vm17769_vm6 = vmmov %vm17768_vm14  ;;  %v8917_v0 = vpop.permute.xlu1 %8916 }
0x167d   : > { %v9029_v28 = vsel %vm17769_vm6, %v9012_v46, %v8853_v61  ;;  %9935 = vmatprep.subr.bf16.mxu1 %v9054_v9  ;;  %v8926_v39 = vsel %vm8918_vm0, %v8915_v25, %v8917_v0  ;;  %vm17770_vm2 = vmmov %vm17766_vm4 }
0x167e   : > { %v9051_v17 = vsel %vm8967_vm12, %v9029_v28, %v8889_v43  ;;  %vm17771_vm5 = vmmov %vm17770_vm2  ;;  %v9976_v11 = vpop.permute.xlu0 %9975 }
0x167f   : > { %v9805_v13 = vsel %vm17771_vm5, %v8925_v6, 0 }
0x1680   : > { %9936 = vmatpush1.bf16.msra.mxu1 %v9051_v17 }
0x1681   : > { %12189 = vmatprep.subr.msk.bf16.mxu1 %vm17770_vm2, %v8926_v39 }
0x1684   : > { %9938 = vmatpush1.bf16.msra.mxu1 %v9805_v13 }
0x1687   : > { %12190 = vmatmul.mubr.msk.bf16.vlgmr.msra.gmra.mrb[92].mxu1 %vm9591_vm10, %v16353_v38 }
0x1688   : > { %10641 = vmatprep.mubr.bf16.mxu1 %v17447_v1 }
0x16d3   : > { %v9653_v37 = vpop.f32.mrb[108].mxu0 }
0x16d4   : > { %v9655_v51 = vpop.f32.mrb[109].mxu0 }
0x16d5   : > { %v9657_v14 = vpop.f32.mrb[110].mxu0 }
0x16d6   : > { %v9658_v23 = vpop.f32.mrb[111].mxu0 }
0x1703   : > { %v9694_v63 = vpop.f32.mrb[80].mxu1 }
0x1704   : > { %v9696_v60 = vpop.f32.mrb[81].mxu1 }
0x1705   : > { %v9698_v15 = vpop.f32.mrb[82].mxu1 }
0x1706   : > { %v9699_v41 = vpop.f32.mrb[83].mxu1 }
0x1727   : > { %v9735_v58 = vpop.f32.mrb[112].mxu0 }
0x1728   : > { %v9737_v12 = vpop.f32.mrb[113].mxu0 }
0x1729   : > { %v9739_v22 = vpop.f32.mrb[114].mxu0 }
0x172a   : > { %v9740_v4 = vpop.f32.mrb[115].mxu0 }
0x173f   : > { %v9844_v10 = vpop.f32.mrb[116].mxu0 }
0x1740   : > { %v9845_v62 = vadd.f32 %v9844_v10, %v9653_v37  ;;  %v9846_v27 = vpop.f32.mrb[117].mxu0  ;;  %v17772_v10 = vld [vmem:[#allocation34_spill] sm:$0xff] }
0x1741   : > { %v9847_v5 = vadd.f32 %v9846_v27, %v9655_v51  ;;  %v9848_v38 = vpop.f32.mrb[118].mxu0  ;;  %v9776_v57 = vpop.f32.mrb[84].mxu1  ;;  %vm17773_vm1 = vcmp.ne.s16.totalorder %v17772_v10, 0  ;;  %v17804_v10 = vld [vmem:[#allocation53_spill] sm:$0xff] }
0x1742   : > { %v9849_v3 = vpop.f32.mrb[119].mxu0  ;;  %v9978_v31 = vadd.f32 %v9976_v11, %v9845_v62  ;;  %v9778_v20 = vpop.f32.mrb[85].mxu1  ;;  %v17774_v62 = vld [vmem:[#allocation29_spill] sm:$0xff] }
0x1743   : > { %v9979_v42 = vadd.f32 %v9976_v11, %v9847_v5  ;;  %v9780_v16 = vpop.f32.mrb[86].mxu1  ;;  %vm17775_vm4 = vcmp.ne.s16.totalorder %v17774_v62, 0  ;;  %v17776_v5 = vld [vmem:[#allocation59_spill] sm:$0xff] }
0x1744   : > { %v9986_v53 = vmax.f32 %v9978_v31, 0.0  ;;  %v9781_v50 = vpop.f32.mrb[87].mxu1  ;;  %vm17777_vm15 = vcmp.ne.s16.totalorder %v17776_v5, 0  ;;  %v17778_v31 = vld [vmem:[#allocation32_spill] sm:$0xff] }
0x1745   : > { %v9987_v54 = vmax.f32 %v9979_v42, 0.0  ;;  %vm17779_vm14 = vcmp.ne.s16.totalorder %v17778_v31, 0  ;;  %v17808_v31 = vld [vmem:[#allocation67_spill] sm:$0xff] }
0x1746   : > { %v9994_v36 = vpack.c.bf16 %v9986_v53, %v9986_v53  ;;  %v17780_v53 = vld [vmem:[#allocation30_spill] sm:$0xff] }
0x1747   : > { %v9995_v48 = vpack.c.bf16 %v9987_v54, %v9987_v54  ;;  %vm17781_vm6 = vcmp.ne.s16.totalorder %v17780_v53, 0  ;;  %v17810_v53 = vld [vmem:[#allocation63_spill] sm:$0xff] }
0x1748   : > { %10011 = vrot.lane.b32.xlu1 %v9994_v36, %s12767_s11  ;;  %v17782_v36 = vld [vmem:[#allocation42_spill] sm:$0xff] }
0x1749   : > { %vm17783_vm2 = vcmp.ne.s16.totalorder %v17782_v36, 0  ;;  %v17812_v36 = vld [vmem:[#allocation70_spill] sm:$0xff] }
0x174b   : > { %v9926_v33 = vpop.f32.mrb[120].mxu0 }
0x174c   : > { %v9927_v8 = vadd.f32 %v9926_v33, %v9735_v58  ;;  %v9928_v18 = vpop.f32.mrb[121].mxu0  ;;  %10013 = vrot.lane.b32.xlu1 %v9995_v48, %s12767_s11  ;;  %v17784_v48 = vld [vmem:[#allocation31_spill] sm:$0xff] }
0x174d   : > { %v9929_v19 = vadd.f32 %v9928_v18, %v9737_v12  ;;  %v9930_v35 = vpop.f32.mrb[122].mxu0  ;;  %vm17785_vm5 = vcmp.ne.s16.totalorder %v17784_v48, 0  ;;  %v17786_v18 = vld [vmem:[#allocation50_spill] sm:$0xff]  ;;  %v17814_v48 = vld [vmem:[#allocation65_spill] sm:$0xff] }
0x174e   : > { %v9931_v2 = vpop.f32.mrb[123].mxu0  ;;  %v9885_v7 = vpop.f32.mrb[88].mxu1  ;;  %v9982_v44 = vadd.f32 %v9976_v11, %v9927_v8 }
0x174f   : > { %v9886_v40 = vadd.f32 %v9885_v7, %v9694_v63  ;;  %v9887_v24 = vpop.f32.mrb[89].mxu1  ;;  %v9983_v61 = vadd.f32 %v9976_v11, %v9929_v19  ;;  %v17788_v7 = vld [vmem:[#allocation52_spill] sm:$0xff] }
0x1750   : > { %v9888_v32 = vadd.f32 %v9887_v24, %v9696_v60  ;;  %v9889_v52 = vpop.f32.mrb[90].mxu1  ;;  %v9990_v26 = vmax.f32 %v9982_v44, 0.0 }
0x1751   : > { %v9980_v30 = vadd.f32 %v9976_v11, %v9886_v40  ;;  %v9890_v55 = vpop.f32.mrb[91].mxu1  ;;  %v9991_v25 = vmax.f32 %v9983_v61, 0.0 }
0x1752   : > { %v9981_v49 = vadd.f32 %v9976_v11, %v9888_v32  ;;  %v9998_v21 = vpack.c.bf16 %v9990_v26, %v9990_v26  ;;  %v17790_v32 = vld [vmem:[#allocation46_spill] sm:$0xff]  ;;  %v17792_v26 = vld [vmem:[#allocation60_spill] sm:$0xff] }
0x1753   : > { %v9988_v56 = vmax.f32 %v9980_v30, 0.0  ;;  %v9999_v28 = vpack.c.bf16 %v9991_v25, %v9991_v25 }
0x1754   : > { %v9989_v43 = vmax.f32 %v9981_v49, 0.0 }
0x1755   : > { %v9996_v46 = vpack.c.bf16 %v9988_v56, %v9988_v56 }
0x1756   : > { %v9997_v45 = vpack.c.bf16 %v9989_v43, %v9989_v43 }
0x1757   : > { %10015 = vrot.lane.b32.xlu0 %v9996_v46, %s12767_s11 }
0x1758   : > { %10017 = vrot.lane.b32.xlu1 %v9997_v45, %s12767_s11 }
0x175a   : > { %v9967_v9 = vpop.f32.mrb[92].mxu1 }
0x175b   : > { %10019 = vrot.lane.b32.xlu0 %v9998_v21, %s12767_s11  ;;  %v9968_v17 = vadd.f32 %v9967_v9, %v9776_v57  ;;  %v9969_v6 = vpop.f32.mrb[93].mxu1  ;;  %v17794_v21 = vld [vmem:[#allocation78_spill] sm:$0xff] }
0x175c   : > { %10021 = vrot.lane.b32.xlu1 %v9999_v28, %s12767_s11  ;;  %v9970_v0 = vadd.f32 %v9969_v6, %v9778_v20  ;;  %v9971_v39 = vpop.f32.mrb[94].mxu1 }
0x175d   : > { %v9984_v13 = vadd.f32 %v9976_v11, %v9968_v17  ;;  %v9972_v37 = vpop.f32.mrb[95].mxu1 }
0x175e   : > { %v9985_v51 = vadd.f32 %v9976_v11, %v9970_v0  ;;  %v17796_v0 = vld [vmem:[#allocation79_spill] sm:$0xff] }
0x175f   : > { %v9992_v14 = vmax.f32 %v9984_v13, 0.0  ;;  %v17798_v37 = vld [vmem:[#allocation43_spill] sm:$0xff] }
0x1760   : > { %v9993_v23 = vmax.f32 %v9985_v51, 0.0 }
0x1761   : > { %v10000_v63 = vpack.c.bf16 %v9992_v14, %v9992_v14 }
0x1762   : > { %v10001_v60 = vpack.c.bf16 %v9993_v23, %v9993_v23  ;;  %v17800_v23 = vld [vmem:[#allocation48_spill] sm:$0xff] }
0x1763   : > { %10023 = vrot.lane.b32.xlu0 %v10000_v63, %s12767_s11 }
0x1764   : > { %10025 = vrot.lane.b32.xlu1 %v10001_v60, %s12767_s11 }
0x17ba   : > { %v10012_v15 = vpop.permute.xlu1 %10011 }
0x17bb   : > { %v16492_v41 = vsel %vm8259_vm11, 0, %v10012_v15 }
0x17bc   : > { %10225 = vrot.lane.b32.xlu1 %v16492_v41, %s17312_s5  ;;  %v10102_v58 = vrot.slane %v16492_v41, 6  ;;  %v10339_v4 = vrot.slane %v16492_v41, 2  ;;  %v10091_v11 = vsel %vm17773_vm1, %v16492_v41, 0  ;;  %v10055_v27 = vsel %vm17775_vm4, %v16492_v41, 0 }
0x17bd   : > { %v10146_v3 = vrot.slane %v10055_v27, 4  ;;  %v10082_v57 = vsel %vm17779_vm14, %v16492_v41, 0  ;;  %v10064_v20 = vsel %vm17781_vm6, %v16492_v41, 0  ;;  %v10073_v33 = vsel %vm17785_vm5, %v16492_v41, 0  ;;  %v17806_v27 = vld [vmem:[#allocation61_spill] sm:$0xff] }
0x17be   : > { %10111 = vrot.lane.b32.xlu0 %v10102_v58, %s17310_s26  ;;  %v10014_v12 = vpop.permute.xlu1 %10013  ;;  %v10304_v16 = vrot.slane %v10082_v57, 4  ;;  %v10190_v50 = vrot.slane %v10064_v20, 2  ;;  %vm17787_vm1 = vcmp.ne.s16.totalorder %v17786_v18, 0  ;;  %v10260_v35 = vrot.slane %v10073_v33, 6  ;;  %v17816_v18 = vld [vmem:[#allocation74_spill] sm:$0xff] }
0x17bf   : > { %v16499_v22 = vsel %vm8259_vm11, %v10012_v15, %v10014_v12  ;;  %vm17789_vm4 = vcmp.ne.s16.totalorder %v17788_v7, 0  ;;  %vm17793_vm14 = vcmp.ne.s16.totalorder %v17792_v26, 0  ;;  %vm17795_vm6 = vcmp.ne.s16.totalorder %v17794_v21, 0  ;;  %v17802_v15 = vld [vmem:[#allocation51_spill] sm:$0xff]  ;;  %v17822_v21 = vld [vmem:[#allocation62_spill] sm:$0xff] }
0x17c0   : > { %10227 = vrot.lane.b32.xlu1 %v16499_v22, %s17312_s5  ;;  %v10092_v38 = vsel %vm17777_vm15, %v16499_v22, 0  ;;  %v10103_v42 = vrot.slane %v16499_v22, 6  ;;  %v10056_v54 = vsel %vm17783_vm2, %v16499_v22, 0  ;;  %v10074_v19 = vsel %vm17787_vm1, %v16499_v22, 0 }
0x17c1   : > { %v10147_v8 = vrot.slane %v10056_v54, 4  ;;  %v10261_v2 = vrot.slane %v10074_v19, 6  ;;  %v10083_v40 = vsel %vm17789_vm4, %v16499_v22, 0  ;;  %v10340_v24 = vrot.slane %v16499_v22, 2 }
0x17c2   : > { %10348 = vrot.lane.b32.xlu0 %v10339_v4, %s12768_s7  ;;  %vm17791_vm15 = vcmp.ne.s16.totalorder %v17790_v32, 0  ;;  %v10305_v44 = vrot.slane %v10083_v40, 4  ;;  %vm17797_vm2 = vcmp.ne.s16.totalorder %v17796_v0, 0  ;;  %vm17799_vm5 = vcmp.ne.s16.totalorder %v17798_v37, 0  ;;  %v17824_v0 = vld [vmem:[#allocation68_spill] sm:$0xff]  ;;  %v17826_v37 = vld [vmem:[#allocation66_spill] sm:$0xff] }
0x17c3   : > { %v10065_v52 = vsel %vm17791_vm15, %v16499_v22, 0  ;;  %vm17801_vm1 = vcmp.ne.s16.totalorder %v17800_v23, 0  ;;  %vm17803_vm4 = vcmp.ne.s16.totalorder %v17802_v15, 0  ;;  %vm17805_vm15 = vcmp.ne.s16.totalorder %v17804_v10, 0  ;;  %v17828_v23 = vld [vmem:[#allocation72_spill] sm:$0xff]  ;;  %v17830_v15 = vld [vmem:[#allocation69_spill] sm:$0xff] }
0x17c4   : > { %10383 = vrot.lane.b32.xlu1 %v10091_v11, %s12769_s10  ;;  %v10191_v61 = vrot.slane %v10065_v52, 2  ;;  %v17820_v52 = vld [vmem:[#allocation75_spill] sm:$0xff] }
0x17c6   : > { %10385 = vrot.lane.b32.xlu0 %v10092_v38, %s12769_s10 }
0x17c8   : > { %10155 = vrot.lane.b32.xlu1 %v10146_v3, %s17309_s1 }
0x17c9   : > { %v10016_v30 = vpop.permute.xlu0 %10015 }
0x17ca   : > { %10113 = vrot.lane.b32.xlu0 %v10103_v42, %s17310_s26  ;;  %v10018_v55 = vpop.permute.xlu1 %10017  ;;  %v16553_v56 = vsel %vm8259_vm11, %v10014_v12, %v10016_v30 }
0x17cb   : > { %v16550_v49 = vsel %vm8259_vm11, %v10016_v30, %v10018_v55  ;;  %v10093_v46 = vsel %vm17793_vm14, %v16553_v56, 0  ;;  %v10104_v45 = vrot.slane %v16553_v56, 6  ;;  %v10341_v17 = vrot.slane %v16553_v56, 2 }
0x17cc   : > { %10313 = vrot.lane.b32.xlu1 %v10304_v16, %s12764_s8  ;;  %v10094_v28 = vsel %vm17795_vm6, %v16550_v49, 0  ;;  %v10105_v13 = vrot.slane %v16550_v49, 6  ;;  %v10057_v51 = vsel %vm17799_vm5, %v16553_v56, 0  ;;  %v10066_v63 = vsel %vm17801_vm1, %v16553_v56, 0 }
0x17cd   : > { %v10020_v43 = vpop.permute.xlu0 %10019  ;;  %v10148_v60 = vrot.slane %v10057_v51, 4  ;;  %v10075_v58 = vsel %vm17803_vm4, %v16553_v56, 0  ;;  %v10192_v12 = vrot.slane %v10066_v63, 2  ;;  %v10084_v11 = vsel %vm17805_vm15, %v16553_v56, 0 }
0x17ce   : > { %10199 = vrot.lane.b32.xlu0 %v10190_v50, %s17311_s3  ;;  %v16564_v25 = vsel %vm8259_vm11, %v10018_v55, %v10020_v43  ;;  %v10022_v9 = vpop.permute.xlu1 %10021  ;;  %v10262_v4 = vrot.slane %v10075_v58, 6  ;;  %vm17807_vm14 = vcmp.ne.s16.totalorder %v17806_v27, 0  ;;  %v10306_v38 = vrot.slane %v10084_v11, 4 }
0x17cf   : > { %v16577_v6 = vsel %vm8259_vm11, %v10020_v43, %v10022_v9  ;;  %v10095_v39 = vsel %vm17797_vm2, %v16564_v25, 0  ;;  %v10106_v14 = vrot.slane %v16564_v25, 6  ;;  %v10343_v62 = vrot.slane %v16564_v25, 2 }
0x17d0   : > { %10157 = vrot.lane.b32.xlu1 %v10147_v8, %s17309_s1  ;;  %v10058_v5 = vsel %vm17807_vm14, %v16550_v49, 0  ;;  %vm17809_vm6 = vcmp.ne.s16.totalorder %v17808_v31, 0  ;;  %v10342_v42 = vrot.slane %v16550_v49, 2  ;;  %vm17811_vm2 = vcmp.ne.s16.totalorder %v17810_v53, 0 }
0x17d1   : > { %v10149_v3 = vrot.slane %v10058_v5, 4  ;;  %v10068_v57 = vsel %vm17809_vm6, %v16564_v25, 0  ;;  %v10059_v20 = vsel %vm17811_vm2, %v16564_v25, 0  ;;  %vm17813_vm5 = vcmp.ne.s16.totalorder %v17812_v36, 0  ;;  %v17838_v36 = vld [vmem:[#allocation38_spill] sm:$0xff] }
0x17d2   : > { %10269 = vrot.lane.b32.xlu0 %v10260_v35, %s17329_s9  ;;  %v10194_v16 = vrot.slane %v10068_v57, 2  ;;  %v10076_v54 = vsel %vm17813_vm5, %v16550_v49, 0  ;;  %v10150_v50 = vrot.slane %v10059_v20, 4  ;;  %vm17815_vm1 = vcmp.ne.s16.totalorder %v17814_v48, 0 }
0x17d3   : > { %v10067_v33 = vsel %vm17815_vm1, %v16550_v49, 0  ;;  %v10263_v8 = vrot.slane %v10076_v54, 6  ;;  %vm17817_vm4 = vcmp.ne.s16.totalorder %v17816_v18, 0  ;;  %vm17821_vm14 = vcmp.ne.s16.totalorder %v17820_v52, 0 }
0x17d4   : > { %10271 = vrot.lane.b32.xlu1 %v10261_v2, %s17329_s9  ;;  %v10085_v19 = vsel %vm17817_vm4, %v16550_v49, 0  ;;  %v10193_v35 = vrot.slane %v10067_v33, 2  ;;  %v17818_v2 = vld [vmem:[#allocation71_spill] sm:$0xff]  ;;  %v10107_v26 = vrot.slane %v16577_v6, 6  ;;  %vm17823_vm6 = vcmp.ne.s16.totalorder %v17822_v21, 0  ;;  %v17840_v33 = vld [vmem:[#allocation33_spill] sm:$0xff] }
0x17d5   : > { %vm17819_vm15 = vcmp.ne.s16.totalorder %v17818_v2, 0  ;;  %v10307_v40 = vrot.slane %v10085_v19, 4  ;;  %vm17825_vm2 = vcmp.ne.s16.totalorder %v17824_v0, 0  ;;  %vm17827_vm5 = vcmp.ne.s16.totalorder %v17826_v37, 0  ;;  %v17852_v37 = vld [vmem:[#allocation37_spill] sm:$0xff] }
0x17d6   : > { %10350 = vrot.lane.b32.xlu0 %v10340_v24, %s12768_s7  ;;  %v10077_v7 = vsel %vm17819_vm15, %v16564_v25, 0  ;;  %v10024_v24 = vpop.permute.xlu0 %10023  ;;  %v10026_v55 = vpop.permute.xlu1 %10025  ;;  %vm17829_vm1 = vcmp.ne.s16.totalorder %v17828_v23, 0  ;;  %vm17831_vm4 = vcmp.ne.s16.totalorder %v17830_v15, 0 }
0x17d7   : > { %v10264_v32 = vrot.slane %v10077_v7, 6  ;;  %v16641_v30 = vsel %vm8259_vm11, %v10022_v9, %v10024_v24  ;;  %v16647_v43 = vsel %vm8259_vm11, %v10026_v55, 0  ;;  %v10078_v63 = vsel %vm17829_vm1, %v16577_v6, 0 }
0x17d8   : > { %10315 = vrot.lane.b32.xlu1 %v10305_v44, %s12764_s8  ;;  %v10086_v44 = vsel %vm17821_vm14, %v16564_v25, 0  ;;  %v10345_v9 = vrot.slane %v16641_v30, 2  ;;  %v10061_v51 = vsel %vm17827_vm5, %v16641_v30, 0  ;;  %v10070_v58 = vsel %vm17831_vm4, %v16641_v30, 0 }
0x17d9   : > { %v10196_v11 = vrot.slane %v10070_v58, 2  ;;  %v16693_v57 = vsel %vm8259_vm11, %v10024_v24, %v10026_v55  ;;  %vm17841_vm11 = vcmp.ne.s16.totalorder %v17840_v33, 0  ;;  %v17844_v24 = vld [vmem:[#allocation35_spill] sm:$0xff]  ;;  %v17846_v55 = vld [vmem:[#allocation54_spill] sm:$0xff]  ;;  %v17854_v58 = vld [vmem:[#allocation40_spill] sm:$0xff] }
0x17da   : > { %10201 = vrot.lane.b32.xlu0 %v10191_v61, %s17311_s3  ;;  %v10308_v61 = vrot.slane %v10086_v44, 4  ;;  %v10109_v53 = vrot.slane %v16693_v57, 6  ;;  %v10346_v48 = vrot.slane %v16693_v57, 2  ;;  %vm17845_vm1 = vcmp.ne.s16.totalorder %v17844_v24, 0 }
0x17db   : > { %vm17847_vm4 = vcmp.ne.s16.totalorder %v17846_v55, 0 }
0x17dc   : > { %10231 = vrot.lane.b32.xlu1 %v16550_v49, %s17312_s5 }
0x17de   : > { %10229 = vrot.lane.b32.xlu0 %v16553_v56, %s17312_s5 }
0x17e0   : > { %10387 = vrot.lane.b32.xlu1 %v10093_v46, %s12769_s10  ;;  %v10108_v46 = vrot.slane %v16641_v30, 6 }
0x17e2   : > { %10233 = vrot.lane.b32.xlu0 %v16564_v25, %s17312_s5 }
0x17e4   : > { %10115 = vrot.lane.b32.xlu1 %v10104_v45, %s17310_s26  ;;  %v10344_v45 = vrot.slane %v16577_v6, 2 }
0x17e6   : > { %10389 = vrot.lane.b32.xlu0 %v10094_v28, %s12769_s10  ;;  %v10060_v28 = vsel %vm17823_vm6, %v16577_v6, 0 }
0x17e8   : > { %10352 = vrot.lane.b32.xlu1 %v10341_v17, %s12768_s7  ;;  %v10151_v17 = vrot.slane %v10060_v28, 4 }
0x17ea   : > { %10235 = vrot.lane.b32.xlu0 %v16577_v6, %s17312_s5 }
0x17ec   : > { %10391 = vrot.lane.b32.xlu1 %v10095_v39, %s12769_s10  ;;  %v10069_v39 = vsel %vm17825_vm2, %v16577_v6, 0  ;;  %vm17839_vm2 = vcmp.ne.s16.totalorder %v17838_v36, 0 }
0x17ed   : > { %v10063_v54 = vsel %vm17839_vm2, %v16647_v43, 0  ;;  %vm17855_vm2 = vcmp.ne.s16.totalorder %v17854_v58, 0 }
0x17ee   : > { %10117 = vrot.lane.b32.xlu0 %v10105_v13, %s17310_s26  ;;  %v10110_v13 = vrot.slane %v16647_v43, 6  ;;  %v10154_v19 = vrot.slane %v10063_v54, 4  ;;  %v12693_v54 = vld [vmem:[%s12918_s27] sm:$0xf] }
0x17f0   : > { %10119 = vrot.lane.b32.xlu1 %v10106_v14, %s17310_s26  ;;  %v10195_v14 = vrot.slane %v10069_v39, 2 }
0x17f2   : > { %10159 = vrot.lane.b32.xlu0 %v10148_v60, %s17309_s1  ;;  %v10152_v60 = vrot.slane %v10061_v51, 4 }
0x17f4   : > { %10203 = vrot.lane.b32.xlu1 %v10192_v12, %s17311_s3  ;;  %v10265_v12 = vrot.slane %v10078_v63, 6 }
0x17f6   : > { %10273 = vrot.lane.b32.xlu0 %v10262_v4, %s17329_s9  ;;  %v17832_v4 = vld [vmem:[#allocation76_spill] sm:$0xff] }
0x17f7   : > { %vm17833_vm15 = vcmp.ne.s16.totalorder %v17832_v4, 0 }
0x17f8   : > { %10356 = vrot.lane.b32.xlu1 %v10343_v62, %s12768_s7  ;;  %v10087_v10 = vsel %vm17833_vm15, %v16577_v6, 0  ;;  %v17834_v62 = vld [vmem:[#allocation73_spill] sm:$0xff] }
0x17f9   : > { %vm17835_vm14 = vcmp.ne.s16.totalorder %v17834_v62, 0  ;;  %v10309_v5 = vrot.slane %v10087_v10, 4  ;;  %v17856_v10 = vld [vmem:[#allocation123_spill] sm:$0xff] }
0x17fa   : > { %10317 = vrot.lane.b32.xlu0 %v10306_v38, %s12764_s8  ;;  %v10079_v27 = vsel %vm17835_vm14, %v16641_v30, 0 }
0x17fb   : > { %v10266_v38 = vrot.slane %v10079_v27, 6  ;;  %v17858_v27 = vld [vmem:[#allocation56_spill] sm:$0xff] }
0x17fc   : > { %10161 = vrot.lane.b32.xlu1 %v10149_v3, %s17309_s1  ;;  %v17836_v3 = vld [vmem:[#allocation77_spill] sm:$0xff] }
0x17fd   : > { %vm17837_vm6 = vcmp.ne.s16.totalorder %v17836_v3, 0  ;;  %v17860_v3 = vld [vmem:[#allocation41_spill] sm:$0xff] }
0x17fe   : > { %10354 = vrot.lane.b32.xlu0 %v10342_v42, %s12768_s7  ;;  %v10088_v31 = vsel %vm17837_vm6, %v16641_v30, 0  ;;  %vm17853_vm6 = vcmp.ne.s16.totalorder %v17852_v37, 0 }
0x17ff   : > { %v10310_v42 = vrot.slane %v10088_v31, 4  ;;  %v10089_v51 = vsel %vm17853_vm6, %v16693_v57, 0  ;;  %vm17865_vm6 = vcmp.ne.s16.totalorder %v17546_v59, 0 }
0x1800   : > { %10207 = vrot.lane.b32.xlu1 %v10194_v16, %s17311_s3  ;;  %v10347_v16 = vrot.slane %v16647_v43, 2 }
0x1802   : > { %10163 = vrot.lane.b32.xlu0 %v10150_v50, %s17309_s1 }
0x1804   : > { %10275 = vrot.lane.b32.xlu1 %v10263_v8, %s17329_s9  ;;  %v10062_v8 = vsel %vm17841_vm11, %v16693_v57, 0  ;;  %vm17857_vm11 = vcmp.ne.s16.totalorder %v17856_v10, 0 }
0x1806   : > { %10205 = vrot.lane.b32.xlu0 %v10193_v35, %s17311_s3  ;;  %v17842_v35 = vld [vmem:[#allocation39_spill] sm:$0xff] }
0x1807   : > { %vm17843_vm5 = vcmp.ne.s16.totalorder %v17842_v35, 0 }
0x1808   : > { %10319 = vrot.lane.b32.xlu1 %v10307_v40, %s12764_s8  ;;  %v10072_v2 = vsel %vm17843_vm5, %v16647_v43, 0  ;;  %v10153_v40 = vrot.slane %v10062_v8, 4  ;;  %vm17859_vm5 = vcmp.ne.s16.totalorder %v17858_v27, 0 }
0x1809   : > { %v10198_v44 = vrot.slane %v10072_v2, 2 }
0x180a   : > { %10277 = vrot.lane.b32.xlu0 %v10264_v32, %s17329_s9  ;;  %v10071_v32 = vsel %vm17845_vm1, %v16693_v57, 0  ;;  %vm17861_vm1 = vcmp.ne.s16.totalorder %v17860_v3, 0 }
0x180b   : > { %v10098_v31 = vsel %vm17861_vm1, %v16693_v57, 0  ;;  %vm17869_vm1 = vcmp.ne.s16.totalorder %v17547_v34, 0 }
0x180c   : > { %10237 = vrot.lane.b32.xlu1 %v16641_v30, %s17312_s5 }
0x180e   : > { %10321 = vrot.lane.b32.xlu0 %v10308_v61, %s12764_s8  ;;  %v10081_v61 = vsel %vm17847_vm4, %v16647_v43, 0  ;;  %vm17862_vm4 = vcmask 777216  }
0x1810   : > { %10241 = vrot.lane.b32.xlu1 %v16647_v43, %s17312_s5 }
0x1812   : > { %10121 = vrot.lane.b32.xlu0 %v10107_v26, %s17310_s26 }
0x1814   : > { %10123 = vrot.lane.b32.xlu1 %v10108_v46, %s17310_s26  ;;  %v10197_v46 = vrot.slane %v10071_v32, 2 }
0x1816   : > { %10358 = vrot.lane.b32.xlu0 %v10344_v45, %s12768_s7  ;;  %v17848_v45 = vld [vmem:[#allocation36_spill] sm:$0xff] }
0x1817   : > { %vm17849_vm15 = vcmp.ne.s16.totalorder %v17848_v45, 0 }
0x1818   : > { %10360 = vrot.lane.b32.xlu1 %v10345_v9, %s12768_s7  ;;  %v10080_v21 = vsel %vm17849_vm15, %v16693_v57, 0  ;;  %v10268_v9 = vrot.slane %v10081_v61, 6  ;;  %vm17863_vm15 = vcmask 1039360  }
0x181a   : > { %10165 = vrot.lane.b32.xlu0 %v10151_v17, %s17309_s1  ;;  %v17850_v17 = vld [vmem:[#allocation55_spill] sm:$0xff] }
0x181b   : > { %vm17851_vm14 = vcmp.ne.s16.totalorder %v17850_v17, 0 }
0x181c   : > { %10127 = vrot.lane.b32.xlu1 %v10110_v13, %s17310_s26  ;;  %v10090_v0 = vsel %vm17851_vm14, %v16647_v43, 0  ;;  %v10267_v13 = vrot.slane %v10080_v21, 6  ;;  %vm17864_vm14 = vmmov %vm17863_vm15 }
0x181d   : > { %v10312_v23 = vrot.slane %v10090_v0, 4  ;;  %v10047_v0 = vsel %vm17869_vm1, %v16492_v41, 0 }
0x181e   : > { %10209 = vrot.lane.b32.xlu0 %v10195_v14, %s17311_s3 }
0x1820   : > { %10167 = vrot.lane.b32.xlu1 %v10152_v60, %s17309_s1  ;;  %v10311_v60 = vrot.slane %v10089_v51, 4 }
0x1822   : > { %10279 = vrot.lane.b32.xlu0 %v10265_v12, %s17329_s9  ;;  %v10097_v12 = vsel %vm17855_vm2, %v16641_v30, 0  ;;  %vm17866_vm2 = vcmask 1031168  }
0x1824   : > { %10211 = vrot.lane.b32.xlu1 %v10196_v11, %s17311_s3  ;;  %v10096_v11 = vsel %vm17857_vm11, %v16577_v6, 0  ;;  %vm17867_vm11 = vcmask 1041408  }
0x1826   : > { %10323 = vrot.lane.b32.xlu0 %v10309_v5, %s12764_s8  ;;  %v10099_v5 = vsel %vm17859_vm5, %v16647_v43, 0  ;;  %vm17868_vm5 = vmmov %vm17866_vm2 }
0x1828   : > { %10281 = vrot.lane.b32.xlu1 %v10266_v38, %s17329_s9 }
0x182a   : > { %10239 = vrot.lane.b32.xlu0 %v16693_v57, %s17312_s5  ;;  %s17885_s5 = sld [smem:[#allocation19_spill]] }
0x182c   : > { %10325 = vrot.lane.b32.xlu1 %v10310_v42, %s12764_s8  ;;  %v10749_v42 = vld [vmem:[%s12928_s6] sm:$0x7] }
0x182e   : > { %10125 = vrot.lane.b32.xlu0 %v10109_v53, %s17310_s26  ;;  %v16700_v20 = vpop.permute.xlu1 %10225 }
0x1830   : > { %v16706_v50 = vpop.permute.xlu0 %10111  ;;  %10364 = vrot.lane.b32.xlu1 %v10347_v16, %s12768_s7 }
0x1832   : > { %10362 = vrot.lane.b32.xlu0 %v10346_v48, %s12768_s7  ;;  %v16714_v18 = vpop.permute.xlu1 %10227 }
0x1834   : > { %v16719_v7 = vpop.permute.xlu0 %10348  ;;  %10171 = vrot.lane.b32.xlu1 %v10154_v19, %s17309_s1 }
0x1836   : > { %10169 = vrot.lane.b32.xlu0 %v10153_v40, %s17309_s1  ;;  %v16726_v52 = vpop.permute.xlu1 %10383 }
0x1838   : > { %v16731_v26 = vpop.permute.xlu0 %10385  ;;  %10215 = vrot.lane.b32.xlu1 %v10198_v44, %s17311_s3 }
0x183a   : > { %10213 = vrot.lane.b32.xlu0 %v10197_v46, %s17311_s3  ;;  %v10156_v28 = vpop.permute.xlu1 %10155  ;;  %v10048_v46 = vsel %vm17865_vm6, %v16499_v22, 0  ;;  %s12214_s3 = sshll.u32 %s17968_s23, 5 }
0x183b   : > { %s1038_s26 = scalar_lea.vmem %s12933_s20, %s12214_s3 }
0x183c   : > { %v10114_v39 = vpop.permute.xlu0 %10113  ;;  %10285 = vrot.lane.b32.xlu1 %v10268_v9, %s17329_s9 }
0x183d   : > { %v10129_v61 = vsel %vm17864_vm14, %v16706_v50, %v10114_v39  ;;  %vm17872_vm14 = vmmov %vm17867_vm11 }
0x183e   : > { %10283 = vrot.lane.b32.xlu0 %v10267_v13, %s17329_s9  ;;  %v10314_v14 = vpop.permute.xlu1 %10313  ;;  %vm17879_vm1 = vmmov %vm17872_vm14 }
0x1840   : > { %v10200_v63 = vpop.permute.xlu0 %10199  ;;  %10329 = vrot.lane.b32.xlu1 %v10312_v23, %s12764_s8 }
0x1842   : > { %10327 = vrot.lane.b32.xlu0 %v10311_v60, %s12764_s8  ;;  %v10158_v15 = vpop.permute.xlu1 %10157 }
0x1843   : > { %v10173_v21 = vsel %vm17866_vm2, %v10156_v28, %v10158_v15  ;;  %vm17875_vm2 = vcmask 769024  }
0x1844   : > { %v10270_v4 = vpop.permute.xlu0 %10269  ;;  %10395 = vrot.lane.b32.xlu1 %v10097_v12, %s12769_s10 }
0x1846   : > { %10393 = vrot.lane.b32.xlu0 %v10096_v11, %s12769_s10  ;;  %v10272_v62 = vpop.permute.xlu1 %10271 }
0x1847   : > { %v10287_v23 = vsel %vm17875_vm2, %v10270_v4, %v10272_v62 }
0x1848   : > { %v10351_v38 = vpop.permute.xlu0 %10350  ;;  %10399 = vrot.lane.b32.xlu1 %v10099_v5, %s12769_s10 }
0x184a   : > { %10397 = vrot.lane.b32.xlu0 %v10098_v31, %s12769_s10  ;;  %v10316_v53 = vpop.permute.xlu1 %10315 }
0x184c   : > { %v10202_v16 = vpop.permute.xlu0 %10201  ;;  %10752 = vperm.xlu1 %12578, %v10749_v42   ;;  %v10401_v42 = vsel %vm8918_vm0, %v16726_v52, %v16731_v26  ;;  %v16847_v52 = vld [vmem:[%s17885_s5] sm:$0x3] }
0x184e   : > { %v16765_v36 = vpop.permute.xlu1 %10231  ;;  %10538 = vperm.xlu0 %12580, %v12693_v54  }
0x1850   : > { %v16768_v48 = vpop.permute.xlu0 %10229 }
0x1852   : > { %v16770_v43 = vpop.permute.xlu1 %10387  ;;  %12581 = vset.pattern.permute.xlu0 %v17447_v1 }
0x1854   : > { %v16773_v33 = vpop.permute.xlu0 %10233 }
0x1856   : > { %v10116_v8 = vpop.permute.xlu1 %10115 }
0x1857   : > { %v10130_v44 = vsel %vm17863_vm15, %v10114_v39, %v10116_v8  ;;  %vm17871_vm15 = vcmask 1043456   ;;  %v10411_v39 = vsel %vm17872_vm14, %v10047_v0, %v10129_v61  ;;  %vm17882_vm14 = vmmov %vm17879_vm1 }
0x1858   : > { %v16775_v19 = vpop.permute.xlu0 %10389  ;;  %v10414_v9 = vsel %vm17867_vm11, %v10048_v46, %v10130_v44  ;;  %vm17874_vm6 = vmmov %vm17871_vm15  ;;  %vm17876_vm11 = vcmask 523264  }
0x1859   : > { %v10434_v22 = vsel %vm17874_vm6, %v10411_v39, %v10173_v21  ;;  %v10331_v41 = vsel %vm17876_vm11, %v10314_v14, %v10316_v53 }
0x185a   : > { %v16777_v35 = vpop.permute.xlu1 %10352 }
0x185c   : > { %v16779_v2 = vpop.permute.xlu0 %10235 }
0x185d   : > { %v16784_v40 = vsel %vm17862_vm4, %v16773_v33, %v16779_v2  ;;  %vm17870_vm4 = vcmask 785408  }
0x185e   : > { %v16786_v24 = vpop.permute.xlu1 %10391  ;;  %v10217_v13 = vsel %vm17870_vm4, %v10200_v63, %v10202_v16  ;;  %vm17873_vm7 = vmmov %vm17870_vm4 }
0x185f   : > { %v10450_v34 = vsel %vm8967_vm12, %v10434_v22, %v10217_v13 }
0x1860   : > { %v10118_v32 = vpop.permute.xlu0 %10117 }
0x1862   : > { %v16789_v55 = vpop.permute.xlu1 %10119 }
0x1864   : > { %v10160_v45 = vpop.permute.xlu0 %10159 }
0x1865   : > { %v10174_v17 = vsel %vm17868_vm5, %v10158_v15, %v10160_v45  ;;  %vm17877_vm5 = vmmov %vm17875_vm2 }
0x1866   : > { %v10204_v37 = vpop.permute.xlu1 %10203  ;;  %v10436_v50 = vsel %vm17871_vm15, %v10414_v9, %v10174_v17  ;;  %vm17881_vm15 = vmmov %vm17874_vm6  ;;  %v10049_v9 = vsel %vm8339_vm9, %v16553_v56, 0 }
0x1867   : > { %v10218_v59 = vsel %vm17873_vm7, %v10202_v16, %v10204_v37  ;;  %vm17878_vm7 = vcmask 777216   ;;  %vm17883_vm6 = vmmov %vm17876_vm11 }
0x1868   : > { %v10274_v28 = vpop.permute.xlu0 %10273  ;;  %v10453_v51 = vsel %vm8967_vm12, %v10436_v50, %v10218_v59  ;;  %v10243_v15 = vsel %vm17878_vm7, %v16700_v20, %v16714_v18  ;;  %vm17880_vm4 = vmmov %vm17878_vm7  ;;  %v10366_v20 = vsel %vm8882_vm13, %v16719_v7, %v10351_v38  ;;  %vm17888_vm7 = vcmask 1039360  }
0x1869   : > { %10568 = vmatprep.subr.bf16.mxu0 %v10453_v51  ;;  %v10288_v63 = vsel %vm17877_vm5, %v10272_v62, %v10274_v28  ;;  %v10475_v58 = vsel %vm17879_vm1, %v10243_v15, %v10287_v23  ;;  %v10244_v12 = vsel %vm17880_vm4, %v16714_v18, %v16768_v48  ;;  %v10367_v62 = vsel %vm8882_vm13, %v10351_v38, %v16777_v35  ;;  %vm17884_vm2 = vmmov %vm17881_vm15 }
0x186a   : > { %10569 = vmatpush1.bf16.msra.mxu0 %v10450_v34  ;;  %v16812_v60 = vpop.permute.xlu1 %10356  ;;  %v10498_v10 = vsel %vm17881_vm15, %v10475_v58, %v10331_v41  ;;  %v10478_v14 = vsel %vm17882_vm14, %v10244_v12, %v10288_v63  ;;  %vm17886_vm11 = vmmov %vm17879_vm1  ;;  %v10131_v54 = vsel %vm17888_vm7, %v10116_v8, %v10118_v32  ;;  %vm17890_vm4 = vcmask 1031168  }
0x186b   : > { %v10514_v31 = vsel %vm8967_vm12, %v10498_v10, %v10366_v20  ;;  %vm17887_vm5 = vmmov %vm17879_vm1  ;;  %v10050_v8 = vsel %vm8340_vm8, %v16550_v49, 0  ;;  %vm17899_vm8 = vcmask 769024   ;;  %v10404_v20 = vsel %vm8918_vm0, %v16775_v19, %v16786_v24 }
0x186c   : > { %v10318_v4 = vpop.permute.xlu0 %10317  ;;  %v10545_v7 = vsel %vm17887_vm5, %v10401_v42, 0  ;;  %vm17889_vm1 = vmmov %vm17888_vm7  ;;  %vm17900_vm7 = vcmask 523264  }
0x186d   : > { %v10332_v11 = vsel %vm17883_vm6, %v10316_v53, %v10318_v4  ;;  %v10402_v53 = vsel %vm8918_vm0, %v16731_v26, %v16770_v43  ;;  %v10132_v44 = vsel %vm17889_vm1, %v10118_v32, %v16789_v55  ;;  %vm17891_vm15 = vmmov %vm17890_vm4 }
0x186e   : > { %v10162_v27 = vpop.permute.xlu1 %10161  ;;  %v10500_v5 = vsel %vm17884_vm2, %v10478_v14, %v10332_v11  ;;  %vm17894_vm14 = vmmov %vm17887_vm5 }
0x186f   : > { %v10517_v3 = vsel %vm8967_vm12, %v10500_v5, %v10367_v62  ;;  %v10175_v61 = vsel %vm17890_vm4, %v10160_v45, %v10162_v27  ;;  %v10417_v0 = vsel %vm17894_vm14, %v10049_v9, %v10131_v54  ;;  %vm17895_vm6 = vmmov %vm17887_vm5  ;;  %vm17902_vm4 = vcmask 777216   ;;  %v17917_v9 = vld [vmem:[#allocation24_spill] sm:$0xff] }
0x1870   : > { %v10355_v18 = vpop.permute.xlu0 %10354  ;;  %10570 = vmatprep.subr.bf16.mxu0 %v10517_v3  ;;  %v10420_v32 = vsel %vm17895_vm6, %v10050_v8, %v10132_v44  ;;  %v10438_v45 = vsel %vm17884_vm2, %v10417_v0, %v10175_v61  ;;  %vm17898_vm9 = vmmov %vm17884_vm2  ;;  %v10245_v63 = vsel %vm17902_vm4, %v16768_v48, %v16765_v36  ;;  %v10403_v5 = vsel %vm8918_vm0, %v16770_v43, %v16775_v19 }
0x1871   : > { %10571 = vmatpush1.bf16.msra.mxu0 %v10514_v31  ;;  %vm17901_vm1 = vmmov %vm17899_vm8  ;;  %v10369_v14 = vsel %vm8882_vm13, %v10355_v18, %v16812_v60  ;;  %v10368_v62 = vsel %vm8882_vm13, %v16777_v35, %v10355_v18 }
0x1872   : > { %12191 = vmatprep.subr.msk.bf16.mxu0 %vm17886_vm11, %v10402_v53  ;;  %v16838_v16 = vpop.permute.xlu1 %10207  ;;  %vm17896_vm11 = vcmask 785408   ;;  %vm17904_vm14 = vmmov %vm17895_vm6 }
0x1873   : > { %vm17897_vm5 = vmmov %vm17896_vm11 }
0x1874   : > { %v16841_v38 = vpop.permute.xlu0 %10163  ;;  %vm17905_vm6 = vmmov %vm17884_vm2 }
0x1875   : > { %10573 = vmatpush1.bf16.msra.mxu0 %v10545_v7  ;;  %v10176_v26 = vsel %vm17891_vm15, %v10162_v27, %v16841_v38  ;;  %vm17903_vm15 = vmmov %vm17902_vm4  ;;  %vm17913_vm4 = vcmask 1031168  }
0x1876   : > { %v10276_v46 = vpop.permute.xlu1 %10275  ;;  %v10440_v56 = vsel %vm17898_vm9, %v10420_v32, %v10176_v26  ;;  %v10246_v15 = vsel %vm17903_vm15, %v16765_v36, %v16773_v33  ;;  %vm17906_vm2 = vmmov %vm17904_vm14  ;;  %v17914_v26 = vld [vmem:[#allocation25_spill] sm:$0xff] }
0x1877   : > { %v10289_v23 = vsel %vm17899_vm8, %v10274_v28, %v10276_v46  ;;  %vm17909_vm9 = vmmov %vm17906_vm2  ;;  %vm17915_vm15 = vcmp.ne.s16.totalorder %v17914_v26, 0 }
0x1878   : > { %v10206_v13 = vpop.permute.xlu0 %10205  ;;  %12192 = vmatmul.mubr.msk.bf16.vlgmr.msra.gmra.mrb[124].mxu0 %vm9591_vm10, %v16847_v52  ;;  %v10481_v58 = vsel %vm17904_vm14, %v10245_v63, %v10289_v23  ;;  %vm17910_vm8 = vmmov %vm17906_vm2 }
0x1879   : > { %v10219_v50 = vsel %vm17896_vm11, %v10204_v37, %v10206_v13  ;;  %v10220_v39 = vsel %vm17897_vm5, %v10206_v13, %v16838_v16  ;;  %10682 = vmatprep.mubr.bf16.mxu0 %v17447_v1  ;;  %vm17907_vm11 = vmmov %vm17900_vm7  ;;  %v10551_v35 = vsel %vm17910_vm8, %v10403_v5, 0  ;;  %vm17922_vm8 = vcmask 1043456  }
0x187a   : > { %v10320_v49 = vpop.permute.xlu1 %10319  ;;  %v10459_v59 = vsel %vm8967_vm12, %v10440_v56, %v10220_v39  ;;  %v10456_v22 = vsel %vm8967_vm12, %v10438_v45, %v10219_v50  ;;  %vm17908_vm5 = vmmov %vm17905_vm6 }
0x187b   : > { %10609 = vmatprep.subr.bf16.mxu1 %v10459_v59  ;;  %v10333_v34 = vsel %vm17900_vm7, %v10318_v4, %v10320_v49  ;;  %vm17911_vm7 = vcmask 1039360   ;;  %vm17916_vm14 = vmmov %vm17913_vm4 }
0x187c   : > { %v10278_v51 = vpop.permute.xlu0 %10277  ;;  %10610 = vmatpush1.bf16.msra.mxu1 %v10456_v22  ;;  %v10502_v10 = vsel %vm17905_vm6, %v10481_v58, %v10333_v34  ;;  %vm17918_vm6 = vcmp.ne.s16.totalorder %v17917_v9, 0 }
0x187d   : > { %v10290_v37 = vsel %vm17901_vm1, %v10276_v46, %v10278_v51  ;;  %v10520_v27 = vsel %vm8967_vm12, %v10502_v10, %v10368_v62  ;;  %vm17912_vm1 = vmmov %vm17911_vm7  ;;  %v10052_v46 = vsel %vm17915_vm15, %v16577_v6, 0  ;;  %v10051_v17 = vsel %vm17918_vm6, %v16564_v25, 0 }
0x187e   : > { %v16873_v41 = vpop.permute.xlu1 %10237  ;;  %v10484_v28 = vsel %vm17906_vm2, %v10246_v15, %v10290_v37  ;;  %vm17928_vm6 = vmmov %vm17906_vm2 }
0x1880   : > { %v10322_v12 = vpop.permute.xlu0 %10321 }
0x1881   : > { %v10334_v4 = vsel %vm17907_vm11, %v10320_v49, %v10322_v12  ;;  %vm17919_vm11 = vcmask 785408  }
0x1882   : > { %v16887_v11 = vpop.permute.xlu1 %10241  ;;  %v10504_v48 = vsel %vm17908_vm5, %v10484_v28, %v10334_v4  ;;  %vm17920_vm5 = vmmov %vm17906_vm2 }
0x1883   : > { %v10523_v36 = vsel %vm8967_vm12, %v10504_v48, %v10369_v14 }
0x1884   : > { %v10122_v33 = vpop.permute.xlu0 %10121  ;;  %10611 = vmatprep.subr.bf16.mxu1 %v10523_v36 }
0x1885   : > { %10612 = vmatpush1.bf16.msra.mxu1 %v10520_v27  ;;  %v10133_v54 = vsel %vm17912_vm1, %v16789_v55, %v10122_v33  ;;  %vm17924_vm1 = vcmask 769024  }
0x1886   : > { %12193 = vmatprep.subr.msk.bf16.mxu1 %vm17909_vm9, %v10404_v20  ;;  %v10124_v3 = vpop.permute.xlu1 %10123  ;;  %v10423_v32 = vsel %vm17920_vm5, %v10051_v17, %v10133_v54  ;;  %vm17921_vm9 = vmmov %vm17919_vm11 }
0x1887   : > { %v10134_v19 = vsel %vm17911_vm7, %v10122_v33, %v10124_v3  ;;  %vm17923_vm7 = vmmov %vm17922_vm8 }
0x1888   : > { %v10359_v18 = vpop.permute.xlu0 %10358  ;;  %v10426_v8 = vsel %vm17906_vm2, %v10052_v46, %v10134_v19  ;;  %vm17926_vm15 = vmmov %vm17924_vm1 }
0x1889   : > { %10614 = vmatpush1.bf16.msra.mxu1 %v10551_v35  ;;  %vm17929_vm2 = vmmov %vm17923_vm7  ;;  %v10370_v10 = vsel %vm8882_vm13, %v16812_v60, %v10359_v18  ;;  %v10053_v60 = vsel %vm8343_vm3, %v16641_v30, 0  ;;  %vm17942_vm3 = vcmask 769024  }
0x188a   : > { %v16902_v31 = vpop.permute.xlu1 %10360 }
0x188c   : > { %v10166_v42 = vpop.permute.xlu0 %10165  ;;  %12194 = vmatmul.mubr.msk.bf16.vlgmr.msra.gmra.mrb[96].mxu1 %vm9591_vm10, %v16847_v52 }
0x188d   : > { %10723 = vmatprep.mubr.bf16.mxu1 %v17447_v1  ;;  %v10177_v21 = vsel %vm17916_vm14, %v16841_v38, %v10166_v42  ;;  %vm17927_vm14 = vcmask 777216  }
0x188e   : > { %v10128_v43 = vpop.permute.xlu1 %10127  ;;  %v10442_v6 = vsel %vm17923_vm7, %v10423_v32, %v10177_v21  ;;  %v10248_v22 = vsel %vm17927_vm14, %v16779_v2, %v16873_v41  ;;  %vm17938_vm14 = vmmov %vm17928_vm6 }
0x1890   : > { %v10210_v53 = vpop.permute.xlu0 %10209 }
0x1891   : > { %v10221_v0 = vsel %vm17919_vm11, %v16838_v16, %v10210_v53  ;;  %vm17930_vm11 = vmmov %vm17920_vm5 }
0x1892   : > { %v10168_v7 = vpop.permute.xlu1 %10167  ;;  %v10462_v25 = vsel %vm8967_vm12, %v10442_v6, %v10221_v0 }
0x1893   : > { %v10178_v44 = vsel %vm17913_vm4, %v10166_v42, %v10168_v7  ;;  %vm17925_vm4 = vcmask 523264  }
0x1894   : > { %v10280_v61 = vpop.permute.xlu0 %10279  ;;  %v10444_v45 = vsel %vm17922_vm8, %v10426_v8, %v10178_v44  ;;  %vm17931_vm5 = vmmov %vm17925_vm4  ;;  %vm17933_vm8 = vcmask 1039360  }
0x1895   : > { %v10291_v56 = vsel %vm17924_vm1, %v10278_v51, %v10280_v61  ;;  %v10371_v51 = vsel %vm8882_vm13, %v10359_v18, %v16902_v31  ;;  %vm17934_vm7 = vmmov %vm17933_vm8  ;;  %vm17935_vm1 = vcmask 1031168  }
0x1896   : > { %v10212_v55 = vpop.permute.xlu1 %10211  ;;  %v10487_v23 = vsel %vm17928_vm6, %v16784_v40, %v10291_v56 }
0x1897   : > { %v10222_v13 = vsel %vm17921_vm9, %v10210_v53, %v10212_v55  ;;  %vm17932_vm9 = vmmov %vm17929_vm2 }
0x1898   : > { %v10324_v50 = vpop.permute.xlu0 %10323  ;;  %v10465_v38 = vsel %vm8967_vm12, %v10444_v45, %v10222_v13 }
0x1899   : > { %10650 = vmatprep.subr.bf16.mxu0 %v10465_v38  ;;  %v10335_v16 = vsel %vm17925_vm4, %v10322_v12, %v10324_v50  ;;  %vm17936_vm4 = vmmov %vm17935_vm1 }
0x189a   : > { %10651 = vmatpush1.bf16.msra.mxu0 %v10462_v25  ;;  %v10282_v39 = vpop.permute.xlu1 %10281  ;;  %v10506_v37 = vsel %vm17929_vm2, %v10487_v23, %v10335_v16 }
0x189b   : > { %v10292_v49 = vsel %vm17926_vm15, %v10280_v61, %v10282_v39  ;;  %v10526_v28 = vsel %vm8967_vm12, %v10506_v37, %v10370_v10  ;;  %vm17937_vm15 = vcmp.ne.s16.totalorder %v17661_v29, 0 }
0x189c   : > { %v10240_v59 = vpop.permute.xlu0 %10239  ;;  %v10490_v63 = vsel %vm17930_vm11, %v10248_v22, %v10292_v49  ;;  %v10054_v20 = vsel %vm17937_vm15, %v16693_v57, 0  ;;  %vm17939_vm11 = vcmask 785408  }
0x189e   : > { %v10326_v34 = vpop.permute.xlu1 %10325 }
0x189f   : > { %v10336_v15 = vsel %vm17931_vm5, %v10324_v50, %v10326_v34  ;;  %vm17940_vm5 = vmmov %vm17939_vm11 }
0x18a0   : > { %v10126_v58 = vpop.permute.xlu0 %10125  ;;  %v10508_v12 = vsel %vm17932_vm9, %v10490_v63, %v10336_v15  ;;  %vm17941_vm9 = vmmov %vm17929_vm2 }
0x18a1   : > { %v10529_v2 = vsel %vm8967_vm12, %v10508_v12, %v10371_v51  ;;  %v10135_v62 = vsel %vm17933_vm8, %v10124_v3, %v10126_v58  ;;  %v10136_v36 = vsel %vm17934_vm7, %v10126_v58, %v10128_v43  ;;  %vm17943_vm8 = vmmov %vm17942_vm3  ;;  %vm17944_vm7 = vcmask 777216  }
0x18a2   : > { %10652 = vmatprep.subr.bf16.mxu0 %v10529_v2  ;;  %v10365_v40 = vpop.permute.xlu1 %10364  ;;  %v10429_v35 = vsel %vm17938_vm14, %v10053_v60, %v10135_v62  ;;  %v10432_v18 = vsel %vm17928_vm6, %v10054_v20, %v10136_v36  ;;  %v10249_v61 = vsel %vm17944_vm7, %v16873_v41, %v10240_v59  ;;  %vm17948_vm14 = vcmask 523264  }
0x18a3   : > { %10653 = vmatpush1.bf16.msra.mxu0 %v10526_v28 }
0x18a4   : > { %v10363_v4 = vpop.permute.xlu0 %10362 }
0x18a5   : > { %v10372_v0 = vsel %vm8882_vm13, %v16902_v31, %v10363_v4 }
0x18a6   : > { %v10172_v14 = vpop.permute.xlu1 %10171 }
0x18a8   : > { %v10170_v48 = vpop.permute.xlu0 %10169 }
0x18a9   : > { %v10179_v33 = vsel %vm17935_vm1, %v10168_v7, %v10170_v48  ;;  %v10180_v27 = vsel %vm17936_vm4, %v10170_v48, %v10172_v14  ;;  %vm17945_vm1 = vmmov %vm17944_vm7 }
0x18aa   : > { %v10216_v5 = vpop.permute.xlu1 %10215  ;;  %v10446_v42 = vsel %vm17929_vm2, %v10429_v35, %v10179_v33  ;;  %v10448_v7 = vsel %vm17941_vm9, %v10432_v18, %v10180_v27  ;;  %v10250_v26 = vsel %vm17945_vm1, %v10240_v59, %v16887_v11  ;;  %vm17946_vm4 = vmmov %vm17928_vm6 }
0x18ab   : > { %vm17947_vm15 = vmmov %vm17946_vm4 }
0x18ac   : > { %v10214_v3 = vpop.permute.xlu0 %10213  ;;  %vm17949_vm6 = vmmov %vm17948_vm14 }
0x18ad   : > { %v10223_v43 = vsel %vm17939_vm11, %v10212_v55, %v10214_v3  ;;  %v10224_v53 = vsel %vm17940_vm5, %v10214_v3, %v10216_v5  ;;  %v10373_v55 = vsel %vm8882_vm13, %v10363_v4, %v10365_v40  ;;  %vm17950_vm11 = vmmov %vm17929_vm2 }
0x18ae   : > { %v10286_v19 = vpop.permute.xlu1 %10285  ;;  %v10471_v47 = vsel %vm8967_vm12, %v10448_v7, %v10224_v53  ;;  %v10468_v30 = vsel %vm8967_vm12, %v10446_v42, %v10223_v43  ;;  %vm17951_vm5 = vmmov %vm17946_vm4 }
0x18af   : > { %10691 = vmatprep.subr.bf16.mxu1 %v10471_v47  ;;  %vm17952_vm13 = vmmov %vm17946_vm4 }
0x18b0   : > { %v10284_v29 = vpop.permute.xlu0 %10283  ;;  %10692 = vmatpush1.bf16.msra.mxu1 %v10468_v30  ;;  %vm17954_vm9 = vmmov %vm17946_vm4 }
0x18b1   : > { %v10293_v57 = vsel %vm17942_vm3, %v10282_v39, %v10284_v29  ;;  %v10294_v54 = vsel %vm17943_vm8, %v10284_v29, %v10286_v19 }
0x18b2   : > { %v10330_v44 = vpop.permute.xlu1 %10329  ;;  %v10493_v21 = vsel %vm17946_vm4, %v10249_v61, %v10293_v57  ;;  %v10496_v9 = vsel %vm17947_vm15, %v10250_v26, %v10294_v54 }
0x18b4   : > { %v10328_v46 = vpop.permute.xlu0 %10327 }
0x18b5   : > { %v10337_v17 = vsel %vm17948_vm14, %v10326_v34, %v10328_v46  ;;  %v10338_v8 = vsel %vm17949_vm6, %v10328_v46, %v10330_v44 }
0x18b6   : > { %v10510_v32 = vsel %vm17929_vm2, %v10493_v21, %v10337_v17  ;;  %v10396_v41 = vpop.permute.xlu1 %10395  ;;  %v10512_v13 = vsel %vm17950_vm11, %v10496_v9, %v10338_v8 }
0x18b7   : > { %v10535_v11 = vsel %vm8967_vm12, %v10512_v13, %v10373_v55  ;;  %v10532_v45 = vsel %vm8967_vm12, %v10510_v32, %v10372_v0  ;;  %vm17953_vm12 = vmmov %vm17946_vm4 }
0x18b8   : > { %v10394_v6 = vpop.permute.xlu0 %10393  ;;  %10693 = vmatprep.subr.bf16.mxu1 %v10535_v11 }
0x18b9   : > { %v10405_v50 = vsel %vm8918_vm0, %v16786_v24, %v10394_v6  ;;  %v10406_v38 = vsel %vm8918_vm0, %v10394_v6, %v10396_v41  ;;  %10694 = vmatpush1.bf16.msra.mxu1 %v10532_v45 }
0x18ba   : > { %v10557_v31 = vsel %vm17951_vm5, %v10405_v50, 0  ;;  %12195 = vmatprep.subr.msk.bf16.mxu0 %vm17952_vm13, %v10406_v38  ;;  %v10400_v25 = vpop.permute.xlu1 %10399 }
0x18bb   : > { %10655 = vmatpush1.bf16.msra.mxu0 %v10557_v31 }
0x18bc   : > { %v10398_v39 = vpop.permute.xlu0 %10397 }
0x18bd   : > { %v10407_v56 = vsel %vm8918_vm0, %v10396_v41, %v10398_v39  ;;  %v10408_v16 = vsel %vm8918_vm0, %v10398_v39, %v10400_v25  ;;  %vm17955_vm0 = vmmov %vm17946_vm4 }
0x18be   : > { %v10563_v49 = vsel %vm17953_vm12, %v10407_v56, 0  ;;  %12196 = vmatmul.mubr.msk.bf16.vlgmr.msra.gmra.mrb[128].mxu0 %vm9591_vm10, %v16847_v52  ;;  %12197 = vmatprep.subr.msk.bf16.mxu1 %vm17954_vm9, %v10408_v16  ;;  %vm17956_vm3 = vmmov %vm17955_vm0 }
0x18bf   : > { %10696 = vmatpush1.bf16.msra.mxu1 %v10563_v49  ;;  %10814 = vmatprep.mubr.bf16.mxu0 %v17447_v1  ;;  %vm17958_vm8 = vmmov %vm17955_vm0 }
0x18c0   : > { %vm17959_vm7 = vmmov %vm17955_vm0 }
0x18c1   : > { %vm17961_vm4 = vmmov %vm17955_vm0 }
0x18c2   : > { %12198 = vmatmul.mubr.msk.bf16.vlgmr.msra.gmra.mrb[100].mxu1 %vm9591_vm10, %v16847_v52  ;;  %v10748_v52 = vld [vmem:[%s12923_s4] sm:$0x3]  ;;  %vm17957_vm10 = vcmask 31744   ;;  %vm17962_vm15 = vmmov %vm17955_vm0 }
0x18c3   : > { %10855 = vmatprep.mubr.bf16.mxu1 %v17447_v1  ;;  %vm17960_vm1 = vmmov %vm17957_vm10 }
0x18c4   : > { %vm17963_vm14 = vmmov %vm17955_vm0 }
0x18c5   : > { %vm17964_vm6 = vmmov %vm17960_vm1 }
0x18c6   : > { %vm17965_vm2 = vmmov %vm17955_vm0 }
0x18c7   : > { %vm17966_vm11 = vmmov %vm17960_vm1 }
0x18cb   : > { %v10753_v17 = vpop.permute.xlu1 %10752 }
0x18cd   : > { %v10539_v24 = vpop.permute.xlu0 %10538 }
0x194b   : > { %v10602_v59 = vpop.f32.mrb[124].mxu0 }
0x194c   : > { %v10604_v22 = vpop.f32.mrb[125].mxu0  ;;  %v10603_v23 = vadd.f32 %v10602_v59, %v10539_v24 }
0x194d   : > { %v10605_v34 = vadd.f32 %v10604_v22, %v10539_v24  ;;  %v10606_v37 = vpop.f32.mrb[126].mxu0 }
0x194e   : > { %v10732_v63 = vmax.f32 %v10603_v23, 0.0  ;;  %v10607_v15 = vpop.f32.mrb[127].mxu0 }
0x194f   : > { %v10733_v51 = vmax.f32 %v10605_v34, 0.0 }
0x1950   : > { %v10740_v58 = vpack.c.bf16 %v10732_v63, %v10732_v63 }
0x1951   : > { %v10741_v12 = vpack.c.bf16 %v10733_v51, %v10733_v51 }
0x1952   : > { %v10759_v10 = vsel %vm17955_vm0, %v10740_v58, 0 }
0x1953   : > { %12199 = vmatprep.subr.msk.bf16.mxu0 %vm17956_vm3, %v10741_v12 }
0x1954   : > { %10783 = vmatpush1.bf16.msra.mxu0 %v10759_v10 }
0x1957   : > { %12200 = vmatmul.mubr.msk.bf16.vlgmr.msra.gmra.mrb[132].mxu0 %vm17957_vm10, %v10748_v52 }
0x1958   : > { %10896 = vmatprep.mubr.bf16.mxu0 %v17447_v1 }
0x195f   : > { %v10643_v2 = vpop.f32.mrb[96].mxu1 }
0x1960   : > { %v10644_v40 = vadd.f32 %v10643_v2, %v10539_v24  ;;  %v10645_v28 = vpop.f32.mrb[97].mxu1 }
0x1961   : > { %v10646_v4 = vadd.f32 %v10645_v28, %v10539_v24  ;;  %v10647_v14 = vpop.f32.mrb[98].mxu1 }
0x1962   : > { %v10734_v48 = vmax.f32 %v10644_v40, 0.0  ;;  %v10648_v62 = vpop.f32.mrb[99].mxu1 }
0x1963   : > { %v10735_v36 = vmax.f32 %v10646_v4, 0.0 }
0x1964   : > { %v10742_v33 = vpack.c.bf16 %v10734_v48, %v10734_v48 }
0x1965   : > { %v10743_v27 = vpack.c.bf16 %v10735_v36, %v10735_v36 }
0x1966   : > { %v10765_v5 = vsel %vm17958_vm8, %v10742_v33, 0 }
0x1967   : > { %12201 = vmatprep.subr.msk.bf16.mxu1 %vm17959_vm7, %v10743_v27 }
0x1968   : > { %10824 = vmatpush1.bf16.msra.mxu1 %v10765_v5 }
0x196b   : > { %12202 = vmatmul.mubr.msk.bf16.vlgmr.msra.gmra.mrb[104].mxu1 %vm17960_vm1, %v10748_v52 }
0x196c   : > { %10937 = vmatprep.mubr.bf16.mxu1 %v17447_v1 }
0x1991   : > { %v10684_v60 = vpop.f32.mrb[128].mxu0 }
0x1992   : > { %v10685_v20 = vadd.f32 %v10684_v60, %v10539_v24  ;;  %v10686_v35 = vpop.f32.mrb[129].mxu0 }
0x1993   : > { %v10687_v18 = vadd.f32 %v10686_v35, %v10539_v24  ;;  %v10688_v3 = vpop.f32.mrb[130].mxu0 }
0x1994   : > { %v10736_v42 = vmax.f32 %v10685_v20, 0.0  ;;  %v10689_v43 = vpop.f32.mrb[131].mxu0 }
0x1995   : > { %v10737_v53 = vmax.f32 %v10687_v18, 0.0  ;;  %v10725_v7 = vpop.f32.mrb[100].mxu1 }
0x1996   : > { %v10744_v19 = vpack.c.bf16 %v10736_v42, %v10736_v42  ;;  %v10726_v47 = vadd.f32 %v10725_v7, %v10539_v24  ;;  %v10727_v30 = vpop.f32.mrb[101].mxu1 }
0x1997   : > { %v10745_v29 = vpack.c.bf16 %v10737_v53, %v10737_v53  ;;  %v10728_v57 = vadd.f32 %v10727_v30, %v10539_v24  ;;  %v10729_v54 = vpop.f32.mrb[102].mxu1 }
0x1998   : > { %v10738_v44 = vmax.f32 %v10726_v47, 0.0  ;;  %v10730_v61 = vpop.f32.mrb[103].mxu1  ;;  %v10771_v1 = vsel %vm17961_vm4, %v10744_v19, 0 }
0x1999   : > { %v10739_v26 = vmax.f32 %v10728_v57, 0.0  ;;  %12203 = vmatprep.subr.msk.bf16.mxu0 %vm17962_vm15, %v10745_v29 }
0x199a   : > { %v10746_v46 = vpack.c.bf16 %v10738_v44, %v10738_v44  ;;  %10865 = vmatpush1.bf16.msra.mxu0 %v10771_v1 }
0x199b   : > { %v10747_v21 = vpack.c.bf16 %v10739_v26, %v10739_v26 }
0x199c   : > { %v10777_v9 = vsel %vm17963_vm14, %v10746_v46, 0 }
0x199d   : > { %12204 = vmatmul.mubr.msk.bf16.vlgmr.msra.gmra.mrb[136].mxu0 %vm17964_vm6, %v10748_v52  ;;  %12205 = vmatprep.subr.msk.bf16.mxu1 %vm17965_vm2, %v10747_v21 }
0x199e   : > { %10906 = vmatpush1.bf16.msra.mxu1 %v10777_v9 }
0x19a1   : > { %12206 = vmatmul.mubr.msk.bf16.vlgmr.msra.gmra.mrb[108].mxu1 %vm17966_vm11, %v10748_v52 }
0x1a2a   : > { %v10816_v8 = vpop.f32.mrb[132].mxu0 }
0x1a2b   : > { %v10817_v0 = vadd.f32 %v10816_v8, %v10753_v17  ;;  %v10818_v55 = vpop.f32.mrb[133].mxu0 }
0x1a2c   : > { %v10819_v32 = vadd.f32 %v10818_v55, %v10753_v17  ;;  %v10820_v41 = vpop.f32.mrb[134].mxu0 }
0x1a2d   : > { %v10821_v13 = vpop.f32.mrb[135].mxu0 }
0x1a2e   : > { %v10954_v11 = vcombine.low %v10817_v0, %v10819_v32 }
0x1a30   : > { %10962 = vst [vmem:[%s1038_s26] sm:$0x77] %v10954_v11 }
0x1a3e   : > { %v10857_v45 = vpop.f32.mrb[104].mxu1 }
0x1a3f   : > { %v10858_v6 = vadd.f32 %v10857_v45, %v10753_v17  ;;  %v10859_v50 = vpop.f32.mrb[105].mxu1 }
0x1a40   : > { %v10860_v38 = vadd.f32 %v10859_v50, %v10753_v17  ;;  %v10861_v31 = vpop.f32.mrb[106].mxu1 }
0x1a41   : > { %v10862_v25 = vpop.f32.mrb[107].mxu1 }
0x1a42   : > { %v10955_v39 = vcombine.low %v10858_v6, %v10860_v38 }
0x1a44   : > { %10963 = vst [vmem:[%s1038_s26 + $0x8] sm:$0x77] %v10955_v39 }
0x1a70   : > { %v10898_v56 = vpop.f32.mrb[136].mxu0 }
0x1a71   : > { %v10899_v16 = vadd.f32 %v10898_v56, %v10753_v17  ;;  %v10900_v49 = vpop.f32.mrb[137].mxu0 }
0x1a72   : > { %v10901_v24 = vadd.f32 %v10900_v49, %v10753_v17  ;;  %v10902_v59 = vpop.f32.mrb[138].mxu0 }
0x1a73   : > { %v10903_v22 = vpop.f32.mrb[139].mxu0 }
0x1a74   : > { %v10956_v23 = vcombine.low %v10899_v16, %v10901_v24  ;;  %v10939_v34 = vpop.f32.mrb[108].mxu1 }
0x1a75   : > { %v10940_v37 = vadd.f32 %v10939_v34, %v10753_v17  ;;  %v10941_v63 = vpop.f32.mrb[109].mxu1 }
0x1a76   : > { %10964 = vst [vmem:[%s1038_s26 + $0x10] sm:$0x77] %v10956_v23  ;;  %v10942_v15 = vadd.f32 %v10941_v63, %v10753_v17  ;;  %v10943_v51 = vpop.f32.mrb[110].mxu1 }
0x1a77   : > { %v10944_v58 = vpop.f32.mrb[111].mxu1 }
0x1a78   : > { %v10957_v12 = vcombine.low %v10940_v37, %v10942_v15 }
0x1a7a   : > { %10965 = vst [vmem:[%s1038_s26 + $0x18] sm:$0x77] %v10957_v12 }
0x1a7b PF: > { %s73_s22 = sadd.s32 1, %s12700_s22  }
0x1a7c   : > { %p70_p4 = scmp.ge.s32.totalorder %s73_s22, 4  }
0x1a7e   :  { %72 = sbr.rel (!%p70_p4) target bundleno = 54 (0x36), region = 229 }

</bundles_post_ra>
